<compile_context>
chip_gen: v7x
topology: tpu7x:2x2x1
jax: 0.10.0
libtpu: 0.0.40
codegen_flags: <defaults>
</compile_context>

<pallas_src>
import math

import jax
import jax.numpy as jnp
from jax import lax
from jax.experimental import pallas as pl
from jax.experimental.pallas import tpu as pltpu

EPS = 1e-5      # PyTorch BatchNorm1d default eps
C_EFF = 128     # every channel dim padded to 128 lanes inside the kernel
OFF = 16        # left halo offset: sublane-aligned for f32 (8) and packed bf16 (16)
                # (only needs >= 3; right halo only needs >= 4)

MXU_LAYERS = (('c1y', 5), ('c1z', 3), ('c2x', 8), ('c2y', 5), ('c2z', 3),
              ('c2sy', 1), ('c3x', 8), ('c3y', 5), ('c3z', 3))
BN_LAYERS = ('c1x', 'c1sy', 'c1y', 'c1z', 'c2x', 'c2y', 'c2z', 'c2sy',
             'c3x', 'c3y', 'c3z', 'bn3sy')


# ---------------------------------------------------------------------------
# Hardware gating: how many TensorCores does one device's "parallel" axis span?
# ---------------------------------------------------------------------------
def _tensorcores_per_device():
    try:
        info = pltpu.get_tpu_info()
        for attr in ("num_cores_per_chip", "tensorcores_per_chip",
                     "cores_per_chip", "num_tensorcores"):
            v = getattr(info, attr, None)
            if isinstance(v, int) and 1 <= v <= 4:
                return v
    except Exception:
        pass
    try:
        kind = jax.devices()[0].device_kind.lower()
        if any(t in kind for t in ("v7", "7x", "v4", "v5p")):
            return 2
    except Exception:
        pass
    return 1


# ---------------------------------------------------------------------------
# Host-side parameter packing: two slabs, static offsets
# ---------------------------------------------------------------------------
def _pack_params(P):
    C = C_EFF

    # --- bf16 MXU weight slab: [sum(K)*128, 128], tap-major per layer ---
    w_parts, w_off, off = [], {}, 0
    for name, k in MXU_LAYERS:
        w = P[name]['w']                                   # [Cout, Cin, K]
        cout, cin, kk = w.shape
        wt = jnp.transpose(w, (2, 1, 0)).astype(jnp.float32)   # [K, Cin, Cout]
        wt = jnp.pad(wt, ((0, 0), (0, C - cin), (0, C - cout)))
        w_parts.append(wt.reshape(kk * C, C))
        w_off[name] = off
        off += kk
    w_slab = jnp.concatenate(w_parts, axis=0).astype(jnp.bfloat16)

    # --- f32 param slab: rank-1 conv weights + gamma/beta rows (no conv bias:
    #     it is cancelled exactly by training-mode BN's mean subtraction) ---
    rows, p_off = [], {}

    def pad_row(v):
        v = v.astype(jnp.float32)
        return jnp.pad(v, (0, C - v.shape[0]))

    for name in ('c1x', 'c1sy'):                           # Cin == 1 VPU convs
        w = P[name]['w']                                   # [Cout, 1, K]
        p_off[name + '_w'] = len(rows)
        for t in range(w.shape[-1]):
            rows.append(pad_row(w[:, 0, t]))
    for name in BN_LAYERS:
        p_off[name + '_gb'] = len(rows)
        rows.append(pad_row(P[name]['gamma']))
        rows.append(pad_row(P[name]['beta']))
    while len(rows) % 8:
        rows.append(jnp.zeros((C,), jnp.float32))
    p_slab = jnp.stack(rows, axis=0)
    return w_slab, p_slab, w_off, p_off


# ---------------------------------------------------------------------------
# Fused backbone kernel (G inputs per grid step)
# ---------------------------------------------------------------------------
def _make_backbone_kernel(B, L, G, w_off, p_off):
    C = C_EFF
    GB = G * B
    BL = B * L
    inv_n = 1.0 / float(BL)

    def kernel(x_ref, w_ref, p_ref, o_ref, xin, xpad):
        # x_ref: [G, B, L, 1] f32 | w_ref: bf16 weight slab | p_ref: f32 param slab
        # xin:  [GB, L+2*OFF, C] f32  lane-replicated raw input (+ zero halo)
        # xpad: [GB, L+2*OFF, C] bf16 inter-layer activations (+ zero halo)

        def bn(y, name):
            # training-mode BN, one-pass stats, computed per input (per group half)
            r = p_off[name + '_gb']
            gamma = p_ref[r:r + 1, :]
            beta = p_ref[r + 1:r + 2, :]
            outs = []
            for g in range(G):
                yg = y[g * BL:(g + 1) * BL]
                mean = jnp.sum(yg, axis=0, keepdims=True) * inv_n
                ex2 = jnp.sum(yg * yg, axis=0, keepdims=True) * inv_n
                var = jnp.maximum(ex2 - mean * mean, 0.0)
                outs.append((yg - mean) * lax.rsqrt(var + EPS))
            yn = outs[0] if G == 1 else jnp.concatenate(outs, axis=0)
            return yn * gamma + beta

        def store_act(y):
            # bf16 cast once per element; rows [OFF, OFF+L) are (16,128)-tile aligned
            for gb in range(GB):
                xpad[gb, OFF:OFF + L, :] = y[gb * L:(gb + 1) * L, :].astype(jnp.bfloat16)

        def layer_mxu(name, K, relu):
            # im2col [GB*L, K*128] (bf16) @ [K*128, 128] (bf16) -> f32
            pad_l = (K - 1) // 2
            parts = []
            for gb in range(GB):
                xb = xpad[gb]                                  # [L+2*OFF, C] bf16
                parts.append(jnp.concatenate(
                    [xb[OFF - pad_l + k:OFF - pad_l + k + L, :] for k in range(K)],
                    axis=1))
            lhs = parts[0] if GB == 1 else jnp.concatenate(parts, axis=0)
            r = w_off[name] * C
            y = jnp.dot(lhs, w_ref[r:r + K * C, :],
                        preferred_element_type=jnp.float32)
            y = bn(y, name)
            return jnp.maximum(y, 0.0) if relu else y

        def layer_rank1(name, K, relu):
            # Cin == 1: rank-1 broadcast MAC on the VPU, f32, reads the raw input
            pad_l = (K - 1) // 2
            wr = p_off[name + '_w']
            parts = []
            for gb in range(GB):
                xb = xin[gb]                                   # [L+2*OFF, C] f32
                acc = jnp.zeros((L, C), jnp.float32)
                for k in range(K):
                    acc = acc + (xb[OFF - pad_l + k:OFF - pad_l + k + L, :]
                                 * p_ref[wr + k:wr + k + 1, :])
                parts.append(acc)
            y = parts[0] if GB == 1 else jnp.concatenate(parts, axis=0)
            y = bn(y, name)
            return jnp.maximum(y, 0.0) if relu else y

        # ---- prologue: zero ONLY the halo rows, lane-replicate the raw input ----
        zf = jnp.zeros((OFF, C), jnp.float32)
        zb = jnp.zeros((OFF, C), jnp.bfloat16)
        for gb in range(GB):
            g, b = divmod(gb, B)
            xin[gb, 0:OFF, :] = zf
            xin[gb, OFF + L:OFF + L + OFF, :] = zf
            xin[gb, OFF:OFF + L, :] = jnp.broadcast_to(x_ref[g, b], (L, C))
            xpad[gb, 0:OFF, :] = zb
            xpad[gb, OFF + L:OFF + L + OFF, :] = zb

        # ---- block 1 (real width 64, zero-padded to 128 lanes) ----
        s = layer_rank1('c1sy', 1, False)          # conv1_sy + bn1_sy (shortcut)
        y = layer_rank1('c1x', 8, True);   store_act(y)
        y = layer_mxu('c1y', 5, True);     store_act(y)
        t = layer_mxu('c1z', 3, False)
        blk = jnp.maximum(t + s, 0.0);     store_act(blk)

        # ---- block 2 ----
        s = layer_mxu('c2sy', 1, False)            # conv2_sy + bn2_sy (shortcut)
        y = layer_mxu('c2x', 8, True);     store_act(y)
        y = layer_mxu('c2y', 5, True);     store_act(y)
        t = layer_mxu('c2z', 3, False)
        blk = jnp.maximum(t + s, 0.0);     store_act(blk)

        # ---- block 3 ----
        s = bn(blk, 'bn3sy')                       # shortcut = bn3_sy(block2), own stats
        y = layer_mxu('c3x', 8, True);     store_act(y)
        y = layer_mxu('c3y', 5, True);     store_act(y)
        t = layer_mxu('c3z', 3, False)
        t = bn(t, 'bn3sy')                         # block3's Sequential ends with bn3_sy
        out = jnp.maximum(t + s, 0.0)

        for gb in range(GB):
            g, b = divmod(gb, B)
            o_ref[g, b] = out[gb * L:(gb + 1) * L, :]

    return kernel


# ---------------------------------------------------------------------------
# Pallas wrapper
# ---------------------------------------------------------------------------
def backbone_pair(P, x_pair):
    """x_pair: [2, B, L, 1] f32 -> [2, B, L, 128] f32."""
    _, B, L, _ = x_pair.shape
    w_slab, p_slab, w_off, p_off = _pack_params(P)

    # multi-TC (v7x / megacore): 1 input per grid step, 'parallel' across cores.
    # single-TC (v5e / v6e): fold both inputs into one M = 2*B*L pass.
    n_tc = _tensorcores_per_device()
    G = 1 if n_tc >= 2 else 2
    n_steps = 2 // G

    kernel = _make_backbone_kernel(B, L, G, w_off, p_off)

    return pl.pallas_call(
        kernel,
        out_shape=jax.ShapeDtypeStruct((2, B, L, C_EFF), jnp.float32),
        grid=(n_steps,),
        in_specs=[
            pl.BlockSpec((G, B, L, 1), lambda i: (i, 0, 0, 0)),
            # packed slabs: constant block index -> DMA'd once, stay resident
            pl.BlockSpec(w_slab.shape, lambda i: (0, 0)),
            pl.BlockSpec(p_slab.shape, lambda i: (0, 0)),
        ],
        out_specs=pl.BlockSpec((G, B, L, C_EFF), lambda i: (i, 0, 0, 0)),
        scratch_shapes=[
            pltpu.VMEM((G * B, L + 2 * OFF, C_EFF), jnp.float32),    # raw input + halo
            pltpu.VMEM((G * B, L + 2 * OFF, C_EFF), jnp.bfloat16),   # activations + halo
        ],
        compiler_params=pltpu.CompilerParams(
            dimension_semantics=("parallel",)),
    )(x_pair, w_slab, p_slab)


@jax.jit
def resnet_forward(P, X1, X2):
    """X1, X2: [B, 1, L] (PyTorch NCL).  Returns (block3_1, block3_2) in NCL."""
    x = jnp.stack([X1, X2], axis=0).astype(jnp.float32)        # [2, B, 1, L]
    x = jnp.transpose(x, (0, 1, 3, 2))                         # [2, B, L, 1]
    out = backbone_pair(P, x)                                  # [2, B, L, 128]
    out = jnp.transpose(out, (0, 1, 3, 2))                     # [2, B, 128, L]
    # TODO(synk): CrossModalAttention, LGFF, AvgPool1d and the Linear head are
    # undefined in the provided module source; forward stops at the backbone.
    return out[0], out[1]


# ---------------------------------------------------------------------------
# Parameters (deterministic, synthetic, PyTorch layouts)
# ---------------------------------------------------------------------------
def _init_conv(key, cout, cin, k):
    kw, kb = jax.random.split(key)
    bound = 1.0 / math.sqrt(cin * k)
    w = jax.random.uniform(kw, (cout, cin, k), jnp.float32, -bound, bound)
    b = jax.random.uniform(kb, (cout,), jnp.float32, -bound, bound)
    return w, b


def _init_bn(key, c):
    kg, kb = jax.random.split(key)
    gamma = 1.0 + 0.05 * jax.random.normal(kg, (c,), jnp.float32)
    beta = 0.05 * jax.random.normal(kb, (c,), jnp.float32)
    return gamma, beta


def make_params(key, nf=64):
    keys = iter(jax.random.split(key, 32))
    P = {}

    def add(name, cout, cin, k):
        w, b = _init_conv(next(keys), cout, cin, k)
        g, be = _init_bn(next(keys), cout)
        P[name] = dict(w=w, b=b, gamma=g, beta=be)

    add('c1x', nf, 1, 8)
    add('c1y', nf, nf, 5)
    add('c1z', nf, nf, 3)
    add('c1sy', nf, 1, 1)
    add('c2x', 2 * nf, nf, 8)
    add('c2y', 2 * nf, 2 * nf, 5)
    add('c2z', 2 * nf, 2 * nf, 3)
    add('c2sy', 2 * nf, nf, 1)
    add('c3x', 2 * nf, 2 * nf, 8)
    add('c3y', 2 * nf, 2 * nf, 5)
    add('c3z', 2 * nf, 2 * nf, 3)
    g, be = _init_bn(next(keys), 2 * nf)
    P['bn3sy'] = dict(gamma=g, beta=be)
    return P


# ---------------------------------------------------------------------------
# Pure-JAX reference (lax.conv + training-mode BN) mirroring the kernel's
# precision choice (bf16 MXU inputs for Cin>1 convs, f32 everywhere else).
# The reference keeps the conv bias; training-mode BN cancels it exactly, so
# the kernel (which drops the dead bias add) must still match.
# ---------------------------------------------------------------------------
def _ref_bn_train(y, gamma, beta):
    mean = y.mean(axis=(0, 2), keepdims=True)
    var = jnp.square(y - mean).mean(axis=(0, 2), keepdims=True)
    return (y - mean) * lax.rsqrt(var + EPS) * gamma[None, :, None] + beta[None, :, None]


def _ref_conv_bn(x_ncl, w, b, gamma, beta, relu):
    K = w.shape[-1]
    cin = w.shape[1]
    pad_l = (K - 1) // 2
    pad_r = (K - 1) - pad_l
    if cin > 1:  # kernel feeds the MXU bf16 inputs with f32 accumulation
        xc, wc = x_ncl.astype(jnp.bfloat16), w.astype(jnp.bfloat16)
    else:        # kernel does the Cin=1 convs on the VPU in f32
        xc, wc = x_ncl, w
    y = lax.conv_general_dilated(xc, wc, (1,), [(pad_l, pad_r)],
                                 dimension_numbers=('NCH', 'OIH', 'NCH'),
                                 preferred_element_type=jnp.float32)
    y = y + b[None, :, None]
    y = _ref_bn_train(y, gamma, beta)
    return jnp.maximum(y, 0.0) if relu else y


def _ref_backbone(P, x_ncl):
    def cb(name, inp, relu):
        p = P[name]
        return _ref_conv_bn(inp, p['w'], p['b'], p['gamma'], p['beta'], relu)

    t = cb('c1x', x_ncl, True); t = cb('c1y', t, True); t = cb('c1z', t, False)
    b1 = jnp.maximum(t + cb('c1sy', x_ncl, False), 0.0)
    t = cb('c2x', b1, True); t = cb('c2y', t, True); t = cb('c2z', t, False)
    b2 = jnp.maximum(t + cb('c2sy', b1, False), 0.0)
    t = cb('c3x', b2, True); t = cb('c3y', t, True); t = cb('c3z', t, False)
    t = _ref_bn_train(t, P['bn3sy']['gamma'], P['bn3sy']['beta'])   # block3 ends with bn3_sy
    s = _ref_bn_train(b2, P['bn3sy']['gamma'], P['bn3sy']['beta'])  # shortcut bn3_sy
    return jnp.maximum(t + s, 0.0)


# ---------------------------------------------------------------------------
if __name__ == "__main__":
    key = jax.random.PRNGKey(0)
    kp, k1, k2 = jax.random.split(key, 3)

    B, L = 2, 16
    P = make_params(kp, nf=64)
    X1 = jax.random.normal(k1, (B, 1, L), jnp.float32)
    X2 = jax.random.normal(k2, (B, 1, L), jnp.float32)

    out1, out2 = resnet_forward(P, X1, X2)
    out1 = jax.block_until_ready(out1)
    out2 = jax.block_until_ready(out2)

    ref1 = _ref_backbone(P, X1)
    ref2 = _ref_backbone(P, X2)
    assert out1.shape == (B, 128, L) and out2.shape == (B, 128, L)
    err1 = float(jnp.max(jnp.abs(out1 - ref1)))
    err2 = float(jnp.max(jnp.abs(out2 - ref2)))
    assert jnp.allclose(out1, ref1, atol=3e-3, rtol=3e-3), f"max err X1: {err1}"
    assert jnp.allclose(out2, ref2, atol=3e-3, rtol=3e-3), f"max err X2: {err2}"

    print("KERNEL_OK")
</pallas_src>

<mosaic_0001>
module attributes {stable_mosaic.version = 11 : i64} {
  func.func @kernel(%arg0: i32, %arg1: memref<2x2x16x1xf32, #tpu.memory_space<vmem>>, %arg2: memref<5248x128xbf16, #tpu.memory_space<vmem>>, %arg3: memref<40x128xf32, #tpu.memory_space<vmem>>, %arg4: memref<2x2x16x128xf32, #tpu.memory_space<vmem>>, %arg5: memref<4x48x128xf32, #tpu.memory_space<vmem>>, %arg6: memref<4x48x128xbf16, #tpu.memory_space<vmem>>) attributes {dimension_semantics = [#tpu.dimension_semantics<parallel>], iteration_bounds = array<i64: 1>, scalar_prefetch = 0 : i64, scratch_operands = 2 : i64, tpu.core_type = #tpu.core_type<tc>, window_params = [{transform_indices = @transform_0, window_bounds = array<i64: 2, 2, 16, 1>}, {pipeline_mode = #tpu.pipeline_mode<synchronous>, transform_indices = @transform_1, window_bounds = array<i64: 5248, 128>}, {pipeline_mode = #tpu.pipeline_mode<synchronous>, transform_indices = @transform_2, window_bounds = array<i64: 40, 128>}, {transform_indices = @transform_3, window_bounds = array<i64: 2, 2, 16, 128>}]} {
    %cst = arith.constant 0.000000e+00 : f32
    %0 = vector.broadcast %cst : f32 to vector<16x128xf32>
    %cst_0 = arith.constant 0.000000e+00 : bf16
    %1 = vector.broadcast %cst_0 : bf16 to vector<16x128xbf16>
    %c0 = arith.constant 0 : index
    %c0_1 = arith.constant 0 : index
    %c0_2 = arith.constant 0 : index
    %2 = vector.load %arg5[%c0, %c0_1, %c0_2] : memref<4x48x128xf32, #tpu.memory_space<vmem>>, vector<1x16x128xf32>
    %3 = vector.shape_cast %2 : vector<1x16x128xf32> to vector<16x128xf32>
    %4 = vector.shape_cast %0 : vector<16x128xf32> to vector<1x16x128xf32>
    tpu.vector_store %arg5[%c0, %c0_1, %c0_2], %4 {strides = array<i32>} : memref<4x48x128xf32, #tpu.memory_space<vmem>>, vector<1x16x128xf32>,
    %c0_3 = arith.constant 0 : index
    %c32 = arith.constant 32 : index
    %c0_4 = arith.constant 0 : index
    %5 = vector.load %arg5[%c0_3, %c32, %c0_4] : memref<4x48x128xf32, #tpu.memory_space<vmem>>, vector<1x16x128xf32>
    %6 = vector.shape_cast %5 : vector<1x16x128xf32> to vector<16x128xf32>
    %7 = vector.shape_cast %0 : vector<16x128xf32> to vector<1x16x128xf32>
    tpu.vector_store %arg5[%c0_3, %c32, %c0_4], %7 {strides = array<i32>} : memref<4x48x128xf32, #tpu.memory_space<vmem>>, vector<1x16x128xf32>,
    %c0_5 = arith.constant 0 : index
    %c0_6 = arith.constant 0 : index
    %c0_7 = arith.constant 0 : index
    %c0_8 = arith.constant 0 : index
    %8 = vector.load %arg1[%c0_5, %c0_6, %c0_7, %c0_8] : memref<2x2x16x1xf32, #tpu.memory_space<vmem>>, vector<1x1x16x1xf32>
    %9 = vector.shape_cast %8 : vector<1x1x16x1xf32> to vector<16x1xf32>
    %10 = vector.shape_cast %9 : vector<16x1xf32> to vector<16x1xf32>
    %11 = vector.broadcast %10 : vector<16x1xf32> to vector<16x128xf32>
    %c0_9 = arith.constant 0 : index
    %c16 = arith.constant 16 : index
    %c0_10 = arith.constant 0 : index
    %12 = vector.load %arg5[%c0_9, %c16, %c0_10] : memref<4x48x128xf32, #tpu.memory_space<vmem>>, vector<1x16x128xf32>
    %13 = vector.shape_cast %12 : vector<1x16x128xf32> to vector<16x128xf32>
    %14 = vector.shape_cast %11 : vector<16x128xf32> to vector<1x16x128xf32>
    tpu.vector_store %arg5[%c0_9, %c16, %c0_10], %14 {strides = array<i32>} : memref<4x48x128xf32, #tpu.memory_space<vmem>>, vector<1x16x128xf32>,
    %c0_11 = arith.constant 0 : index
    %c0_12 = arith.constant 0 : index
    %c0_13 = arith.constant 0 : index
    %15 = vector.load %arg6[%c0_11, %c0_12, %c0_13] : memref<4x48x128xbf16, #tpu.memory_space<vmem>>, vector<1x16x128xbf16>
    %16 = vector.shape_cast %15 : vector<1x16x128xbf16> to vector<16x128xbf16>
    %17 = vector.shape_cast %1 : vector<16x128xbf16> to vector<1x16x128xbf16>
    tpu.vector_store %arg6[%c0_11, %c0_12, %c0_13], %17 {strides = array<i32>} : memref<4x48x128xbf16, #tpu.memory_space<vmem>>, vector<1x16x128xbf16>,
    %c0_14 = arith.constant 0 : index
    %c32_15 = arith.constant 32 : index
    %c0_16 = arith.constant 0 : index
    %18 = vector.load %arg6[%c0_14, %c32_15, %c0_16] : memref<4x48x128xbf16, #tpu.memory_space<vmem>>, vector<1x16x128xbf16>
    %19 = vector.shape_cast %18 : vector<1x16x128xbf16> to vector<16x128xbf16>
    %20 = vector.shape_cast %1 : vector<16x128xbf16> to vector<1x16x128xbf16>
    tpu.vector_store %arg6[%c0_14, %c32_15, %c0_16], %20 {strides = array<i32>} : memref<4x48x128xbf16, #tpu.memory_space<vmem>>, vector<1x16x128xbf16>,
    %c1 = arith.constant 1 : index
    %c0_17 = arith.constant 0 : index
    %c0_18 = arith.constant 0 : index
    %21 = vector.load %arg5[%c1, %c0_17, %c0_18] : memref<4x48x128xf32, #tpu.memory_space<vmem>>, vector<1x16x128xf32>
    %22 = vector.shape_cast %21 : vector<1x16x128xf32> to vector<16x128xf32>
    %23 = vector.shape_cast %0 : vector<16x128xf32> to vector<1x16x128xf32>
    tpu.vector_store %arg5[%c1, %c0_17, %c0_18], %23 {strides = array<i32>} : memref<4x48x128xf32, #tpu.memory_space<vmem>>, vector<1x16x128xf32>,
    %c1_19 = arith.constant 1 : index
    %c32_20 = arith.constant 32 : index
    %c0_21 = arith.constant 0 : index
    %24 = vector.load %arg5[%c1_19, %c32_20, %c0_21] : memref<4x48x128xf32, #tpu.memory_space<vmem>>, vector<1x16x128xf32>
    %25 = vector.shape_cast %24 : vector<1x16x128xf32> to vector<16x128xf32>
    %26 = vector.shape_cast %0 : vector<16x128xf32> to vector<1x16x128xf32>
    tpu.vector_store %arg5[%c1_19, %c32_20, %c0_21], %26 {strides = array<i32>} : memref<4x48x128xf32, #tpu.memory_space<vmem>>, vector<1x16x128xf32>,
    %c0_22 = arith.constant 0 : index
    %c1_23 = arith.constant 1 : index
    %c0_24 = arith.constant 0 : index
    %c0_25 = arith.constant 0 : index
    %27 = vector.load %arg1[%c0_22, %c1_23, %c0_24, %c0_25] : memref<2x2x16x1xf32, #tpu.memory_space<vmem>>, vector<1x1x16x1xf32>
    %28 = vector.shape_cast %27 : vector<1x1x16x1xf32> to vector<16x1xf32>
    %29 = vector.shape_cast %28 : vector<16x1xf32> to vector<16x1xf32>
    %30 = vector.broadcast %29 : vector<16x1xf32> to vector<16x128xf32>
    %c1_26 = arith.constant 1 : index
    %c16_27 = arith.constant 16 : index
    %c0_28 = arith.constant 0 : index
    %31 = vector.load %arg5[%c1_26, %c16_27, %c0_28] : memref<4x48x128xf32, #tpu.memory_space<vmem>>, vector<1x16x128xf32>
    %32 = vector.shape_cast %31 : vector<1x16x128xf32> to vector<16x128xf32>
    %33 = vector.shape_cast %30 : vector<16x128xf32> to vector<1x16x128xf32>
    tpu.vector_store %arg5[%c1_26, %c16_27, %c0_28], %33 {strides = array<i32>} : memref<4x48x128xf32, #tpu.memory_space<vmem>>, vector<1x16x128xf32>,
    %c1_29 = arith.constant 1 : index
    %c0_30 = arith.constant 0 : index
    %c0_31 = arith.constant 0 : index
    %34 = vector.load %arg6[%c1_29, %c0_30, %c0_31] : memref<4x48x128xbf16, #tpu.memory_space<vmem>>, vector<1x16x128xbf16>
    %35 = vector.shape_cast %34 : vector<1x16x128xbf16> to vector<16x128xbf16>
    %36 = vector.shape_cast %1 : vector<16x128xbf16> to vector<1x16x128xbf16>
    tpu.vector_store %arg6[%c1_29, %c0_30, %c0_31], %36 {strides = array<i32>} : memref<4x48x128xbf16, #tpu.memory_space<vmem>>, vector<1x16x128xbf16>,
    %c1_32 = arith.constant 1 : index
    %c32_33 = arith.constant 32 : index
    %c0_34 = arith.constant 0 : index
    %37 = vector.load %arg6[%c1_32, %c32_33, %c0_34] : memref<4x48x128xbf16, #tpu.memory_space<vmem>>, vector<1x16x128xbf16>
    %38 = vector.shape_cast %37 : vector<1x16x128xbf16> to vector<16x128xbf16>
    %39 = vector.shape_cast %1 : vector<16x128xbf16> to vector<1x16x128xbf16>
    tpu.vector_store %arg6[%c1_32, %c32_33, %c0_34], %39 {strides = array<i32>} : memref<4x48x128xbf16, #tpu.memory_space<vmem>>, vector<1x16x128xbf16>,
    %c2 = arith.constant 2 : index
    %c0_35 = arith.constant 0 : index
    %c0_36 = arith.constant 0 : index
    %40 = vector.load %arg5[%c2, %c0_35, %c0_36] : memref<4x48x128xf32, #tpu.memory_space<vmem>>, vector<1x16x128xf32>
    %41 = vector.shape_cast %40 : vector<1x16x128xf32> to vector<16x128xf32>
    %42 = vector.shape_cast %0 : vector<16x128xf32> to vector<1x16x128xf32>
    tpu.vector_store %arg5[%c2, %c0_35, %c0_36], %42 {strides = array<i32>} : memref<4x48x128xf32, #tpu.memory_space<vmem>>, vector<1x16x128xf32>,
    %c2_37 = arith.constant 2 : index
    %c32_38 = arith.constant 32 : index
    %c0_39 = arith.constant 0 : index
    %43 = vector.load %arg5[%c2_37, %c32_38, %c0_39] : memref<4x48x128xf32, #tpu.memory_space<vmem>>, vector<1x16x128xf32>
    %44 = vector.shape_cast %43 : vector<1x16x128xf32> to vector<16x128xf32>
    %45 = vector.shape_cast %0 : vector<16x128xf32> to vector<1x16x128xf32>
    tpu.vector_store %arg5[%c2_37, %c32_38, %c0_39], %45 {strides = array<i32>} : memref<4x48x128xf32, #tpu.memory_space<vmem>>, vector<1x16x128xf32>,
    %c1_40 = arith.constant 1 : index
    %c0_41 = arith.constant 0 : index
    %c0_42 = arith.constant 0 : index
    %c0_43 = arith.constant 0 : index
    %46 = vector.load %arg1[%c1_40, %c0_41, %c0_42, %c0_43] : memref<2x2x16x1xf32, #tpu.memory_space<vmem>>, vector<1x1x16x1xf32>
    %47 = vector.shape_cast %46 : vector<1x1x16x1xf32> to vector<16x1xf32>
    %48 = vector.shape_cast %47 : vector<16x1xf32> to vector<16x1xf32>
    %49 = vector.broadcast %48 : vector<16x1xf32> to vector<16x128xf32>
    %c2_44 = arith.constant 2 : index
    %c16_45 = arith.constant 16 : index
    %c0_46 = arith.constant 0 : index
    %50 = vector.load %arg5[%c2_44, %c16_45, %c0_46] : memref<4x48x128xf32, #tpu.memory_space<vmem>>, vector<1x16x128xf32>
    %51 = vector.shape_cast %50 : vector<1x16x128xf32> to vector<16x128xf32>
    %52 = vector.shape_cast %49 : vector<16x128xf32> to vector<1x16x128xf32>
    tpu.vector_store %arg5[%c2_44, %c16_45, %c0_46], %52 {strides = array<i32>} : memref<4x48x128xf32, #tpu.memory_space<vmem>>, vector<1x16x128xf32>,
    %c2_47 = arith.constant 2 : index
    %c0_48 = arith.constant 0 : index
    %c0_49 = arith.constant 0 : index
    %53 = vector.load %arg6[%c2_47, %c0_48, %c0_49] : memref<4x48x128xbf16, #tpu.memory_space<vmem>>, vector<1x16x128xbf16>
    %54 = vector.shape_cast %53 : vector<1x16x128xbf16> to vector<16x128xbf16>
    %55 = vector.shape_cast %1 : vector<16x128xbf16> to vector<1x16x128xbf16>
    tpu.vector_store %arg6[%c2_47, %c0_48, %c0_49], %55 {strides = array<i32>} : memref<4x48x128xbf16, #tpu.memory_space<vmem>>, vector<1x16x128xbf16>,
    %c2_50 = arith.constant 2 : index
    %c32_51 = arith.constant 32 : index
    %c0_52 = arith.constant 0 : index
    %56 = vector.load %arg6[%c2_50, %c32_51, %c0_52] : memref<4x48x128xbf16, #tpu.memory_space<vmem>>, vector<1x16x128xbf16>
    %57 = vector.shape_cast %56 : vector<1x16x128xbf16> to vector<16x128xbf16>
    %58 = vector.shape_cast %1 : vector<16x128xbf16> to vector<1x16x128xbf16>
    tpu.vector_store %arg6[%c2_50, %c32_51, %c0_52], %58 {strides = array<i32>} : memref<4x48x128xbf16, #tpu.memory_space<vmem>>, vector<1x16x128xbf16>,
    %c3 = arith.constant 3 : index
    %c0_53 = arith.constant 0 : index
    %c0_54 = arith.constant 0 : index
    %59 = vector.load %arg5[%c3, %c0_53, %c0_54] : memref<4x48x128xf32, #tpu.memory_space<vmem>>, vector<1x16x128xf32>
    %60 = vector.shape_cast %59 : vector<1x16x128xf32> to vector<16x128xf32>
    %61 = vector.shape_cast %0 : vector<16x128xf32> to vector<1x16x128xf32>
    tpu.vector_store %arg5[%c3, %c0_53, %c0_54], %61 {strides = array<i32>} : memref<4x48x128xf32, #tpu.memory_space<vmem>>, vector<1x16x128xf32>,
    %c3_55 = arith.constant 3 : index
    %c32_56 = arith.constant 32 : index
    %c0_57 = arith.constant 0 : index
    %62 = vector.load %arg5[%c3_55, %c32_56, %c0_57] : memref<4x48x128xf32, #tpu.memory_space<vmem>>, vector<1x16x128xf32>
    %63 = vector.shape_cast %62 : vector<1x16x128xf32> to vector<16x128xf32>
    %64 = vector.shape_cast %0 : vector<16x128xf32> to vector<1x16x128xf32>
    tpu.vector_store %arg5[%c3_55, %c32_56, %c0_57], %64 {strides = array<i32>} : memref<4x48x128xf32, #tpu.memory_space<vmem>>, vector<1x16x128xf32>,
    %c1_58 = arith.constant 1 : index
    %c1_59 = arith.constant 1 : index
    %c0_60 = arith.constant 0 : index
    %c0_61 = arith.constant 0 : index
    %65 = vector.load %arg1[%c1_58, %c1_59, %c0_60, %c0_61] : memref<2x2x16x1xf32, #tpu.memory_space<vmem>>, vector<1x1x16x1xf32>
    %66 = vector.shape_cast %65 : vector<1x1x16x1xf32> to vector<16x1xf32>
    %67 = vector.shape_cast %66 : vector<16x1xf32> to vector<16x1xf32>
    %68 = vector.broadcast %67 : vector<16x1xf32> to vector<16x128xf32>
    %c3_62 = arith.constant 3 : index
    %c16_63 = arith.constant 16 : index
    %c0_64 = arith.constant 0 : index
    %69 = vector.load %arg5[%c3_62, %c16_63, %c0_64] : memref<4x48x128xf32, #tpu.memory_space<vmem>>, vector<1x16x128xf32>
    %70 = vector.shape_cast %69 : vector<1x16x128xf32> to vector<16x128xf32>
    %71 = vector.shape_cast %68 : vector<16x128xf32> to vector<1x16x128xf32>
    tpu.vector_store %arg5[%c3_62, %c16_63, %c0_64], %71 {strides = array<i32>} : memref<4x48x128xf32, #tpu.memory_space<vmem>>, vector<1x16x128xf32>,
    %c3_65 = arith.constant 3 : index
    %c0_66 = arith.constant 0 : index
    %c0_67 = arith.constant 0 : index
    %72 = vector.load %arg6[%c3_65, %c0_66, %c0_67] : memref<4x48x128xbf16, #tpu.memory_space<vmem>>, vector<1x16x128xbf16>
    %73 = vector.shape_cast %72 : vector<1x16x128xbf16> to vector<16x128xbf16>
    %74 = vector.shape_cast %1 : vector<16x128xbf16> to vector<1x16x128xbf16>
    tpu.vector_store %arg6[%c3_65, %c0_66, %c0_67], %74 {strides = array<i32>} : memref<4x48x128xbf16, #tpu.memory_space<vmem>>, vector<1x16x128xbf16>,
    %c3_68 = arith.constant 3 : index
    %c32_69 = arith.constant 32 : index
    %c0_70 = arith.constant 0 : index
    %75 = vector.load %arg6[%c3_68, %c32_69, %c0_70] : memref<4x48x128xbf16, #tpu.memory_space<vmem>>, vector<1x16x128xbf16>
    %76 = vector.shape_cast %75 : vector<1x16x128xbf16> to vector<16x128xbf16>
    %77 = vector.shape_cast %1 : vector<16x128xbf16> to vector<1x16x128xbf16>
    tpu.vector_store %arg6[%c3_68, %c32_69, %c0_70], %77 {strides = array<i32>} : memref<4x48x128xbf16, #tpu.memory_space<vmem>>, vector<1x16x128xbf16>,
    %c0_71 = arith.constant 0 : index
    %c0_72 = arith.constant 0 : index
    %c0_73 = arith.constant 0 : index
    %78 = vector.load %arg5[%c0_71, %c0_72, %c0_73] : memref<4x48x128xf32, #tpu.memory_space<vmem>>, vector<1x48x128xf32>
    %79 = vector.shape_cast %78 : vector<1x48x128xf32> to vector<48x128xf32>
    %cst_74 = arith.constant 0.000000e+00 : f32
    %80 = vector.broadcast %cst_74 : f32 to vector<16x128xf32>
    %81 = vector.extract_strided_slice %79 {offsets = [16, 0], sizes = [16, 128], strides = [1, 1]} : vector<48x128xf32> to vector<16x128xf32>
    %c8 = arith.constant 8 : index
    %c0_75 = arith.constant 0 : index
    %82 = vector.load %arg3[%c8, %c0_75] : memref<40x128xf32, #tpu.memory_space<vmem>>, vector<1x128xf32>
    %83 = vector.broadcast %82 : vector<1x128xf32> to vector<16x128xf32>
    %84 = arith.mulf %81, %83 : vector<16x128xf32>
    %85 = arith.addf %80, %84 : vector<16x128xf32>
    %c1_76 = arith.constant 1 : index
    %c0_77 = arith.constant 0 : index
    %c0_78 = arith.constant 0 : index
    %86 = vector.load %arg5[%c1_76, %c0_77, %c0_78] : memref<4x48x128xf32, #tpu.memory_space<vmem>>, vector<1x48x128xf32>
    %87 = vector.shape_cast %86 : vector<1x48x128xf32> to vector<48x128xf32>
    %cst_79 = arith.constant 0.000000e+00 : f32
    %88 = vector.broadcast %cst_79 : f32 to vector<16x128xf32>
    %89 = vector.extract_strided_slice %87 {offsets = [16, 0], sizes = [16, 128], strides = [1, 1]} : vector<48x128xf32> to vector<16x128xf32>
    %c8_80 = arith.constant 8 : index
    %c0_81 = arith.constant 0 : index
    %90 = vector.load %arg3[%c8_80, %c0_81] : memref<40x128xf32, #tpu.memory_space<vmem>>, vector<1x128xf32>
    %91 = vector.broadcast %90 : vector<1x128xf32> to vector<16x128xf32>
    %92 = arith.mulf %89, %91 : vector<16x128xf32>
    %93 = arith.addf %88, %92 : vector<16x128xf32>
    %c2_82 = arith.constant 2 : index
    %c0_83 = arith.constant 0 : index
    %c0_84 = arith.constant 0 : index
    %94 = vector.load %arg5[%c2_82, %c0_83, %c0_84] : memref<4x48x128xf32, #tpu.memory_space<vmem>>, vector<1x48x128xf32>
    %95 = vector.shape_cast %94 : vector<1x48x128xf32> to vector<48x128xf32>
    %cst_85 = arith.constant 0.000000e+00 : f32
    %96 = vector.broadcast %cst_85 : f32 to vector<16x128xf32>
    %97 = vector.extract_strided_slice %95 {offsets = [16, 0], sizes = [16, 128], strides = [1, 1]} : vector<48x128xf32> to vector<16x128xf32>
    %c8_86 = arith.constant 8 : index
    %c0_87 = arith.constant 0 : index
    %98 = vector.load %arg3[%c8_86, %c0_87] : memref<40x128xf32, #tpu.memory_space<vmem>>, vector<1x128xf32>
    %99 = vector.broadcast %98 : vector<1x128xf32> to vector<16x128xf32>
    %100 = arith.mulf %97, %99 : vector<16x128xf32>
    %101 = arith.addf %96, %100 : vector<16x128xf32>
    %c3_88 = arith.constant 3 : index
    %c0_89 = arith.constant 0 : index
    %c0_90 = arith.constant 0 : index
    %102 = vector.load %arg5[%c3_88, %c0_89, %c0_90] : memref<4x48x128xf32, #tpu.memory_space<vmem>>, vector<1x48x128xf32>
    %103 = vector.shape_cast %102 : vector<1x48x128xf32> to vector<48x128xf32>
    %cst_91 = arith.constant 0.000000e+00 : f32
    %104 = vector.broadcast %cst_91 : f32 to vector<16x128xf32>
    %105 = vector.extract_strided_slice %103 {offsets = [16, 0], sizes = [16, 128], strides = [1, 1]} : vector<48x128xf32> to vector<16x128xf32>
    %c8_92 = arith.constant 8 : index
    %c0_93 = arith.constant 0 : index
    %106 = vector.load %arg3[%c8_92, %c0_93] : memref<40x128xf32, #tpu.memory_space<vmem>>, vector<1x128xf32>
    %107 = vector.broadcast %106 : vector<1x128xf32> to vector<16x128xf32>
    %108 = arith.mulf %105, %107 : vector<16x128xf32>
    %109 = arith.addf %104, %108 : vector<16x128xf32>
    %110 = tpu.concatenate %85, %93, %101, %109 in 0 : vector<16x128xf32>, vector<16x128xf32>, vector<16x128xf32>, vector<16x128xf32> -> vector<64x128xf32>
    %c11 = arith.constant 11 : index
    %c0_94 = arith.constant 0 : index
    %111 = vector.load %arg3[%c11, %c0_94] : memref<40x128xf32, #tpu.memory_space<vmem>>, vector<1x128xf32>
    %c12 = arith.constant 12 : index
    %c0_95 = arith.constant 0 : index
    %112 = vector.load %arg3[%c12, %c0_95] : memref<40x128xf32, #tpu.memory_space<vmem>>, vector<1x128xf32>
    %113 = vector.extract_strided_slice %110 {offsets = [0, 0], sizes = [32, 128], strides = [1, 1]} : vector<64x128xf32> to vector<32x128xf32>
    %cst_96 = arith.constant dense<0.000000e+00> : vector<128xf32>
    %114 = vector.multi_reduction <add>, %113, %cst_96 [0] : vector<32x128xf32> to vector<128xf32>
    %115 = vector.shape_cast %114 : vector<128xf32> to vector<1x128xf32>
    %cst_97 = arith.constant 3.125000e-02 : f32
    %116 = vector.broadcast %cst_97 : f32 to vector<1x128xf32>
    %117 = arith.mulf %115, %116 : vector<1x128xf32>
    %118 = arith.mulf %113, %113 : vector<32x128xf32>
    %cst_98 = arith.constant dense<0.000000e+00> : vector<128xf32>
    %119 = vector.multi_reduction <add>, %118, %cst_98 [0] : vector<32x128xf32> to vector<128xf32>
    %120 = vector.shape_cast %119 : vector<128xf32> to vector<1x128xf32>
    %cst_99 = arith.constant 3.125000e-02 : f32
    %121 = vector.broadcast %cst_99 : f32 to vector<1x128xf32>
    %122 = arith.mulf %120, %121 : vector<1x128xf32>
    %123 = arith.mulf %117, %117 : vector<1x128xf32>
    %124 = arith.subf %122, %123 : vector<1x128xf32>
    %cst_100 = arith.constant 0.000000e+00 : f32
    %125 = vector.broadcast %cst_100 : f32 to vector<1x128xf32>
    %126 = arith.maximumf %124, %125 : vector<1x128xf32>
    %127 = vector.broadcast %117 : vector<1x128xf32> to vector<32x128xf32>
    %128 = arith.subf %113, %127 : vector<32x128xf32>
    %cst_101 = arith.constant 9.99999974E-6 : f32
    %129 = vector.broadcast %cst_101 : f32 to vector<1x128xf32>
    %130 = arith.addf %126, %129 : vector<1x128xf32>
    %131 = math.rsqrt %130 : vector<1x128xf32>
    %132 = vector.broadcast %131 : vector<1x128xf32> to vector<32x128xf32>
    %133 = arith.mulf %128, %132 : vector<32x128xf32>
    %134 = vector.extract_strided_slice %110 {offsets = [32, 0], sizes = [32, 128], strides = [1, 1]} : vector<64x128xf32> to vector<32x128xf32>
    %cst_102 = arith.constant dense<0.000000e+00> : vector<128xf32>
    %135 = vector.multi_reduction <add>, %134, %cst_102 [0] : vector<32x128xf32> to vector<128xf32>
    %136 = vector.shape_cast %135 : vector<128xf32> to vector<1x128xf32>
    %cst_103 = arith.constant 3.125000e-02 : f32
    %137 = vector.broadcast %cst_103 : f32 to vector<1x128xf32>
    %138 = arith.mulf %136, %137 : vector<1x128xf32>
    %139 = arith.mulf %134, %134 : vector<32x128xf32>
    %cst_104 = arith.constant dense<0.000000e+00> : vector<128xf32>
    %140 = vector.multi_reduction <add>, %139, %cst_104 [0] : vector<32x128xf32> to vector<128xf32>
    %141 = vector.shape_cast %140 : vector<128xf32> to vector<1x128xf32>
    %cst_105 = arith.constant 3.125000e-02 : f32
    %142 = vector.broadcast %cst_105 : f32 to vector<1x128xf32>
    %143 = arith.mulf %141, %142 : vector<1x128xf32>
    %144 = arith.mulf %138, %138 : vector<1x128xf32>
    %145 = arith.subf %143, %144 : vector<1x128xf32>
    %cst_106 = arith.constant 0.000000e+00 : f32
    %146 = vector.broadcast %cst_106 : f32 to vector<1x128xf32>
    %147 = arith.maximumf %145, %146 : vector<1x128xf32>
    %148 = vector.broadcast %138 : vector<1x128xf32> to vector<32x128xf32>
    %149 = arith.subf %134, %148 : vector<32x128xf32>
    %cst_107 = arith.constant 9.99999974E-6 : f32
    %150 = vector.broadcast %cst_107 : f32 to vector<1x128xf32>
    %151 = arith.addf %147, %150 : vector<1x128xf32>
    %152 = math.rsqrt %151 : vector<1x128xf32>
    %153 = vector.broadcast %152 : vector<1x128xf32> to vector<32x128xf32>
    %154 = arith.mulf %149, %153 : vector<32x128xf32>
    %155 = tpu.concatenate %133, %154 in 0 : vector<32x128xf32>, vector<32x128xf32> -> vector<64x128xf32>
    %156 = vector.broadcast %111 : vector<1x128xf32> to vector<64x128xf32>
    %157 = arith.mulf %155, %156 : vector<64x128xf32>
    %158 = vector.broadcast %112 : vector<1x128xf32> to vector<64x128xf32>
    %159 = arith.addf %157, %158 : vector<64x128xf32>
    %c0_108 = arith.constant 0 : index
    %c0_109 = arith.constant 0 : index
    %c0_110 = arith.constant 0 : index
    %160 = vector.load %arg5[%c0_108, %c0_109, %c0_110] : memref<4x48x128xf32, #tpu.memory_space<vmem>>, vector<1x48x128xf32>
    %161 = vector.shape_cast %160 : vector<1x48x128xf32> to vector<48x128xf32>
    %cst_111 = arith.constant 0.000000e+00 : f32
    %162 = vector.broadcast %cst_111 : f32 to vector<16x128xf32>
    %163 = vector.extract_strided_slice %161 {offsets = [13, 0], sizes = [16, 128], strides = [1, 1]} : vector<48x128xf32> to vector<16x128xf32>
    %c0_112 = arith.constant 0 : index
    %c0_113 = arith.constant 0 : index
    %164 = vector.load %arg3[%c0_112, %c0_113] : memref<40x128xf32, #tpu.memory_space<vmem>>, vector<1x128xf32>
    %165 = vector.broadcast %164 : vector<1x128xf32> to vector<16x128xf32>
    %166 = arith.mulf %163, %165 : vector<16x128xf32>
    %167 = arith.addf %162, %166 : vector<16x128xf32>
    %168 = vector.extract_strided_slice %161 {offsets = [14, 0], sizes = [16, 128], strides = [1, 1]} : vector<48x128xf32> to vector<16x128xf32>
    %c1_114 = arith.constant 1 : index
    %c0_115 = arith.constant 0 : index
    %169 = vector.load %arg3[%c1_114, %c0_115] : memref<40x128xf32, #tpu.memory_space<vmem>>, vector<1x128xf32>
    %170 = vector.broadcast %169 : vector<1x128xf32> to vector<16x128xf32>
    %171 = arith.mulf %168, %170 : vector<16x128xf32>
    %172 = arith.addf %167, %171 : vector<16x128xf32>
    %173 = vector.extract_strided_slice %161 {offsets = [15, 0], sizes = [16, 128], strides = [1, 1]} : vector<48x128xf32> to vector<16x128xf32>
    %c2_116 = arith.constant 2 : index
    %c0_117 = arith.constant 0 : index
    %174 = vector.load %arg3[%c2_116, %c0_117] : memref<40x128xf32, #tpu.memory_space<vmem>>, vector<1x128xf32>
    %175 = vector.broadcast %174 : vector<1x128xf32> to vector<16x128xf32>
    %176 = arith.mulf %173, %175 : vector<16x128xf32>
    %177 = arith.addf %172, %176 : vector<16x128xf32>
    %178 = vector.extract_strided_slice %161 {offsets = [16, 0], sizes = [16, 128], strides = [1, 1]} : vector<48x128xf32> to vector<16x128xf32>
    %c3_118 = arith.constant 3 : index
    %c0_119 = arith.constant 0 : index
    %179 = vector.load %arg3[%c3_118, %c0_119] : memref<40x128xf32, #tpu.memory_space<vmem>>, vector<1x128xf32>
    %180 = vector.broadcast %179 : vector<1x128xf32> to vector<16x128xf32>
    %181 = arith.mulf %178, %180 : vector<16x128xf32>
    %182 = arith.addf %177, %181 : vector<16x128xf32>
    %183 = vector.extract_strided_slice %161 {offsets = [17, 0], sizes = [16, 128], strides = [1, 1]} : vector<48x128xf32> to vector<16x128xf32>
    %c4 = arith.constant 4 : index
    %c0_120 = arith.constant 0 : index
    %184 = vector.load %arg3[%c4, %c0_120] : memref<40x128xf32, #tpu.memory_space<vmem>>, vector<1x128xf32>
    %185 = vector.broadcast %184 : vector<1x128xf32> to vector<16x128xf32>
    %186 = arith.mulf %183, %185 : vector<16x128xf32>
    %187 = arith.addf %182, %186 : vector<16x128xf32>
    %188 = vector.extract_strided_slice %161 {offsets = [18, 0], sizes = [16, 128], strides = [1, 1]} : vector<48x128xf32> to vector<16x128xf32>
    %c5 = arith.constant 5 : index
    %c0_121 = arith.constant 0 : index
    %189 = vector.load %arg3[%c5, %c0_121] : memref<40x128xf32, #tpu.memory_space<vmem>>, vector<1x128xf32>
    %190 = vector.broadcast %189 : vector<1x128xf32> to vector<16x128xf32>
    %191 = arith.mulf %188, %190 : vector<16x128xf32>
    %192 = arith.addf %187, %191 : vector<16x128xf32>
    %193 = vector.extract_strided_slice %161 {offsets = [19, 0], sizes = [16, 128], strides = [1, 1]} : vector<48x128xf32> to vector<16x128xf32>
    %c6 = arith.constant 6 : index
    %c0_122 = arith.constant 0 : index
    %194 = vector.load %arg3[%c6, %c0_122] : memref<40x128xf32, #tpu.memory_space<vmem>>, vector<1x128xf32>
    %195 = vector.broadcast %194 : vector<1x128xf32> to vector<16x128xf32>
    %196 = arith.mulf %193, %195 : vector<16x128xf32>
    %197 = arith.addf %192, %196 : vector<16x128xf32>
    %198 = vector.extract_strided_slice %161 {offsets = [20, 0], sizes = [16, 128], strides = [1, 1]} : vector<48x128xf32> to vector<16x128xf32>
    %c7 = arith.constant 7 : index
    %c0_123 = arith.constant 0 : index
    %199 = vector.load %arg3[%c7, %c0_123] : memref<40x128xf32, #tpu.memory_space<vmem>>, vector<1x128xf32>
    %200 = vector.broadcast %199 : vector<1x128xf32> to vector<16x128xf32>
    %201 = arith.mulf %198, %200 : vector<16x128xf32>
    %202 = arith.addf %197, %201 : vector<16x128xf32>
    %c1_124 = arith.constant 1 : index
    %c0_125 = arith.constant 0 : index
    %c0_126 = arith.constant 0 : index
    %203 = vector.load %arg5[%c1_124, %c0_125, %c0_126] : memref<4x48x128xf32, #tpu.memory_space<vmem>>, vector<1x48x128xf32>
    %204 = vector.shape_cast %203 : vector<1x48x128xf32> to vector<48x128xf32>
    %cst_127 = arith.constant 0.000000e+00 : f32
    %205 = vector.broadcast %cst_127 : f32 to vector<16x128xf32>
    %206 = vector.extract_strided_slice %204 {offsets = [13, 0], sizes = [16, 128], strides = [1, 1]} : vector<48x128xf32> to vector<16x128xf32>
    %c0_128 = arith.constant 0 : index
    %c0_129 = arith.constant 0 : index
    %207 = vector.load %arg3[%c0_128, %c0_129] : memref<40x128xf32, #tpu.memory_space<vmem>>, vector<1x128xf32>
    %208 = vector.broadcast %207 : vector<1x128xf32> to vector<16x128xf32>
    %209 = arith.mulf %206, %208 : vector<16x128xf32>
    %210 = arith.addf %205, %209 : vector<16x128xf32>
    %211 = vector.extract_strided_slice %204 {offsets = [14, 0], sizes = [16, 128], strides = [1, 1]} : vector<48x128xf32> to vector<16x128xf32>
    %c1_130 = arith.constant 1 : index
    %c0_131 = arith.constant 0 : index
    %212 = vector.load %arg3[%c1_130, %c0_131] : memref<40x128xf32, #tpu.memory_space<vmem>>, vector<1x128xf32>
    %213 = vector.broadcast %212 : vector<1x128xf32> to vector<16x128xf32>
    %214 = arith.mulf %211, %213 : vector<16x128xf32>
    %215 = arith.addf %210, %214 : vector<16x128xf32>
    %216 = vector.extract_strided_slice %204 {offsets = [15, 0], sizes = [16, 128], strides = [1, 1]} : vector<48x128xf32> to vector<16x128xf32>
    %c2_132 = arith.constant 2 : index
    %c0_133 = arith.constant 0 : index
    %217 = vector.load %arg3[%c2_132, %c0_133] : memref<40x128xf32, #tpu.memory_space<vmem>>, vector<1x128xf32>
    %218 = vector.broadcast %217 : vector<1x128xf32> to vector<16x128xf32>
    %219 = arith.mulf %216, %218 : vector<16x128xf32>
    %220 = arith.addf %215, %219 : vector<16x128xf32>
    %221 = vector.extract_strided_slice %204 {offsets = [16, 0], sizes = [16, 128], strides = [1, 1]} : vector<48x128xf32> to vector<16x128xf32>
    %c3_134 = arith.constant 3 : index
    %c0_135 = arith.constant 0 : index
    %222 = vector.load %arg3[%c3_134, %c0_135] : memref<40x128xf32, #tpu.memory_space<vmem>>, vector<1x128xf32>
    %223 = vector.broadcast %222 : vector<1x128xf32> to vector<16x128xf32>
    %224 = arith.mulf %221, %223 : vector<16x128xf32>
    %225 = arith.addf %220, %224 : vector<16x128xf32>
    %226 = vector.extract_strided_slice %204 {offsets = [17, 0], sizes = [16, 128], strides = [1, 1]} : vector<48x128xf32> to vector<16x128xf32>
    %c4_136 = arith.constant 4 : index
    %c0_137 = arith.constant 0 : index
    %227 = vector.load %arg3[%c4_136, %c0_137] : memref<40x128xf32, #tpu.memory_space<vmem>>, vector<1x128xf32>
    %228 = vector.broadcast %227 : vector<1x128xf32> to vector<16x128xf32>
    %229 = arith.mulf %226, %228 : vector<16x128xf32>
    %230 = arith.addf %225, %229 : vector<16x128xf32>
    %231 = vector.extract_strided_slice %204 {offsets = [18, 0], sizes = [16, 128], strides = [1, 1]} : vector<48x128xf32> to vector<16x128xf32>
    %c5_138 = arith.constant 5 : index
    %c0_139 = arith.constant 0 : index
    %232 = vector.load %arg3[%c5_138, %c0_139] : memref<40x128xf32, #tpu.memory_space<vmem>>, vector<1x128xf32>
    %233 = vector.broadcast %232 : vector<1x128xf32> to vector<16x128xf32>
    %234 = arith.mulf %231, %233 : vector<16x128xf32>
    %235 = arith.addf %230, %234 : vector<16x128xf32>
    %236 = vector.extract_strided_slice %204 {offsets = [19, 0], sizes = [16, 128], strides = [1, 1]} : vector<48x128xf32> to vector<16x128xf32>
    %c6_140 = arith.constant 6 : index
    %c0_141 = arith.constant 0 : index
    %237 = vector.load %arg3[%c6_140, %c0_141] : memref<40x128xf32, #tpu.memory_space<vmem>>, vector<1x128xf32>
    %238 = vector.broadcast %237 : vector<1x128xf32> to vector<16x128xf32>
    %239 = arith.mulf %236, %238 : vector<16x128xf32>
    %240 = arith.addf %235, %239 : vector<16x128xf32>
    %241 = vector.extract_strided_slice %204 {offsets = [20, 0], sizes = [16, 128], strides = [1, 1]} : vector<48x128xf32> to vector<16x128xf32>
    %c7_142 = arith.constant 7 : index
    %c0_143 = arith.constant 0 : index
    %242 = vector.load %arg3[%c7_142, %c0_143] : memref<40x128xf32, #tpu.memory_space<vmem>>, vector<1x128xf32>
    %243 = vector.broadcast %242 : vector<1x128xf32> to vector<16x128xf32>
    %244 = arith.mulf %241, %243 : vector<16x128xf32>
    %245 = arith.addf %240, %244 : vector<16x128xf32>
    %c2_144 = arith.constant 2 : index
    %c0_145 = arith.constant 0 : index
    %c0_146 = arith.constant 0 : index
    %246 = vector.load %arg5[%c2_144, %c0_145, %c0_146] : memref<4x48x128xf32, #tpu.memory_space<vmem>>, vector<1x48x128xf32>
    %247 = vector.shape_cast %246 : vector<1x48x128xf32> to vector<48x128xf32>
    %cst_147 = arith.constant 0.000000e+00 : f32
    %248 = vector.broadcast %cst_147 : f32 to vector<16x128xf32>
    %249 = vector.extract_strided_slice %247 {offsets = [13, 0], sizes = [16, 128], strides = [1, 1]} : vector<48x128xf32> to vector<16x128xf32>
    %c0_148 = arith.constant 0 : index
    %c0_149 = arith.constant 0 : index
    %250 = vector.load %arg3[%c0_148, %c0_149] : memref<40x128xf32, #tpu.memory_space<vmem>>, vector<1x128xf32>
    %251 = vector.broadcast %250 : vector<1x128xf32> to vector<16x128xf32>
    %252 = arith.mulf %249, %251 : vector<16x128xf32>
    %253 = arith.addf %248, %252 : vector<16x128xf32>
    %254 = vector.extract_strided_slice %247 {offsets = [14, 0], sizes = [16, 128], strides = [1, 1]} : vector<48x128xf32> to vector<16x128xf32>
    %c1_150 = arith.constant 1 : index
    %c0_151 = arith.constant 0 : index
    %255 = vector.load %arg3[%c1_150, %c0_151] : memref<40x128xf32, #tpu.memory_space<vmem>>, vector<1x128xf32>
    %256 = vector.broadcast %255 : vector<1x128xf32> to vector<16x128xf32>
    %257 = arith.mulf %254, %256 : vector<16x128xf32>
    %258 = arith.addf %253, %257 : vector<16x128xf32>
    %259 = vector.extract_strided_slice %247 {offsets = [15, 0], sizes = [16, 128], strides = [1, 1]} : vector<48x128xf32> to vector<16x128xf32>
    %c2_152 = arith.constant 2 : index
    %c0_153 = arith.constant 0 : index
    %260 = vector.load %arg3[%c2_152, %c0_153] : memref<40x128xf32, #tpu.memory_space<vmem>>, vector<1x128xf32>
    %261 = vector.broadcast %260 : vector<1x128xf32> to vector<16x128xf32>
    %262 = arith.mulf %259, %261 : vector<16x128xf32>
    %263 = arith.addf %258, %262 : vector<16x128xf32>
    %264 = vector.extract_strided_slice %247 {offsets = [16, 0], sizes = [16, 128], strides = [1, 1]} : vector<48x128xf32> to vector<16x128xf32>
    %c3_154 = arith.constant 3 : index
    %c0_155 = arith.constant 0 : index
    %265 = vector.load %arg3[%c3_154, %c0_155] : memref<40x128xf32, #tpu.memory_space<vmem>>, vector<1x128xf32>
    %266 = vector.broadcast %265 : vector<1x128xf32> to vector<16x128xf32>
    %267 = arith.mulf %264, %266 : vector<16x128xf32>
    %268 = arith.addf %263, %267 : vector<16x128xf32>
    %269 = vector.extract_strided_slice %247 {offsets = [17, 0], sizes = [16, 128], strides = [1, 1]} : vector<48x128xf32> to vector<16x128xf32>
    %c4_156 = arith.constant 4 : index
    %c0_157 = arith.constant 0 : index
    %270 = vector.load %arg3[%c4_156, %c0_157] : memref<40x128xf32, #tpu.memory_space<vmem>>, vector<1x128xf32>
    %271 = vector.broadcast %270 : vector<1x128xf32> to vector<16x128xf32>
    %272 = arith.mulf %269, %271 : vector<16x128xf32>
    %273 = arith.addf %268, %272 : vector<16x128xf32>
    %274 = vector.extract_strided_slice %247 {offsets = [18, 0], sizes = [16, 128], strides = [1, 1]} : vector<48x128xf32> to vector<16x128xf32>
    %c5_158 = arith.constant 5 : index
    %c0_159 = arith.constant 0 : index
    %275 = vector.load %arg3[%c5_158, %c0_159] : memref<40x128xf32, #tpu.memory_space<vmem>>, vector<1x128xf32>
    %276 = vector.broadcast %275 : vector<1x128xf32> to vector<16x128xf32>
    %277 = arith.mulf %274, %276 : vector<16x128xf32>
    %278 = arith.addf %273, %277 : vector<16x128xf32>
    %279 = vector.extract_strided_slice %247 {offsets = [19, 0], sizes = [16, 128], strides = [1, 1]} : vector<48x128xf32> to vector<16x128xf32>
    %c6_160 = arith.constant 6 : index
    %c0_161 = arith.constant 0 : index
    %280 = vector.load %arg3[%c6_160, %c0_161] : memref<40x128xf32, #tpu.memory_space<vmem>>, vector<1x128xf32>
    %281 = vector.broadcast %280 : vector<1x128xf32> to vector<16x128xf32>
    %282 = arith.mulf %279, %281 : vector<16x128xf32>
    %283 = arith.addf %278, %282 : vector<16x128xf32>
    %284 = vector.extract_strided_slice %247 {offsets = [20, 0], sizes = [16, 128], strides = [1, 1]} : vector<48x128xf32> to vector<16x128xf32>
    %c7_162 = arith.constant 7 : index
    %c0_163 = arith.constant 0 : index
    %285 = vector.load %arg3[%c7_162, %c0_163] : memref<40x128xf32, #tpu.memory_space<vmem>>, vector<1x128xf32>
    %286 = vector.broadcast %285 : vector<1x128xf32> to vector<16x128xf32>
    %287 = arith.mulf %284, %286 : vector<16x128xf32>
    %288 = arith.addf %283, %287 : vector<16x128xf32>
    %c3_164 = arith.constant 3 : index
    %c0_165 = arith.constant 0 : index
    %c0_166 = arith.constant 0 : index
    %289 = vector.load %arg5[%c3_164, %c0_165, %c0_166] : memref<4x48x128xf32, #tpu.memory_space<vmem>>, vector<1x48x128xf32>
    %290 = vector.shape_cast %289 : vector<1x48x128xf32> to vector<48x128xf32>
    %cst_167 = arith.constant 0.000000e+00 : f32
    %291 = vector.broadcast %cst_167 : f32 to vector<16x128xf32>
    %292 = vector.extract_strided_slice %290 {offsets = [13, 0], sizes = [16, 128], strides = [1, 1]} : vector<48x128xf32> to vector<16x128xf32>
    %c0_168 = arith.constant 0 : index
    %c0_169 = arith.constant 0 : index
    %293 = vector.load %arg3[%c0_168, %c0_169] : memref<40x128xf32, #tpu.memory_space<vmem>>, vector<1x128xf32>
    %294 = vector.broadcast %293 : vector<1x128xf32> to vector<16x128xf32>
    %295 = arith.mulf %292, %294 : vector<16x128xf32>
    %296 = arith.addf %291, %295 : vector<16x128xf32>
    %297 = vector.extract_strided_slice %290 {offsets = [14, 0], sizes = [16, 128], strides = [1, 1]} : vector<48x128xf32> to vector<16x128xf32>
    %c1_170 = arith.constant 1 : index
    %c0_171 = arith.constant 0 : index
    %298 = vector.load %arg3[%c1_170, %c0_171] : memref<40x128xf32, #tpu.memory_space<vmem>>, vector<1x128xf32>
    %299 = vector.broadcast %298 : vector<1x128xf32> to vector<16x128xf32>
    %300 = arith.mulf %297, %299 : vector<16x128xf32>
    %301 = arith.addf %296, %300 : vector<16x128xf32>
    %302 = vector.extract_strided_slice %290 {offsets = [15, 0], sizes = [16, 128], strides = [1, 1]} : vector<48x128xf32> to vector<16x128xf32>
    %c2_172 = arith.constant 2 : index
    %c0_173 = arith.constant 0 : index
    %303 = vector.load %arg3[%c2_172, %c0_173] : memref<40x128xf32, #tpu.memory_space<vmem>>, vector<1x128xf32>
    %304 = vector.broadcast %303 : vector<1x128xf32> to vector<16x128xf32>
    %305 = arith.mulf %302, %304 : vector<16x128xf32>
    %306 = arith.addf %301, %305 : vector<16x128xf32>
    %307 = vector.extract_strided_slice %290 {offsets = [16, 0], sizes = [16, 128], strides = [1, 1]} : vector<48x128xf32> to vector<16x128xf32>
    %c3_174 = arith.constant 3 : index
    %c0_175 = arith.constant 0 : index
    %308 = vector.load %arg3[%c3_174, %c0_175] : memref<40x128xf32, #tpu.memory_space<vmem>>, vector<1x128xf32>
    %309 = vector.broadcast %308 : vector<1x128xf32> to vector<16x128xf32>
    %310 = arith.mulf %307, %309 : vector<16x128xf32>
    %311 = arith.addf %306, %310 : vector<16x128xf32>
    %312 = vector.extract_strided_slice %290 {offsets = [17, 0], sizes = [16, 128], strides = [1, 1]} : vector<48x128xf32> to vector<16x128xf32>
    %c4_176 = arith.constant 4 : index
    %c0_177 = arith.constant 0 : index
    %313 = vector.load %arg3[%c4_176, %c0_177] : memref<40x128xf32, #tpu.memory_space<vmem>>, vector<1x128xf32>
    %314 = vector.broadcast %313 : vector<1x128xf32> to vector<16x128xf32>
    %315 = arith.mulf %312, %314 : vector<16x128xf32>
    %316 = arith.addf %311, %315 : vector<16x128xf32>
    %317 = vector.extract_strided_slice %290 {offsets = [18, 0], sizes = [16, 128], strides = [1, 1]} : vector<48x128xf32> to vector<16x128xf32>
    %c5_178 = arith.constant 5 : index
    %c0_179 = arith.constant 0 : index
    %318 = vector.load %arg3[%c5_178, %c0_179] : memref<40x128xf32, #tpu.memory_space<vmem>>, vector<1x128xf32>
    %319 = vector.broadcast %318 : vector<1x128xf32> to vector<16x128xf32>
    %320 = arith.mulf %317, %319 : vector<16x128xf32>
    %321 = arith.addf %316, %320 : vector<16x128xf32>
    %322 = vector.extract_strided_slice %290 {offsets = [19, 0], sizes = [16, 128], strides = [1, 1]} : vector<48x128xf32> to vector<16x128xf32>
    %c6_180 = arith.constant 6 : index
    %c0_181 = arith.constant 0 : index
    %323 = vector.load %arg3[%c6_180, %c0_181] : memref<40x128xf32, #tpu.memory_space<vmem>>, vector<1x128xf32>
    %324 = vector.broadcast %323 : vector<1x128xf32> to vector<16x128xf32>
    %325 = arith.mulf %322, %324 : vector<16x128xf32>
    %326 = arith.addf %321, %325 : vector<16x128xf32>
    %327 = vector.extract_strided_slice %290 {offsets = [20, 0], sizes = [16, 128], strides = [1, 1]} : vector<48x128xf32> to vector<16x128xf32>
    %c7_182 = arith.constant 7 : index
    %c0_183 = arith.constant 0 : index
    %328 = vector.load %arg3[%c7_182, %c0_183] : memref<40x128xf32, #tpu.memory_space<vmem>>, vector<1x128xf32>
    %329 = vector.broadcast %328 : vector<1x128xf32> to vector<16x128xf32>
    %330 = arith.mulf %327, %329 : vector<16x128xf32>
    %331 = arith.addf %326, %330 : vector<16x128xf32>
    %332 = tpu.concatenate %202, %245, %288, %331 in 0 : vector<16x128xf32>, vector<16x128xf32>, vector<16x128xf32>, vector<16x128xf32> -> vector<64x128xf32>
    %c9 = arith.constant 9 : index
    %c0_184 = arith.constant 0 : index
    %333 = vector.load %arg3[%c9, %c0_184] : memref<40x128xf32, #tpu.memory_space<vmem>>, vector<1x128xf32>
    %c10 = arith.constant 10 : index
    %c0_185 = arith.constant 0 : index
    %334 = vector.load %arg3[%c10, %c0_185] : memref<40x128xf32, #tpu.memory_space<vmem>>, vector<1x128xf32>
    %335 = vector.extract_strided_slice %332 {offsets = [0, 0], sizes = [32, 128], strides = [1, 1]} : vector<64x128xf32> to vector<32x128xf32>
    %cst_186 = arith.constant dense<0.000000e+00> : vector<128xf32>
    %336 = vector.multi_reduction <add>, %335, %cst_186 [0] : vector<32x128xf32> to vector<128xf32>
    %337 = vector.shape_cast %336 : vector<128xf32> to vector<1x128xf32>
    %cst_187 = arith.constant 3.125000e-02 : f32
    %338 = vector.broadcast %cst_187 : f32 to vector<1x128xf32>
    %339 = arith.mulf %337, %338 : vector<1x128xf32>
    %340 = arith.mulf %335, %335 : vector<32x128xf32>
    %cst_188 = arith.constant dense<0.000000e+00> : vector<128xf32>
    %341 = vector.multi_reduction <add>, %340, %cst_188 [0] : vector<32x128xf32> to vector<128xf32>
    %342 = vector.shape_cast %341 : vector<128xf32> to vector<1x128xf32>
    %cst_189 = arith.constant 3.125000e-02 : f32
    %343 = vector.broadcast %cst_189 : f32 to vector<1x128xf32>
    %344 = arith.mulf %342, %343 : vector<1x128xf32>
    %345 = arith.mulf %339, %339 : vector<1x128xf32>
    %346 = arith.subf %344, %345 : vector<1x128xf32>
    %cst_190 = arith.constant 0.000000e+00 : f32
    %347 = vector.broadcast %cst_190 : f32 to vector<1x128xf32>
    %348 = arith.maximumf %346, %347 : vector<1x128xf32>
    %349 = vector.broadcast %339 : vector<1x128xf32> to vector<32x128xf32>
    %350 = arith.subf %335, %349 : vector<32x128xf32>
    %cst_191 = arith.constant 9.99999974E-6 : f32
    %351 = vector.broadcast %cst_191 : f32 to vector<1x128xf32>
    %352 = arith.addf %348, %351 : vector<1x128xf32>
    %353 = math.rsqrt %352 : vector<1x128xf32>
    %354 = vector.broadcast %353 : vector<1x128xf32> to vector<32x128xf32>
    %355 = arith.mulf %350, %354 : vector<32x128xf32>
    %356 = vector.extract_strided_slice %332 {offsets = [32, 0], sizes = [32, 128], strides = [1, 1]} : vector<64x128xf32> to vector<32x128xf32>
    %cst_192 = arith.constant dense<0.000000e+00> : vector<128xf32>
    %357 = vector.multi_reduction <add>, %356, %cst_192 [0] : vector<32x128xf32> to vector<128xf32>
    %358 = vector.shape_cast %357 : vector<128xf32> to vector<1x128xf32>
    %cst_193 = arith.constant 3.125000e-02 : f32
    %359 = vector.broadcast %cst_193 : f32 to vector<1x128xf32>
    %360 = arith.mulf %358, %359 : vector<1x128xf32>
    %361 = arith.mulf %356, %356 : vector<32x128xf32>
    %cst_194 = arith.constant dense<0.000000e+00> : vector<128xf32>
    %362 = vector.multi_reduction <add>, %361, %cst_194 [0] : vector<32x128xf32> to vector<128xf32>
    %363 = vector.shape_cast %362 : vector<128xf32> to vector<1x128xf32>
    %cst_195 = arith.constant 3.125000e-02 : f32
    %364 = vector.broadcast %cst_195 : f32 to vector<1x128xf32>
    %365 = arith.mulf %363, %364 : vector<1x128xf32>
    %366 = arith.mulf %360, %360 : vector<1x128xf32>
    %367 = arith.subf %365, %366 : vector<1x128xf32>
    %cst_196 = arith.constant 0.000000e+00 : f32
    %368 = vector.broadcast %cst_196 : f32 to vector<1x128xf32>
    %369 = arith.maximumf %367, %368 : vector<1x128xf32>
    %370 = vector.broadcast %360 : vector<1x128xf32> to vector<32x128xf32>
    %371 = arith.subf %356, %370 : vector<32x128xf32>
    %cst_197 = arith.constant 9.99999974E-6 : f32
    %372 = vector.broadcast %cst_197 : f32 to vector<1x128xf32>
    %373 = arith.addf %369, %372 : vector<1x128xf32>
    %374 = math.rsqrt %373 : vector<1x128xf32>
    %375 = vector.broadcast %374 : vector<1x128xf32> to vector<32x128xf32>
    %376 = arith.mulf %371, %375 : vector<32x128xf32>
    %377 = tpu.concatenate %355, %376 in 0 : vector<32x128xf32>, vector<32x128xf32> -> vector<64x128xf32>
    %378 = vector.broadcast %333 : vector<1x128xf32> to vector<64x128xf32>
    %379 = arith.mulf %377, %378 : vector<64x128xf32>
    %380 = vector.broadcast %334 : vector<1x128xf32> to vector<64x128xf32>
    %381 = arith.addf %379, %380 : vector<64x128xf32>
    %cst_198 = arith.constant 0.000000e+00 : f32
    %382 = vector.broadcast %cst_198 : f32 to vector<64x128xf32>
    %383 = arith.maximumf %381, %382 : vector<64x128xf32>
    %384 = vector.extract_strided_slice %383 {offsets = [0, 0], sizes = [16, 128], strides = [1, 1]} : vector<64x128xf32> to vector<16x128xf32>
    %385 = arith.truncf %384 : vector<16x128xf32> to vector<16x128xbf16>
    %c0_199 = arith.constant 0 : index
    %c16_200 = arith.constant 16 : index
    %c0_201 = arith.constant 0 : index
    %386 = vector.load %arg6[%c0_199, %c16_200, %c0_201] : memref<4x48x128xbf16, #tpu.memory_space<vmem>>, vector<1x16x128xbf16>
    %387 = vector.shape_cast %386 : vector<1x16x128xbf16> to vector<16x128xbf16>
    %388 = vector.shape_cast %385 : vector<16x128xbf16> to vector<1x16x128xbf16>
    tpu.vector_store %arg6[%c0_199, %c16_200, %c0_201], %388 {strides = array<i32>} : memref<4x48x128xbf16, #tpu.memory_space<vmem>>, vector<1x16x128xbf16>,
    %389 = vector.extract_strided_slice %383 {offsets = [16, 0], sizes = [16, 128], strides = [1, 1]} : vector<64x128xf32> to vector<16x128xf32>
    %390 = arith.truncf %389 : vector<16x128xf32> to vector<16x128xbf16>
    %c1_202 = arith.constant 1 : index
    %c16_203 = arith.constant 16 : index
    %c0_204 = arith.constant 0 : index
    %391 = vector.load %arg6[%c1_202, %c16_203, %c0_204] : memref<4x48x128xbf16, #tpu.memory_space<vmem>>, vector<1x16x128xbf16>
    %392 = vector.shape_cast %391 : vector<1x16x128xbf16> to vector<16x128xbf16>
    %393 = vector.shape_cast %390 : vector<16x128xbf16> to vector<1x16x128xbf16>
    tpu.vector_store %arg6[%c1_202, %c16_203, %c0_204], %393 {strides = array<i32>} : memref<4x48x128xbf16, #tpu.memory_space<vmem>>, vector<1x16x128xbf16>,
    %394 = vector.extract_strided_slice %383 {offsets = [32, 0], sizes = [16, 128], strides = [1, 1]} : vector<64x128xf32> to vector<16x128xf32>
    %395 = arith.truncf %394 : vector<16x128xf32> to vector<16x128xbf16>
    %c2_205 = arith.constant 2 : index
    %c16_206 = arith.constant 16 : index
    %c0_207 = arith.constant 0 : index
    %396 = vector.load %arg6[%c2_205, %c16_206, %c0_207] : memref<4x48x128xbf16, #tpu.memory_space<vmem>>, vector<1x16x128xbf16>
    %397 = vector.shape_cast %396 : vector<1x16x128xbf16> to vector<16x128xbf16>
    %398 = vector.shape_cast %395 : vector<16x128xbf16> to vector<1x16x128xbf16>
    tpu.vector_store %arg6[%c2_205, %c16_206, %c0_207], %398 {strides = array<i32>} : memref<4x48x128xbf16, #tpu.memory_space<vmem>>, vector<1x16x128xbf16>,
    %399 = vector.extract_strided_slice %383 {offsets = [48, 0], sizes = [16, 128], strides = [1, 1]} : vector<64x128xf32> to vector<16x128xf32>
    %400 = arith.truncf %399 : vector<16x128xf32> to vector<16x128xbf16>
    %c3_208 = arith.constant 3 : index
    %c16_209 = arith.constant 16 : index
    %c0_210 = arith.constant 0 : index
    %401 = vector.load %arg6[%c3_208, %c16_209, %c0_210] : memref<4x48x128xbf16, #tpu.memory_space<vmem>>, vector<1x16x128xbf16>
    %402 = vector.shape_cast %401 : vector<1x16x128xbf16> to vector<16x128xbf16>
    %403 = vector.shape_cast %400 : vector<16x128xbf16> to vector<1x16x128xbf16>
    tpu.vector_store %arg6[%c3_208, %c16_209, %c0_210], %403 {strides = array<i32>} : memref<4x48x128xbf16, #tpu.memory_space<vmem>>, vector<1x16x128xbf16>,
    %c0_211 = arith.constant 0 : index
    %c0_212 = arith.constant 0 : index
    %c0_213 = arith.constant 0 : index
    %404 = vector.load %arg6[%c0_211, %c0_212, %c0_213] : memref<4x48x128xbf16, #tpu.memory_space<vmem>>, vector<1x48x128xbf16>
    %405 = vector.shape_cast %404 : vector<1x48x128xbf16> to vector<48x128xbf16>
    %406 = vector.extract_strided_slice %405 {offsets = [14, 0], sizes = [16, 128], strides = [1, 1]} : vector<48x128xbf16> to vector<16x128xbf16>
    %407 = vector.extract_strided_slice %405 {offsets = [15, 0], sizes = [16, 128], strides = [1, 1]} : vector<48x128xbf16> to vector<16x128xbf16>
    %408 = vector.extract_strided_slice %405 {offsets = [16, 0], sizes = [16, 128], strides = [1, 1]} : vector<48x128xbf16> to vector<16x128xbf16>
    %409 = vector.extract_strided_slice %405 {offsets = [17, 0], sizes = [16, 128], strides = [1, 1]} : vector<48x128xbf16> to vector<16x128xbf16>
    %410 = vector.extract_strided_slice %405 {offsets = [18, 0], sizes = [16, 128], strides = [1, 1]} : vector<48x128xbf16> to vector<16x128xbf16>
    %411 = tpu.concatenate %406, %407, %408, %409, %410 in 1 : vector<16x128xbf16>, vector<16x128xbf16>, vector<16x128xbf16>, vector<16x128xbf16>, vector<16x128xbf16> -> vector<16x640xbf16>
    %c1_214 = arith.constant 1 : index
    %c0_215 = arith.constant 0 : index
    %c0_216 = arith.constant 0 : index
    %412 = vector.load %arg6[%c1_214, %c0_215, %c0_216] : memref<4x48x128xbf16, #tpu.memory_space<vmem>>, vector<1x48x128xbf16>
    %413 = vector.shape_cast %412 : vector<1x48x128xbf16> to vector<48x128xbf16>
    %414 = vector.extract_strided_slice %413 {offsets = [14, 0], sizes = [16, 128], strides = [1, 1]} : vector<48x128xbf16> to vector<16x128xbf16>
    %415 = vector.extract_strided_slice %413 {offsets = [15, 0], sizes = [16, 128], strides = [1, 1]} : vector<48x128xbf16> to vector<16x128xbf16>
    %416 = vector.extract_strided_slice %413 {offsets = [16, 0], sizes = [16, 128], strides = [1, 1]} : vector<48x128xbf16> to vector<16x128xbf16>
    %417 = vector.extract_strided_slice %413 {offsets = [17, 0], sizes = [16, 128], strides = [1, 1]} : vector<48x128xbf16> to vector<16x128xbf16>
    %418 = vector.extract_strided_slice %413 {offsets = [18, 0], sizes = [16, 128], strides = [1, 1]} : vector<48x128xbf16> to vector<16x128xbf16>
    %419 = tpu.concatenate %414, %415, %416, %417, %418 in 1 : vector<16x128xbf16>, vector<16x128xbf16>, vector<16x128xbf16>, vector<16x128xbf16>, vector<16x128xbf16> -> vector<16x640xbf16>
    %c2_217 = arith.constant 2 : index
    %c0_218 = arith.constant 0 : index
    %c0_219 = arith.constant 0 : index
    %420 = vector.load %arg6[%c2_217, %c0_218, %c0_219] : memref<4x48x128xbf16, #tpu.memory_space<vmem>>, vector<1x48x128xbf16>
    %421 = vector.shape_cast %420 : vector<1x48x128xbf16> to vector<48x128xbf16>
    %422 = vector.extract_strided_slice %421 {offsets = [14, 0], sizes = [16, 128], strides = [1, 1]} : vector<48x128xbf16> to vector<16x128xbf16>
    %423 = vector.extract_strided_slice %421 {offsets = [15, 0], sizes = [16, 128], strides = [1, 1]} : vector<48x128xbf16> to vector<16x128xbf16>
    %424 = vector.extract_strided_slice %421 {offsets = [16, 0], sizes = [16, 128], strides = [1, 1]} : vector<48x128xbf16> to vector<16x128xbf16>
    %425 = vector.extract_strided_slice %421 {offsets = [17, 0], sizes = [16, 128], strides = [1, 1]} : vector<48x128xbf16> to vector<16x128xbf16>
    %426 = vector.extract_strided_slice %421 {offsets = [18, 0], sizes = [16, 128], strides = [1, 1]} : vector<48x128xbf16> to vector<16x128xbf16>
    %427 = tpu.concatenate %422, %423, %424, %425, %426 in 1 : vector<16x128xbf16>, vector<16x128xbf16>, vector<16x128xbf16>, vector<16x128xbf16>, vector<16x128xbf16> -> vector<16x640xbf16>
    %c3_220 = arith.constant 3 : index
    %c0_221 = arith.constant 0 : index
    %c0_222 = arith.constant 0 : index
    %428 = vector.load %arg6[%c3_220, %c0_221, %c0_222] : memref<4x48x128xbf16, #tpu.memory_space<vmem>>, vector<1x48x128xbf16>
    %429 = vector.shape_cast %428 : vector<1x48x128xbf16> to vector<48x128xbf16>
    %430 = vector.extract_strided_slice %429 {offsets = [14, 0], sizes = [16, 128], strides = [1, 1]} : vector<48x128xbf16> to vector<16x128xbf16>
    %431 = vector.extract_strided_slice %429 {offsets = [15, 0], sizes = [16, 128], strides = [1, 1]} : vector<48x128xbf16> to vector<16x128xbf16>
    %432 = vector.extract_strided_slice %429 {offsets = [16, 0], sizes = [16, 128], strides = [1, 1]} : vector<48x128xbf16> to vector<16x128xbf16>
    %433 = vector.extract_strided_slice %429 {offsets = [17, 0], sizes = [16, 128], strides = [1, 1]} : vector<48x128xbf16> to vector<16x128xbf16>
    %434 = vector.extract_strided_slice %429 {offsets = [18, 0], sizes = [16, 128], strides = [1, 1]} : vector<48x128xbf16> to vector<16x128xbf16>
    %435 = tpu.concatenate %430, %431, %432, %433, %434 in 1 : vector<16x128xbf16>, vector<16x128xbf16>, vector<16x128xbf16>, vector<16x128xbf16>, vector<16x128xbf16> -> vector<16x640xbf16>
    %436 = tpu.concatenate %411, %419, %427, %435 in 0 : vector<16x640xbf16>, vector<16x640xbf16>, vector<16x640xbf16>, vector<16x640xbf16> -> vector<64x640xbf16>
    %c0_223 = arith.constant 0 : index
    %c0_224 = arith.constant 0 : index
    %437 = vector.load %arg2[%c0_223, %c0_224] : memref<5248x128xbf16, #tpu.memory_space<vmem>>, vector<640x128xbf16>
    %cst_225 = arith.constant dense<0.000000e+00> : vector<64x128xf32>
    %438 = tpu.matmul %436, %437, %cst_225 {dimension_numbers = #tpu.dot_dimension_numbers<[1], [0], [0], [1], [0, 0, 1, 1], [], []>} : vector<64x640xbf16>, vector<640x128xbf16>, vector<64x128xf32> -> vector<64x128xf32>
    %c13 = arith.constant 13 : index
    %c0_226 = arith.constant 0 : index
    %439 = vector.load %arg3[%c13, %c0_226] : memref<40x128xf32, #tpu.memory_space<vmem>>, vector<1x128xf32>
    %c14 = arith.constant 14 : index
    %c0_227 = arith.constant 0 : index
    %440 = vector.load %arg3[%c14, %c0_227] : memref<40x128xf32, #tpu.memory_space<vmem>>, vector<1x128xf32>
    %441 = vector.extract_strided_slice %438 {offsets = [0, 0], sizes = [32, 128], strides = [1, 1]} : vector<64x128xf32> to vector<32x128xf32>
    %cst_228 = arith.constant dense<0.000000e+00> : vector<128xf32>
    %442 = vector.multi_reduction <add>, %441, %cst_228 [0] : vector<32x128xf32> to vector<128xf32>
    %443 = vector.shape_cast %442 : vector<128xf32> to vector<1x128xf32>
    %cst_229 = arith.constant 3.125000e-02 : f32
    %444 = vector.broadcast %cst_229 : f32 to vector<1x128xf32>
    %445 = arith.mulf %443, %444 : vector<1x128xf32>
    %446 = arith.mulf %441, %441 : vector<32x128xf32>
    %cst_230 = arith.constant dense<0.000000e+00> : vector<128xf32>
    %447 = vector.multi_reduction <add>, %446, %cst_230 [0] : vector<32x128xf32> to vector<128xf32>
    %448 = vector.shape_cast %447 : vector<128xf32> to vector<1x128xf32>
    %cst_231 = arith.constant 3.125000e-02 : f32
    %449 = vector.broadcast %cst_231 : f32 to vector<1x128xf32>
    %450 = arith.mulf %448, %449 : vector<1x128xf32>
    %451 = arith.mulf %445, %445 : vector<1x128xf32>
    %452 = arith.subf %450, %451 : vector<1x128xf32>
    %cst_232 = arith.constant 0.000000e+00 : f32
    %453 = vector.broadcast %cst_232 : f32 to vector<1x128xf32>
    %454 = arith.maximumf %452, %453 : vector<1x128xf32>
    %455 = vector.broadcast %445 : vector<1x128xf32> to vector<32x128xf32>
    %456 = arith.subf %441, %455 : vector<32x128xf32>
    %cst_233 = arith.constant 9.99999974E-6 : f32
    %457 = vector.broadcast %cst_233 : f32 to vector<1x128xf32>
    %458 = arith.addf %454, %457 : vector<1x128xf32>
    %459 = math.rsqrt %458 : vector<1x128xf32>
    %460 = vector.broadcast %459 : vector<1x128xf32> to vector<32x128xf32>
    %461 = arith.mulf %456, %460 : vector<32x128xf32>
    %462 = vector.extract_strided_slice %438 {offsets = [32, 0], sizes = [32, 128], strides = [1, 1]} : vector<64x128xf32> to vector<32x128xf32>
    %cst_234 = arith.constant dense<0.000000e+00> : vector<128xf32>
    %463 = vector.multi_reduction <add>, %462, %cst_234 [0] : vector<32x128xf32> to vector<128xf32>
    %464 = vector.shape_cast %463 : vector<128xf32> to vector<1x128xf32>
    %cst_235 = arith.constant 3.125000e-02 : f32
    %465 = vector.broadcast %cst_235 : f32 to vector<1x128xf32>
    %466 = arith.mulf %464, %465 : vector<1x128xf32>
    %467 = arith.mulf %462, %462 : vector<32x128xf32>
    %cst_236 = arith.constant dense<0.000000e+00> : vector<128xf32>
    %468 = vector.multi_reduction <add>, %467, %cst_236 [0] : vector<32x128xf32> to vector<128xf32>
    %469 = vector.shape_cast %468 : vector<128xf32> to vector<1x128xf32>
    %cst_237 = arith.constant 3.125000e-02 : f32
    %470 = vector.broadcast %cst_237 : f32 to vector<1x128xf32>
    %471 = arith.mulf %469, %470 : vector<1x128xf32>
    %472 = arith.mulf %466, %466 : vector<1x128xf32>
    %473 = arith.subf %471, %472 : vector<1x128xf32>
    %cst_238 = arith.constant 0.000000e+00 : f32
    %474 = vector.broadcast %cst_238 : f32 to vector<1x128xf32>
    %475 = arith.maximumf %473, %474 : vector<1x128xf32>
    %476 = vector.broadcast %466 : vector<1x128xf32> to vector<32x128xf32>
    %477 = arith.subf %462, %476 : vector<32x128xf32>
    %cst_239 = arith.constant 9.99999974E-6 : f32
    %478 = vector.broadcast %cst_239 : f32 to vector<1x128xf32>
    %479 = arith.addf %475, %478 : vector<1x128xf32>
    %480 = math.rsqrt %479 : vector<1x128xf32>
    %481 = vector.broadcast %480 : vector<1x128xf32> to vector<32x128xf32>
    %482 = arith.mulf %477, %481 : vector<32x128xf32>
    %483 = tpu.concatenate %461, %482 in 0 : vector<32x128xf32>, vector<32x128xf32> -> vector<64x128xf32>
    %484 = vector.broadcast %439 : vector<1x128xf32> to vector<64x128xf32>
    %485 = arith.mulf %483, %484 : vector<64x128xf32>
    %486 = vector.broadcast %440 : vector<1x128xf32> to vector<64x128xf32>
    %487 = arith.addf %485, %486 : vector<64x128xf32>
    %cst_240 = arith.constant 0.000000e+00 : f32
    %488 = vector.broadcast %cst_240 : f32 to vector<64x128xf32>
    %489 = arith.maximumf %487, %488 : vector<64x128xf32>
    %490 = vector.extract_strided_slice %489 {offsets = [0, 0], sizes = [16, 128], strides = [1, 1]} : vector<64x128xf32> to vector<16x128xf32>
    %491 = arith.truncf %490 : vector<16x128xf32> to vector<16x128xbf16>
    %c0_241 = arith.constant 0 : index
    %c16_242 = arith.constant 16 : index
    %c0_243 = arith.constant 0 : index
    %492 = vector.load %arg6[%c0_241, %c16_242, %c0_243] : memref<4x48x128xbf16, #tpu.memory_space<vmem>>, vector<1x16x128xbf16>
    %493 = vector.shape_cast %492 : vector<1x16x128xbf16> to vector<16x128xbf16>
    %494 = vector.shape_cast %491 : vector<16x128xbf16> to vector<1x16x128xbf16>
    tpu.vector_store %arg6[%c0_241, %c16_242, %c0_243], %494 {strides = array<i32>} : memref<4x48x128xbf16, #tpu.memory_space<vmem>>, vector<1x16x128xbf16>,
    %495 = vector.extract_strided_slice %489 {offsets = [16, 0], sizes = [16, 128], strides = [1, 1]} : vector<64x128xf32> to vector<16x128xf32>
    %496 = arith.truncf %495 : vector<16x128xf32> to vector<16x128xbf16>
    %c1_244 = arith.constant 1 : index
    %c16_245 = arith.constant 16 : index
    %c0_246 = arith.constant 0 : index
    %497 = vector.load %arg6[%c1_244, %c16_245, %c0_246] : memref<4x48x128xbf16, #tpu.memory_space<vmem>>, vector<1x16x128xbf16>
    %498 = vector.shape_cast %497 : vector<1x16x128xbf16> to vector<16x128xbf16>
    %499 = vector.shape_cast %496 : vector<16x128xbf16> to vector<1x16x128xbf16>
    tpu.vector_store %arg6[%c1_244, %c16_245, %c0_246], %499 {strides = array<i32>} : memref<4x48x128xbf16, #tpu.memory_space<vmem>>, vector<1x16x128xbf16>,
    %500 = vector.extract_strided_slice %489 {offsets = [32, 0], sizes = [16, 128], strides = [1, 1]} : vector<64x128xf32> to vector<16x128xf32>
    %501 = arith.truncf %500 : vector<16x128xf32> to vector<16x128xbf16>
    %c2_247 = arith.constant 2 : index
    %c16_248 = arith.constant 16 : index
    %c0_249 = arith.constant 0 : index
    %502 = vector.load %arg6[%c2_247, %c16_248, %c0_249] : memref<4x48x128xbf16, #tpu.memory_space<vmem>>, vector<1x16x128xbf16>
    %503 = vector.shape_cast %502 : vector<1x16x128xbf16> to vector<16x128xbf16>
    %504 = vector.shape_cast %501 : vector<16x128xbf16> to vector<1x16x128xbf16>
    tpu.vector_store %arg6[%c2_247, %c16_248, %c0_249], %504 {strides = array<i32>} : memref<4x48x128xbf16, #tpu.memory_space<vmem>>, vector<1x16x128xbf16>,
    %505 = vector.extract_strided_slice %489 {offsets = [48, 0], sizes = [16, 128], strides = [1, 1]} : vector<64x128xf32> to vector<16x128xf32>
    %506 = arith.truncf %505 : vector<16x128xf32> to vector<16x128xbf16>
    %c3_250 = arith.constant 3 : index
    %c16_251 = arith.constant 16 : index
    %c0_252 = arith.constant 0 : index
    %507 = vector.load %arg6[%c3_250, %c16_251, %c0_252] : memref<4x48x128xbf16, #tpu.memory_space<vmem>>, vector<1x16x128xbf16>
    %508 = vector.shape_cast %507 : vector<1x16x128xbf16> to vector<16x128xbf16>
    %509 = vector.shape_cast %506 : vector<16x128xbf16> to vector<1x16x128xbf16>
    tpu.vector_store %arg6[%c3_250, %c16_251, %c0_252], %509 {strides = array<i32>} : memref<4x48x128xbf16, #tpu.memory_space<vmem>>, vector<1x16x128xbf16>,
    %c0_253 = arith.constant 0 : index
    %c0_254 = arith.constant 0 : index
    %c0_255 = arith.constant 0 : index
    %510 = vector.load %arg6[%c0_253, %c0_254, %c0_255] : memref<4x48x128xbf16, #tpu.memory_space<vmem>>, vector<1x48x128xbf16>
    %511 = vector.shape_cast %510 : vector<1x48x128xbf16> to vector<48x128xbf16>
    %512 = vector.extract_strided_slice %511 {offsets = [15, 0], sizes = [16, 128], strides = [1, 1]} : vector<48x128xbf16> to vector<16x128xbf16>
    %513 = vector.extract_strided_slice %511 {offsets = [16, 0], sizes = [16, 128], strides = [1, 1]} : vector<48x128xbf16> to vector<16x128xbf16>
    %514 = vector.extract_strided_slice %511 {offsets = [17, 0], sizes = [16, 128], strides = [1, 1]} : vector<48x128xbf16> to vector<16x128xbf16>
    %515 = tpu.concatenate %512, %513, %514 in 1 : vector<16x128xbf16>, vector<16x128xbf16>, vector<16x128xbf16> -> vector<16x384xbf16>
    %c1_256 = arith.constant 1 : index
    %c0_257 = arith.constant 0 : index
    %c0_258 = arith.constant 0 : index
    %516 = vector.load %arg6[%c1_256, %c0_257, %c0_258] : memref<4x48x128xbf16, #tpu.memory_space<vmem>>, vector<1x48x128xbf16>
    %517 = vector.shape_cast %516 : vector<1x48x128xbf16> to vector<48x128xbf16>
    %518 = vector.extract_strided_slice %517 {offsets = [15, 0], sizes = [16, 128], strides = [1, 1]} : vector<48x128xbf16> to vector<16x128xbf16>
    %519 = vector.extract_strided_slice %517 {offsets = [16, 0], sizes = [16, 128], strides = [1, 1]} : vector<48x128xbf16> to vector<16x128xbf16>
    %520 = vector.extract_strided_slice %517 {offsets = [17, 0], sizes = [16, 128], strides = [1, 1]} : vector<48x128xbf16> to vector<16x128xbf16>
    %521 = tpu.concatenate %518, %519, %520 in 1 : vector<16x128xbf16>, vector<16x128xbf16>, vector<16x128xbf16> -> vector<16x384xbf16>
    %c2_259 = arith.constant 2 : index
    %c0_260 = arith.constant 0 : index
    %c0_261 = arith.constant 0 : index
    %522 = vector.load %arg6[%c2_259, %c0_260, %c0_261] : memref<4x48x128xbf16, #tpu.memory_space<vmem>>, vector<1x48x128xbf16>
    %523 = vector.shape_cast %522 : vector<1x48x128xbf16> to vector<48x128xbf16>
    %524 = vector.extract_strided_slice %523 {offsets = [15, 0], sizes = [16, 128], strides = [1, 1]} : vector<48x128xbf16> to vector<16x128xbf16>
    %525 = vector.extract_strided_slice %523 {offsets = [16, 0], sizes = [16, 128], strides = [1, 1]} : vector<48x128xbf16> to vector<16x128xbf16>
    %526 = vector.extract_strided_slice %523 {offsets = [17, 0], sizes = [16, 128], strides = [1, 1]} : vector<48x128xbf16> to vector<16x128xbf16>
    %527 = tpu.concatenate %524, %525, %526 in 1 : vector<16x128xbf16>, vector<16x128xbf16>, vector<16x128xbf16> -> vector<16x384xbf16>
    %c3_262 = arith.constant 3 : index
    %c0_263 = arith.constant 0 : index
    %c0_264 = arith.constant 0 : index
    %528 = vector.load %arg6[%c3_262, %c0_263, %c0_264] : memref<4x48x128xbf16, #tpu.memory_space<vmem>>, vector<1x48x128xbf16>
    %529 = vector.shape_cast %528 : vector<1x48x128xbf16> to vector<48x128xbf16>
    %530 = vector.extract_strided_slice %529 {offsets = [15, 0], sizes = [16, 128], strides = [1, 1]} : vector<48x128xbf16> to vector<16x128xbf16>
    %531 = vector.extract_strided_slice %529 {offsets = [16, 0], sizes = [16, 128], strides = [1, 1]} : vector<48x128xbf16> to vector<16x128xbf16>
    %532 = vector.extract_strided_slice %529 {offsets = [17, 0], sizes = [16, 128], strides = [1, 1]} : vector<48x128xbf16> to vector<16x128xbf16>
    %533 = tpu.concatenate %530, %531, %532 in 1 : vector<16x128xbf16>, vector<16x128xbf16>, vector<16x128xbf16> -> vector<16x384xbf16>
    %534 = tpu.concatenate %515, %521, %527, %533 in 0 : vector<16x384xbf16>, vector<16x384xbf16>, vector<16x384xbf16>, vector<16x384xbf16> -> vector<64x384xbf16>
    %c640 = arith.constant 640 : index
    %c0_265 = arith.constant 0 : index
    %535 = vector.load %arg2[%c640, %c0_265] : memref<5248x128xbf16, #tpu.memory_space<vmem>>, vector<384x128xbf16>
    %cst_266 = arith.constant dense<0.000000e+00> : vector<64x128xf32>
    %536 = tpu.matmul %534, %535, %cst_266 {dimension_numbers = #tpu.dot_dimension_numbers<[1], [0], [0], [1], [0, 0, 1, 1], [], []>} : vector<64x384xbf16>, vector<384x128xbf16>, vector<64x128xf32> -> vector<64x128xf32>
    %c15 = arith.constant 15 : index
    %c0_267 = arith.constant 0 : index
    %537 = vector.load %arg3[%c15, %c0_267] : memref<40x128xf32, #tpu.memory_space<vmem>>, vector<1x128xf32>
    %c16_268 = arith.constant 16 : index
    %c0_269 = arith.constant 0 : index
    %538 = vector.load %arg3[%c16_268, %c0_269] : memref<40x128xf32, #tpu.memory_space<vmem>>, vector<1x128xf32>
    %539 = vector.extract_strided_slice %536 {offsets = [0, 0], sizes = [32, 128], strides = [1, 1]} : vector<64x128xf32> to vector<32x128xf32>
    %cst_270 = arith.constant dense<0.000000e+00> : vector<128xf32>
    %540 = vector.multi_reduction <add>, %539, %cst_270 [0] : vector<32x128xf32> to vector<128xf32>
    %541 = vector.shape_cast %540 : vector<128xf32> to vector<1x128xf32>
    %cst_271 = arith.constant 3.125000e-02 : f32
    %542 = vector.broadcast %cst_271 : f32 to vector<1x128xf32>
    %543 = arith.mulf %541, %542 : vector<1x128xf32>
    %544 = arith.mulf %539, %539 : vector<32x128xf32>
    %cst_272 = arith.constant dense<0.000000e+00> : vector<128xf32>
    %545 = vector.multi_reduction <add>, %544, %cst_272 [0] : vector<32x128xf32> to vector<128xf32>
    %546 = vector.shape_cast %545 : vector<128xf32> to vector<1x128xf32>
    %cst_273 = arith.constant 3.125000e-02 : f32
    %547 = vector.broadcast %cst_273 : f32 to vector<1x128xf32>
    %548 = arith.mulf %546, %547 : vector<1x128xf32>
    %549 = arith.mulf %543, %543 : vector<1x128xf32>
    %550 = arith.subf %548, %549 : vector<1x128xf32>
    %cst_274 = arith.constant 0.000000e+00 : f32
    %551 = vector.broadcast %cst_274 : f32 to vector<1x128xf32>
    %552 = arith.maximumf %550, %551 : vector<1x128xf32>
    %553 = vector.broadcast %543 : vector<1x128xf32> to vector<32x128xf32>
    %554 = arith.subf %539, %553 : vector<32x128xf32>
    %cst_275 = arith.constant 9.99999974E-6 : f32
    %555 = vector.broadcast %cst_275 : f32 to vector<1x128xf32>
    %556 = arith.addf %552, %555 : vector<1x128xf32>
    %557 = math.rsqrt %556 : vector<1x128xf32>
    %558 = vector.broadcast %557 : vector<1x128xf32> to vector<32x128xf32>
    %559 = arith.mulf %554, %558 : vector<32x128xf32>
    %560 = vector.extract_strided_slice %536 {offsets = [32, 0], sizes = [32, 128], strides = [1, 1]} : vector<64x128xf32> to vector<32x128xf32>
    %cst_276 = arith.constant dense<0.000000e+00> : vector<128xf32>
    %561 = vector.multi_reduction <add>, %560, %cst_276 [0] : vector<32x128xf32> to vector<128xf32>
    %562 = vector.shape_cast %561 : vector<128xf32> to vector<1x128xf32>
    %cst_277 = arith.constant 3.125000e-02 : f32
    %563 = vector.broadcast %cst_277 : f32 to vector<1x128xf32>
    %564 = arith.mulf %562, %563 : vector<1x128xf32>
    %565 = arith.mulf %560, %560 : vector<32x128xf32>
    %cst_278 = arith.constant dense<0.000000e+00> : vector<128xf32>
    %566 = vector.multi_reduction <add>, %565, %cst_278 [0] : vector<32x128xf32> to vector<128xf32>
    %567 = vector.shape_cast %566 : vector<128xf32> to vector<1x128xf32>
    %cst_279 = arith.constant 3.125000e-02 : f32
    %568 = vector.broadcast %cst_279 : f32 to vector<1x128xf32>
    %569 = arith.mulf %567, %568 : vector<1x128xf32>
    %570 = arith.mulf %564, %564 : vector<1x128xf32>
    %571 = arith.subf %569, %570 : vector<1x128xf32>
    %cst_280 = arith.constant 0.000000e+00 : f32
    %572 = vector.broadcast %cst_280 : f32 to vector<1x128xf32>
    %573 = arith.maximumf %571, %572 : vector<1x128xf32>
    %574 = vector.broadcast %564 : vector<1x128xf32> to vector<32x128xf32>
    %575 = arith.subf %560, %574 : vector<32x128xf32>
    %cst_281 = arith.constant 9.99999974E-6 : f32
    %576 = vector.broadcast %cst_281 : f32 to vector<1x128xf32>
    %577 = arith.addf %573, %576 : vector<1x128xf32>
    %578 = math.rsqrt %577 : vector<1x128xf32>
    %579 = vector.broadcast %578 : vector<1x128xf32> to vector<32x128xf32>
    %580 = arith.mulf %575, %579 : vector<32x128xf32>
    %581 = tpu.concatenate %559, %580 in 0 : vector<32x128xf32>, vector<32x128xf32> -> vector<64x128xf32>
    %582 = vector.broadcast %537 : vector<1x128xf32> to vector<64x128xf32>
    %583 = arith.mulf %581, %582 : vector<64x128xf32>
    %584 = vector.broadcast %538 : vector<1x128xf32> to vector<64x128xf32>
    %585 = arith.addf %583, %584 : vector<64x128xf32>
    %586 = arith.addf %585, %159 : vector<64x128xf32>
    %cst_282 = arith.constant 0.000000e+00 : f32
    %587 = vector.broadcast %cst_282 : f32 to vector<64x128xf32>
    %588 = arith.maximumf %586, %587 : vector<64x128xf32>
    %589 = vector.extract_strided_slice %588 {offsets = [0, 0], sizes = [16, 128], strides = [1, 1]} : vector<64x128xf32> to vector<16x128xf32>
    %590 = arith.truncf %589 : vector<16x128xf32> to vector<16x128xbf16>
    %c0_283 = arith.constant 0 : index
    %c16_284 = arith.constant 16 : index
    %c0_285 = arith.constant 0 : index
    %591 = vector.load %arg6[%c0_283, %c16_284, %c0_285] : memref<4x48x128xbf16, #tpu.memory_space<vmem>>, vector<1x16x128xbf16>
    %592 = vector.shape_cast %591 : vector<1x16x128xbf16> to vector<16x128xbf16>
    %593 = vector.shape_cast %590 : vector<16x128xbf16> to vector<1x16x128xbf16>
    tpu.vector_store %arg6[%c0_283, %c16_284, %c0_285], %593 {strides = array<i32>} : memref<4x48x128xbf16, #tpu.memory_space<vmem>>, vector<1x16x128xbf16>,
    %594 = vector.extract_strided_slice %588 {offsets = [16, 0], sizes = [16, 128], strides = [1, 1]} : vector<64x128xf32> to vector<16x128xf32>
    %595 = arith.truncf %594 : vector<16x128xf32> to vector<16x128xbf16>
    %c1_286 = arith.constant 1 : index
    %c16_287 = arith.constant 16 : index
    %c0_288 = arith.constant 0 : index
    %596 = vector.load %arg6[%c1_286, %c16_287, %c0_288] : memref<4x48x128xbf16, #tpu.memory_space<vmem>>, vector<1x16x128xbf16>
    %597 = vector.shape_cast %596 : vector<1x16x128xbf16> to vector<16x128xbf16>
    %598 = vector.shape_cast %595 : vector<16x128xbf16> to vector<1x16x128xbf16>
    tpu.vector_store %arg6[%c1_286, %c16_287, %c0_288], %598 {strides = array<i32>} : memref<4x48x128xbf16, #tpu.memory_space<vmem>>, vector<1x16x128xbf16>,
    %599 = vector.extract_strided_slice %588 {offsets = [32, 0], sizes = [16, 128], strides = [1, 1]} : vector<64x128xf32> to vector<16x128xf32>
    %600 = arith.truncf %599 : vector<16x128xf32> to vector<16x128xbf16>
    %c2_289 = arith.constant 2 : index
    %c16_290 = arith.constant 16 : index
    %c0_291 = arith.constant 0 : index
    %601 = vector.load %arg6[%c2_289, %c16_290, %c0_291] : memref<4x48x128xbf16, #tpu.memory_space<vmem>>, vector<1x16x128xbf16>
    %602 = vector.shape_cast %601 : vector<1x16x128xbf16> to vector<16x128xbf16>
    %603 = vector.shape_cast %600 : vector<16x128xbf16> to vector<1x16x128xbf16>
    tpu.vector_store %arg6[%c2_289, %c16_290, %c0_291], %603 {strides = array<i32>} : memref<4x48x128xbf16, #tpu.memory_space<vmem>>, vector<1x16x128xbf16>,
    %604 = vector.extract_strided_slice %588 {offsets = [48, 0], sizes = [16, 128], strides = [1, 1]} : vector<64x128xf32> to vector<16x128xf32>
    %605 = arith.truncf %604 : vector<16x128xf32> to vector<16x128xbf16>
    %c3_292 = arith.constant 3 : index
    %c16_293 = arith.constant 16 : index
    %c0_294 = arith.constant 0 : index
    %606 = vector.load %arg6[%c3_292, %c16_293, %c0_294] : memref<4x48x128xbf16, #tpu.memory_space<vmem>>, vector<1x16x128xbf16>
    %607 = vector.shape_cast %606 : vector<1x16x128xbf16> to vector<16x128xbf16>
    %608 = vector.shape_cast %605 : vector<16x128xbf16> to vector<1x16x128xbf16>
    tpu.vector_store %arg6[%c3_292, %c16_293, %c0_294], %608 {strides = array<i32>} : memref<4x48x128xbf16, #tpu.memory_space<vmem>>, vector<1x16x128xbf16>,
    %c0_295 = arith.constant 0 : index
    %c0_296 = arith.constant 0 : index
    %c0_297 = arith.constant 0 : index
    %609 = vector.load %arg6[%c0_295, %c0_296, %c0_297] : memref<4x48x128xbf16, #tpu.memory_space<vmem>>, vector<1x48x128xbf16>
    %610 = vector.shape_cast %609 : vector<1x48x128xbf16> to vector<48x128xbf16>
    %611 = vector.extract_strided_slice %610 {offsets = [16, 0], sizes = [16, 128], strides = [1, 1]} : vector<48x128xbf16> to vector<16x128xbf16>
    %c1_298 = arith.constant 1 : index
    %c0_299 = arith.constant 0 : index
    %c0_300 = arith.constant 0 : index
    %612 = vector.load %arg6[%c1_298, %c0_299, %c0_300] : memref<4x48x128xbf16, #tpu.memory_space<vmem>>, vector<1x48x128xbf16>
    %613 = vector.shape_cast %612 : vector<1x48x128xbf16> to vector<48x128xbf16>
    %614 = vector.extract_strided_slice %613 {offsets = [16, 0], sizes = [16, 128], strides = [1, 1]} : vector<48x128xbf16> to vector<16x128xbf16>
    %c2_301 = arith.constant 2 : index
    %c0_302 = arith.constant 0 : index
    %c0_303 = arith.constant 0 : index
    %615 = vector.load %arg6[%c2_301, %c0_302, %c0_303] : memref<4x48x128xbf16, #tpu.memory_space<vmem>>, vector<1x48x128xbf16>
    %616 = vector.shape_cast %615 : vector<1x48x128xbf16> to vector<48x128xbf16>
    %617 = vector.extract_strided_slice %616 {offsets = [16, 0], sizes = [16, 128], strides = [1, 1]} : vector<48x128xbf16> to vector<16x128xbf16>
    %c3_304 = arith.constant 3 : index
    %c0_305 = arith.constant 0 : index
    %c0_306 = arith.constant 0 : index
    %618 = vector.load %arg6[%c3_304, %c0_305, %c0_306] : memref<4x48x128xbf16, #tpu.memory_space<vmem>>, vector<1x48x128xbf16>
    %619 = vector.shape_cast %618 : vector<1x48x128xbf16> to vector<48x128xbf16>
    %620 = vector.extract_strided_slice %619 {offsets = [16, 0], sizes = [16, 128], strides = [1, 1]} : vector<48x128xbf16> to vector<16x128xbf16>
    %621 = tpu.concatenate %611, %614, %617, %620 in 0 : vector<16x128xbf16>, vector<16x128xbf16>, vector<16x128xbf16>, vector<16x128xbf16> -> vector<64x128xbf16>
    %c3072 = arith.constant 3072 : index
    %c0_307 = arith.constant 0 : index
    %622 = vector.load %arg2[%c3072, %c0_307] : memref<5248x128xbf16, #tpu.memory_space<vmem>>, vector<128x128xbf16>
    %cst_308 = arith.constant dense<0.000000e+00> : vector<64x128xf32>
    %623 = tpu.matmul %621, %622, %cst_308 {dimension_numbers = #tpu.dot_dimension_numbers<[1], [0], [0], [1], [0, 0, 1, 1], [], []>} : vector<64x128xbf16>, vector<128x128xbf16>, vector<64x128xf32> -> vector<64x128xf32>
    %c23 = arith.constant 23 : index
    %c0_309 = arith.constant 0 : index
    %624 = vector.load %arg3[%c23, %c0_309] : memref<40x128xf32, #tpu.memory_space<vmem>>, vector<1x128xf32>
    %c24 = arith.constant 24 : index
    %c0_310 = arith.constant 0 : index
    %625 = vector.load %arg3[%c24, %c0_310] : memref<40x128xf32, #tpu.memory_space<vmem>>, vector<1x128xf32>
    %626 = vector.extract_strided_slice %623 {offsets = [0, 0], sizes = [32, 128], strides = [1, 1]} : vector<64x128xf32> to vector<32x128xf32>
    %cst_311 = arith.constant dense<0.000000e+00> : vector<128xf32>
    %627 = vector.multi_reduction <add>, %626, %cst_311 [0] : vector<32x128xf32> to vector<128xf32>
    %628 = vector.shape_cast %627 : vector<128xf32> to vector<1x128xf32>
    %cst_312 = arith.constant 3.125000e-02 : f32
    %629 = vector.broadcast %cst_312 : f32 to vector<1x128xf32>
    %630 = arith.mulf %628, %629 : vector<1x128xf32>
    %631 = arith.mulf %626, %626 : vector<32x128xf32>
    %cst_313 = arith.constant dense<0.000000e+00> : vector<128xf32>
    %632 = vector.multi_reduction <add>, %631, %cst_313 [0] : vector<32x128xf32> to vector<128xf32>
    %633 = vector.shape_cast %632 : vector<128xf32> to vector<1x128xf32>
    %cst_314 = arith.constant 3.125000e-02 : f32
    %634 = vector.broadcast %cst_314 : f32 to vector<1x128xf32>
    %635 = arith.mulf %633, %634 : vector<1x128xf32>
    %636 = arith.mulf %630, %630 : vector<1x128xf32>
    %637 = arith.subf %635, %636 : vector<1x128xf32>
    %cst_315 = arith.constant 0.000000e+00 : f32
    %638 = vector.broadcast %cst_315 : f32 to vector<1x128xf32>
    %639 = arith.maximumf %637, %638 : vector<1x128xf32>
    %640 = vector.broadcast %630 : vector<1x128xf32> to vector<32x128xf32>
    %641 = arith.subf %626, %640 : vector<32x128xf32>
    %cst_316 = arith.constant 9.99999974E-6 : f32
    %642 = vector.broadcast %cst_316 : f32 to vector<1x128xf32>
    %643 = arith.addf %639, %642 : vector<1x128xf32>
    %644 = math.rsqrt %643 : vector<1x128xf32>
    %645 = vector.broadcast %644 : vector<1x128xf32> to vector<32x128xf32>
    %646 = arith.mulf %641, %645 : vector<32x128xf32>
    %647 = vector.extract_strided_slice %623 {offsets = [32, 0], sizes = [32, 128], strides = [1, 1]} : vector<64x128xf32> to vector<32x128xf32>
    %cst_317 = arith.constant dense<0.000000e+00> : vector<128xf32>
    %648 = vector.multi_reduction <add>, %647, %cst_317 [0] : vector<32x128xf32> to vector<128xf32>
    %649 = vector.shape_cast %648 : vector<128xf32> to vector<1x128xf32>
    %cst_318 = arith.constant 3.125000e-02 : f32
    %650 = vector.broadcast %cst_318 : f32 to vector<1x128xf32>
    %651 = arith.mulf %649, %650 : vector<1x128xf32>
    %652 = arith.mulf %647, %647 : vector<32x128xf32>
    %cst_319 = arith.constant dense<0.000000e+00> : vector<128xf32>
    %653 = vector.multi_reduction <add>, %652, %cst_319 [0] : vector<32x128xf32> to vector<128xf32>
    %654 = vector.shape_cast %653 : vector<128xf32> to vector<1x128xf32>
    %cst_320 = arith.constant 3.125000e-02 : f32
    %655 = vector.broadcast %cst_320 : f32 to vector<1x128xf32>
    %656 = arith.mulf %654, %655 : vector<1x128xf32>
    %657 = arith.mulf %651, %651 : vector<1x128xf32>
    %658 = arith.subf %656, %657 : vector<1x128xf32>
    %cst_321 = arith.constant 0.000000e+00 : f32
    %659 = vector.broadcast %cst_321 : f32 to vector<1x128xf32>
    %660 = arith.maximumf %658, %659 : vector<1x128xf32>
    %661 = vector.broadcast %651 : vector<1x128xf32> to vector<32x128xf32>
    %662 = arith.subf %647, %661 : vector<32x128xf32>
    %cst_322 = arith.constant 9.99999974E-6 : f32
    %663 = vector.broadcast %cst_322 : f32 to vector<1x128xf32>
    %664 = arith.addf %660, %663 : vector<1x128xf32>
    %665 = math.rsqrt %664 : vector<1x128xf32>
    %666 = vector.broadcast %665 : vector<1x128xf32> to vector<32x128xf32>
    %667 = arith.mulf %662, %666 : vector<32x128xf32>
    %668 = tpu.concatenate %646, %667 in 0 : vector<32x128xf32>, vector<32x128xf32> -> vector<64x128xf32>
    %669 = vector.broadcast %624 : vector<1x128xf32> to vector<64x128xf32>
    %670 = arith.mulf %668, %669 : vector<64x128xf32>
    %671 = vector.broadcast %625 : vector<1x128xf32> to vector<64x128xf32>
    %672 = arith.addf %670, %671 : vector<64x128xf32>
    %c0_323 = arith.constant 0 : index
    %c0_324 = arith.constant 0 : index
    %c0_325 = arith.constant 0 : index
    %673 = vector.load %arg6[%c0_323, %c0_324, %c0_325] : memref<4x48x128xbf16, #tpu.memory_space<vmem>>, vector<1x48x128xbf16>
    %674 = vector.shape_cast %673 : vector<1x48x128xbf16> to vector<48x128xbf16>
    %675 = vector.extract_strided_slice %674 {offsets = [13, 0], sizes = [16, 128], strides = [1, 1]} : vector<48x128xbf16> to vector<16x128xbf16>
    %676 = vector.extract_strided_slice %674 {offsets = [14, 0], sizes = [16, 128], strides = [1, 1]} : vector<48x128xbf16> to vector<16x128xbf16>
    %677 = vector.extract_strided_slice %674 {offsets = [15, 0], sizes = [16, 128], strides = [1, 1]} : vector<48x128xbf16> to vector<16x128xbf16>
    %678 = vector.extract_strided_slice %674 {offsets = [16, 0], sizes = [16, 128], strides = [1, 1]} : vector<48x128xbf16> to vector<16x128xbf16>
    %679 = vector.extract_strided_slice %674 {offsets = [17, 0], sizes = [16, 128], strides = [1, 1]} : vector<48x128xbf16> to vector<16x128xbf16>
    %680 = vector.extract_strided_slice %674 {offsets = [18, 0], sizes = [16, 128], strides = [1, 1]} : vector<48x128xbf16> to vector<16x128xbf16>
    %681 = vector.extract_strided_slice %674 {offsets = [19, 0], sizes = [16, 128], strides = [1, 1]} : vector<48x128xbf16> to vector<16x128xbf16>
    %682 = vector.extract_strided_slice %674 {offsets = [20, 0], sizes = [16, 128], strides = [1, 1]} : vector<48x128xbf16> to vector<16x128xbf16>
    %683 = tpu.concatenate %675, %676, %677, %678, %679, %680, %681, %682 in 1 : vector<16x128xbf16>, vector<16x128xbf16>, vector<16x128xbf16>, vector<16x128xbf16>, vector<16x128xbf16>, vector<16x128xbf16>, vector<16x128xbf16>, vector<16x128xbf16> -> vector<16x1024xbf16>
    %c1_326 = arith.constant 1 : index
    %c0_327 = arith.constant 0 : index
    %c0_328 = arith.constant 0 : index
    %684 = vector.load %arg6[%c1_326, %c0_327, %c0_328] : memref<4x48x128xbf16, #tpu.memory_space<vmem>>, vector<1x48x128xbf16>
    %685 = vector.shape_cast %684 : vector<1x48x128xbf16> to vector<48x128xbf16>
    %686 = vector.extract_strided_slice %685 {offsets = [13, 0], sizes = [16, 128], strides = [1, 1]} : vector<48x128xbf16> to vector<16x128xbf16>
    %687 = vector.extract_strided_slice %685 {offsets = [14, 0], sizes = [16, 128], strides = [1, 1]} : vector<48x128xbf16> to vector<16x128xbf16>
    %688 = vector.extract_strided_slice %685 {offsets = [15, 0], sizes = [16, 128], strides = [1, 1]} : vector<48x128xbf16> to vector<16x128xbf16>
    %689 = vector.extract_strided_slice %685 {offsets = [16, 0], sizes = [16, 128], strides = [1, 1]} : vector<48x128xbf16> to vector<16x128xbf16>
    %690 = vector.extract_strided_slice %685 {offsets = [17, 0], sizes = [16, 128], strides = [1, 1]} : vector<48x128xbf16> to vector<16x128xbf16>
    %691 = vector.extract_strided_slice %685 {offsets = [18, 0], sizes = [16, 128], strides = [1, 1]} : vector<48x128xbf16> to vector<16x128xbf16>
    %692 = vector.extract_strided_slice %685 {offsets = [19, 0], sizes = [16, 128], strides = [1, 1]} : vector<48x128xbf16> to vector<16x128xbf16>
    %693 = vector.extract_strided_slice %685 {offsets = [20, 0], sizes = [16, 128], strides = [1, 1]} : vector<48x128xbf16> to vector<16x128xbf16>
    %694 = tpu.concatenate %686, %687, %688, %689, %690, %691, %692, %693 in 1 : vector<16x128xbf16>, vector<16x128xbf16>, vector<16x128xbf16>, vector<16x128xbf16>, vector<16x128xbf16>, vector<16x128xbf16>, vector<16x128xbf16>, vector<16x128xbf16> -> vector<16x1024xbf16>
    %c2_329 = arith.constant 2 : index
    %c0_330 = arith.constant 0 : index
    %c0_331 = arith.constant 0 : index
    %695 = vector.load %arg6[%c2_329, %c0_330, %c0_331] : memref<4x48x128xbf16, #tpu.memory_space<vmem>>, vector<1x48x128xbf16>
    %696 = vector.shape_cast %695 : vector<1x48x128xbf16> to vector<48x128xbf16>
    %697 = vector.extract_strided_slice %696 {offsets = [13, 0], sizes = [16, 128], strides = [1, 1]} : vector<48x128xbf16> to vector<16x128xbf16>
    %698 = vector.extract_strided_slice %696 {offsets = [14, 0], sizes = [16, 128], strides = [1, 1]} : vector<48x128xbf16> to vector<16x128xbf16>
    %699 = vector.extract_strided_slice %696 {offsets = [15, 0], sizes = [16, 128], strides = [1, 1]} : vector<48x128xbf16> to vector<16x128xbf16>
    %700 = vector.extract_strided_slice %696 {offsets = [16, 0], sizes = [16, 128], strides = [1, 1]} : vector<48x128xbf16> to vector<16x128xbf16>
    %701 = vector.extract_strided_slice %696 {offsets = [17, 0], sizes = [16, 128], strides = [1, 1]} : vector<48x128xbf16> to vector<16x128xbf16>
    %702 = vector.extract_strided_slice %696 {offsets = [18, 0], sizes = [16, 128], strides = [1, 1]} : vector<48x128xbf16> to vector<16x128xbf16>
    %703 = vector.extract_strided_slice %696 {offsets = [19, 0], sizes = [16, 128], strides = [1, 1]} : vector<48x128xbf16> to vector<16x128xbf16>
    %704 = vector.extract_strided_slice %696 {offsets = [20, 0], sizes = [16, 128], strides = [1, 1]} : vector<48x128xbf16> to vector<16x128xbf16>
    %705 = tpu.concatenate %697, %698, %699, %700, %701, %702, %703, %704 in 1 : vector<16x128xbf16>, vector<16x128xbf16>, vector<16x128xbf16>, vector<16x128xbf16>, vector<16x128xbf16>, vector<16x128xbf16>, vector<16x128xbf16>, vector<16x128xbf16> -> vector<16x1024xbf16>
    %c3_332 = arith.constant 3 : index
    %c0_333 = arith.constant 0 : index
    %c0_334 = arith.constant 0 : index
    %706 = vector.load %arg6[%c3_332, %c0_333, %c0_334] : memref<4x48x128xbf16, #tpu.memory_space<vmem>>, vector<1x48x128xbf16>
    %707 = vector.shape_cast %706 : vector<1x48x128xbf16> to vector<48x128xbf16>
    %708 = vector.extract_strided_slice %707 {offsets = [13, 0], sizes = [16, 128], strides = [1, 1]} : vector<48x128xbf16> to vector<16x128xbf16>
    %709 = vector.extract_strided_slice %707 {offsets = [14, 0], sizes = [16, 128], strides = [1, 1]} : vector<48x128xbf16> to vector<16x128xbf16>
    %710 = vector.extract_strided_slice %707 {offsets = [15, 0], sizes = [16, 128], strides = [1, 1]} : vector<48x128xbf16> to vector<16x128xbf16>
    %711 = vector.extract_strided_slice %707 {offsets = [16, 0], sizes = [16, 128], strides = [1, 1]} : vector<48x128xbf16> to vector<16x128xbf16>
    %712 = vector.extract_strided_slice %707 {offsets = [17, 0], sizes = [16, 128], strides = [1, 1]} : vector<48x128xbf16> to vector<16x128xbf16>
    %713 = vector.extract_strided_slice %707 {offsets = [18, 0], sizes = [16, 128], strides = [1, 1]} : vector<48x128xbf16> to vector<16x128xbf16>
    %714 = vector.extract_strided_slice %707 {offsets = [19, 0], sizes = [16, 128], strides = [1, 1]} : vector<48x128xbf16> to vector<16x128xbf16>
    %715 = vector.extract_strided_slice %707 {offsets = [20, 0], sizes = [16, 128], strides = [1, 1]} : vector<48x128xbf16> to vector<16x128xbf16>
    %716 = tpu.concatenate %708, %709, %710, %711, %712, %713, %714, %715 in 1 : vector<16x128xbf16>, vector<16x128xbf16>, vector<16x128xbf16>, vector<16x128xbf16>, vector<16x128xbf16>, vector<16x128xbf16>, vector<16x128xbf16>, vector<16x128xbf16> -> vector<16x1024xbf16>
    %717 = tpu.concatenate %683, %694, %705, %716 in 0 : vector<16x1024xbf16>, vector<16x1024xbf16>, vector<16x1024xbf16>, vector<16x1024xbf16> -> vector<64x1024xbf16>
    %c1024 = arith.constant 1024 : index
    %c0_335 = arith.constant 0 : index
    %718 = vector.load %arg2[%c1024, %c0_335] : memref<5248x128xbf16, #tpu.memory_space<vmem>>, vector<1024x128xbf16>
    %cst_336 = arith.constant dense<0.000000e+00> : vector<64x128xf32>
    %719 = tpu.matmul %717, %718, %cst_336 {dimension_numbers = #tpu.dot_dimension_numbers<[1], [0], [0], [1], [0, 0, 1, 1], [], []>} : vector<64x1024xbf16>, vector<1024x128xbf16>, vector<64x128xf32> -> vector<64x128xf32>
    %c17 = arith.constant 17 : index
    %c0_337 = arith.constant 0 : index
    %720 = vector.load %arg3[%c17, %c0_337] : memref<40x128xf32, #tpu.memory_space<vmem>>, vector<1x128xf32>
    %c18 = arith.constant 18 : index
    %c0_338 = arith.constant 0 : index
    %721 = vector.load %arg3[%c18, %c0_338] : memref<40x128xf32, #tpu.memory_space<vmem>>, vector<1x128xf32>
    %722 = vector.extract_strided_slice %719 {offsets = [0, 0], sizes = [32, 128], strides = [1, 1]} : vector<64x128xf32> to vector<32x128xf32>
    %cst_339 = arith.constant dense<0.000000e+00> : vector<128xf32>
    %723 = vector.multi_reduction <add>, %722, %cst_339 [0] : vector<32x128xf32> to vector<128xf32>
    %724 = vector.shape_cast %723 : vector<128xf32> to vector<1x128xf32>
    %cst_340 = arith.constant 3.125000e-02 : f32
    %725 = vector.broadcast %cst_340 : f32 to vector<1x128xf32>
    %726 = arith.mulf %724, %725 : vector<1x128xf32>
    %727 = arith.mulf %722, %722 : vector<32x128xf32>
    %cst_341 = arith.constant dense<0.000000e+00> : vector<128xf32>
    %728 = vector.multi_reduction <add>, %727, %cst_341 [0] : vector<32x128xf32> to vector<128xf32>
    %729 = vector.shape_cast %728 : vector<128xf32> to vector<1x128xf32>
    %cst_342 = arith.constant 3.125000e-02 : f32
    %730 = vector.broadcast %cst_342 : f32 to vector<1x128xf32>
    %731 = arith.mulf %729, %730 : vector<1x128xf32>
    %732 = arith.mulf %726, %726 : vector<1x128xf32>
    %733 = arith.subf %731, %732 : vector<1x128xf32>
    %cst_343 = arith.constant 0.000000e+00 : f32
    %734 = vector.broadcast %cst_343 : f32 to vector<1x128xf32>
    %735 = arith.maximumf %733, %734 : vector<1x128xf32>
    %736 = vector.broadcast %726 : vector<1x128xf32> to vector<32x128xf32>
    %737 = arith.subf %722, %736 : vector<32x128xf32>
    %cst_344 = arith.constant 9.99999974E-6 : f32
    %738 = vector.broadcast %cst_344 : f32 to vector<1x128xf32>
    %739 = arith.addf %735, %738 : vector<1x128xf32>
    %740 = math.rsqrt %739 : vector<1x128xf32>
    %741 = vector.broadcast %740 : vector<1x128xf32> to vector<32x128xf32>
    %742 = arith.mulf %737, %741 : vector<32x128xf32>
    %743 = vector.extract_strided_slice %719 {offsets = [32, 0], sizes = [32, 128], strides = [1, 1]} : vector<64x128xf32> to vector<32x128xf32>
    %cst_345 = arith.constant dense<0.000000e+00> : vector<128xf32>
    %744 = vector.multi_reduction <add>, %743, %cst_345 [0] : vector<32x128xf32> to vector<128xf32>
    %745 = vector.shape_cast %744 : vector<128xf32> to vector<1x128xf32>
    %cst_346 = arith.constant 3.125000e-02 : f32
    %746 = vector.broadcast %cst_346 : f32 to vector<1x128xf32>
    %747 = arith.mulf %745, %746 : vector<1x128xf32>
    %748 = arith.mulf %743, %743 : vector<32x128xf32>
    %cst_347 = arith.constant dense<0.000000e+00> : vector<128xf32>
    %749 = vector.multi_reduction <add>, %748, %cst_347 [0] : vector<32x128xf32> to vector<128xf32>
    %750 = vector.shape_cast %749 : vector<128xf32> to vector<1x128xf32>
    %cst_348 = arith.constant 3.125000e-02 : f32
    %751 = vector.broadcast %cst_348 : f32 to vector<1x128xf32>
    %752 = arith.mulf %750, %751 : vector<1x128xf32>
    %753 = arith.mulf %747, %747 : vector<1x128xf32>
    %754 = arith.subf %752, %753 : vector<1x128xf32>
    %cst_349 = arith.constant 0.000000e+00 : f32
    %755 = vector.broadcast %cst_349 : f32 to vector<1x128xf32>
    %756 = arith.maximumf %754, %755 : vector<1x128xf32>
    %757 = vector.broadcast %747 : vector<1x128xf32> to vector<32x128xf32>
    %758 = arith.subf %743, %757 : vector<32x128xf32>
    %cst_350 = arith.constant 9.99999974E-6 : f32
    %759 = vector.broadcast %cst_350 : f32 to vector<1x128xf32>
    %760 = arith.addf %756, %759 : vector<1x128xf32>
    %761 = math.rsqrt %760 : vector<1x128xf32>
    %762 = vector.broadcast %761 : vector<1x128xf32> to vector<32x128xf32>
    %763 = arith.mulf %758, %762 : vector<32x128xf32>
    %764 = tpu.concatenate %742, %763 in 0 : vector<32x128xf32>, vector<32x128xf32> -> vector<64x128xf32>
    %765 = vector.broadcast %720 : vector<1x128xf32> to vector<64x128xf32>
    %766 = arith.mulf %764, %765 : vector<64x128xf32>
    %767 = vector.broadcast %721 : vector<1x128xf32> to vector<64x128xf32>
    %768 = arith.addf %766, %767 : vector<64x128xf32>
    %cst_351 = arith.constant 0.000000e+00 : f32
    %769 = vector.broadcast %cst_351 : f32 to vector<64x128xf32>
    %770 = arith.maximumf %768, %769 : vector<64x128xf32>
    %771 = vector.extract_strided_slice %770 {offsets = [0, 0], sizes = [16, 128], strides = [1, 1]} : vector<64x128xf32> to vector<16x128xf32>
    %772 = arith.truncf %771 : vector<16x128xf32> to vector<16x128xbf16>
    %c0_352 = arith.constant 0 : index
    %c16_353 = arith.constant 16 : index
    %c0_354 = arith.constant 0 : index
    %773 = vector.load %arg6[%c0_352, %c16_353, %c0_354] : memref<4x48x128xbf16, #tpu.memory_space<vmem>>, vector<1x16x128xbf16>
    %774 = vector.shape_cast %773 : vector<1x16x128xbf16> to vector<16x128xbf16>
    %775 = vector.shape_cast %772 : vector<16x128xbf16> to vector<1x16x128xbf16>
    tpu.vector_store %arg6[%c0_352, %c16_353, %c0_354], %775 {strides = array<i32>} : memref<4x48x128xbf16, #tpu.memory_space<vmem>>, vector<1x16x128xbf16>,
    %776 = vector.extract_strided_slice %770 {offsets = [16, 0], sizes = [16, 128], strides = [1, 1]} : vector<64x128xf32> to vector<16x128xf32>
    %777 = arith.truncf %776 : vector<16x128xf32> to vector<16x128xbf16>
    %c1_355 = arith.constant 1 : index
    %c16_356 = arith.constant 16 : index
    %c0_357 = arith.constant 0 : index
    %778 = vector.load %arg6[%c1_355, %c16_356, %c0_357] : memref<4x48x128xbf16, #tpu.memory_space<vmem>>, vector<1x16x128xbf16>
    %779 = vector.shape_cast %778 : vector<1x16x128xbf16> to vector<16x128xbf16>
    %780 = vector.shape_cast %777 : vector<16x128xbf16> to vector<1x16x128xbf16>
    tpu.vector_store %arg6[%c1_355, %c16_356, %c0_357], %780 {strides = array<i32>} : memref<4x48x128xbf16, #tpu.memory_space<vmem>>, vector<1x16x128xbf16>,
    %781 = vector.extract_strided_slice %770 {offsets = [32, 0], sizes = [16, 128], strides = [1, 1]} : vector<64x128xf32> to vector<16x128xf32>
    %782 = arith.truncf %781 : vector<16x128xf32> to vector<16x128xbf16>
    %c2_358 = arith.constant 2 : index
    %c16_359 = arith.constant 16 : index
    %c0_360 = arith.constant 0 : index
    %783 = vector.load %arg6[%c2_358, %c16_359, %c0_360] : memref<4x48x128xbf16, #tpu.memory_space<vmem>>, vector<1x16x128xbf16>
    %784 = vector.shape_cast %783 : vector<1x16x128xbf16> to vector<16x128xbf16>
    %785 = vector.shape_cast %782 : vector<16x128xbf16> to vector<1x16x128xbf16>
    tpu.vector_store %arg6[%c2_358, %c16_359, %c0_360], %785 {strides = array<i32>} : memref<4x48x128xbf16, #tpu.memory_space<vmem>>, vector<1x16x128xbf16>,
    %786 = vector.extract_strided_slice %770 {offsets = [48, 0], sizes = [16, 128], strides = [1, 1]} : vector<64x128xf32> to vector<16x128xf32>
    %787 = arith.truncf %786 : vector<16x128xf32> to vector<16x128xbf16>
    %c3_361 = arith.constant 3 : index
    %c16_362 = arith.constant 16 : index
    %c0_363 = arith.constant 0 : index
    %788 = vector.load %arg6[%c3_361, %c16_362, %c0_363] : memref<4x48x128xbf16, #tpu.memory_space<vmem>>, vector<1x16x128xbf16>
    %789 = vector.shape_cast %788 : vector<1x16x128xbf16> to vector<16x128xbf16>
    %790 = vector.shape_cast %787 : vector<16x128xbf16> to vector<1x16x128xbf16>
    tpu.vector_store %arg6[%c3_361, %c16_362, %c0_363], %790 {strides = array<i32>} : memref<4x48x128xbf16, #tpu.memory_space<vmem>>, vector<1x16x128xbf16>,
    %c0_364 = arith.constant 0 : index
    %c0_365 = arith.constant 0 : index
    %c0_366 = arith.constant 0 : index
    %791 = vector.load %arg6[%c0_364, %c0_365, %c0_366] : memref<4x48x128xbf16, #tpu.memory_space<vmem>>, vector<1x48x128xbf16>
    %792 = vector.shape_cast %791 : vector<1x48x128xbf16> to vector<48x128xbf16>
    %793 = vector.extract_strided_slice %792 {offsets = [14, 0], sizes = [16, 128], strides = [1, 1]} : vector<48x128xbf16> to vector<16x128xbf16>
    %794 = vector.extract_strided_slice %792 {offsets = [15, 0], sizes = [16, 128], strides = [1, 1]} : vector<48x128xbf16> to vector<16x128xbf16>
    %795 = vector.extract_strided_slice %792 {offsets = [16, 0], sizes = [16, 128], strides = [1, 1]} : vector<48x128xbf16> to vector<16x128xbf16>
    %796 = vector.extract_strided_slice %792 {offsets = [17, 0], sizes = [16, 128], strides = [1, 1]} : vector<48x128xbf16> to vector<16x128xbf16>
    %797 = vector.extract_strided_slice %792 {offsets = [18, 0], sizes = [16, 128], strides = [1, 1]} : vector<48x128xbf16> to vector<16x128xbf16>
    %798 = tpu.concatenate %793, %794, %795, %796, %797 in 1 : vector<16x128xbf16>, vector<16x128xbf16>, vector<16x128xbf16>, vector<16x128xbf16>, vector<16x128xbf16> -> vector<16x640xbf16>
    %c1_367 = arith.constant 1 : index
    %c0_368 = arith.constant 0 : index
    %c0_369 = arith.constant 0 : index
    %799 = vector.load %arg6[%c1_367, %c0_368, %c0_369] : memref<4x48x128xbf16, #tpu.memory_space<vmem>>, vector<1x48x128xbf16>
    %800 = vector.shape_cast %799 : vector<1x48x128xbf16> to vector<48x128xbf16>
    %801 = vector.extract_strided_slice %800 {offsets = [14, 0], sizes = [16, 128], strides = [1, 1]} : vector<48x128xbf16> to vector<16x128xbf16>
    %802 = vector.extract_strided_slice %800 {offsets = [15, 0], sizes = [16, 128], strides = [1, 1]} : vector<48x128xbf16> to vector<16x128xbf16>
    %803 = vector.extract_strided_slice %800 {offsets = [16, 0], sizes = [16, 128], strides = [1, 1]} : vector<48x128xbf16> to vector<16x128xbf16>
    %804 = vector.extract_strided_slice %800 {offsets = [17, 0], sizes = [16, 128], strides = [1, 1]} : vector<48x128xbf16> to vector<16x128xbf16>
    %805 = vector.extract_strided_slice %800 {offsets = [18, 0], sizes = [16, 128], strides = [1, 1]} : vector<48x128xbf16> to vector<16x128xbf16>
    %806 = tpu.concatenate %801, %802, %803, %804, %805 in 1 : vector<16x128xbf16>, vector<16x128xbf16>, vector<16x128xbf16>, vector<16x128xbf16>, vector<16x128xbf16> -> vector<16x640xbf16>
    %c2_370 = arith.constant 2 : index
    %c0_371 = arith.constant 0 : index
    %c0_372 = arith.constant 0 : index
    %807 = vector.load %arg6[%c2_370, %c0_371, %c0_372] : memref<4x48x128xbf16, #tpu.memory_space<vmem>>, vector<1x48x128xbf16>
    %808 = vector.shape_cast %807 : vector<1x48x128xbf16> to vector<48x128xbf16>
    %809 = vector.extract_strided_slice %808 {offsets = [14, 0], sizes = [16, 128], strides = [1, 1]} : vector<48x128xbf16> to vector<16x128xbf16>
    %810 = vector.extract_strided_slice %808 {offsets = [15, 0], sizes = [16, 128], strides = [1, 1]} : vector<48x128xbf16> to vector<16x128xbf16>
    %811 = vector.extract_strided_slice %808 {offsets = [16, 0], sizes = [16, 128], strides = [1, 1]} : vector<48x128xbf16> to vector<16x128xbf16>
    %812 = vector.extract_strided_slice %808 {offsets = [17, 0], sizes = [16, 128], strides = [1, 1]} : vector<48x128xbf16> to vector<16x128xbf16>
    %813 = vector.extract_strided_slice %808 {offsets = [18, 0], sizes = [16, 128], strides = [1, 1]} : vector<48x128xbf16> to vector<16x128xbf16>
    %814 = tpu.concatenate %809, %810, %811, %812, %813 in 1 : vector<16x128xbf16>, vector<16x128xbf16>, vector<16x128xbf16>, vector<16x128xbf16>, vector<16x128xbf16> -> vector<16x640xbf16>
    %c3_373 = arith.constant 3 : index
    %c0_374 = arith.constant 0 : index
    %c0_375 = arith.constant 0 : index
    %815 = vector.load %arg6[%c3_373, %c0_374, %c0_375] : memref<4x48x128xbf16, #tpu.memory_space<vmem>>, vector<1x48x128xbf16>
    %816 = vector.shape_cast %815 : vector<1x48x128xbf16> to vector<48x128xbf16>
    %817 = vector.extract_strided_slice %816 {offsets = [14, 0], sizes = [16, 128], strides = [1, 1]} : vector<48x128xbf16> to vector<16x128xbf16>
    %818 = vector.extract_strided_slice %816 {offsets = [15, 0], sizes = [16, 128], strides = [1, 1]} : vector<48x128xbf16> to vector<16x128xbf16>
    %819 = vector.extract_strided_slice %816 {offsets = [16, 0], sizes = [16, 128], strides = [1, 1]} : vector<48x128xbf16> to vector<16x128xbf16>
    %820 = vector.extract_strided_slice %816 {offsets = [17, 0], sizes = [16, 128], strides = [1, 1]} : vector<48x128xbf16> to vector<16x128xbf16>
    %821 = vector.extract_strided_slice %816 {offsets = [18, 0], sizes = [16, 128], strides = [1, 1]} : vector<48x128xbf16> to vector<16x128xbf16>
    %822 = tpu.concatenate %817, %818, %819, %820, %821 in 1 : vector<16x128xbf16>, vector<16x128xbf16>, vector<16x128xbf16>, vector<16x128xbf16>, vector<16x128xbf16> -> vector<16x640xbf16>
    %823 = tpu.concatenate %798, %806, %814, %822 in 0 : vector<16x640xbf16>, vector<16x640xbf16>, vector<16x640xbf16>, vector<16x640xbf16> -> vector<64x640xbf16>
    %c2048 = arith.constant 2048 : index
    %c0_376 = arith.constant 0 : index
    %824 = vector.load %arg2[%c2048, %c0_376] : memref<5248x128xbf16, #tpu.memory_space<vmem>>, vector<640x128xbf16>
    %cst_377 = arith.constant dense<0.000000e+00> : vector<64x128xf32>
    %825 = tpu.matmul %823, %824, %cst_377 {dimension_numbers = #tpu.dot_dimension_numbers<[1], [0], [0], [1], [0, 0, 1, 1], [], []>} : vector<64x640xbf16>, vector<640x128xbf16>, vector<64x128xf32> -> vector<64x128xf32>
    %c19 = arith.constant 19 : index
    %c0_378 = arith.constant 0 : index
    %826 = vector.load %arg3[%c19, %c0_378] : memref<40x128xf32, #tpu.memory_space<vmem>>, vector<1x128xf32>
    %c20 = arith.constant 20 : index
    %c0_379 = arith.constant 0 : index
    %827 = vector.load %arg3[%c20, %c0_379] : memref<40x128xf32, #tpu.memory_space<vmem>>, vector<1x128xf32>
    %828 = vector.extract_strided_slice %825 {offsets = [0, 0], sizes = [32, 128], strides = [1, 1]} : vector<64x128xf32> to vector<32x128xf32>
    %cst_380 = arith.constant dense<0.000000e+00> : vector<128xf32>
    %829 = vector.multi_reduction <add>, %828, %cst_380 [0] : vector<32x128xf32> to vector<128xf32>
    %830 = vector.shape_cast %829 : vector<128xf32> to vector<1x128xf32>
    %cst_381 = arith.constant 3.125000e-02 : f32
    %831 = vector.broadcast %cst_381 : f32 to vector<1x128xf32>
    %832 = arith.mulf %830, %831 : vector<1x128xf32>
    %833 = arith.mulf %828, %828 : vector<32x128xf32>
    %cst_382 = arith.constant dense<0.000000e+00> : vector<128xf32>
    %834 = vector.multi_reduction <add>, %833, %cst_382 [0] : vector<32x128xf32> to vector<128xf32>
    %835 = vector.shape_cast %834 : vector<128xf32> to vector<1x128xf32>
    %cst_383 = arith.constant 3.125000e-02 : f32
    %836 = vector.broadcast %cst_383 : f32 to vector<1x128xf32>
    %837 = arith.mulf %835, %836 : vector<1x128xf32>
    %838 = arith.mulf %832, %832 : vector<1x128xf32>
    %839 = arith.subf %837, %838 : vector<1x128xf32>
    %cst_384 = arith.constant 0.000000e+00 : f32
    %840 = vector.broadcast %cst_384 : f32 to vector<1x128xf32>
    %841 = arith.maximumf %839, %840 : vector<1x128xf32>
    %842 = vector.broadcast %832 : vector<1x128xf32> to vector<32x128xf32>
    %843 = arith.subf %828, %842 : vector<32x128xf32>
    %cst_385 = arith.constant 9.99999974E-6 : f32
    %844 = vector.broadcast %cst_385 : f32 to vector<1x128xf32>
    %845 = arith.addf %841, %844 : vector<1x128xf32>
    %846 = math.rsqrt %845 : vector<1x128xf32>
    %847 = vector.broadcast %846 : vector<1x128xf32> to vector<32x128xf32>
    %848 = arith.mulf %843, %847 : vector<32x128xf32>
    %849 = vector.extract_strided_slice %825 {offsets = [32, 0], sizes = [32, 128], strides = [1, 1]} : vector<64x128xf32> to vector<32x128xf32>
    %cst_386 = arith.constant dense<0.000000e+00> : vector<128xf32>
    %850 = vector.multi_reduction <add>, %849, %cst_386 [0] : vector<32x128xf32> to vector<128xf32>
    %851 = vector.shape_cast %850 : vector<128xf32> to vector<1x128xf32>
    %cst_387 = arith.constant 3.125000e-02 : f32
    %852 = vector.broadcast %cst_387 : f32 to vector<1x128xf32>
    %853 = arith.mulf %851, %852 : vector<1x128xf32>
    %854 = arith.mulf %849, %849 : vector<32x128xf32>
    %cst_388 = arith.constant dense<0.000000e+00> : vector<128xf32>
    %855 = vector.multi_reduction <add>, %854, %cst_388 [0] : vector<32x128xf32> to vector<128xf32>
    %856 = vector.shape_cast %855 : vector<128xf32> to vector<1x128xf32>
    %cst_389 = arith.constant 3.125000e-02 : f32
    %857 = vector.broadcast %cst_389 : f32 to vector<1x128xf32>
    %858 = arith.mulf %856, %857 : vector<1x128xf32>
    %859 = arith.mulf %853, %853 : vector<1x128xf32>
    %860 = arith.subf %858, %859 : vector<1x128xf32>
    %cst_390 = arith.constant 0.000000e+00 : f32
    %861 = vector.broadcast %cst_390 : f32 to vector<1x128xf32>
    %862 = arith.maximumf %860, %861 : vector<1x128xf32>
    %863 = vector.broadcast %853 : vector<1x128xf32> to vector<32x128xf32>
    %864 = arith.subf %849, %863 : vector<32x128xf32>
    %cst_391 = arith.constant 9.99999974E-6 : f32
    %865 = vector.broadcast %cst_391 : f32 to vector<1x128xf32>
    %866 = arith.addf %862, %865 : vector<1x128xf32>
    %867 = math.rsqrt %866 : vector<1x128xf32>
    %868 = vector.broadcast %867 : vector<1x128xf32> to vector<32x128xf32>
    %869 = arith.mulf %864, %868 : vector<32x128xf32>
    %870 = tpu.concatenate %848, %869 in 0 : vector<32x128xf32>, vector<32x128xf32> -> vector<64x128xf32>
    %871 = vector.broadcast %826 : vector<1x128xf32> to vector<64x128xf32>
    %872 = arith.mulf %870, %871 : vector<64x128xf32>
    %873 = vector.broadcast %827 : vector<1x128xf32> to vector<64x128xf32>
    %874 = arith.addf %872, %873 : vector<64x128xf32>
    %cst_392 = arith.constant 0.000000e+00 : f32
    %875 = vector.broadcast %cst_392 : f32 to vector<64x128xf32>
    %876 = arith.maximumf %874, %875 : vector<64x128xf32>
    %877 = vector.extract_strided_slice %876 {offsets = [0, 0], sizes = [16, 128], strides = [1, 1]} : vector<64x128xf32> to vector<16x128xf32>
    %878 = arith.truncf %877 : vector<16x128xf32> to vector<16x128xbf16>
    %c0_393 = arith.constant 0 : index
    %c16_394 = arith.constant 16 : index
    %c0_395 = arith.constant 0 : index
    %879 = vector.load %arg6[%c0_393, %c16_394, %c0_395] : memref<4x48x128xbf16, #tpu.memory_space<vmem>>, vector<1x16x128xbf16>
    %880 = vector.shape_cast %879 : vector<1x16x128xbf16> to vector<16x128xbf16>
    %881 = vector.shape_cast %878 : vector<16x128xbf16> to vector<1x16x128xbf16>
    tpu.vector_store %arg6[%c0_393, %c16_394, %c0_395], %881 {strides = array<i32>} : memref<4x48x128xbf16, #tpu.memory_space<vmem>>, vector<1x16x128xbf16>,
    %882 = vector.extract_strided_slice %876 {offsets = [16, 0], sizes = [16, 128], strides = [1, 1]} : vector<64x128xf32> to vector<16x128xf32>
    %883 = arith.truncf %882 : vector<16x128xf32> to vector<16x128xbf16>
    %c1_396 = arith.constant 1 : index
    %c16_397 = arith.constant 16 : index
    %c0_398 = arith.constant 0 : index
    %884 = vector.load %arg6[%c1_396, %c16_397, %c0_398] : memref<4x48x128xbf16, #tpu.memory_space<vmem>>, vector<1x16x128xbf16>
    %885 = vector.shape_cast %884 : vector<1x16x128xbf16> to vector<16x128xbf16>
    %886 = vector.shape_cast %883 : vector<16x128xbf16> to vector<1x16x128xbf16>
    tpu.vector_store %arg6[%c1_396, %c16_397, %c0_398], %886 {strides = array<i32>} : memref<4x48x128xbf16, #tpu.memory_space<vmem>>, vector<1x16x128xbf16>,
    %887 = vector.extract_strided_slice %876 {offsets = [32, 0], sizes = [16, 128], strides = [1, 1]} : vector<64x128xf32> to vector<16x128xf32>
    %888 = arith.truncf %887 : vector<16x128xf32> to vector<16x128xbf16>
    %c2_399 = arith.constant 2 : index
    %c16_400 = arith.constant 16 : index
    %c0_401 = arith.constant 0 : index
    %889 = vector.load %arg6[%c2_399, %c16_400, %c0_401] : memref<4x48x128xbf16, #tpu.memory_space<vmem>>, vector<1x16x128xbf16>
    %890 = vector.shape_cast %889 : vector<1x16x128xbf16> to vector<16x128xbf16>
    %891 = vector.shape_cast %888 : vector<16x128xbf16> to vector<1x16x128xbf16>
    tpu.vector_store %arg6[%c2_399, %c16_400, %c0_401], %891 {strides = array<i32>} : memref<4x48x128xbf16, #tpu.memory_space<vmem>>, vector<1x16x128xbf16>,
    %892 = vector.extract_strided_slice %876 {offsets = [48, 0], sizes = [16, 128], strides = [1, 1]} : vector<64x128xf32> to vector<16x128xf32>
    %893 = arith.truncf %892 : vector<16x128xf32> to vector<16x128xbf16>
    %c3_402 = arith.constant 3 : index
    %c16_403 = arith.constant 16 : index
    %c0_404 = arith.constant 0 : index
    %894 = vector.load %arg6[%c3_402, %c16_403, %c0_404] : memref<4x48x128xbf16, #tpu.memory_space<vmem>>, vector<1x16x128xbf16>
    %895 = vector.shape_cast %894 : vector<1x16x128xbf16> to vector<16x128xbf16>
    %896 = vector.shape_cast %893 : vector<16x128xbf16> to vector<1x16x128xbf16>
    tpu.vector_store %arg6[%c3_402, %c16_403, %c0_404], %896 {strides = array<i32>} : memref<4x48x128xbf16, #tpu.memory_space<vmem>>, vector<1x16x128xbf16>,
    %c0_405 = arith.constant 0 : index
    %c0_406 = arith.constant 0 : index
    %c0_407 = arith.constant 0 : index
    %897 = vector.load %arg6[%c0_405, %c0_406, %c0_407] : memref<4x48x128xbf16, #tpu.memory_space<vmem>>, vector<1x48x128xbf16>
    %898 = vector.shape_cast %897 : vector<1x48x128xbf16> to vector<48x128xbf16>
    %899 = vector.extract_strided_slice %898 {offsets = [15, 0], sizes = [16, 128], strides = [1, 1]} : vector<48x128xbf16> to vector<16x128xbf16>
    %900 = vector.extract_strided_slice %898 {offsets = [16, 0], sizes = [16, 128], strides = [1, 1]} : vector<48x128xbf16> to vector<16x128xbf16>
    %901 = vector.extract_strided_slice %898 {offsets = [17, 0], sizes = [16, 128], strides = [1, 1]} : vector<48x128xbf16> to vector<16x128xbf16>
    %902 = tpu.concatenate %899, %900, %901 in 1 : vector<16x128xbf16>, vector<16x128xbf16>, vector<16x128xbf16> -> vector<16x384xbf16>
    %c1_408 = arith.constant 1 : index
    %c0_409 = arith.constant 0 : index
    %c0_410 = arith.constant 0 : index
    %903 = vector.load %arg6[%c1_408, %c0_409, %c0_410] : memref<4x48x128xbf16, #tpu.memory_space<vmem>>, vector<1x48x128xbf16>
    %904 = vector.shape_cast %903 : vector<1x48x128xbf16> to vector<48x128xbf16>
    %905 = vector.extract_strided_slice %904 {offsets = [15, 0], sizes = [16, 128], strides = [1, 1]} : vector<48x128xbf16> to vector<16x128xbf16>
    %906 = vector.extract_strided_slice %904 {offsets = [16, 0], sizes = [16, 128], strides = [1, 1]} : vector<48x128xbf16> to vector<16x128xbf16>
    %907 = vector.extract_strided_slice %904 {offsets = [17, 0], sizes = [16, 128], strides = [1, 1]} : vector<48x128xbf16> to vector<16x128xbf16>
    %908 = tpu.concatenate %905, %906, %907 in 1 : vector<16x128xbf16>, vector<16x128xbf16>, vector<16x128xbf16> -> vector<16x384xbf16>
    %c2_411 = arith.constant 2 : index
    %c0_412 = arith.constant 0 : index
    %c0_413 = arith.constant 0 : index
    %909 = vector.load %arg6[%c2_411, %c0_412, %c0_413] : memref<4x48x128xbf16, #tpu.memory_space<vmem>>, vector<1x48x128xbf16>
    %910 = vector.shape_cast %909 : vector<1x48x128xbf16> to vector<48x128xbf16>
    %911 = vector.extract_strided_slice %910 {offsets = [15, 0], sizes = [16, 128], strides = [1, 1]} : vector<48x128xbf16> to vector<16x128xbf16>
    %912 = vector.extract_strided_slice %910 {offsets = [16, 0], sizes = [16, 128], strides = [1, 1]} : vector<48x128xbf16> to vector<16x128xbf16>
    %913 = vector.extract_strided_slice %910 {offsets = [17, 0], sizes = [16, 128], strides = [1, 1]} : vector<48x128xbf16> to vector<16x128xbf16>
    %914 = tpu.concatenate %911, %912, %913 in 1 : vector<16x128xbf16>, vector<16x128xbf16>, vector<16x128xbf16> -> vector<16x384xbf16>
    %c3_414 = arith.constant 3 : index
    %c0_415 = arith.constant 0 : index
    %c0_416 = arith.constant 0 : index
    %915 = vector.load %arg6[%c3_414, %c0_415, %c0_416] : memref<4x48x128xbf16, #tpu.memory_space<vmem>>, vector<1x48x128xbf16>
    %916 = vector.shape_cast %915 : vector<1x48x128xbf16> to vector<48x128xbf16>
    %917 = vector.extract_strided_slice %916 {offsets = [15, 0], sizes = [16, 128], strides = [1, 1]} : vector<48x128xbf16> to vector<16x128xbf16>
    %918 = vector.extract_strided_slice %916 {offsets = [16, 0], sizes = [16, 128], strides = [1, 1]} : vector<48x128xbf16> to vector<16x128xbf16>
    %919 = vector.extract_strided_slice %916 {offsets = [17, 0], sizes = [16, 128], strides = [1, 1]} : vector<48x128xbf16> to vector<16x128xbf16>
    %920 = tpu.concatenate %917, %918, %919 in 1 : vector<16x128xbf16>, vector<16x128xbf16>, vector<16x128xbf16> -> vector<16x384xbf16>
    %921 = tpu.concatenate %902, %908, %914, %920 in 0 : vector<16x384xbf16>, vector<16x384xbf16>, vector<16x384xbf16>, vector<16x384xbf16> -> vector<64x384xbf16>
    %c2688 = arith.constant 2688 : index
    %c0_417 = arith.constant 0 : index
    %922 = vector.load %arg2[%c2688, %c0_417] : memref<5248x128xbf16, #tpu.memory_space<vmem>>, vector<384x128xbf16>
    %cst_418 = arith.constant dense<0.000000e+00> : vector<64x128xf32>
    %923 = tpu.matmul %921, %922, %cst_418 {dimension_numbers = #tpu.dot_dimension_numbers<[1], [0], [0], [1], [0, 0, 1, 1], [], []>} : vector<64x384xbf16>, vector<384x128xbf16>, vector<64x128xf32> -> vector<64x128xf32>
    %c21 = arith.constant 21 : index
    %c0_419 = arith.constant 0 : index
    %924 = vector.load %arg3[%c21, %c0_419] : memref<40x128xf32, #tpu.memory_space<vmem>>, vector<1x128xf32>
    %c22 = arith.constant 22 : index
    %c0_420 = arith.constant 0 : index
    %925 = vector.load %arg3[%c22, %c0_420] : memref<40x128xf32, #tpu.memory_space<vmem>>, vector<1x128xf32>
    %926 = vector.extract_strided_slice %923 {offsets = [0, 0], sizes = [32, 128], strides = [1, 1]} : vector<64x128xf32> to vector<32x128xf32>
    %cst_421 = arith.constant dense<0.000000e+00> : vector<128xf32>
    %927 = vector.multi_reduction <add>, %926, %cst_421 [0] : vector<32x128xf32> to vector<128xf32>
    %928 = vector.shape_cast %927 : vector<128xf32> to vector<1x128xf32>
    %cst_422 = arith.constant 3.125000e-02 : f32
    %929 = vector.broadcast %cst_422 : f32 to vector<1x128xf32>
    %930 = arith.mulf %928, %929 : vector<1x128xf32>
    %931 = arith.mulf %926, %926 : vector<32x128xf32>
    %cst_423 = arith.constant dense<0.000000e+00> : vector<128xf32>
    %932 = vector.multi_reduction <add>, %931, %cst_423 [0] : vector<32x128xf32> to vector<128xf32>
    %933 = vector.shape_cast %932 : vector<128xf32> to vector<1x128xf32>
    %cst_424 = arith.constant 3.125000e-02 : f32
    %934 = vector.broadcast %cst_424 : f32 to vector<1x128xf32>
    %935 = arith.mulf %933, %934 : vector<1x128xf32>
    %936 = arith.mulf %930, %930 : vector<1x128xf32>
    %937 = arith.subf %935, %936 : vector<1x128xf32>
    %cst_425 = arith.constant 0.000000e+00 : f32
    %938 = vector.broadcast %cst_425 : f32 to vector<1x128xf32>
    %939 = arith.maximumf %937, %938 : vector<1x128xf32>
    %940 = vector.broadcast %930 : vector<1x128xf32> to vector<32x128xf32>
    %941 = arith.subf %926, %940 : vector<32x128xf32>
    %cst_426 = arith.constant 9.99999974E-6 : f32
    %942 = vector.broadcast %cst_426 : f32 to vector<1x128xf32>
    %943 = arith.addf %939, %942 : vector<1x128xf32>
    %944 = math.rsqrt %943 : vector<1x128xf32>
    %945 = vector.broadcast %944 : vector<1x128xf32> to vector<32x128xf32>
    %946 = arith.mulf %941, %945 : vector<32x128xf32>
    %947 = vector.extract_strided_slice %923 {offsets = [32, 0], sizes = [32, 128], strides = [1, 1]} : vector<64x128xf32> to vector<32x128xf32>
    %cst_427 = arith.constant dense<0.000000e+00> : vector<128xf32>
    %948 = vector.multi_reduction <add>, %947, %cst_427 [0] : vector<32x128xf32> to vector<128xf32>
    %949 = vector.shape_cast %948 : vector<128xf32> to vector<1x128xf32>
    %cst_428 = arith.constant 3.125000e-02 : f32
    %950 = vector.broadcast %cst_428 : f32 to vector<1x128xf32>
    %951 = arith.mulf %949, %950 : vector<1x128xf32>
    %952 = arith.mulf %947, %947 : vector<32x128xf32>
    %cst_429 = arith.constant dense<0.000000e+00> : vector<128xf32>
    %953 = vector.multi_reduction <add>, %952, %cst_429 [0] : vector<32x128xf32> to vector<128xf32>
    %954 = vector.shape_cast %953 : vector<128xf32> to vector<1x128xf32>
    %cst_430 = arith.constant 3.125000e-02 : f32
    %955 = vector.broadcast %cst_430 : f32 to vector<1x128xf32>
    %956 = arith.mulf %954, %955 : vector<1x128xf32>
    %957 = arith.mulf %951, %951 : vector<1x128xf32>
    %958 = arith.subf %956, %957 : vector<1x128xf32>
    %cst_431 = arith.constant 0.000000e+00 : f32
    %959 = vector.broadcast %cst_431 : f32 to vector<1x128xf32>
    %960 = arith.maximumf %958, %959 : vector<1x128xf32>
    %961 = vector.broadcast %951 : vector<1x128xf32> to vector<32x128xf32>
    %962 = arith.subf %947, %961 : vector<32x128xf32>
    %cst_432 = arith.constant 9.99999974E-6 : f32
    %963 = vector.broadcast %cst_432 : f32 to vector<1x128xf32>
    %964 = arith.addf %960, %963 : vector<1x128xf32>
    %965 = math.rsqrt %964 : vector<1x128xf32>
    %966 = vector.broadcast %965 : vector<1x128xf32> to vector<32x128xf32>
    %967 = arith.mulf %962, %966 : vector<32x128xf32>
    %968 = tpu.concatenate %946, %967 in 0 : vector<32x128xf32>, vector<32x128xf32> -> vector<64x128xf32>
    %969 = vector.broadcast %924 : vector<1x128xf32> to vector<64x128xf32>
    %970 = arith.mulf %968, %969 : vector<64x128xf32>
    %971 = vector.broadcast %925 : vector<1x128xf32> to vector<64x128xf32>
    %972 = arith.addf %970, %971 : vector<64x128xf32>
    %973 = arith.addf %972, %672 : vector<64x128xf32>
    %cst_433 = arith.constant 0.000000e+00 : f32
    %974 = vector.broadcast %cst_433 : f32 to vector<64x128xf32>
    %975 = arith.maximumf %973, %974 : vector<64x128xf32>
    %976 = vector.extract_strided_slice %975 {offsets = [0, 0], sizes = [16, 128], strides = [1, 1]} : vector<64x128xf32> to vector<16x128xf32>
    %977 = arith.truncf %976 : vector<16x128xf32> to vector<16x128xbf16>
    %c0_434 = arith.constant 0 : index
    %c16_435 = arith.constant 16 : index
    %c0_436 = arith.constant 0 : index
    %978 = vector.load %arg6[%c0_434, %c16_435, %c0_436] : memref<4x48x128xbf16, #tpu.memory_space<vmem>>, vector<1x16x128xbf16>
    %979 = vector.shape_cast %978 : vector<1x16x128xbf16> to vector<16x128xbf16>
    %980 = vector.shape_cast %977 : vector<16x128xbf16> to vector<1x16x128xbf16>
    tpu.vector_store %arg6[%c0_434, %c16_435, %c0_436], %980 {strides = array<i32>} : memref<4x48x128xbf16, #tpu.memory_space<vmem>>, vector<1x16x128xbf16>,
    %981 = vector.extract_strided_slice %975 {offsets = [16, 0], sizes = [16, 128], strides = [1, 1]} : vector<64x128xf32> to vector<16x128xf32>
    %982 = arith.truncf %981 : vector<16x128xf32> to vector<16x128xbf16>
    %c1_437 = arith.constant 1 : index
    %c16_438 = arith.constant 16 : index
    %c0_439 = arith.constant 0 : index
    %983 = vector.load %arg6[%c1_437, %c16_438, %c0_439] : memref<4x48x128xbf16, #tpu.memory_space<vmem>>, vector<1x16x128xbf16>
    %984 = vector.shape_cast %983 : vector<1x16x128xbf16> to vector<16x128xbf16>
    %985 = vector.shape_cast %982 : vector<16x128xbf16> to vector<1x16x128xbf16>
    tpu.vector_store %arg6[%c1_437, %c16_438, %c0_439], %985 {strides = array<i32>} : memref<4x48x128xbf16, #tpu.memory_space<vmem>>, vector<1x16x128xbf16>,
    %986 = vector.extract_strided_slice %975 {offsets = [32, 0], sizes = [16, 128], strides = [1, 1]} : vector<64x128xf32> to vector<16x128xf32>
    %987 = arith.truncf %986 : vector<16x128xf32> to vector<16x128xbf16>
    %c2_440 = arith.constant 2 : index
    %c16_441 = arith.constant 16 : index
    %c0_442 = arith.constant 0 : index
    %988 = vector.load %arg6[%c2_440, %c16_441, %c0_442] : memref<4x48x128xbf16, #tpu.memory_space<vmem>>, vector<1x16x128xbf16>
    %989 = vector.shape_cast %988 : vector<1x16x128xbf16> to vector<16x128xbf16>
    %990 = vector.shape_cast %987 : vector<16x128xbf16> to vector<1x16x128xbf16>
    tpu.vector_store %arg6[%c2_440, %c16_441, %c0_442], %990 {strides = array<i32>} : memref<4x48x128xbf16, #tpu.memory_space<vmem>>, vector<1x16x128xbf16>,
    %991 = vector.extract_strided_slice %975 {offsets = [48, 0], sizes = [16, 128], strides = [1, 1]} : vector<64x128xf32> to vector<16x128xf32>
    %992 = arith.truncf %991 : vector<16x128xf32> to vector<16x128xbf16>
    %c3_443 = arith.constant 3 : index
    %c16_444 = arith.constant 16 : index
    %c0_445 = arith.constant 0 : index
    %993 = vector.load %arg6[%c3_443, %c16_444, %c0_445] : memref<4x48x128xbf16, #tpu.memory_space<vmem>>, vector<1x16x128xbf16>
    %994 = vector.shape_cast %993 : vector<1x16x128xbf16> to vector<16x128xbf16>
    %995 = vector.shape_cast %992 : vector<16x128xbf16> to vector<1x16x128xbf16>
    tpu.vector_store %arg6[%c3_443, %c16_444, %c0_445], %995 {strides = array<i32>} : memref<4x48x128xbf16, #tpu.memory_space<vmem>>, vector<1x16x128xbf16>,
    %c31 = arith.constant 31 : index
    %c0_446 = arith.constant 0 : index
    %996 = vector.load %arg3[%c31, %c0_446] : memref<40x128xf32, #tpu.memory_space<vmem>>, vector<1x128xf32>
    %c32_447 = arith.constant 32 : index
    %c0_448 = arith.constant 0 : index
    %997 = vector.load %arg3[%c32_447, %c0_448] : memref<40x128xf32, #tpu.memory_space<vmem>>, vector<1x128xf32>
    %998 = vector.extract_strided_slice %975 {offsets = [0, 0], sizes = [32, 128], strides = [1, 1]} : vector<64x128xf32> to vector<32x128xf32>
    %cst_449 = arith.constant dense<0.000000e+00> : vector<128xf32>
    %999 = vector.multi_reduction <add>, %998, %cst_449 [0] : vector<32x128xf32> to vector<128xf32>
    %1000 = vector.shape_cast %999 : vector<128xf32> to vector<1x128xf32>
    %cst_450 = arith.constant 3.125000e-02 : f32
    %1001 = vector.broadcast %cst_450 : f32 to vector<1x128xf32>
    %1002 = arith.mulf %1000, %1001 : vector<1x128xf32>
    %1003 = arith.mulf %998, %998 : vector<32x128xf32>
    %cst_451 = arith.constant dense<0.000000e+00> : vector<128xf32>
    %1004 = vector.multi_reduction <add>, %1003, %cst_451 [0] : vector<32x128xf32> to vector<128xf32>
    %1005 = vector.shape_cast %1004 : vector<128xf32> to vector<1x128xf32>
    %cst_452 = arith.constant 3.125000e-02 : f32
    %1006 = vector.broadcast %cst_452 : f32 to vector<1x128xf32>
    %1007 = arith.mulf %1005, %1006 : vector<1x128xf32>
    %1008 = arith.mulf %1002, %1002 : vector<1x128xf32>
    %1009 = arith.subf %1007, %1008 : vector<1x128xf32>
    %cst_453 = arith.constant 0.000000e+00 : f32
    %1010 = vector.broadcast %cst_453 : f32 to vector<1x128xf32>
    %1011 = arith.maximumf %1009, %1010 : vector<1x128xf32>
    %1012 = vector.broadcast %1002 : vector<1x128xf32> to vector<32x128xf32>
    %1013 = arith.subf %998, %1012 : vector<32x128xf32>
    %cst_454 = arith.constant 9.99999974E-6 : f32
    %1014 = vector.broadcast %cst_454 : f32 to vector<1x128xf32>
    %1015 = arith.addf %1011, %1014 : vector<1x128xf32>
    %1016 = math.rsqrt %1015 : vector<1x128xf32>
    %1017 = vector.broadcast %1016 : vector<1x128xf32> to vector<32x128xf32>
    %1018 = arith.mulf %1013, %1017 : vector<32x128xf32>
    %1019 = vector.extract_strided_slice %975 {offsets = [32, 0], sizes = [32, 128], strides = [1, 1]} : vector<64x128xf32> to vector<32x128xf32>
    %cst_455 = arith.constant dense<0.000000e+00> : vector<128xf32>
    %1020 = vector.multi_reduction <add>, %1019, %cst_455 [0] : vector<32x128xf32> to vector<128xf32>
    %1021 = vector.shape_cast %1020 : vector<128xf32> to vector<1x128xf32>
    %cst_456 = arith.constant 3.125000e-02 : f32
    %1022 = vector.broadcast %cst_456 : f32 to vector<1x128xf32>
    %1023 = arith.mulf %1021, %1022 : vector<1x128xf32>
    %1024 = arith.mulf %1019, %1019 : vector<32x128xf32>
    %cst_457 = arith.constant dense<0.000000e+00> : vector<128xf32>
    %1025 = vector.multi_reduction <add>, %1024, %cst_457 [0] : vector<32x128xf32> to vector<128xf32>
    %1026 = vector.shape_cast %1025 : vector<128xf32> to vector<1x128xf32>
    %cst_458 = arith.constant 3.125000e-02 : f32
    %1027 = vector.broadcast %cst_458 : f32 to vector<1x128xf32>
    %1028 = arith.mulf %1026, %1027 : vector<1x128xf32>
    %1029 = arith.mulf %1023, %1023 : vector<1x128xf32>
    %1030 = arith.subf %1028, %1029 : vector<1x128xf32>
    %cst_459 = arith.constant 0.000000e+00 : f32
    %1031 = vector.broadcast %cst_459 : f32 to vector<1x128xf32>
    %1032 = arith.maximumf %1030, %1031 : vector<1x128xf32>
    %1033 = vector.broadcast %1023 : vector<1x128xf32> to vector<32x128xf32>
    %1034 = arith.subf %1019, %1033 : vector<32x128xf32>
    %cst_460 = arith.constant 9.99999974E-6 : f32
    %1035 = vector.broadcast %cst_460 : f32 to vector<1x128xf32>
    %1036 = arith.addf %1032, %1035 : vector<1x128xf32>
    %1037 = math.rsqrt %1036 : vector<1x128xf32>
    %1038 = vector.broadcast %1037 : vector<1x128xf32> to vector<32x128xf32>
    %1039 = arith.mulf %1034, %1038 : vector<32x128xf32>
    %1040 = tpu.concatenate %1018, %1039 in 0 : vector<32x128xf32>, vector<32x128xf32> -> vector<64x128xf32>
    %1041 = vector.broadcast %996 : vector<1x128xf32> to vector<64x128xf32>
    %1042 = arith.mulf %1040, %1041 : vector<64x128xf32>
    %1043 = vector.broadcast %997 : vector<1x128xf32> to vector<64x128xf32>
    %1044 = arith.addf %1042, %1043 : vector<64x128xf32>
    %c0_461 = arith.constant 0 : index
    %c0_462 = arith.constant 0 : index
    %c0_463 = arith.constant 0 : index
    %1045 = vector.load %arg6[%c0_461, %c0_462, %c0_463] : memref<4x48x128xbf16, #tpu.memory_space<vmem>>, vector<1x48x128xbf16>
    %1046 = vector.shape_cast %1045 : vector<1x48x128xbf16> to vector<48x128xbf16>
    %1047 = vector.extract_strided_slice %1046 {offsets = [13, 0], sizes = [16, 128], strides = [1, 1]} : vector<48x128xbf16> to vector<16x128xbf16>
    %1048 = vector.extract_strided_slice %1046 {offsets = [14, 0], sizes = [16, 128], strides = [1, 1]} : vector<48x128xbf16> to vector<16x128xbf16>
    %1049 = vector.extract_strided_slice %1046 {offsets = [15, 0], sizes = [16, 128], strides = [1, 1]} : vector<48x128xbf16> to vector<16x128xbf16>
    %1050 = vector.extract_strided_slice %1046 {offsets = [16, 0], sizes = [16, 128], strides = [1, 1]} : vector<48x128xbf16> to vector<16x128xbf16>
    %1051 = vector.extract_strided_slice %1046 {offsets = [17, 0], sizes = [16, 128], strides = [1, 1]} : vector<48x128xbf16> to vector<16x128xbf16>
    %1052 = vector.extract_strided_slice %1046 {offsets = [18, 0], sizes = [16, 128], strides = [1, 1]} : vector<48x128xbf16> to vector<16x128xbf16>
    %1053 = vector.extract_strided_slice %1046 {offsets = [19, 0], sizes = [16, 128], strides = [1, 1]} : vector<48x128xbf16> to vector<16x128xbf16>
    %1054 = vector.extract_strided_slice %1046 {offsets = [20, 0], sizes = [16, 128], strides = [1, 1]} : vector<48x128xbf16> to vector<16x128xbf16>
    %1055 = tpu.concatenate %1047, %1048, %1049, %1050, %1051, %1052, %1053, %1054 in 1 : vector<16x128xbf16>, vector<16x128xbf16>, vector<16x128xbf16>, vector<16x128xbf16>, vector<16x128xbf16>, vector<16x128xbf16>, vector<16x128xbf16>, vector<16x128xbf16> -> vector<16x1024xbf16>
    %c1_464 = arith.constant 1 : index
    %c0_465 = arith.constant 0 : index
    %c0_466 = arith.constant 0 : index
    %1056 = vector.load %arg6[%c1_464, %c0_465, %c0_466] : memref<4x48x128xbf16, #tpu.memory_space<vmem>>, vector<1x48x128xbf16>
    %1057 = vector.shape_cast %1056 : vector<1x48x128xbf16> to vector<48x128xbf16>
    %1058 = vector.extract_strided_slice %1057 {offsets = [13, 0], sizes = [16, 128], strides = [1, 1]} : vector<48x128xbf16> to vector<16x128xbf16>
    %1059 = vector.extract_strided_slice %1057 {offsets = [14, 0], sizes = [16, 128], strides = [1, 1]} : vector<48x128xbf16> to vector<16x128xbf16>
    %1060 = vector.extract_strided_slice %1057 {offsets = [15, 0], sizes = [16, 128], strides = [1, 1]} : vector<48x128xbf16> to vector<16x128xbf16>
    %1061 = vector.extract_strided_slice %1057 {offsets = [16, 0], sizes = [16, 128], strides = [1, 1]} : vector<48x128xbf16> to vector<16x128xbf16>
    %1062 = vector.extract_strided_slice %1057 {offsets = [17, 0], sizes = [16, 128], strides = [1, 1]} : vector<48x128xbf16> to vector<16x128xbf16>
    %1063 = vector.extract_strided_slice %1057 {offsets = [18, 0], sizes = [16, 128], strides = [1, 1]} : vector<48x128xbf16> to vector<16x128xbf16>
    %1064 = vector.extract_strided_slice %1057 {offsets = [19, 0], sizes = [16, 128], strides = [1, 1]} : vector<48x128xbf16> to vector<16x128xbf16>
    %1065 = vector.extract_strided_slice %1057 {offsets = [20, 0], sizes = [16, 128], strides = [1, 1]} : vector<48x128xbf16> to vector<16x128xbf16>
    %1066 = tpu.concatenate %1058, %1059, %1060, %1061, %1062, %1063, %1064, %1065 in 1 : vector<16x128xbf16>, vector<16x128xbf16>, vector<16x128xbf16>, vector<16x128xbf16>, vector<16x128xbf16>, vector<16x128xbf16>, vector<16x128xbf16>, vector<16x128xbf16> -> vector<16x1024xbf16>
    %c2_467 = arith.constant 2 : index
    %c0_468 = arith.constant 0 : index
    %c0_469 = arith.constant 0 : index
    %1067 = vector.load %arg6[%c2_467, %c0_468, %c0_469] : memref<4x48x128xbf16, #tpu.memory_space<vmem>>, vector<1x48x128xbf16>
    %1068 = vector.shape_cast %1067 : vector<1x48x128xbf16> to vector<48x128xbf16>
    %1069 = vector.extract_strided_slice %1068 {offsets = [13, 0], sizes = [16, 128], strides = [1, 1]} : vector<48x128xbf16> to vector<16x128xbf16>
    %1070 = vector.extract_strided_slice %1068 {offsets = [14, 0], sizes = [16, 128], strides = [1, 1]} : vector<48x128xbf16> to vector<16x128xbf16>
    %1071 = vector.extract_strided_slice %1068 {offsets = [15, 0], sizes = [16, 128], strides = [1, 1]} : vector<48x128xbf16> to vector<16x128xbf16>
    %1072 = vector.extract_strided_slice %1068 {offsets = [16, 0], sizes = [16, 128], strides = [1, 1]} : vector<48x128xbf16> to vector<16x128xbf16>
    %1073 = vector.extract_strided_slice %1068 {offsets = [17, 0], sizes = [16, 128], strides = [1, 1]} : vector<48x128xbf16> to vector<16x128xbf16>
    %1074 = vector.extract_strided_slice %1068 {offsets = [18, 0], sizes = [16, 128], strides = [1, 1]} : vector<48x128xbf16> to vector<16x128xbf16>
    %1075 = vector.extract_strided_slice %1068 {offsets = [19, 0], sizes = [16, 128], strides = [1, 1]} : vector<48x128xbf16> to vector<16x128xbf16>
    %1076 = vector.extract_strided_slice %1068 {offsets = [20, 0], sizes = [16, 128], strides = [1, 1]} : vector<48x128xbf16> to vector<16x128xbf16>
    %1077 = tpu.concatenate %1069, %1070, %1071, %1072, %1073, %1074, %1075, %1076 in 1 : vector<16x128xbf16>, vector<16x128xbf16>, vector<16x128xbf16>, vector<16x128xbf16>, vector<16x128xbf16>, vector<16x128xbf16>, vector<16x128xbf16>, vector<16x128xbf16> -> vector<16x1024xbf16>
    %c3_470 = arith.constant 3 : index
    %c0_471 = arith.constant 0 : index
    %c0_472 = arith.constant 0 : index
    %1078 = vector.load %arg6[%c3_470, %c0_471, %c0_472] : memref<4x48x128xbf16, #tpu.memory_space<vmem>>, vector<1x48x128xbf16>
    %1079 = vector.shape_cast %1078 : vector<1x48x128xbf16> to vector<48x128xbf16>
    %1080 = vector.extract_strided_slice %1079 {offsets = [13, 0], sizes = [16, 128], strides = [1, 1]} : vector<48x128xbf16> to vector<16x128xbf16>
    %1081 = vector.extract_strided_slice %1079 {offsets = [14, 0], sizes = [16, 128], strides = [1, 1]} : vector<48x128xbf16> to vector<16x128xbf16>
    %1082 = vector.extract_strided_slice %1079 {offsets = [15, 0], sizes = [16, 128], strides = [1, 1]} : vector<48x128xbf16> to vector<16x128xbf16>
    %1083 = vector.extract_strided_slice %1079 {offsets = [16, 0], sizes = [16, 128], strides = [1, 1]} : vector<48x128xbf16> to vector<16x128xbf16>
    %1084 = vector.extract_strided_slice %1079 {offsets = [17, 0], sizes = [16, 128], strides = [1, 1]} : vector<48x128xbf16> to vector<16x128xbf16>
    %1085 = vector.extract_strided_slice %1079 {offsets = [18, 0], sizes = [16, 128], strides = [1, 1]} : vector<48x128xbf16> to vector<16x128xbf16>
    %1086 = vector.extract_strided_slice %1079 {offsets = [19, 0], sizes = [16, 128], strides = [1, 1]} : vector<48x128xbf16> to vector<16x128xbf16>
    %1087 = vector.extract_strided_slice %1079 {offsets = [20, 0], sizes = [16, 128], strides = [1, 1]} : vector<48x128xbf16> to vector<16x128xbf16>
    %1088 = tpu.concatenate %1080, %1081, %1082, %1083, %1084, %1085, %1086, %1087 in 1 : vector<16x128xbf16>, vector<16x128xbf16>, vector<16x128xbf16>, vector<16x128xbf16>, vector<16x128xbf16>, vector<16x128xbf16>, vector<16x128xbf16>, vector<16x128xbf16> -> vector<16x1024xbf16>
    %1089 = tpu.concatenate %1055, %1066, %1077, %1088 in 0 : vector<16x1024xbf16>, vector<16x1024xbf16>, vector<16x1024xbf16>, vector<16x1024xbf16> -> vector<64x1024xbf16>
    %c3200 = arith.constant 3200 : index
    %c0_473 = arith.constant 0 : index
    %1090 = vector.load %arg2[%c3200, %c0_473] : memref<5248x128xbf16, #tpu.memory_space<vmem>>, vector<1024x128xbf16>
    %cst_474 = arith.constant dense<0.000000e+00> : vector<64x128xf32>
    %1091 = tpu.matmul %1089, %1090, %cst_474 {dimension_numbers = #tpu.dot_dimension_numbers<[1], [0], [0], [1], [0, 0, 1, 1], [], []>} : vector<64x1024xbf16>, vector<1024x128xbf16>, vector<64x128xf32> -> vector<64x128xf32>
    %c25 = arith.constant 25 : index
    %c0_475 = arith.constant 0 : index
    %1092 = vector.load %arg3[%c25, %c0_475] : memref<40x128xf32, #tpu.memory_space<vmem>>, vector<1x128xf32>
    %c26 = arith.constant 26 : index
    %c0_476 = arith.constant 0 : index
    %1093 = vector.load %arg3[%c26, %c0_476] : memref<40x128xf32, #tpu.memory_space<vmem>>, vector<1x128xf32>
    %1094 = vector.extract_strided_slice %1091 {offsets = [0, 0], sizes = [32, 128], strides = [1, 1]} : vector<64x128xf32> to vector<32x128xf32>
    %cst_477 = arith.constant dense<0.000000e+00> : vector<128xf32>
    %1095 = vector.multi_reduction <add>, %1094, %cst_477 [0] : vector<32x128xf32> to vector<128xf32>
    %1096 = vector.shape_cast %1095 : vector<128xf32> to vector<1x128xf32>
    %cst_478 = arith.constant 3.125000e-02 : f32
    %1097 = vector.broadcast %cst_478 : f32 to vector<1x128xf32>
    %1098 = arith.mulf %1096, %1097 : vector<1x128xf32>
    %1099 = arith.mulf %1094, %1094 : vector<32x128xf32>
    %cst_479 = arith.constant dense<0.000000e+00> : vector<128xf32>
    %1100 = vector.multi_reduction <add>, %1099, %cst_479 [0] : vector<32x128xf32> to vector<128xf32>
    %1101 = vector.shape_cast %1100 : vector<128xf32> to vector<1x128xf32>
    %cst_480 = arith.constant 3.125000e-02 : f32
    %1102 = vector.broadcast %cst_480 : f32 to vector<1x128xf32>
    %1103 = arith.mulf %1101, %1102 : vector<1x128xf32>
    %1104 = arith.mulf %1098, %1098 : vector<1x128xf32>
    %1105 = arith.subf %1103, %1104 : vector<1x128xf32>
    %cst_481 = arith.constant 0.000000e+00 : f32
    %1106 = vector.broadcast %cst_481 : f32 to vector<1x128xf32>
    %1107 = arith.maximumf %1105, %1106 : vector<1x128xf32>
    %1108 = vector.broadcast %1098 : vector<1x128xf32> to vector<32x128xf32>
    %1109 = arith.subf %1094, %1108 : vector<32x128xf32>
    %cst_482 = arith.constant 9.99999974E-6 : f32
    %1110 = vector.broadcast %cst_482 : f32 to vector<1x128xf32>
    %1111 = arith.addf %1107, %1110 : vector<1x128xf32>
    %1112 = math.rsqrt %1111 : vector<1x128xf32>
    %1113 = vector.broadcast %1112 : vector<1x128xf32> to vector<32x128xf32>
    %1114 = arith.mulf %1109, %1113 : vector<32x128xf32>
    %1115 = vector.extract_strided_slice %1091 {offsets = [32, 0], sizes = [32, 128], strides = [1, 1]} : vector<64x128xf32> to vector<32x128xf32>
    %cst_483 = arith.constant dense<0.000000e+00> : vector<128xf32>
    %1116 = vector.multi_reduction <add>, %1115, %cst_483 [0] : vector<32x128xf32> to vector<128xf32>
    %1117 = vector.shape_cast %1116 : vector<128xf32> to vector<1x128xf32>
    %cst_484 = arith.constant 3.125000e-02 : f32
    %1118 = vector.broadcast %cst_484 : f32 to vector<1x128xf32>
    %1119 = arith.mulf %1117, %1118 : vector<1x128xf32>
    %1120 = arith.mulf %1115, %1115 : vector<32x128xf32>
    %cst_485 = arith.constant dense<0.000000e+00> : vector<128xf32>
    %1121 = vector.multi_reduction <add>, %1120, %cst_485 [0] : vector<32x128xf32> to vector<128xf32>
    %1122 = vector.shape_cast %1121 : vector<128xf32> to vector<1x128xf32>
    %cst_486 = arith.constant 3.125000e-02 : f32
    %1123 = vector.broadcast %cst_486 : f32 to vector<1x128xf32>
    %1124 = arith.mulf %1122, %1123 : vector<1x128xf32>
    %1125 = arith.mulf %1119, %1119 : vector<1x128xf32>
    %1126 = arith.subf %1124, %1125 : vector<1x128xf32>
    %cst_487 = arith.constant 0.000000e+00 : f32
    %1127 = vector.broadcast %cst_487 : f32 to vector<1x128xf32>
    %1128 = arith.maximumf %1126, %1127 : vector<1x128xf32>
    %1129 = vector.broadcast %1119 : vector<1x128xf32> to vector<32x128xf32>
    %1130 = arith.subf %1115, %1129 : vector<32x128xf32>
    %cst_488 = arith.constant 9.99999974E-6 : f32
    %1131 = vector.broadcast %cst_488 : f32 to vector<1x128xf32>
    %1132 = arith.addf %1128, %1131 : vector<1x128xf32>
    %1133 = math.rsqrt %1132 : vector<1x128xf32>
    %1134 = vector.broadcast %1133 : vector<1x128xf32> to vector<32x128xf32>
    %1135 = arith.mulf %1130, %1134 : vector<32x128xf32>
    %1136 = tpu.concatenate %1114, %1135 in 0 : vector<32x128xf32>, vector<32x128xf32> -> vector<64x128xf32>
    %1137 = vector.broadcast %1092 : vector<1x128xf32> to vector<64x128xf32>
    %1138 = arith.mulf %1136, %1137 : vector<64x128xf32>
    %1139 = vector.broadcast %1093 : vector<1x128xf32> to vector<64x128xf32>
    %1140 = arith.addf %1138, %1139 : vector<64x128xf32>
    %cst_489 = arith.constant 0.000000e+00 : f32
    %1141 = vector.broadcast %cst_489 : f32 to vector<64x128xf32>
    %1142 = arith.maximumf %1140, %1141 : vector<64x128xf32>
    %1143 = vector.extract_strided_slice %1142 {offsets = [0, 0], sizes = [16, 128], strides = [1, 1]} : vector<64x128xf32> to vector<16x128xf32>
    %1144 = arith.truncf %1143 : vector<16x128xf32> to vector<16x128xbf16>
    %c0_490 = arith.constant 0 : index
    %c16_491 = arith.constant 16 : index
    %c0_492 = arith.constant 0 : index
    %1145 = vector.load %arg6[%c0_490, %c16_491, %c0_492] : memref<4x48x128xbf16, #tpu.memory_space<vmem>>, vector<1x16x128xbf16>
    %1146 = vector.shape_cast %1145 : vector<1x16x128xbf16> to vector<16x128xbf16>
    %1147 = vector.shape_cast %1144 : vector<16x128xbf16> to vector<1x16x128xbf16>
    tpu.vector_store %arg6[%c0_490, %c16_491, %c0_492], %1147 {strides = array<i32>} : memref<4x48x128xbf16, #tpu.memory_space<vmem>>, vector<1x16x128xbf16>,
    %1148 = vector.extract_strided_slice %1142 {offsets = [16, 0], sizes = [16, 128], strides = [1, 1]} : vector<64x128xf32> to vector<16x128xf32>
    %1149 = arith.truncf %1148 : vector<16x128xf32> to vector<16x128xbf16>
    %c1_493 = arith.constant 1 : index
    %c16_494 = arith.constant 16 : index
    %c0_495 = arith.constant 0 : index
    %1150 = vector.load %arg6[%c1_493, %c16_494, %c0_495] : memref<4x48x128xbf16, #tpu.memory_space<vmem>>, vector<1x16x128xbf16>
    %1151 = vector.shape_cast %1150 : vector<1x16x128xbf16> to vector<16x128xbf16>
    %1152 = vector.shape_cast %1149 : vector<16x128xbf16> to vector<1x16x128xbf16>
    tpu.vector_store %arg6[%c1_493, %c16_494, %c0_495], %1152 {strides = array<i32>} : memref<4x48x128xbf16, #tpu.memory_space<vmem>>, vector<1x16x128xbf16>,
    %1153 = vector.extract_strided_slice %1142 {offsets = [32, 0], sizes = [16, 128], strides = [1, 1]} : vector<64x128xf32> to vector<16x128xf32>
    %1154 = arith.truncf %1153 : vector<16x128xf32> to vector<16x128xbf16>
    %c2_496 = arith.constant 2 : index
    %c16_497 = arith.constant 16 : index
    %c0_498 = arith.constant 0 : index
    %1155 = vector.load %arg6[%c2_496, %c16_497, %c0_498] : memref<4x48x128xbf16, #tpu.memory_space<vmem>>, vector<1x16x128xbf16>
    %1156 = vector.shape_cast %1155 : vector<1x16x128xbf16> to vector<16x128xbf16>
    %1157 = vector.shape_cast %1154 : vector<16x128xbf16> to vector<1x16x128xbf16>
    tpu.vector_store %arg6[%c2_496, %c16_497, %c0_498], %1157 {strides = array<i32>} : memref<4x48x128xbf16, #tpu.memory_space<vmem>>, vector<1x16x128xbf16>,
    %1158 = vector.extract_strided_slice %1142 {offsets = [48, 0], sizes = [16, 128], strides = [1, 1]} : vector<64x128xf32> to vector<16x128xf32>
    %1159 = arith.truncf %1158 : vector<16x128xf32> to vector<16x128xbf16>
    %c3_499 = arith.constant 3 : index
    %c16_500 = arith.constant 16 : index
    %c0_501 = arith.constant 0 : index
    %1160 = vector.load %arg6[%c3_499, %c16_500, %c0_501] : memref<4x48x128xbf16, #tpu.memory_space<vmem>>, vector<1x16x128xbf16>
    %1161 = vector.shape_cast %1160 : vector<1x16x128xbf16> to vector<16x128xbf16>
    %1162 = vector.shape_cast %1159 : vector<16x128xbf16> to vector<1x16x128xbf16>
    tpu.vector_store %arg6[%c3_499, %c16_500, %c0_501], %1162 {strides = array<i32>} : memref<4x48x128xbf16, #tpu.memory_space<vmem>>, vector<1x16x128xbf16>,
    %c0_502 = arith.constant 0 : index
    %c0_503 = arith.constant 0 : index
    %c0_504 = arith.constant 0 : index
    %1163 = vector.load %arg6[%c0_502, %c0_503, %c0_504] : memref<4x48x128xbf16, #tpu.memory_space<vmem>>, vector<1x48x128xbf16>
    %1164 = vector.shape_cast %1163 : vector<1x48x128xbf16> to vector<48x128xbf16>
    %1165 = vector.extract_strided_slice %1164 {offsets = [14, 0], sizes = [16, 128], strides = [1, 1]} : vector<48x128xbf16> to vector<16x128xbf16>
    %1166 = vector.extract_strided_slice %1164 {offsets = [15, 0], sizes = [16, 128], strides = [1, 1]} : vector<48x128xbf16> to vector<16x128xbf16>
    %1167 = vector.extract_strided_slice %1164 {offsets = [16, 0], sizes = [16, 128], strides = [1, 1]} : vector<48x128xbf16> to vector<16x128xbf16>
    %1168 = vector.extract_strided_slice %1164 {offsets = [17, 0], sizes = [16, 128], strides = [1, 1]} : vector<48x128xbf16> to vector<16x128xbf16>
    %1169 = vector.extract_strided_slice %1164 {offsets = [18, 0], sizes = [16, 128], strides = [1, 1]} : vector<48x128xbf16> to vector<16x128xbf16>
    %1170 = tpu.concatenate %1165, %1166, %1167, %1168, %1169 in 1 : vector<16x128xbf16>, vector<16x128xbf16>, vector<16x128xbf16>, vector<16x128xbf16>, vector<16x128xbf16> -> vector<16x640xbf16>
    %c1_505 = arith.constant 1 : index
    %c0_506 = arith.constant 0 : index
    %c0_507 = arith.constant 0 : index
    %1171 = vector.load %arg6[%c1_505, %c0_506, %c0_507] : memref<4x48x128xbf16, #tpu.memory_space<vmem>>, vector<1x48x128xbf16>
    %1172 = vector.shape_cast %1171 : vector<1x48x128xbf16> to vector<48x128xbf16>
    %1173 = vector.extract_strided_slice %1172 {offsets = [14, 0], sizes = [16, 128], strides = [1, 1]} : vector<48x128xbf16> to vector<16x128xbf16>
    %1174 = vector.extract_strided_slice %1172 {offsets = [15, 0], sizes = [16, 128], strides = [1, 1]} : vector<48x128xbf16> to vector<16x128xbf16>
    %1175 = vector.extract_strided_slice %1172 {offsets = [16, 0], sizes = [16, 128], strides = [1, 1]} : vector<48x128xbf16> to vector<16x128xbf16>
    %1176 = vector.extract_strided_slice %1172 {offsets = [17, 0], sizes = [16, 128], strides = [1, 1]} : vector<48x128xbf16> to vector<16x128xbf16>
    %1177 = vector.extract_strided_slice %1172 {offsets = [18, 0], sizes = [16, 128], strides = [1, 1]} : vector<48x128xbf16> to vector<16x128xbf16>
    %1178 = tpu.concatenate %1173, %1174, %1175, %1176, %1177 in 1 : vector<16x128xbf16>, vector<16x128xbf16>, vector<16x128xbf16>, vector<16x128xbf16>, vector<16x128xbf16> -> vector<16x640xbf16>
    %c2_508 = arith.constant 2 : index
    %c0_509 = arith.constant 0 : index
    %c0_510 = arith.constant 0 : index
    %1179 = vector.load %arg6[%c2_508, %c0_509, %c0_510] : memref<4x48x128xbf16, #tpu.memory_space<vmem>>, vector<1x48x128xbf16>
    %1180 = vector.shape_cast %1179 : vector<1x48x128xbf16> to vector<48x128xbf16>
    %1181 = vector.extract_strided_slice %1180 {offsets = [14, 0], sizes = [16, 128], strides = [1, 1]} : vector<48x128xbf16> to vector<16x128xbf16>
    %1182 = vector.extract_strided_slice %1180 {offsets = [15, 0], sizes = [16, 128], strides = [1, 1]} : vector<48x128xbf16> to vector<16x128xbf16>
    %1183 = vector.extract_strided_slice %1180 {offsets = [16, 0], sizes = [16, 128], strides = [1, 1]} : vector<48x128xbf16> to vector<16x128xbf16>
    %1184 = vector.extract_strided_slice %1180 {offsets = [17, 0], sizes = [16, 128], strides = [1, 1]} : vector<48x128xbf16> to vector<16x128xbf16>
    %1185 = vector.extract_strided_slice %1180 {offsets = [18, 0], sizes = [16, 128], strides = [1, 1]} : vector<48x128xbf16> to vector<16x128xbf16>
    %1186 = tpu.concatenate %1181, %1182, %1183, %1184, %1185 in 1 : vector<16x128xbf16>, vector<16x128xbf16>, vector<16x128xbf16>, vector<16x128xbf16>, vector<16x128xbf16> -> vector<16x640xbf16>
    %c3_511 = arith.constant 3 : index
    %c0_512 = arith.constant 0 : index
    %c0_513 = arith.constant 0 : index
    %1187 = vector.load %arg6[%c3_511, %c0_512, %c0_513] : memref<4x48x128xbf16, #tpu.memory_space<vmem>>, vector<1x48x128xbf16>
    %1188 = vector.shape_cast %1187 : vector<1x48x128xbf16> to vector<48x128xbf16>
    %1189 = vector.extract_strided_slice %1188 {offsets = [14, 0], sizes = [16, 128], strides = [1, 1]} : vector<48x128xbf16> to vector<16x128xbf16>
    %1190 = vector.extract_strided_slice %1188 {offsets = [15, 0], sizes = [16, 128], strides = [1, 1]} : vector<48x128xbf16> to vector<16x128xbf16>
    %1191 = vector.extract_strided_slice %1188 {offsets = [16, 0], sizes = [16, 128], strides = [1, 1]} : vector<48x128xbf16> to vector<16x128xbf16>
    %1192 = vector.extract_strided_slice %1188 {offsets = [17, 0], sizes = [16, 128], strides = [1, 1]} : vector<48x128xbf16> to vector<16x128xbf16>
    %1193 = vector.extract_strided_slice %1188 {offsets = [18, 0], sizes = [16, 128], strides = [1, 1]} : vector<48x128xbf16> to vector<16x128xbf16>
    %1194 = tpu.concatenate %1189, %1190, %1191, %1192, %1193 in 1 : vector<16x128xbf16>, vector<16x128xbf16>, vector<16x128xbf16>, vector<16x128xbf16>, vector<16x128xbf16> -> vector<16x640xbf16>
    %1195 = tpu.concatenate %1170, %1178, %1186, %1194 in 0 : vector<16x640xbf16>, vector<16x640xbf16>, vector<16x640xbf16>, vector<16x640xbf16> -> vector<64x640xbf16>
    %c4224 = arith.constant 4224 : index
    %c0_514 = arith.constant 0 : index
    %1196 = vector.load %arg2[%c4224, %c0_514] : memref<5248x128xbf16, #tpu.memory_space<vmem>>, vector<640x128xbf16>
    %cst_515 = arith.constant dense<0.000000e+00> : vector<64x128xf32>
    %1197 = tpu.matmul %1195, %1196, %cst_515 {dimension_numbers = #tpu.dot_dimension_numbers<[1], [0], [0], [1], [0, 0, 1, 1], [], []>} : vector<64x640xbf16>, vector<640x128xbf16>, vector<64x128xf32> -> vector<64x128xf32>
    %c27 = arith.constant 27 : index
    %c0_516 = arith.constant 0 : index
    %1198 = vector.load %arg3[%c27, %c0_516] : memref<40x128xf32, #tpu.memory_space<vmem>>, vector<1x128xf32>
    %c28 = arith.constant 28 : index
    %c0_517 = arith.constant 0 : index
    %1199 = vector.load %arg3[%c28, %c0_517] : memref<40x128xf32, #tpu.memory_space<vmem>>, vector<1x128xf32>
    %1200 = vector.extract_strided_slice %1197 {offsets = [0, 0], sizes = [32, 128], strides = [1, 1]} : vector<64x128xf32> to vector<32x128xf32>
    %cst_518 = arith.constant dense<0.000000e+00> : vector<128xf32>
    %1201 = vector.multi_reduction <add>, %1200, %cst_518 [0] : vector<32x128xf32> to vector<128xf32>
    %1202 = vector.shape_cast %1201 : vector<128xf32> to vector<1x128xf32>
    %cst_519 = arith.constant 3.125000e-02 : f32
    %1203 = vector.broadcast %cst_519 : f32 to vector<1x128xf32>
    %1204 = arith.mulf %1202, %1203 : vector<1x128xf32>
    %1205 = arith.mulf %1200, %1200 : vector<32x128xf32>
    %cst_520 = arith.constant dense<0.000000e+00> : vector<128xf32>
    %1206 = vector.multi_reduction <add>, %1205, %cst_520 [0] : vector<32x128xf32> to vector<128xf32>
    %1207 = vector.shape_cast %1206 : vector<128xf32> to vector<1x128xf32>
    %cst_521 = arith.constant 3.125000e-02 : f32
    %1208 = vector.broadcast %cst_521 : f32 to vector<1x128xf32>
    %1209 = arith.mulf %1207, %1208 : vector<1x128xf32>
    %1210 = arith.mulf %1204, %1204 : vector<1x128xf32>
    %1211 = arith.subf %1209, %1210 : vector<1x128xf32>
    %cst_522 = arith.constant 0.000000e+00 : f32
    %1212 = vector.broadcast %cst_522 : f32 to vector<1x128xf32>
    %1213 = arith.maximumf %1211, %1212 : vector<1x128xf32>
    %1214 = vector.broadcast %1204 : vector<1x128xf32> to vector<32x128xf32>
    %1215 = arith.subf %1200, %1214 : vector<32x128xf32>
    %cst_523 = arith.constant 9.99999974E-6 : f32
    %1216 = vector.broadcast %cst_523 : f32 to vector<1x128xf32>
    %1217 = arith.addf %1213, %1216 : vector<1x128xf32>
    %1218 = math.rsqrt %1217 : vector<1x128xf32>
    %1219 = vector.broadcast %1218 : vector<1x128xf32> to vector<32x128xf32>
    %1220 = arith.mulf %1215, %1219 : vector<32x128xf32>
    %1221 = vector.extract_strided_slice %1197 {offsets = [32, 0], sizes = [32, 128], strides = [1, 1]} : vector<64x128xf32> to vector<32x128xf32>
    %cst_524 = arith.constant dense<0.000000e+00> : vector<128xf32>
    %1222 = vector.multi_reduction <add>, %1221, %cst_524 [0] : vector<32x128xf32> to vector<128xf32>
    %1223 = vector.shape_cast %1222 : vector<128xf32> to vector<1x128xf32>
    %cst_525 = arith.constant 3.125000e-02 : f32
    %1224 = vector.broadcast %cst_525 : f32 to vector<1x128xf32>
    %1225 = arith.mulf %1223, %1224 : vector<1x128xf32>
    %1226 = arith.mulf %1221, %1221 : vector<32x128xf32>
    %cst_526 = arith.constant dense<0.000000e+00> : vector<128xf32>
    %1227 = vector.multi_reduction <add>, %1226, %cst_526 [0] : vector<32x128xf32> to vector<128xf32>
    %1228 = vector.shape_cast %1227 : vector<128xf32> to vector<1x128xf32>
    %cst_527 = arith.constant 3.125000e-02 : f32
    %1229 = vector.broadcast %cst_527 : f32 to vector<1x128xf32>
    %1230 = arith.mulf %1228, %1229 : vector<1x128xf32>
    %1231 = arith.mulf %1225, %1225 : vector<1x128xf32>
    %1232 = arith.subf %1230, %1231 : vector<1x128xf32>
    %cst_528 = arith.constant 0.000000e+00 : f32
    %1233 = vector.broadcast %cst_528 : f32 to vector<1x128xf32>
    %1234 = arith.maximumf %1232, %1233 : vector<1x128xf32>
    %1235 = vector.broadcast %1225 : vector<1x128xf32> to vector<32x128xf32>
    %1236 = arith.subf %1221, %1235 : vector<32x128xf32>
    %cst_529 = arith.constant 9.99999974E-6 : f32
    %1237 = vector.broadcast %cst_529 : f32 to vector<1x128xf32>
    %1238 = arith.addf %1234, %1237 : vector<1x128xf32>
    %1239 = math.rsqrt %1238 : vector<1x128xf32>
    %1240 = vector.broadcast %1239 : vector<1x128xf32> to vector<32x128xf32>
    %1241 = arith.mulf %1236, %1240 : vector<32x128xf32>
    %1242 = tpu.concatenate %1220, %1241 in 0 : vector<32x128xf32>, vector<32x128xf32> -> vector<64x128xf32>
    %1243 = vector.broadcast %1198 : vector<1x128xf32> to vector<64x128xf32>
    %1244 = arith.mulf %1242, %1243 : vector<64x128xf32>
    %1245 = vector.broadcast %1199 : vector<1x128xf32> to vector<64x128xf32>
    %1246 = arith.addf %1244, %1245 : vector<64x128xf32>
    %cst_530 = arith.constant 0.000000e+00 : f32
    %1247 = vector.broadcast %cst_530 : f32 to vector<64x128xf32>
    %1248 = arith.maximumf %1246, %1247 : vector<64x128xf32>
    %1249 = vector.extract_strided_slice %1248 {offsets = [0, 0], sizes = [16, 128], strides = [1, 1]} : vector<64x128xf32> to vector<16x128xf32>
    %1250 = arith.truncf %1249 : vector<16x128xf32> to vector<16x128xbf16>
    %c0_531 = arith.constant 0 : index
    %c16_532 = arith.constant 16 : index
    %c0_533 = arith.constant 0 : index
    %1251 = vector.load %arg6[%c0_531, %c16_532, %c0_533] : memref<4x48x128xbf16, #tpu.memory_space<vmem>>, vector<1x16x128xbf16>
    %1252 = vector.shape_cast %1251 : vector<1x16x128xbf16> to vector<16x128xbf16>
    %1253 = vector.shape_cast %1250 : vector<16x128xbf16> to vector<1x16x128xbf16>
    tpu.vector_store %arg6[%c0_531, %c16_532, %c0_533], %1253 {strides = array<i32>} : memref<4x48x128xbf16, #tpu.memory_space<vmem>>, vector<1x16x128xbf16>,
    %1254 = vector.extract_strided_slice %1248 {offsets = [16, 0], sizes = [16, 128], strides = [1, 1]} : vector<64x128xf32> to vector<16x128xf32>
    %1255 = arith.truncf %1254 : vector<16x128xf32> to vector<16x128xbf16>
    %c1_534 = arith.constant 1 : index
    %c16_535 = arith.constant 16 : index
    %c0_536 = arith.constant 0 : index
    %1256 = vector.load %arg6[%c1_534, %c16_535, %c0_536] : memref<4x48x128xbf16, #tpu.memory_space<vmem>>, vector<1x16x128xbf16>
    %1257 = vector.shape_cast %1256 : vector<1x16x128xbf16> to vector<16x128xbf16>
    %1258 = vector.shape_cast %1255 : vector<16x128xbf16> to vector<1x16x128xbf16>
    tpu.vector_store %arg6[%c1_534, %c16_535, %c0_536], %1258 {strides = array<i32>} : memref<4x48x128xbf16, #tpu.memory_space<vmem>>, vector<1x16x128xbf16>,
    %1259 = vector.extract_strided_slice %1248 {offsets = [32, 0], sizes = [16, 128], strides = [1, 1]} : vector<64x128xf32> to vector<16x128xf32>
    %1260 = arith.truncf %1259 : vector<16x128xf32> to vector<16x128xbf16>
    %c2_537 = arith.constant 2 : index
    %c16_538 = arith.constant 16 : index
    %c0_539 = arith.constant 0 : index
    %1261 = vector.load %arg6[%c2_537, %c16_538, %c0_539] : memref<4x48x128xbf16, #tpu.memory_space<vmem>>, vector<1x16x128xbf16>
    %1262 = vector.shape_cast %1261 : vector<1x16x128xbf16> to vector<16x128xbf16>
    %1263 = vector.shape_cast %1260 : vector<16x128xbf16> to vector<1x16x128xbf16>
    tpu.vector_store %arg6[%c2_537, %c16_538, %c0_539], %1263 {strides = array<i32>} : memref<4x48x128xbf16, #tpu.memory_space<vmem>>, vector<1x16x128xbf16>,
    %1264 = vector.extract_strided_slice %1248 {offsets = [48, 0], sizes = [16, 128], strides = [1, 1]} : vector<64x128xf32> to vector<16x128xf32>
    %1265 = arith.truncf %1264 : vector<16x128xf32> to vector<16x128xbf16>
    %c3_540 = arith.constant 3 : index
    %c16_541 = arith.constant 16 : index
    %c0_542 = arith.constant 0 : index
    %1266 = vector.load %arg6[%c3_540, %c16_541, %c0_542] : memref<4x48x128xbf16, #tpu.memory_space<vmem>>, vector<1x16x128xbf16>
    %1267 = vector.shape_cast %1266 : vector<1x16x128xbf16> to vector<16x128xbf16>
    %1268 = vector.shape_cast %1265 : vector<16x128xbf16> to vector<1x16x128xbf16>
    tpu.vector_store %arg6[%c3_540, %c16_541, %c0_542], %1268 {strides = array<i32>} : memref<4x48x128xbf16, #tpu.memory_space<vmem>>, vector<1x16x128xbf16>,
    %c0_543 = arith.constant 0 : index
    %c0_544 = arith.constant 0 : index
    %c0_545 = arith.constant 0 : index
    %1269 = vector.load %arg6[%c0_543, %c0_544, %c0_545] : memref<4x48x128xbf16, #tpu.memory_space<vmem>>, vector<1x48x128xbf16>
    %1270 = vector.shape_cast %1269 : vector<1x48x128xbf16> to vector<48x128xbf16>
    %1271 = vector.extract_strided_slice %1270 {offsets = [15, 0], sizes = [16, 128], strides = [1, 1]} : vector<48x128xbf16> to vector<16x128xbf16>
    %1272 = vector.extract_strided_slice %1270 {offsets = [16, 0], sizes = [16, 128], strides = [1, 1]} : vector<48x128xbf16> to vector<16x128xbf16>
    %1273 = vector.extract_strided_slice %1270 {offsets = [17, 0], sizes = [16, 128], strides = [1, 1]} : vector<48x128xbf16> to vector<16x128xbf16>
    %1274 = tpu.concatenate %1271, %1272, %1273 in 1 : vector<16x128xbf16>, vector<16x128xbf16>, vector<16x128xbf16> -> vector<16x384xbf16>
    %c1_546 = arith.constant 1 : index
    %c0_547 = arith.constant 0 : index
    %c0_548 = arith.constant 0 : index
    %1275 = vector.load %arg6[%c1_546, %c0_547, %c0_548] : memref<4x48x128xbf16, #tpu.memory_space<vmem>>, vector<1x48x128xbf16>
    %1276 = vector.shape_cast %1275 : vector<1x48x128xbf16> to vector<48x128xbf16>
    %1277 = vector.extract_strided_slice %1276 {offsets = [15, 0], sizes = [16, 128], strides = [1, 1]} : vector<48x128xbf16> to vector<16x128xbf16>
    %1278 = vector.extract_strided_slice %1276 {offsets = [16, 0], sizes = [16, 128], strides = [1, 1]} : vector<48x128xbf16> to vector<16x128xbf16>
    %1279 = vector.extract_strided_slice %1276 {offsets = [17, 0], sizes = [16, 128], strides = [1, 1]} : vector<48x128xbf16> to vector<16x128xbf16>
    %1280 = tpu.concatenate %1277, %1278, %1279 in 1 : vector<16x128xbf16>, vector<16x128xbf16>, vector<16x128xbf16> -> vector<16x384xbf16>
    %c2_549 = arith.constant 2 : index
    %c0_550 = arith.constant 0 : index
    %c0_551 = arith.constant 0 : index
    %1281 = vector.load %arg6[%c2_549, %c0_550, %c0_551] : memref<4x48x128xbf16, #tpu.memory_space<vmem>>, vector<1x48x128xbf16>
    %1282 = vector.shape_cast %1281 : vector<1x48x128xbf16> to vector<48x128xbf16>
    %1283 = vector.extract_strided_slice %1282 {offsets = [15, 0], sizes = [16, 128], strides = [1, 1]} : vector<48x128xbf16> to vector<16x128xbf16>
    %1284 = vector.extract_strided_slice %1282 {offsets = [16, 0], sizes = [16, 128], strides = [1, 1]} : vector<48x128xbf16> to vector<16x128xbf16>
    %1285 = vector.extract_strided_slice %1282 {offsets = [17, 0], sizes = [16, 128], strides = [1, 1]} : vector<48x128xbf16> to vector<16x128xbf16>
    %1286 = tpu.concatenate %1283, %1284, %1285 in 1 : vector<16x128xbf16>, vector<16x128xbf16>, vector<16x128xbf16> -> vector<16x384xbf16>
    %c3_552 = arith.constant 3 : index
    %c0_553 = arith.constant 0 : index
    %c0_554 = arith.constant 0 : index
    %1287 = vector.load %arg6[%c3_552, %c0_553, %c0_554] : memref<4x48x128xbf16, #tpu.memory_space<vmem>>, vector<1x48x128xbf16>
    %1288 = vector.shape_cast %1287 : vector<1x48x128xbf16> to vector<48x128xbf16>
    %1289 = vector.extract_strided_slice %1288 {offsets = [15, 0], sizes = [16, 128], strides = [1, 1]} : vector<48x128xbf16> to vector<16x128xbf16>
    %1290 = vector.extract_strided_slice %1288 {offsets = [16, 0], sizes = [16, 128], strides = [1, 1]} : vector<48x128xbf16> to vector<16x128xbf16>
    %1291 = vector.extract_strided_slice %1288 {offsets = [17, 0], sizes = [16, 128], strides = [1, 1]} : vector<48x128xbf16> to vector<16x128xbf16>
    %1292 = tpu.concatenate %1289, %1290, %1291 in 1 : vector<16x128xbf16>, vector<16x128xbf16>, vector<16x128xbf16> -> vector<16x384xbf16>
    %1293 = tpu.concatenate %1274, %1280, %1286, %1292 in 0 : vector<16x384xbf16>, vector<16x384xbf16>, vector<16x384xbf16>, vector<16x384xbf16> -> vector<64x384xbf16>
    %c4864 = arith.constant 4864 : index
    %c0_555 = arith.constant 0 : index
    %1294 = vector.load %arg2[%c4864, %c0_555] : memref<5248x128xbf16, #tpu.memory_space<vmem>>, vector<384x128xbf16>
    %cst_556 = arith.constant dense<0.000000e+00> : vector<64x128xf32>
    %1295 = tpu.matmul %1293, %1294, %cst_556 {dimension_numbers = #tpu.dot_dimension_numbers<[1], [0], [0], [1], [0, 0, 1, 1], [], []>} : vector<64x384xbf16>, vector<384x128xbf16>, vector<64x128xf32> -> vector<64x128xf32>
    %c29 = arith.constant 29 : index
    %c0_557 = arith.constant 0 : index
    %1296 = vector.load %arg3[%c29, %c0_557] : memref<40x128xf32, #tpu.memory_space<vmem>>, vector<1x128xf32>
    %c30 = arith.constant 30 : index
    %c0_558 = arith.constant 0 : index
    %1297 = vector.load %arg3[%c30, %c0_558] : memref<40x128xf32, #tpu.memory_space<vmem>>, vector<1x128xf32>
    %1298 = vector.extract_strided_slice %1295 {offsets = [0, 0], sizes = [32, 128], strides = [1, 1]} : vector<64x128xf32> to vector<32x128xf32>
    %cst_559 = arith.constant dense<0.000000e+00> : vector<128xf32>
    %1299 = vector.multi_reduction <add>, %1298, %cst_559 [0] : vector<32x128xf32> to vector<128xf32>
    %1300 = vector.shape_cast %1299 : vector<128xf32> to vector<1x128xf32>
    %cst_560 = arith.constant 3.125000e-02 : f32
    %1301 = vector.broadcast %cst_560 : f32 to vector<1x128xf32>
    %1302 = arith.mulf %1300, %1301 : vector<1x128xf32>
    %1303 = arith.mulf %1298, %1298 : vector<32x128xf32>
    %cst_561 = arith.constant dense<0.000000e+00> : vector<128xf32>
    %1304 = vector.multi_reduction <add>, %1303, %cst_561 [0] : vector<32x128xf32> to vector<128xf32>
    %1305 = vector.shape_cast %1304 : vector<128xf32> to vector<1x128xf32>
    %cst_562 = arith.constant 3.125000e-02 : f32
    %1306 = vector.broadcast %cst_562 : f32 to vector<1x128xf32>
    %1307 = arith.mulf %1305, %1306 : vector<1x128xf32>
    %1308 = arith.mulf %1302, %1302 : vector<1x128xf32>
    %1309 = arith.subf %1307, %1308 : vector<1x128xf32>
    %cst_563 = arith.constant 0.000000e+00 : f32
    %1310 = vector.broadcast %cst_563 : f32 to vector<1x128xf32>
    %1311 = arith.maximumf %1309, %1310 : vector<1x128xf32>
    %1312 = vector.broadcast %1302 : vector<1x128xf32> to vector<32x128xf32>
    %1313 = arith.subf %1298, %1312 : vector<32x128xf32>
    %cst_564 = arith.constant 9.99999974E-6 : f32
    %1314 = vector.broadcast %cst_564 : f32 to vector<1x128xf32>
    %1315 = arith.addf %1311, %1314 : vector<1x128xf32>
    %1316 = math.rsqrt %1315 : vector<1x128xf32>
    %1317 = vector.broadcast %1316 : vector<1x128xf32> to vector<32x128xf32>
    %1318 = arith.mulf %1313, %1317 : vector<32x128xf32>
    %1319 = vector.extract_strided_slice %1295 {offsets = [32, 0], sizes = [32, 128], strides = [1, 1]} : vector<64x128xf32> to vector<32x128xf32>
    %cst_565 = arith.constant dense<0.000000e+00> : vector<128xf32>
    %1320 = vector.multi_reduction <add>, %1319, %cst_565 [0] : vector<32x128xf32> to vector<128xf32>
    %1321 = vector.shape_cast %1320 : vector<128xf32> to vector<1x128xf32>
    %cst_566 = arith.constant 3.125000e-02 : f32
    %1322 = vector.broadcast %cst_566 : f32 to vector<1x128xf32>
    %1323 = arith.mulf %1321, %1322 : vector<1x128xf32>
    %1324 = arith.mulf %1319, %1319 : vector<32x128xf32>
    %cst_567 = arith.constant dense<0.000000e+00> : vector<128xf32>
    %1325 = vector.multi_reduction <add>, %1324, %cst_567 [0] : vector<32x128xf32> to vector<128xf32>
    %1326 = vector.shape_cast %1325 : vector<128xf32> to vector<1x128xf32>
    %cst_568 = arith.constant 3.125000e-02 : f32
    %1327 = vector.broadcast %cst_568 : f32 to vector<1x128xf32>
    %1328 = arith.mulf %1326, %1327 : vector<1x128xf32>
    %1329 = arith.mulf %1323, %1323 : vector<1x128xf32>
    %1330 = arith.subf %1328, %1329 : vector<1x128xf32>
    %cst_569 = arith.constant 0.000000e+00 : f32
    %1331 = vector.broadcast %cst_569 : f32 to vector<1x128xf32>
    %1332 = arith.maximumf %1330, %1331 : vector<1x128xf32>
    %1333 = vector.broadcast %1323 : vector<1x128xf32> to vector<32x128xf32>
    %1334 = arith.subf %1319, %1333 : vector<32x128xf32>
    %cst_570 = arith.constant 9.99999974E-6 : f32
    %1335 = vector.broadcast %cst_570 : f32 to vector<1x128xf32>
    %1336 = arith.addf %1332, %1335 : vector<1x128xf32>
    %1337 = math.rsqrt %1336 : vector<1x128xf32>
    %1338 = vector.broadcast %1337 : vector<1x128xf32> to vector<32x128xf32>
    %1339 = arith.mulf %1334, %1338 : vector<32x128xf32>
    %1340 = tpu.concatenate %1318, %1339 in 0 : vector<32x128xf32>, vector<32x128xf32> -> vector<64x128xf32>
    %1341 = vector.broadcast %1296 : vector<1x128xf32> to vector<64x128xf32>
    %1342 = arith.mulf %1340, %1341 : vector<64x128xf32>
    %1343 = vector.broadcast %1297 : vector<1x128xf32> to vector<64x128xf32>
    %1344 = arith.addf %1342, %1343 : vector<64x128xf32>
    %c31_571 = arith.constant 31 : index
    %c0_572 = arith.constant 0 : index
    %1345 = vector.load %arg3[%c31_571, %c0_572] : memref<40x128xf32, #tpu.memory_space<vmem>>, vector<1x128xf32>
    %c32_573 = arith.constant 32 : index
    %c0_574 = arith.constant 0 : index
    %1346 = vector.load %arg3[%c32_573, %c0_574] : memref<40x128xf32, #tpu.memory_space<vmem>>, vector<1x128xf32>
    %1347 = vector.extract_strided_slice %1344 {offsets = [0, 0], sizes = [32, 128], strides = [1, 1]} : vector<64x128xf32> to vector<32x128xf32>
    %cst_575 = arith.constant dense<0.000000e+00> : vector<128xf32>
    %1348 = vector.multi_reduction <add>, %1347, %cst_575 [0] : vector<32x128xf32> to vector<128xf32>
    %1349 = vector.shape_cast %1348 : vector<128xf32> to vector<1x128xf32>
    %cst_576 = arith.constant 3.125000e-02 : f32
    %1350 = vector.broadcast %cst_576 : f32 to vector<1x128xf32>
    %1351 = arith.mulf %1349, %1350 : vector<1x128xf32>
    %1352 = arith.mulf %1347, %1347 : vector<32x128xf32>
    %cst_577 = arith.constant dense<0.000000e+00> : vector<128xf32>
    %1353 = vector.multi_reduction <add>, %1352, %cst_577 [0] : vector<32x128xf32> to vector<128xf32>
    %1354 = vector.shape_cast %1353 : vector<128xf32> to vector<1x128xf32>
    %cst_578 = arith.constant 3.125000e-02 : f32
    %1355 = vector.broadcast %cst_578 : f32 to vector<1x128xf32>
    %1356 = arith.mulf %1354, %1355 : vector<1x128xf32>
    %1357 = arith.mulf %1351, %1351 : vector<1x128xf32>
    %1358 = arith.subf %1356, %1357 : vector<1x128xf32>
    %cst_579 = arith.constant 0.000000e+00 : f32
    %1359 = vector.broadcast %cst_579 : f32 to vector<1x128xf32>
    %1360 = arith.maximumf %1358, %1359 : vector<1x128xf32>
    %1361 = vector.broadcast %1351 : vector<1x128xf32> to vector<32x128xf32>
    %1362 = arith.subf %1347, %1361 : vector<32x128xf32>
    %cst_580 = arith.constant 9.99999974E-6 : f32
    %1363 = vector.broadcast %cst_580 : f32 to vector<1x128xf32>
    %1364 = arith.addf %1360, %1363 : vector<1x128xf32>
    %1365 = math.rsqrt %1364 : vector<1x128xf32>
    %1366 = vector.broadcast %1365 : vector<1x128xf32> to vector<32x128xf32>
    %1367 = arith.mulf %1362, %1366 : vector<32x128xf32>
    %1368 = vector.extract_strided_slice %1344 {offsets = [32, 0], sizes = [32, 128], strides = [1, 1]} : vector<64x128xf32> to vector<32x128xf32>
    %cst_581 = arith.constant dense<0.000000e+00> : vector<128xf32>
    %1369 = vector.multi_reduction <add>, %1368, %cst_581 [0] : vector<32x128xf32> to vector<128xf32>
    %1370 = vector.shape_cast %1369 : vector<128xf32> to vector<1x128xf32>
    %cst_582 = arith.constant 3.125000e-02 : f32
    %1371 = vector.broadcast %cst_582 : f32 to vector<1x128xf32>
    %1372 = arith.mulf %1370, %1371 : vector<1x128xf32>
    %1373 = arith.mulf %1368, %1368 : vector<32x128xf32>
    %cst_583 = arith.constant dense<0.000000e+00> : vector<128xf32>
    %1374 = vector.multi_reduction <add>, %1373, %cst_583 [0] : vector<32x128xf32> to vector<128xf32>
    %1375 = vector.shape_cast %1374 : vector<128xf32> to vector<1x128xf32>
    %cst_584 = arith.constant 3.125000e-02 : f32
    %1376 = vector.broadcast %cst_584 : f32 to vector<1x128xf32>
    %1377 = arith.mulf %1375, %1376 : vector<1x128xf32>
    %1378 = arith.mulf %1372, %1372 : vector<1x128xf32>
    %1379 = arith.subf %1377, %1378 : vector<1x128xf32>
    %cst_585 = arith.constant 0.000000e+00 : f32
    %1380 = vector.broadcast %cst_585 : f32 to vector<1x128xf32>
    %1381 = arith.maximumf %1379, %1380 : vector<1x128xf32>
    %1382 = vector.broadcast %1372 : vector<1x128xf32> to vector<32x128xf32>
    %1383 = arith.subf %1368, %1382 : vector<32x128xf32>
    %cst_586 = arith.constant 9.99999974E-6 : f32
    %1384 = vector.broadcast %cst_586 : f32 to vector<1x128xf32>
    %1385 = arith.addf %1381, %1384 : vector<1x128xf32>
    %1386 = math.rsqrt %1385 : vector<1x128xf32>
    %1387 = vector.broadcast %1386 : vector<1x128xf32> to vector<32x128xf32>
    %1388 = arith.mulf %1383, %1387 : vector<32x128xf32>
    %1389 = tpu.concatenate %1367, %1388 in 0 : vector<32x128xf32>, vector<32x128xf32> -> vector<64x128xf32>
    %1390 = vector.broadcast %1345 : vector<1x128xf32> to vector<64x128xf32>
    %1391 = arith.mulf %1389, %1390 : vector<64x128xf32>
    %1392 = vector.broadcast %1346 : vector<1x128xf32> to vector<64x128xf32>
    %1393 = arith.addf %1391, %1392 : vector<64x128xf32>
    %1394 = arith.addf %1393, %1044 : vector<64x128xf32>
    %cst_587 = arith.constant 0.000000e+00 : f32
    %1395 = vector.broadcast %cst_587 : f32 to vector<64x128xf32>
    %1396 = arith.maximumf %1394, %1395 : vector<64x128xf32>
    %1397 = vector.extract_strided_slice %1396 {offsets = [0, 0], sizes = [16, 128], strides = [1, 1]} : vector<64x128xf32> to vector<16x128xf32>
    %c0_588 = arith.constant 0 : index
    %c0_589 = arith.constant 0 : index
    %c0_590 = arith.constant 0 : index
    %c0_591 = arith.constant 0 : index
    %1398 = vector.load %arg4[%c0_588, %c0_589, %c0_590, %c0_591] : memref<2x2x16x128xf32, #tpu.memory_space<vmem>>, vector<1x1x16x128xf32>
    %1399 = vector.shape_cast %1398 : vector<1x1x16x128xf32> to vector<16x128xf32>
    %1400 = vector.shape_cast %1397 : vector<16x128xf32> to vector<1x1x16x128xf32>
    tpu.vector_store %arg4[%c0_588, %c0_589, %c0_590, %c0_591], %1400 {strides = array<i32>} : memref<2x2x16x128xf32, #tpu.memory_space<vmem>>, vector<1x1x16x128xf32>,
    %1401 = vector.extract_strided_slice %1396 {offsets = [16, 0], sizes = [16, 128], strides = [1, 1]} : vector<64x128xf32> to vector<16x128xf32>
    %c0_592 = arith.constant 0 : index
    %c1_593 = arith.constant 1 : index
    %c0_594 = arith.constant 0 : index
    %c0_595 = arith.constant 0 : index
    %1402 = vector.load %arg4[%c0_592, %c1_593, %c0_594, %c0_595] : memref<2x2x16x128xf32, #tpu.memory_space<vmem>>, vector<1x1x16x128xf32>
    %1403 = vector.shape_cast %1402 : vector<1x1x16x128xf32> to vector<16x128xf32>
    %1404 = vector.shape_cast %1401 : vector<16x128xf32> to vector<1x1x16x128xf32>
    tpu.vector_store %arg4[%c0_592, %c1_593, %c0_594, %c0_595], %1404 {strides = array<i32>} : memref<2x2x16x128xf32, #tpu.memory_space<vmem>>, vector<1x1x16x128xf32>,
    %1405 = vector.extract_strided_slice %1396 {offsets = [32, 0], sizes = [16, 128], strides = [1, 1]} : vector<64x128xf32> to vector<16x128xf32>
    %c1_596 = arith.constant 1 : index
    %c0_597 = arith.constant 0 : index
    %c0_598 = arith.constant 0 : index
    %c0_599 = arith.constant 0 : index
    %1406 = vector.load %arg4[%c1_596, %c0_597, %c0_598, %c0_599] : memref<2x2x16x128xf32, #tpu.memory_space<vmem>>, vector<1x1x16x128xf32>
    %1407 = vector.shape_cast %1406 : vector<1x1x16x128xf32> to vector<16x128xf32>
    %1408 = vector.shape_cast %1405 : vector<16x128xf32> to vector<1x1x16x128xf32>
    tpu.vector_store %arg4[%c1_596, %c0_597, %c0_598, %c0_599], %1408 {strides = array<i32>} : memref<2x2x16x128xf32, #tpu.memory_space<vmem>>, vector<1x1x16x128xf32>,
    %1409 = vector.extract_strided_slice %1396 {offsets = [48, 0], sizes = [16, 128], strides = [1, 1]} : vector<64x128xf32> to vector<16x128xf32>
    %c1_600 = arith.constant 1 : index
    %c1_601 = arith.constant 1 : index
    %c0_602 = arith.constant 0 : index
    %c0_603 = arith.constant 0 : index
    %1410 = vector.load %arg4[%c1_600, %c1_601, %c0_602, %c0_603] : memref<2x2x16x128xf32, #tpu.memory_space<vmem>>, vector<1x1x16x128xf32>
    %1411 = vector.shape_cast %1410 : vector<1x1x16x128xf32> to vector<16x128xf32>
    %1412 = vector.shape_cast %1409 : vector<16x128xf32> to vector<1x1x16x128xf32>
    tpu.vector_store %arg4[%c1_600, %c1_601, %c0_602, %c0_603], %1412 {strides = array<i32>} : memref<2x2x16x128xf32, #tpu.memory_space<vmem>>, vector<1x1x16x128xf32>,
    return
  }
  func.func @transform_0(%arg0: i32) -> (i32, i32, i32, i32) {
    %c0_i32 = arith.constant 0 : i32
    %c0_i32_0 = arith.constant 0 : i32
    %c0_i32_1 = arith.constant 0 : i32
    %c0_i32_2 = arith.constant 0 : i32
    return %arg0, %c0_i32, %c0_i32_0, %c0_i32_1 : i32, i32, i32, i32
  }
  func.func @transform_1(%arg0: i32) -> (i32, i32) {
    %c0_i32 = arith.constant 0 : i32
    %c0_i32_0 = arith.constant 0 : i32
    %c0_i32_1 = arith.constant 0 : i32
    return %c0_i32, %c0_i32_0 : i32, i32
  }
  func.func @transform_2(%arg0: i32) -> (i32, i32) {
    %c0_i32 = arith.constant 0 : i32
    %c0_i32_0 = arith.constant 0 : i32
    %c0_i32_1 = arith.constant 0 : i32
    return %c0_i32, %c0_i32_0 : i32, i32
  }
  func.func @transform_3(%arg0: i32) -> (i32, i32, i32, i32) {
    %c0_i32 = arith.constant 0 : i32
    %c0_i32_0 = arith.constant 0 : i32
    %c0_i32_1 = arith.constant 0 : i32
    %c0_i32_2 = arith.constant 0 : i32
    return %arg0, %c0_i32, %c0_i32_0, %c0_i32_1 : i32, i32, i32, i32
  }
}

</mosaic_0001>

<bundles_post_ra>
// kernel: resnet_forward.1
= control target key start
LH: loop header
LB: loop body
LE: loop exit
PB: predicated region body
PF: predicated region fallthrough
CT: control target
= control target key end

     0   :  { %v14118_v0 = vmov 0   ;;  %vm263_vm0 = vcmask 1046528   ;;  %vm286_vm1 = vcmask 1045504   ;;  %vm307_vm2 = vcmask 1044480   ;;  %s14114_s0 = inlined_call_operand.vmem [shape: f32[2,2,16,1], index: 0, kind: input, shape index: {}]   ;;  %s14115_s2 = inlined_call_operand.vmem [shape: f32[40,128], index: 2, kind: input, shape index: {}]   ;;  %s14116_s1 = inlined_call_operand.vmem [shape: bf16[5248,128], index: 1, kind: input, shape index: {}]   ;;  %s14117_s3 = inlined_call_operand.vmem [shape: f32[2,2,16,128], index: 3, kind: output, shape index: {}]  }
   0x1   :  { %10290 = vset.pattern.permute.xlu1 %v14118_v0  ;;  %10289 = vset.pattern.permute.xlu0 %v14118_v0  ;;  %v8969_v1 = vld [vmem:[%s14114_s0 + $0x10] sm:$0xff]  ;;  %v19_v2 = vld [vmem:[%s14114_s0] sm:$0xff]  ;;  %v8970_v3 = vld [vmem:[%s14114_s0 + $0x18] sm:$0xff]  ;;  %vm328_vm3 = vcmask 1043456   ;;  %vm351_vm4 = vcmask 1042432   ;;  %vm374_vm5 = vcmask 1041408  }
   0x2   :  { %45 = vperm.xlu1 %10290, %v8969_v1   ;;  %23 = vperm.xlu0 %10289, %v19_v2   ;;  %v20_v4 = vld [vmem:[%s14114_s0 + $0x8] sm:$0xff]  ;;  %v8971_v6 = vld [vmem:[%s14114_s0 + $0x20] sm:$0xff]  ;;  %v8974_v7 = vld [vmem:[%s14114_s0 + $0x38] sm:$0xff]  ;;  %vm397_vm6 = vcmask 1040384   ;;  %vm931_vm7 = vsmask.f32 7424 }
   0x3   :  { %v8972_v5 = vld [vmem:[%s14114_s0 + $0x28] sm:$0xff]  ;;  %v8973_v8 = vld [vmem:[%s14114_s0 + $0x30] sm:$0xff]  ;;  %v10729_v9 = vld [vmem:[%s14115_s2 + $0x1] ss:$0 sm:$0xff]  ;;  %vm945_vm8 = vsmask.f32 6400 }
   0x4   :  { %v10734_v10 = vld [vmem:[%s14115_s2 + $0x2] ss:$0 sm:$0xff]  ;;  %v10739_v11 = vld [vmem:[%s14115_s2] ss:$0 sm:$0xff]  ;;  %v257_v12 = vmul.f32 0.0, %v10729_v9  ;;  %v10295_v24 = vld [vmem:[%s14116_s1 + $0x48] sm:$0xff]  }
   0x5   :  { %v280_v13 = vmul.f32 0.0, %v10734_v10  ;;  %v10291_v14 = vld [vmem:[%s14116_s1 + $0x40] sm:$0xff]   ;;  %v10750_v16 = vmul.f32 0.0, %v10739_v11  ;;  %v10296_v27 = vld [vmem:[%s14116_s1 + $0x8] sm:$0xff]   ;;  %v10299_v33 = vld [vmem:[%s14116_s1 + $0x50] sm:$0xff]  }
   0x6   :  { %50 = vperm.xlu1 %10290, %v8970_v3   ;;  %28 = vperm.xlu0 %10289, %v20_v4   ;;  %v10292_v15 = vld [vmem:[%s14116_s1] sm:$0xff]   ;;  %v10760_v19 = vrot.slane %v257_v12, 1  ;;  %v10297_v29 = vld [vmem:[%s14116_s1 + $0xc8] sm:$0xff]   ;;  %v10300_v35 = vld [vmem:[%s14116_s1 + $0x10] sm:$0xff]   ;;  %vm1816_vm9 = vsmask.f32 256 }
   0x7   :  { %v10755_v17 = vld [vmem:[%s14115_s2 + $0x4] ss:$0 sm:$0xff]  ;;  %9356 = vmatprep.subr.bf16.mxu0 %v10291_v14  ;;  %v10765_v20 = vld [vmem:[%s14115_s2 + $0x5] ss:$0 sm:$0xff]  ;;  %v10770_v22 = vrot.slane %v280_v13, 2  ;;  %v10298_v31 = vld [vmem:[%s14116_s1 + $0x88] sm:$0xff]  }
   0x8   :  { %v10293_v18 = vld [vmem:[%s14116_s1 + $0xc0] sm:$0xff]   ;;  %9357 = vmatpush3.bf16.msra.mxu0 %v10292_v15  ;;  %v324_v26 = vmul.f32 0.0, %v10755_v17  ;;  %v347_v28 = vmul.f32 0.0, %v10765_v20  ;;  %v10809_v36 = vld [vmem:[%s14115_s2 + $0x8] ss:$0 sm:$0xff]  ;;  %v10301_v38 = vld [vmem:[%s14116_s1 + $0xd0] sm:$0xff]  }
   0x9   :  { %v10294_v21 = vld [vmem:[%s14116_s1 + $0x80] sm:$0xff]   ;;  %9396 = vmatprep.subr.bf16.mxu1 %v10293_v18  ;;  %9358 = vmatprep.subr.bf16.mxu0 %v10295_v24  ;;  %v10302_v41 = vld [vmem:[%s14116_s1 + $0x90] sm:$0xff]   ;;  %v10303_v44 = vld [vmem:[%s14116_s1 + $0x58] sm:$0xff]   ;;  %vm2839_vm10 = vsmask.f32 1280 }
   0xa   :  { %73 = vperm.xlu1 %10290, %v8972_v5   ;;  %68 = vperm.xlu0 %10289, %v8971_v6   ;;  %v10775_v23 = vld [vmem:[%s14115_s2 + $0x6] ss:$0 sm:$0xff]  ;;  %v10783_v25 = vld [vmem:[%s14115_s2 + $0x7] ss:$0 sm:$0xff]  ;;  %v10801_v34 = vrot.slane %v324_v26, 4  ;;  %v10811_v37 = vrot.slane %v347_v28, 5 }
   0xb   :  { %9397 = vmatpush3.bf16.msra.mxu1 %v10294_v21  ;;  %v370_v30 = vmul.f32 0.0, %v10775_v23  ;;  %v393_v32 = vmul.f32 0.0, %v10783_v25  ;;  %v10819_v39 = vld [vmem:[%s14115_s2 + $0x3] ss:$0 sm:$0xff]  ;;  %v10304_v49 = vld [vmem:[%s14116_s1 + $0x18] sm:$0xff]  }
   0xc   :  { %9359 = vmatpush3.bf16.msra.mxu0 %v10296_v27  ;;  %9398 = vmatprep.subr.bf16.mxu1 %v10297_v29  ;;  %v10305_v55 = vld [vmem:[%s14116_s1 + $0xd8] sm:$0xff]   ;;  %v10307_v2 = vld [vmem:[%s14116_s1 + $0x60] sm:$0xff]   ;;  %vm2667_vm11 = vsmask.f32 5376  ;;  %vm2684_vm12 = vsmask.f32 4352 }
   0xd   :  { %9360 = vmatprep.subr.bf16.mxu0 %v10299_v33  ;;  %v10821_v40 = vrot.slane %v370_v30, 6  ;;  %v10826_v43 = vrot.slane %v393_v32, 7  ;;  %v10306_v1 = vld [vmem:[%s14116_s1 + $0x98] sm:$0xff]   ;;  %v10309_v26 = vld [vmem:[%s14116_s1 + $0xe0] sm:$0xff]   ;;  %v10311_v33 = vld [vmem:[%s14116_s1 + $0x68] sm:$0xff]  }
   0xe   :  { %96 = vperm.xlu1 %10290, %v8974_v7   ;;  %91 = vperm.xlu0 %10289, %v8973_v8   ;;  %v10308_v7 = vld [vmem:[%s14116_s1 + $0x20] sm:$0xff]  }
   0xf   :  { %9399 = vmatpush3.bf16.msra.mxu1 %v10298_v31  ;;  %v10310_v32 = vld [vmem:[%s14116_s1 + $0xa0] sm:$0xff]  }
  0x10   :  { %9361 = vmatpush3.bf16.msra.mxu0 %v10300_v35  ;;  %9400 = vmatprep.subr.bf16.mxu1 %v10301_v38 }
  0x11   :  { %9362 = vmatprep.subr.bf16.mxu0 %v10303_v44  ;;  %v10312_v44 = vld [vmem:[%s14116_s1 + $0x28] sm:$0xff]  }
  0x13   :  { %9401 = vmatpush3.bf16.msra.mxu1 %v10302_v41  ;;  %v10316_v41 = vld [vmem:[%s14116_s1 + $0x30] sm:$0xff]  }
  0x14   :  { %9363 = vmatpush3.bf16.msra.mxu0 %v10304_v49  ;;  %9402 = vmatprep.subr.bf16.mxu1 %v10305_v55 }
  0x15   :  { %9364 = vmatprep.subr.bf16.mxu0 %v10307_v2  ;;  %v10313_v2 = vld [vmem:[%s14116_s1 + $0xe8] sm:$0xff]  }
  0x17   :  { %9403 = vmatpush3.bf16.msra.mxu1 %v10306_v1 }
  0x18   :  { %9365 = vmatpush3.bf16.msra.mxu0 %v10308_v7  ;;  %9404 = vmatprep.subr.bf16.mxu1 %v10309_v26  ;;  %v10314_v26 = vld [vmem:[%s14116_s1 + $0xa8] sm:$0xff]  }
  0x19   :  { %9366 = vmatprep.subr.bf16.mxu0 %v10311_v33 }
  0x1b   :  { %9405 = vmatpush3.bf16.msra.mxu1 %v10310_v32 }
  0x1c   :  { %9367 = vmatpush3.bf16.msra.mxu0 %v10312_v44  ;;  %9406 = vmatprep.subr.bf16.mxu1 %v10313_v2 }
  0x1f   :  { %9407 = vmatpush3.bf16.msra.mxu1 %v10314_v26 }
  0x81   :  { %v46_v42 = vpop.permute.xlu1 %45  ;;  %v24_v54 = vpop.permute.xlu0 %23 }
  0x82   :  { %v10832_v45 = vmul.f32 %v10809_v36, %v46_v42  ;;  %v10835_v46 = vmul.f32 %v10739_v11, %v46_v42  ;;  %v10838_v47 = vmul.f32 %v10729_v9, %v46_v42  ;;  %v10841_v48 = vmul.f32 %v10734_v10, %v46_v42 }
  0x83   :  { %v10847_v50 = vmul.f32 %v10819_v39, %v46_v42  ;;  %v10850_v51 = vmul.f32 %v10755_v17, %v46_v42  ;;  %v10853_v52 = vmul.f32 %v10765_v20, %v46_v42  ;;  %v10856_v53 = vmul.f32 %v10775_v23, %v46_v42 }
  0x84   :  { %v10863_v56 = vmul.f32 %v10832_v45, %v10832_v45  ;;  %v422_v57 = vrot.slane %v10838_v47, 1  ;;  %v439_v58 = vrot.slane %v10841_v48, 2  ;;  %v10868_v59 = vmul.f32 %v10783_v25, %v46_v42 }
  0x85   :  { %v14123_v60 = vrot.slane %v10847_v50, 3  ;;  %v14122_v61 = vrot.slane %v10850_v51, 4  ;;  %v485_v62 = vrot.slane %v10853_v52, 5  ;;  %v502_v63 = vrot.slane %v10856_v53, 6  ;;  %v10926_v31 = vpop.permute.xlu1 %50  ;;  %v10320_v52 = vld [vmem:[%s14116_s1 + $0x38] sm:$0xff]   ;;  %v10323_v53 = vld [vmem:[%s14116_s1 + $0x100] sm:$0xff]  }
  0x86   :  { %v423_v3 = vsel %vm263_vm0, %v10760_v19, %v422_v57  ;;  %v440_v4 = vsel %vm286_vm1, %v10770_v22, %v439_v58  ;;  %v10890_v6 = vmul.f32 %v10809_v36, %v24_v54  ;;  %v10897_v12 = vmul.f32 %v10739_v11, %v24_v54 }
  0x87   :  { %v429_v8 = vadd.f32 %v423_v3, %v10750_v16  ;;  %v10900_v13 = vmul.f32 %v10729_v9, %v24_v54  ;;  %v10903_v14 = vmul.f32 %v10734_v10, %v24_v54  ;;  %v10910_v18 = vmul.f32 %v10819_v39, %v24_v54 }
  0x88   :  { %v10907_v15 = vmul.f32 %v10890_v6, %v10890_v6  ;;  %v10913_v21 = vmul.f32 %v10755_v17, %v24_v54  ;;  %v10916_v24 = vmul.f32 %v10765_v20, %v24_v54  ;;  %v10924_v30 = vmul.f32 %v10775_v23, %v24_v54 }
  0x89   :  { %v446_v27 = vadd.f32 %v440_v4, %v429_v8  ;;  %v14121_v28 = vrot.slane %v10900_v13, 1  ;;  %v14120_v29 = vrot.slane %v10903_v14, 2  ;;  %v308_v35 = vrot.slane %v10910_v18, 3  ;;  %v10315_v4 = vld [vmem:[%s14116_s1 + $0x70] sm:$0xff]  }
  0x8a   :  { %v329_v38 = vrot.slane %v10913_v21, 4  ;;  %v10938_v42 = vmul.f32 %v10783_v25, %v24_v54  ;;  %v10961_v7 = vmul.f32 %v10809_v36, %v10926_v31  ;;  %v411_v8 = vmul.f32 %v10739_v11, %v10926_v31  ;;  %9368 = vmatprep.subr.bf16.mxu0 %v10315_v4 }
  0x8b   :  { %v459_v49 = vadd.f32 %v14123_v60, %v446_v27  ;;  %v266_v55 = vsel %vm263_vm0, %v10760_v19, %v14121_v28  ;;  %v289_v1 = vsel %vm286_vm1, %v10770_v22, %v14120_v29  ;;  %v417_v32 = vmul.f32 %v10729_v9, %v10926_v31  ;;  %9369 = vmatpush3.bf16.msra.mxu0 %v10316_v41 }
  0x8c   :  { %v272_v3 = vadd.f32 %v266_v55, %v10750_v16  ;;  %v434_v33 = vmul.f32 %v10734_v10, %v10926_v31  ;;  %v450_v55 = vmul.f32 %v10819_v39, %v10926_v31  ;;  %v10978_v29 = vmul.f32 %v10961_v7, %v10961_v7 }
  0x8d   :  { %v476_v27 = vadd.f32 %v14122_v61, %v459_v49  ;;  %v463_v28 = vmul.f32 %v10755_v17, %v10926_v31  ;;  %v480_v49 = vmul.f32 %v10765_v20, %v10926_v31  ;;  %v497_v60 = vmul.f32 %v10775_v23, %v10926_v31 }
  0x8e   :  { %v295_v0 = vadd.f32 %v289_v1, %v272_v3  ;;  %v424_v1 = vrot.slane %v417_v32, 1  ;;  %v441_v3 = vrot.slane %v434_v33, 2  ;;  %v454_v54 = vrot.slane %v450_v55, 3 }
  0x8f   :  { %v493_v44 = vadd.f32 %v485_v62, %v476_v27  ;;  %v469_v61 = vrot.slane %v463_v28, 4  ;;  %v486_v2 = vrot.slane %v480_v49, 5  ;;  %v14124_v55 = vrot.slane %v10847_v50, 3 }
  0x90   :  { %v314_v5 = vadd.f32 %v308_v35, %v295_v0  ;;  %v425_v26 = vsel %vm263_vm0, %v422_v57, %v424_v1  ;;  %v431_v32 = vadd.f32 %v424_v1, %v411_v8  ;;  %v442_v33 = vsel %vm286_vm1, %v439_v58, %v441_v3  ;;  %v10317_v0 = vld [vmem:[%s14116_s1 + $0xf0] sm:$0xff]   ;;  %v11016_v8 = vpop.permute.xlu0 %28 }
  0x91   :  { %v510_v27 = vadd.f32 %v502_v63, %v493_v44  ;;  %v430_v4 = vadd.f32 %v425_v26, %v10835_v46  ;;  %v455_v47 = vsel %vm307_vm2, %v14124_v55, %v454_v54  ;;  %v14125_v57 = vrot.slane %v10850_v51, 4  ;;  %v10318_v58 = vld [vmem:[%s14116_s1 + $0xb0] sm:$0xff]   ;;  %9408 = vmatprep.subr.bf16.mxu1 %v10317_v0  ;;  %v10319_v51 = vld [vmem:[%s14116_s1 + $0x78] sm:$0xff]  }
  0x92   :  { %v337_v28 = vadd.f32 %v329_v38, %v314_v5  ;;  %v14126_v41 = vrot.slane %v10868_v59, 7  ;;  %v448_v5 = vadd.f32 %v441_v3, %v431_v32  ;;  %v472_v46 = vsel %vm328_vm3, %v469_v61, %v10801_v34  ;;  %9409 = vmatpush3.bf16.msra.mxu1 %v10318_v58  ;;  %9370 = vmatprep.subr.bf16.mxu0 %v10319_v51 }
  0x93   :  { %v470_v48 = vsel %vm328_vm3, %v14125_v57, %v469_v61  ;;  %v487_v50 = vsel %vm351_vm4, %v485_v62, %v486_v2  ;;  %v14127_v44 = vrot.slane %v10916_v24, 5  ;;  %v447_v26 = vadd.f32 %v442_v33, %v430_v4  ;;  %9371 = vmatpush3.bf16.msra.mxu0 %v10320_v52  ;;  %v10322_v4 = vld [vmem:[%s14116_s1 + $0xb8] sm:$0xff]  }
  0x94   :  { %v11023_v49 = vadd.f32 %v14126_v41, %v510_v27  ;;  %v489_v27 = vsel %vm351_vm4, %v486_v2, %v10811_v37  ;;  %v503_v3 = vrot.slane %v497_v60, 6  ;;  %v461_v62 = vadd.f32 %v454_v54, %v448_v5  ;;  %v10321_v60 = vld [vmem:[%s14116_s1 + $0xf8] sm:$0xff]   ;;  %10120 = vmatprep.subr.bf16.mxu0 %v10323_v53 }
  0x95   :  { %v360_v1 = vadd.f32 %v14127_v44, %v337_v28  ;;  %v514_v32 = vmul.f32 %v10783_v25, %v10926_v31  ;;  %v11045_v0 = vmul.f32 %v10809_v36, %v11016_v8  ;;  %v14128_v2 = vrot.slane %v10924_v30, 6  ;;  %9410 = vmatprep.subr.bf16.mxu1 %v10321_v60 }
  0x96   :  { %v785_v61 = vrot.slane %v11023_v49, 5  ;;  %v460_v28 = vadd.f32 %v455_v47, %v447_v26  ;;  %v504_v54 = vsel %vm374_vm5, %v502_v63, %v503_v3  ;;  %v506_v31 = vsel %vm374_vm5, %v503_v3, %v10821_v40  ;;  %9411 = vmatpush3.bf16.msra.mxu1 %v10322_v4 }
  0x97   :  { %v383_v33 = vadd.f32 %v14128_v2, %v360_v1  ;;  %v478_v55 = vadd.f32 %v472_v46, %v461_v62  ;;  %v520_v57 = vrot.slane %v514_v32, 7  ;;  %v143_v58 = vadd.f32 %v11045_v0, %v10890_v6 }
  0x98   :  { %v154_v47 = vmul.f32 %v11045_v0, %v11045_v0  ;;  %v14129_v63 = vrot.slane %v10938_v42, 7  ;;  %v477_v5 = vadd.f32 %v470_v48, %v460_v28  ;;  %v248_v46 = vmul.f32 %v10739_v11, %v11016_v8 }
  0x99   :  { %v259_v51 = vmul.f32 %v10729_v9, %v11016_v8  ;;  %v495_v44 = vadd.f32 %v489_v27, %v478_v55  ;;  %v14130_v1 = vrot.slane %v10868_v59, 7  ;;  %v523_v3 = vsel %vm397_vm6, %v520_v57, %v10826_v43 }
  0x9a   :  { %v11069_v41 = vadd.f32 %v14129_v63, %v383_v33  ;;  %v144_v52 = vadd.f32 %v143_v58, %v10832_v45  ;;  %v494_v62 = vadd.f32 %v487_v50, %v477_v5  ;;  %v157_v32 = vadd.f32 %v154_v47, %v10907_v15 }
  0x9b   :  { %v521_v26 = vsel %vm397_vm6, %v14130_v1, %v520_v57  ;;  %v267_v60 = vrot.slane %v259_v51, 1  ;;  %v512_v2 = vadd.f32 %v506_v31, %v495_v44  ;;  %v282_v59 = vmul.f32 %v10734_v10, %v11016_v8 }
  0x9c   :  { %v145_v33 = vadd.f32 %v144_v52, %v10961_v7  ;;  %v304_v27 = vmul.f32 %v10819_v39, %v11016_v8  ;;  %v511_v28 = vadd.f32 %v504_v54, %v494_v62  ;;  %v158_v4 = vadd.f32 %v157_v32, %v10863_v56 }
  0x9d   :  { %v14131_v55 = vrot.slane %v10900_v13, 1  ;;  %v274_v50 = vadd.f32 %v267_v60, %v248_v46  ;;  %v529_v58 = vadd.f32 %v523_v3, %v512_v2  ;;  %v290_v47 = vrot.slane %v282_v59, 2 }
  0x9e   :  { %v146_v15 = vrot.slane %v145_v33, 4  ;;  %v528_v53 = vadd.f32 %v521_v26, %v511_v28  ;;  %v159_v63 = vadd.f32 %v158_v4, %v10978_v29  ;;  %v309_v5 = vrot.slane %v304_v27, 3 }
  0x9f   :  { %v268_v57 = vsel %vm263_vm0, %v14131_v55, %v267_v60  ;;  %v323_v51 = vmul.f32 %v10755_v17, %v11016_v8  ;;  %v788_v54 = vrot.slane %v529_v58, 5  ;;  %v14132_v56 = vrot.slane %v10903_v14, 2  ;;  %v74_v55 = vpop.permute.xlu1 %73 }
  0xa0   :  { %v273_v31 = vadd.f32 %v268_v57, %v10897_v12  ;;  %v147_v44 = vadd.f32 %v146_v15, %v145_v33  ;;  %v297_v1 = vadd.f32 %v290_v47, %v274_v50  ;;  %v786_v46 = vrot.slane %v528_v53, 5 }
  0xa1   :  { %v291_v13 = vsel %vm286_vm1, %v14132_v56, %v290_v47  ;;  %v160_v3 = vrot.slane %v159_v63, 4  ;;  %v310_v12 = vsel %vm307_vm2, %v308_v35, %v309_v5  ;;  %v330_v62 = vrot.slane %v323_v51, 4 }
  0xa2   :  { %v296_v52 = vadd.f32 %v291_v13, %v273_v31  ;;  %v148_v26 = vrot.slane %v147_v44, 2  ;;  %v316_v29 = vadd.f32 %v309_v5, %v297_v1  ;;  %v346_v32 = vmul.f32 %v10765_v20, %v11016_v8 }
  0xa3   :  { %v161_v60 = vadd.f32 %v160_v3, %v159_v63  ;;  %v11107_v14 = vsel %vm351_vm4, %v785_v61, %v786_v46  ;;  %v331_v33 = vsel %vm328_vm3, %v329_v38, %v330_v62  ;;  %v333_v35 = vsel %vm328_vm3, %v330_v62, %v10801_v34 }
  0xa4   :  { %v315_v2 = vadd.f32 %v310_v12, %v296_v52  ;;  %v353_v27 = vrot.slane %v346_v32, 5  ;;  %v11115_v28 = vsel %vm351_vm4, %v786_v46, %v788_v54  ;;  %v339_v4 = vadd.f32 %v333_v35, %v316_v29 }
  0xa5   :  { %v162_v18 = vrot.slane %v161_v60, 2  ;;  %v369_v49 = vmul.f32 %v10775_v23, %v11016_v8  ;;  %v392_v61 = vmul.f32 %v10783_v25, %v11016_v8  ;;  %v11123_v21 = vmul.f32 %v11107_v14, %v11107_v14 }
  0xa6   :  { %v338_v59 = vadd.f32 %v331_v33, %v315_v2  ;;  %v14133_v38 = vrot.slane %v10916_v24, 5  ;;  %v356_v50 = vsel %vm351_vm4, %v353_v27, %v10811_v37  ;;  %v11132_v53 = vmul.f32 %v11115_v28, %v11115_v28 }
  0xa7   :  { %v362_v15 = vadd.f32 %v356_v50, %v339_v4  ;;  %v376_v31 = vrot.slane %v369_v49, 6  ;;  %v399_v47 = vrot.slane %v392_v61, 7  ;;  %v11135_v8 = vmul.f32 %v10809_v36, %v74_v55  ;;  %v69_v4 = vpop.permute.xlu0 %68 }
  0xa8   :  { %v354_v57 = vsel %vm351_vm4, %v14133_v38, %v353_v27  ;;  %v538_v63 = vmul.f32 %v10729_v9, %v74_v55  ;;  %v555_v24 = vmul.f32 %v10734_v10, %v74_v55  ;;  %v11139_v5 = vadd.f32 %v162_v18, %v161_v60 }
  0xa9   :  { %v361_v58 = vadd.f32 %v354_v57, %v338_v59  ;;  %v14134_v51 = vrot.slane %v10924_v30, 6  ;;  %v379_v56 = vsel %vm374_vm5, %v376_v31, %v10821_v40  ;;  %v532_v13 = vmul.f32 %v10739_v11, %v74_v55 }
  0xaa   :  { %v385_v46 = vadd.f32 %v379_v56, %v362_v15  ;;  %v14135_v3 = vrot.slane %v10938_v42, 7  ;;  %v545_v12 = vrot.slane %v538_v63, 1  ;;  %v402_v29 = vsel %vm397_vm6, %v399_v47, %v10826_v43 }
  0xab   :  { %v377_v54 = vsel %vm374_vm5, %v14134_v51, %v376_v31  ;;  %v571_v62 = vmul.f32 %v10819_v39, %v74_v55  ;;  %v584_v30 = vmul.f32 %v10755_v17, %v74_v55  ;;  %v601_v32 = vmul.f32 %v10765_v20, %v74_v55 }
  0xac   :  { %v384_v1 = vadd.f32 %v377_v54, %v361_v58  ;;  %v400_v52 = vsel %vm397_vm6, %v14135_v3, %v399_v47  ;;  %v11157_v2 = vadd.f32 %v402_v29, %v385_v46  ;;  %v552_v33 = vadd.f32 %v545_v12, %v532_v13 }
  0xad   :  { %v562_v18 = vrot.slane %v555_v24, 2  ;;  %v11159_v35 = vadd.f32 %v148_v26, %v147_v44  ;;  %v590_v42 = vrot.slane %v584_v30, 4  ;;  %v607_v59 = vrot.slane %v601_v32, 5 }
  0xae   :  { %v11155_v60 = vadd.f32 %v400_v52, %v384_v1  ;;  %v618_v27 = vmul.f32 %v10775_v23, %v74_v55  ;;  %v575_v38 = vrot.slane %v571_v62, 3  ;;  %v11164_v57 = vmul.f32 %v10783_v25, %v74_v55 }
  0xaf   :  { %v569_v61 = vadd.f32 %v562_v18, %v552_v33  ;;  %v11170_v44 = vmul.f32 %v11135_v8, %v11135_v8  ;;  %v593_v26 = vsel %vm328_vm3, %v590_v42, %v10801_v34  ;;  %v537_v63 = vmul.f32 %v10729_v9, %v69_v4 }
  0xb0   :  { %v624_v31 = vrot.slane %v618_v27, 6  ;;  %v641_v47 = vrot.slane %v11164_v57, 7  ;;  %v610_v55 = vsel %vm351_vm4, %v607_v59, %v10811_v37  ;;  %v11179_v24 = vmul.f32 %v10809_v36, %v69_v4 }
  0xb1   :  { %v582_v15 = vadd.f32 %v575_v38, %v569_v61  ;;  %v554_v51 = vmul.f32 %v10734_v10, %v69_v4  ;;  %v570_v54 = vmul.f32 %v10819_v39, %v69_v4  ;;  %v531_v13 = vmul.f32 %v10739_v11, %v69_v4 }
  0xb2   :  { %v543_v1 = vrot.slane %v537_v63, 1  ;;  %v583_v46 = vmul.f32 %v10755_v17, %v69_v4  ;;  %v600_v29 = vmul.f32 %v10765_v20, %v69_v4  ;;  %v617_v62 = vmul.f32 %v10775_v23, %v69_v4 }
  0xb3   :  { %v599_v56 = vadd.f32 %v593_v26, %v582_v15  ;;  %v560_v3 = vrot.slane %v554_v51, 2  ;;  %v574_v52 = vrot.slane %v570_v54, 3  ;;  %v627_v61 = vsel %vm374_vm5, %v624_v31, %v10821_v40 }
  0xb4   :  { %v544_v32 = vsel %vm263_vm0, %v10760_v19, %v543_v1  ;;  %v546_v33 = vsel %vm263_vm0, %v543_v1, %v545_v12  ;;  %v589_v27 = vrot.slane %v583_v46, 4  ;;  %v644_v26 = vsel %vm397_vm6, %v641_v47, %v10826_v43  ;;  %v97_v12 = vpop.permute.xlu1 %96 }
  0xb5   :  { %v616_v30 = vadd.f32 %v610_v55, %v599_v56  ;;  %v550_v15 = vadd.f32 %v544_v32, %v10750_v16  ;;  %v551_v63 = vadd.f32 %v546_v33, %v531_v13  ;;  %v561_v55 = vsel %vm286_vm1, %v10770_v22, %v560_v3 }
  0xb6   :  { %v563_v54 = vsel %vm286_vm1, %v560_v3, %v562_v18  ;;  %v606_v56 = vrot.slane %v600_v29, 5  ;;  %v623_v58 = vrot.slane %v617_v62, 6  ;;  %v634_v48 = vmul.f32 %v10783_v25, %v69_v4 }
  0xb7   :  { %v633_v51 = vadd.f32 %v627_v61, %v616_v30  ;;  %v567_v1 = vadd.f32 %v561_v55, %v550_v15  ;;  %v568_v46 = vadd.f32 %v563_v54, %v551_v63  ;;  %v190_v49 = vmul.f32 %v11179_v24, %v11179_v24 }
  0xb8   :  { %v576_v32 = vsel %vm307_vm2, %v574_v52, %v575_v38  ;;  %v591_v13 = vsel %vm328_vm3, %v589_v27, %v590_v42  ;;  %v608_v61 = vsel %vm351_vm4, %v606_v56, %v607_v59  ;;  %v11207_v18 = vmul.f32 %v10809_v36, %v97_v12 }
  0xb9   :  { %v650_v50 = vadd.f32 %v644_v26, %v633_v51  ;;  %v580_v30 = vadd.f32 %v574_v52, %v567_v1  ;;  %v581_v33 = vadd.f32 %v576_v32, %v568_v46  ;;  %v640_v3 = vrot.slane %v634_v48, 7  ;;  %v11236_v1 = vpop.permute.xlu0 %91 }
  0xba   :  { %v653_v29 = vmul.f32 %v10739_v11, %v97_v12  ;;  %v659_v4 = vmul.f32 %v10729_v9, %v97_v12  ;;  %v11212_v62 = vmul.f32 %v10734_v10, %v97_v12  ;;  %v625_v38 = vsel %vm374_vm5, %v623_v58, %v624_v31 }
  0xbb   :  { %v597_v26 = vadd.f32 %v589_v27, %v580_v30  ;;  %v598_v15 = vadd.f32 %v591_v13, %v581_v33  ;;  %v11216_v42 = vmul.f32 %v10819_v39, %v97_v12  ;;  %v798_v52 = vrot.slane %v650_v50, 5 }
  0xbc   :  { %v666_v59 = vrot.slane %v659_v4, 1  ;;  %v11219_v63 = vmul.f32 %v10755_v17, %v97_v12  ;;  %v11222_v48 = vmul.f32 %v10765_v20, %v97_v12  ;;  %v683_v10 = vrot.slane %v11212_v62, 2  ;;  %v10672_v4 = vld [vmem:[%s14115_s2 + $0x2] ss:$0 sm:$0xff] }
  0xbd   :  { %v614_v11 = vadd.f32 %v606_v56, %v597_v26  ;;  %v615_v9 = vadd.f32 %v608_v61, %v598_v15  ;;  %v11226_v27 = vmul.f32 %v10775_v23, %v97_v12  ;;  %v696_v31 = vrot.slane %v11216_v42, 3 }
  0xbe   :  { %v673_v51 = vadd.f32 %v666_v59, %v653_v29  ;;  %v711_v55 = vrot.slane %v11219_v63, 4  ;;  %v11231_v50 = vmul.f32 %v10783_v25, %v97_v12  ;;  %v728_v20 = vrot.slane %v11222_v48, 5 }
  0xbf   :  { %v631_v17 = vadd.f32 %v623_v58, %v614_v11  ;;  %v632_v54 = vadd.f32 %v625_v38, %v615_v9  ;;  %v180_v56 = vadd.f32 %v11135_v8, %v11179_v24  ;;  %v642_v23 = vsel %vm397_vm6, %v640_v3, %v641_v47 }
  0xc0   :  { %v690_v46 = vadd.f32 %v683_v10, %v673_v51  ;;  %v745_v32 = vrot.slane %v11226_v27, 6  ;;  %v762_v13 = vrot.slane %v11231_v50, 7  ;;  %v14136_v25 = vrot.slane %v11139_v5, 1 }
  0xc1   :  { %v648_v12 = vadd.f32 %v640_v3, %v631_v17  ;;  %v649_v30 = vadd.f32 %v642_v23, %v632_v54  ;;  %v194_v33 = vadd.f32 %v11170_v44, %v190_v49  ;;  %v193_v61 = vmul.f32 %v11207_v18, %v11207_v18  ;;  %v10671_v49 = vld [vmem:[%s14115_s2 + $0x1] ss:$0 sm:$0xff]  ;;  %v10673_v54 = vld [vmem:[%s14115_s2] ss:$0 sm:$0xff] }
  0xc2   :  { %v11246_v58 = vadd.f32 %v14136_v25, %v11139_v5  ;;  %v703_v57 = vadd.f32 %v696_v31, %v690_v46  ;;  %v714_v47 = vsel %vm328_vm3, %v711_v55, %v10801_v34  ;;  %v11259_v29 = vmul.f32 %v10809_v36, %v11236_v1 }
  0xc3   :  { %v795_v5 = vrot.slane %v648_v12, 5  ;;  %v796_v3 = vrot.slane %v649_v30, 5  ;;  %v658_v44 = vmul.f32 %v10671_v49, %v11236_v1  ;;  %v675_v62 = vmul.f32 %v10672_v4, %v11236_v1 }
  0xc4   :  { %v720_v26 = vadd.f32 %v714_v47, %v703_v57  ;;  %v731_v34 = vsel %vm351_vm4, %v728_v20, %v10811_v37  ;;  %v181_v36 = vadd.f32 %v180_v56, %v11259_v29  ;;  %v192_v15 = vmul.f32 %v11259_v29, %v11259_v29 }
  0xc5   :  { %v11277_v38 = vsel %vm351_vm4, %v795_v5, %v796_v3  ;;  %v748_v11 = vsel %vm374_vm5, %v745_v32, %v10821_v40  ;;  %v664_v9 = vrot.slane %v658_v44, 1  ;;  %v681_v51 = vrot.slane %v675_v62, 2 }
  0xc6   :  { %v765_v37 = vsel %vm397_vm6, %v762_v13, %v10826_v43  ;;  %v11288_v17 = vsel %vm351_vm4, %v796_v3, %v798_v52  ;;  %v652_v56 = vmul.f32 %v10673_v54, %v11236_v1  ;;  %v691_v23 = vmul.f32 %v10819_v39, %v11236_v1 }
  0xc7   :  { %v182_v40 = vadd.f32 %v181_v36, %v11207_v18  ;;  %v195_v46 = vadd.f32 %v194_v33, %v192_v15  ;;  %v665_v25 = vsel %vm263_vm0, %v10760_v19, %v664_v9  ;;  %v667_v43 = vsel %vm263_vm0, %v664_v9, %v666_v59  ;;  %v10676_v36 = vld [vmem:[%s14115_s2 + $0x6] ss:$0 sm:$0xff] }
  0xc8   :  { %v11302_v52 = vmul.f32 %v11277_v38, %v11277_v38  ;;  %v737_v12 = vadd.f32 %v731_v34, %v720_v26  ;;  %v671_v30 = vadd.f32 %v665_v25, %v10750_v16  ;;  %v672_v57 = vadd.f32 %v667_v43, %v652_v56  ;;  %v10674_v16 = vld [vmem:[%s14115_s2 + $0x4] ss:$0 sm:$0xff] }
  0xc9   :  { %v183_v47 = vrot.slane %v182_v40, 4  ;;  %v196_v5 = vadd.f32 %v195_v46, %v193_v61  ;;  %v682_v39 = vsel %vm286_vm1, %v10770_v22, %v681_v51  ;;  %v684_v33 = vsel %vm286_vm1, %v681_v51, %v683_v10  ;;  %v10675_v22 = vld [vmem:[%s14115_s2 + $0x5] ss:$0 sm:$0xff] }
  0xca   :  { %v11310_v19 = vadd.f32 %v11288_v17, %v11277_v38  ;;  %v688_v59 = vadd.f32 %v682_v39, %v671_v30  ;;  %v689_v3 = vadd.f32 %v684_v33, %v672_v57  ;;  %v695_v49 = vrot.slane %v691_v23, 3 }
  0xcb   :  { %v184_v44 = vadd.f32 %v183_v47, %v182_v40  ;;  %v197_v4 = vrot.slane %v196_v5, 4  ;;  %v704_v61 = vmul.f32 %v10674_v16, %v11236_v1  ;;  %v721_v10 = vmul.f32 %v10675_v22, %v11236_v1 }
  0xcc   :  { %v754_v62 = vadd.f32 %v748_v11, %v737_v12  ;;  %v697_v26 = vsel %vm307_vm2, %v695_v49, %v696_v31  ;;  %v701_v34 = vadd.f32 %v695_v49, %v688_v59  ;;  %v738_v15 = vmul.f32 %v10676_v36, %v11236_v1  ;;  %v10677_v11 = vld [vmem:[%s14115_s2 + $0x7] ss:$0 sm:$0xff] }
  0xcd   :  { %v185_v9 = vrot.slane %v184_v44, 2  ;;  %v198_v51 = vadd.f32 %v197_v4, %v196_v5  ;;  %v702_v54 = vadd.f32 %v697_v26, %v689_v3  ;;  %v710_v56 = vrot.slane %v704_v61, 4 }
  0xce   :  { %v727_v23 = vrot.slane %v721_v10, 5  ;;  %v744_v40 = vrot.slane %v738_v15, 6  ;;  %v755_v42 = vmul.f32 %v10677_v11, %v11236_v1  ;;  %v14137_v31 = vrot.slane %v11155_v60, 5 }
  0xcf   :  { %v14138_v46 = vrot.slane %v11069_v41, 5  ;;  %v186_v43 = vadd.f32 %v185_v9, %v184_v44  ;;  %v199_v12 = vrot.slane %v198_v51, 2  ;;  %v712_v30 = vsel %vm328_vm3, %v710_v56, %v711_v55 }
  0xd0   :  { %v718_v57 = vadd.f32 %v710_v56, %v701_v34  ;;  %v771_v47 = vadd.f32 %v765_v37, %v754_v62  ;;  %v719_v5 = vadd.f32 %v712_v30, %v702_v54  ;;  %v729_v1 = vsel %vm351_vm4, %v727_v23, %v728_v20 }
  0xd1   :  { %v11336_v25 = vsel %vm351_vm4, %v14138_v46, %v14137_v31  ;;  %v761_v39 = vrot.slane %v755_v42, 7  ;;  %v187_v33 = vrot.slane %v186_v43, 1  ;;  %v200_v59 = vadd.f32 %v199_v12, %v198_v51 }
  0xd2   :  { %v735_v41 = vadd.f32 %v727_v23, %v718_v57  ;;  %v14139_v3 = vrot.slane %v11157_v2, 5  ;;  %v14140_v49 = vmov %v14137_v31  ;;  %v736_v63 = vadd.f32 %v729_v1, %v719_v5 }
  0xd3   :  { %v746_v55 = vsel %vm374_vm5, %v744_v40, %v745_v32  ;;  %v824_v20 = vmul.f32 %v11336_v25, %v11336_v25  ;;  %v188_v37 = vadd.f32 %v187_v33, %v186_v43  ;;  %v201_v4 = vrot.slane %v200_v59, 1 }
  0xd4   :  { %v11349_v44 = vsel %vm351_vm4, %v14140_v49, %v14139_v3  ;;  %v752_v16 = vadd.f32 %v744_v40, %v735_v41  ;;  %v862_v2 = vmul.f32 %v11288_v17, %v11288_v17  ;;  %v753_v61 = vadd.f32 %v746_v55, %v736_v63 }
  0xd5   :  { %v814_v48 = vadd.f32 %v11349_v44, %v11336_v25  ;;  %v825_v60 = vmul.f32 %v11349_v44, %v11349_v44  ;;  %v763_v27 = vsel %vm397_vm6, %v761_v39, %v762_v13  ;;  %v11366_v22 = vmul.f32 0.03125, %v188_v37 }
  0xd6   :  { %v202_v10 = vadd.f32 %v201_v4, %v200_v59  ;;  %v769_v62 = vadd.f32 %v761_v39, %v752_v16  ;;  %v808_v34 = vrot.slane %v771_v47, 5  ;;  %v770_v36 = vadd.f32 %v763_v27, %v753_v61 }
  0xd7   :  { %v815_v32 = vadd.f32 %v814_v48, %v11107_v14  ;;  %v828_v26 = vadd.f32 %v825_v60, %v824_v20  ;;  %v150_v9 = vrot.slane %v11159_v35, 1  ;;  %v204_v54 = vmul.f32 %v11366_v22, %v11366_v22 }
  0xd8   :  { %v203_v51 = vmul.f32 0.03125, %v202_v10  ;;  %v209_v50 = vsub.f32 %v11259_v29, %v11366_v22  ;;  %v805_v13 = vrot.slane %v769_v62, 5  ;;  %v806_v56 = vrot.slane %v770_v36, 5 }
  0xd9   :  { %v816_v15 = vadd.f32 %v815_v32, %v11115_v28  ;;  %v829_v40 = vadd.f32 %v828_v26, %v11123_v21  ;;  %v151_v11 = vadd.f32 %v150_v9, %v11159_v35  ;;  %v210_v31 = vsub.f32 %v11207_v18, %v11366_v22 }
  0xda   :  { %v205_v42 = vsub.f32 %v203_v51, %v204_v54  ;;  %v207_v46 = vsub.f32 %v11179_v24, %v11366_v22  ;;  %v208_v43 = vsub.f32 %v11135_v8, %v11366_v22  ;;  %v11383_v12 = vsel %vm351_vm4, %v805_v13, %v806_v56  ;;  %v8986_v22 = vld [vmem:[%s14115_s2 + $0x9] ss:$0 sm:$0xff] }
  0xdb   :  { %v817_v23 = vrot.slane %v816_v15, 4  ;;  %v11386_v30 = vsel %vm351_vm4, %v806_v56, %v808_v34  ;;  %v830_v21 = vadd.f32 %v829_v40, %v11132_v53  ;;  %v865_v35 = vadd.f32 %v862_v2, %v11302_v52 }
  0xdc   :  { %v206_v47 = vmax.f32 %v205_v42, 0.0  ;;  %v852_v18 = vadd.f32 %v11310_v19, %v11383_v12  ;;  %v863_v24 = vmul.f32 %v11383_v12, %v11383_v12  ;;  %v166_v8 = vmul.f32 0.03125, %v11246_v58 }
  0xdd   :  { %v818_v57 = vadd.f32 %v817_v23, %v816_v15  ;;  %v831_v1 = vrot.slane %v830_v21, 4  ;;  %v152_v39 = vmul.f32 0.03125, %v151_v11  ;;  %v864_v53 = vmul.f32 %v11386_v30, %v11386_v30 }
  0xde   :  { %v211_v33 = vadd.f32 1e-05, %v206_v47  ;;  %v853_v59 = vadd.f32 %v852_v18, %v11386_v30  ;;  %v866_v41 = vadd.f32 %v865_v35, %v863_v24 }
  0xdf   :  { %v819_v5 = vrot.slane %v818_v57, 2  ;;  %v832_v3 = vadd.f32 %v831_v1, %v830_v21  ;;  %v167_v49 = vmul.f32 %v152_v39, %v152_v39  ;;  %v173_v19 = vsub.f32 %v10961_v7, %v152_v39 }
  0xe0   :  { %10619 = vrsqrt.f32 %v211_v33  ;;  %v854_v63 = vrot.slane %v853_v59, 4  ;;  %v867_v55 = vadd.f32 %v866_v41, %v864_v53  ;;  %v170_v58 = vsub.f32 %v10890_v6, %v152_v39 }
  0xe1   :  { %v820_v52 = vadd.f32 %v819_v5, %v818_v57  ;;  %v833_v20 = vrot.slane %v832_v3, 2  ;;  %v168_v37 = vsub.f32 %v166_v8, %v167_v49  ;;  %v171_v4 = vsub.f32 %v11045_v0, %v152_v39 }
  0xe2   :  { %v855_v16 = vadd.f32 %v854_v63, %v853_v59  ;;  %v868_v60 = vrot.slane %v867_v55, 4  ;;  %v172_v2 = vsub.f32 %v10832_v45, %v152_v39  ;;  %v14141_v1 = vmov 0  }
  0xe3   :  { %v821_v48 = vrot.slane %v820_v52, 1  ;;  %v834_v27 = vadd.f32 %v833_v20, %v832_v3  ;;  %v169_v32 = vmax.f32 %v168_v37, 0.0 }
  0xe4   :  { %v856_v10 = vrot.slane %v855_v16, 2  ;;  %v869_v62 = vadd.f32 %v868_v60, %v867_v55 }
  0xe5   :  { %v822_v61 = vadd.f32 %v821_v48, %v820_v52  ;;  %v835_v26 = vrot.slane %v834_v27, 1  ;;  %v174_v34 = vadd.f32 1e-05, %v169_v32 }
  0xe6   :  { %v857_v36 = vadd.f32 %v856_v10, %v855_v16  ;;  %v870_v15 = vrot.slane %v869_v62, 2 }
  0xe7   :  { %v823_v7 = vmul.f32 0.03125, %v822_v61  ;;  %v836_v6 = vadd.f32 %v835_v26, %v834_v27  ;;  %10621 = vrsqrt.f32 %v174_v34 }
  0xe8   :  { %v858_v51 = vrot.slane %v857_v36, 1  ;;  %v871_v54 = vadd.f32 %v870_v15, %v869_v62 }
  0xe9   :  { %v838_v9 = vmul.f32 %v823_v7, %v823_v7  ;;  %v837_v13 = vmul.f32 0.03125, %v836_v6  ;;  %v842_v41 = vsub.f32 %v11349_v44, %v823_v7  ;;  %v843_v52 = vsub.f32 %v11107_v14, %v823_v7 }
  0xea   :  { %v10620_v0 = vpop.eup %10619  ;;  %v859_v56 = vadd.f32 %v858_v51, %v857_v36  ;;  %v872_v23 = vrot.slane %v871_v54, 1  ;;  %v844_v3 = vsub.f32 %v11115_v28, %v823_v7 }
  0xeb   :  { %v839_v45 = vsub.f32 %v837_v13, %v838_v9  ;;  %v11402_v40 = vmul.f32 %v10620_v0, %v210_v31  ;;  %v11404_v11 = vmul.f32 %v10620_v0, %v207_v46  ;;  %v11406_v42 = vmul.f32 %v10620_v0, %v208_v43 }
  0xec   :  { %v860_v57 = vmul.f32 0.03125, %v859_v56  ;;  %v873_v21 = vadd.f32 %v872_v23, %v871_v54  ;;  %v11411_v35 = vmul.f32 %v10620_v0, %v209_v50  ;;  %v11414_v31 = vrot.slane %v14141_v1, 2 }
  0xed   :  { %v840_v47 = vmax.f32 %v839_v45, 0.0  ;;  %v841_v50 = vsub.f32 %v11336_v25, %v823_v7  ;;  %v11443_v0 = vrot.slane %v14141_v1, 7 }
  0xee   :  { %v874_v18 = vmul.f32 0.03125, %v873_v21  ;;  %v875_v24 = vmul.f32 %v860_v57, %v860_v57  ;;  %v880_v25 = vsub.f32 %v11383_v12, %v860_v57  ;;  %v878_v14 = vsub.f32 %v11277_v38, %v860_v57 }
  0xef   :  { %v845_v8 = vadd.f32 1e-05, %v840_v47  ;;  %v879_v28 = vsub.f32 %v11288_v17, %v860_v57  ;;  %v881_v44 = vsub.f32 %v11386_v30, %v860_v57 }
  0xf0   :  { %v876_v5 = vsub.f32 %v874_v18, %v875_v24 }
  0xf1   :  { %10623 = vrsqrt.f32 %v845_v8  ;;  %v10622_v39 = vpop.eup %10621 }
  0xf2   :  { %v877_v46 = vmax.f32 %v876_v5, 0.0  ;;  %v11416_v33 = vmul.f32 %v10622_v39, %v173_v19  ;;  %v11418_v59 = vmul.f32 %v10622_v39, %v170_v58  ;;  %v11420_v53 = vmul.f32 %v10622_v39, %v171_v4  ;;  %v8987_v19 = vld [vmem:[%s14115_s2 + $0xa] ss:$0 sm:$0xff] }
  0xf3   :  { %v11422_v29 = vmul.f32 %v10622_v39, %v172_v2 }
  0xf4   :  { %v882_v43 = vadd.f32 1e-05, %v877_v46 }
  0xf6   :  { %10625 = vrsqrt.f32 %v882_v43 }
  0xfb   :  { %v10624_v49 = vpop.eup %10623 }
  0xfc   :  { %v847_v63 = vmul.f32 %v10624_v49, %v841_v50  ;;  %v848_v55 = vmul.f32 %v10624_v49, %v842_v41  ;;  %v849_v58 = vmul.f32 %v10624_v49, %v843_v52  ;;  %v850_v48 = vmul.f32 %v10624_v49, %v844_v3 }
  0xfe   :  { %v892_v20 = vmul.f32 %v8986_v22, %v847_v63  ;;  %v893_v37 = vmul.f32 %v8986_v22, %v848_v55  ;;  %v894_v4 = vmul.f32 %v8986_v22, %v849_v58  ;;  %v895_v16 = vmul.f32 %v8986_v22, %v850_v48 }
 0x100   :  { %v10626_v60 = vpop.eup %10625  ;;  %v904_v2 = vadd.f32 %v8987_v19, %v892_v20  ;;  %v905_v61 = vadd.f32 %v8987_v19, %v893_v37  ;;  %v906_v27 = vadd.f32 %v8987_v19, %v894_v4  ;;  %v907_v32 = vadd.f32 %v8987_v19, %v895_v16 }
 0x101   :  { %v884_v10 = vmul.f32 %v10626_v60, %v878_v14  ;;  %v885_v62 = vmul.f32 %v10626_v60, %v879_v28  ;;  %v886_v7 = vmul.f32 %v10626_v60, %v880_v25  ;;  %v887_v26 = vmul.f32 %v10626_v60, %v881_v44 }
 0x102   :  { %v912_v34 = vmax.f32 %v904_v2, 0.0  ;;  %v913_v36 = vmax.f32 %v905_v61, 0.0  ;;  %v914_v12 = vmax.f32 %v906_v27, 0.0  ;;  %v915_v15 = vmax.f32 %v907_v32, 0.0 }
 0x103   :  { %v896_v6 = vmul.f32 %v8986_v22, %v884_v10  ;;  %v897_v38 = vmul.f32 %v8986_v22, %v885_v62  ;;  %v898_v9 = vmul.f32 %v8986_v22, %v886_v7  ;;  %v899_v51 = vmul.f32 %v8986_v22, %v887_v26  ;;  %v10324_v10 = vld [vmem:[%s14116_s1 + $0x108] sm:$0xff]  }
 0x104   :  { %v11438_v17 = vpack.c.bf16 %v913_v36, %v912_v34  ;;  %v11440_v30 = vpack.c.bf16 %v915_v15, %v914_v12 }
 0x105   :  { %v908_v54 = vadd.f32 %v8987_v19, %v896_v6  ;;  %v909_v13 = vadd.f32 %v8987_v19, %v897_v38  ;;  %v910_v18 = vadd.f32 %v8987_v19, %v898_v9  ;;  %v911_v46 = vadd.f32 %v8987_v19, %v899_v51  ;;  %v10325_v6 = vld [vmem:[%s14116_s1 + $0x110] sm:$0xff]   ;;  %v10678_v51 = vld [vmem:[%s14116_s1 + $0x100] sm:$0xff]  }
 0x106   :  { %v936_v56 = vshll.u32 %v11438_v17, 16  ;;  %v940_v23 = vshrl.u32 %v11438_v17, 16  ;;  %v966_v45 = vshll.u32 %v11440_v30, 16  ;;  %v970_v57 = vshrl.u32 %v11440_v30, 16 }
 0x107   :  { %v916_v21 = vmax.f32 %v908_v54, 0.0  ;;  %v917_v47 = vmax.f32 %v909_v13, 0.0  ;;  %v1046_v39 = vrot.slane %v11438_v17, 7  ;;  %v918_v62 = vmax.f32 %v910_v18, 0.0 }
 0x108   :  { %v938_v24 = vrot.slane %v936_v56, 1  ;;  %v946_v8 = vrot.slane %v940_v23, 1  ;;  %v947_v5 = vrot.slane %v936_v56, 2  ;;  %v968_v43 = vrot.slane %v966_v45, 1 }
 0x109   :  { %v975_v22 = vrot.slane %v970_v57, 1  ;;  %v976_v50 = vrot.slane %v966_v45, 2  ;;  %v11451_v49 = vpack.c.bf16 %v917_v47, %v916_v21  ;;  %v1047_v27 = vsel %vm397_vm6, %v11443_v0, %v1046_v39 }
 0x10a   :  { %v939_v41 = vsel %vm931_vm7, 0, %v938_v24  ;;  %v942_v52 = vor.u32 %v940_v23, %v938_v24  ;;  %v948_v3 = vor.u32 %v947_v5, %v946_v8  ;;  %v969_v55 = vsel %vm931_vm7, 0, %v968_v43 }
 0x10b   :  { %v1048_v63 = vrot.slane %v939_v41, 7  ;;  %v972_v58 = vor.u32 %v970_v57, %v968_v43  ;;  %v977_v48 = vor.u32 %v976_v50, %v975_v22  ;;  %v1068_v4 = vrot.slane %v969_v55, 7 }
 0x10c   :  { %v1049_v20 = vrot.slane %v942_v52, 7  ;;  %v953_v19 = vsel %vm945_vm8, %v948_v3, %v11414_v31  ;;  %v1053_v37 = vrot.slane %v948_v3, 7  ;;  %v994_v2 = vshll.u32 %v11451_v49, 16 }
 0x10d   :  { %v1054_v16 = vrot.slane %v953_v19, 7  ;;  %v1069_v25 = vrot.slane %v972_v58, 7  ;;  %v982_v14 = vsel %vm945_vm8, %v977_v48, %v11414_v31  ;;  %v1073_v28 = vrot.slane %v977_v48, 7 }
 0x10e   :  { %v1050_v44 = vsel %vm397_vm6, %v1048_v63, %v1049_v20  ;;  %v1074_v60 = vrot.slane %v982_v14, 7  ;;  %v998_v61 = vshrl.u32 %v11451_v49, 16  ;;  %v996_v26 = vrot.slane %v994_v2, 1  ;;  %v10326_v63 = vld [vmem:[%s14116_s1 + $0x118] sm:$0xff]  }
 0x10f   :  { %1476 = vmatprep.mubr.bf16.mxu0 %v1050_v44  ;;  %v1055_v32 = vsel %vm397_vm6, %v1053_v37, %v1054_v16  ;;  %v1070_v7 = vsel %vm397_vm6, %v1068_v4, %v1069_v25  ;;  %v1004_v36 = vrot.slane %v994_v2, 2  ;;  %v1066_v15 = vrot.slane %v11440_v30, 7  ;;  %v10327_v16 = vld [vmem:[%s14116_s1 + $0x120] sm:$0xff]  }
 0x110   :  { %1477 = vmatmul.mubr.bf16.vlgmr.msra.gmra.mrb[0].mxu0 %v1047_v27  ;;  %1541 = vmatprep.mubr.bf16.mxu1 %v1055_v32  ;;  %v1003_v34 = vrot.slane %v998_v61, 1  ;;  %v1075_v12 = vsel %vm397_vm6, %v1073_v28, %v1074_v60  ;;  %v919_v38 = vmax.f32 %v911_v46, 0.0  ;;  %v956_v9 = vrot.slane %v11438_v17, 2 }
 0x111   :  { %1484 = vmatprep.mubr.bf16.mxu0 %v1070_v7  ;;  %1542 = vmatmul.mubr.bf16.vlgmr.msra.gmra.mrb[0].mxu1 %v11438_v17  ;;  %v997_v54 = vsel %vm931_vm7, 0, %v996_v26  ;;  %v1000_v13 = vor.u32 %v998_v61, %v996_v26  ;;  %v984_v23 = vrot.slane %v11440_v30, 2  ;;  %v1086_v57 = vrot.slane %v11451_v49, 7  ;;  %v10328_v7 = vld [vmem:[%s14116_s1 + $0x128] sm:$0xff]  }
 0x112   :  { %10121 = vmatpush3.bf16.msra.mxu0 %v10678_v51  ;;  %1549 = vmatprep.mubr.bf16.mxu1 %v1075_v12  ;;  %v1005_v56 = vor.u32 %v1004_v36, %v1003_v34  ;;  %v1088_v45 = vrot.slane %v997_v54, 7  ;;  %v11481_v21 = vpack.c.bf16 %v919_v38, %v918_v62  ;;  %v11485_v17 = vsel %vm286_vm1, %v956_v9, %v11414_v31  ;;  %v10330_v38 = vld [vmem:[%s14116_s1 + $0x138] sm:$0xff]  }
 0x113   :  { %10122 = vmatprep.subr.bf16.mxu0 %v10324_v10  ;;  %v1089_v47 = vrot.slane %v1000_v13, 7  ;;  %v1012_v8 = vrot.slane %v11451_v49, 2  ;;  %v1056_v43 = vrot.slane %v956_v9, 7  ;;  %v1067_v22 = vsel %vm397_vm6, %v11443_v0, %v1066_v15 }
 0x114   :  { %v1010_v18 = vsel %vm945_vm8, %v1005_v56, %v11414_v31  ;;  %v1093_v24 = vrot.slane %v1005_v56, 7  ;;  %v1022_v46 = vshll.u32 %v11481_v21, 16  ;;  %v1026_v39 = vshrl.u32 %v11481_v21, 16  ;;  %v10331_v56 = vld [vmem:[%s14116_s1 + $0x1c0] sm:$0xff]  }
 0x115   :  { %v1094_v5 = vrot.slane %v1010_v18, 7  ;;  %v1106_v50 = vrot.slane %v11481_v21, 7  ;;  %v1057_v41 = vrot.slane %v11485_v17, 7  ;;  %v986_v52 = vsel %vm286_vm1, %v984_v23, %v11414_v31  ;;  %v10336_v17 = vld [vmem:[%s14116_s1 + $0x148] sm:$0xff]   ;;  %v10338_v18 = vld [vmem:[%s14116_s1 + $0x190] sm:$0xff]  }
 0x116   :  { %10123 = vmatpush3.bf16.msra.mxu0 %v10324_v10  ;;  %v1090_v3 = vsel %vm397_vm6, %v1088_v45, %v1089_v47  ;;  %v1024_v55 = vrot.slane %v1022_v46, 1  ;;  %v1031_v58 = vrot.slane %v1026_v39, 1  ;;  %v1032_v48 = vrot.slane %v1022_v46, 2  ;;  %v10333_v45 = vld [vmem:[%s14116_s1 + $0x140] sm:$0xff]   ;;  %v10337_v47 = vld [vmem:[%s14116_s1 + $0x1d0] sm:$0xff]   ;;  %v10342_v46 = vld [vmem:[%s14116_s1 + $0x158] sm:$0xff]  }
 0x117   :  { %10124 = vmatprep.subr.bf16.mxu0 %v10325_v6  ;;  %v1095_v20 = vsel %vm397_vm6, %v1093_v24, %v1094_v5  ;;  %v1076_v19 = vrot.slane %v984_v23, 7  ;;  %v1077_v37 = vrot.slane %v986_v52, 7  ;;  %v1014_v4 = vsel %vm286_vm1, %v1012_v8, %v11414_v31  ;;  %v10332_v23 = vld [vmem:[%s14116_s1 + $0x180] sm:$0xff]   ;;  %v10339_v24 = vld [vmem:[%s14116_s1 + $0x150] sm:$0xff]   ;;  %v10341_v5 = vld [vmem:[%s14116_s1 + $0x198] sm:$0xff]  }
 0x118   :  { %1485 = vmatmul.mubr.bf16.gmra.mrb[4].mxu0 %v1067_v22  ;;  %v1025_v25 = vsel %vm931_vm7, 0, %v1024_v55  ;;  %v1028_v14 = vor.u32 %v1026_v39, %v1024_v55  ;;  %v1033_v28 = vor.u32 %v1032_v48, %v1031_v58  ;;  %v1096_v44 = vrot.slane %v1012_v8, 7  ;;  %9448 = vmatprep.subr.bf16.mxu1 %v10332_v23  ;;  %v10340_v8 = vld [vmem:[%s14116_s1 + $0x1d8] sm:$0xff]   ;;  %v10343_v39 = vld [vmem:[%s14116_s1 + $0x1e0] sm:$0xff]   ;;  %v10346_v22 = vld [vmem:[%s14116_s1 + $0x1e8] sm:$0xff]  }
 0x119   :  { %1492 = vmatprep.mubr.bf16.mxu0 %v1090_v3  ;;  %1550 = vmatmul.mubr.bf16.gmra.mrb[4].mxu1 %v11440_v30  ;;  %v1097_v60 = vrot.slane %v1014_v4, 7  ;;  %v1040_v2 = vrot.slane %v11481_v21, 2  ;;  %v1108_v61 = vrot.slane %v1025_v25, 7  ;;  %v1087_v36 = vsel %vm397_vm6, %v11443_v0, %v1086_v57  ;;  %v10334_v57 = vld [vmem:[%s14116_s1 + $0x1c8] sm:$0xff]   ;;  %v10349_v52 = vld [vmem:[%s14116_s1 + $0x1f0] sm:$0xff]   ;;  %v10352_v55 = vld [vmem:[%s14116_s1 + $0x1f8] sm:$0xff]  }
 0x11a   :  { %10125 = vmatpush3.bf16.msra.mxu0 %v10325_v6  ;;  %1557 = vmatprep.mubr.bf16.mxu1 %v1095_v20  ;;  %v1109_v27 = vrot.slane %v1028_v14, 7  ;;  %v1038_v30 = vsel %vm945_vm8, %v1033_v28, %v11414_v31  ;;  %v1113_v32 = vrot.slane %v1033_v28, 7  ;;  %v10329_v6 = vld [vmem:[%s14116_s1 + $0x130] sm:$0xff]   ;;  %v1107_v9 = vsel %vm397_vm6, %v11443_v0, %v1106_v50  ;;  %v10345_v50 = vld [vmem:[%s14116_s1 + $0x160] sm:$0xff]   ;;  %v10348_v3 = vld [vmem:[%s14116_s1 + $0x168] sm:$0xff]  }
 0x11b   :  { %10126 = vmatprep.subr.bf16.mxu0 %v10326_v63  ;;  %v1114_v10 = vrot.slane %v1038_v30, 7  ;;  %v1042_v62 = vsel %vm286_vm1, %v1040_v2, %v11414_v31  ;;  %v1116_v26 = vrot.slane %v1040_v2, 7  ;;  %v1078_v51 = vsel %vm397_vm6, %v1076_v19, %v1077_v37  ;;  %9449 = vmatpush3.bf16.msra.mxu1 %v10333_v45  ;;  %v10351_v58 = vld [vmem:[%s14116_s1 + $0x170] sm:$0xff]   ;;  %v10353_v48 = vld [vmem:[%s14116_s1 + $0x1b8] sm:$0xff]  }
 0x11c   :  { %v1117_v34 = vrot.slane %v1042_v62, 7  ;;  %v1110_v12 = vsel %vm397_vm6, %v1108_v61, %v1109_v27  ;;  %v1098_v54 = vsel %vm397_vm6, %v1096_v44, %v1097_v60  ;;  %v10354_v20 = vld [vmem:[%s14116_s1 + $0x178] sm:$0xff]  }
 0x11d   :  { %v1115_v15 = vsel %vm397_vm6, %v1113_v32, %v1114_v10 }
 0x11e   :  { %10127 = vmatpush3.bf16.msra.mxu0 %v10326_v63  ;;  %v1118_v13 = vsel %vm397_vm6, %v1116_v26, %v1117_v34  ;;  %v10350_v63 = vld [vmem:[%s14116_s1 + $0x1b0] sm:$0xff]  }
 0x11f   :  { %10128 = vmatprep.subr.bf16.mxu0 %v10327_v16 }
 0x120   :  { %1493 = vmatmul.mubr.bf16.gmra.mrb[8].mxu0 %v1087_v36 }
 0x121   :  { %1500 = vmatprep.mubr.bf16.mxu0 %v1110_v12  ;;  %1558 = vmatmul.mubr.bf16.gmra.mrb[8].mxu1 %v11451_v49  ;;  %v1058_v49 = vsel %vm397_vm6, %v1056_v43, %v1057_v41  ;;  %v10344_v43 = vld [vmem:[%s14116_s1 + $0x1a0] sm:$0xff]   ;;  %v10347_v41 = vld [vmem:[%s14116_s1 + $0x1a8] sm:$0xff]  }
 0x122   :  { %10129 = vmatpush3.bf16.msra.mxu0 %v10327_v16  ;;  %1565 = vmatprep.mubr.bf16.mxu1 %v1115_v15 }
 0x123   :  { %10130 = vmatprep.subr.bf16.mxu0 %v10328_v7 }
 0x126   :  { %10131 = vmatpush3.bf16.msra.mxu0 %v10328_v7 }
 0x127   :  { %10132 = vmatprep.subr.bf16.mxu0 %v10329_v6 }
 0x128   :  { %1501 = vmatmul.mubr.bf16.gmra.mrb[12].mxu0 %v1107_v9 }
 0x129   :  { %1566 = vmatmul.mubr.bf16.gmra.mrb[12].mxu1 %v11481_v21  ;;  %10136 = vmatprep.mubr.bf16.mxu0 %v1058_v49  ;;  %v10335_v21 = vld [vmem:[%s14116_s1 + $0x188] sm:$0xff]  }
 0x12a   :  { %10133 = vmatpush3.bf16.msra.mxu0 %v10329_v6  ;;  %9450 = vmatprep.subr.bf16.mxu1 %v10335_v21 }
 0x12b   :  { %10134 = vmatprep.subr.bf16.mxu0 %v10330_v38  ;;  %9451 = vmatpush3.bf16.msra.mxu1 %v10336_v17 }
 0x12c   :  { %9452 = vmatprep.subr.bf16.mxu1 %v10338_v18 }
 0x12e   :  { %10135 = vmatpush3.bf16.msra.mxu0 %v10330_v38 }
 0x12f   :  { %10144 = vmatprep.subr.bf16.mxu0 %v10331_v56  ;;  %9453 = vmatpush3.bf16.msra.mxu1 %v10339_v24 }
 0x130   :  { %9454 = vmatprep.subr.bf16.mxu1 %v10341_v5 }
 0x131   :  { %10137 = vmatmul.mubr.bf16.vlgmr.msra.gmra.mrb[16].mxu0 %v1078_v51 }
 0x132   :  { %10140 = vmatprep.mubr.bf16.mxu0 %v1098_v54  ;;  %10145 = vmatpush3.bf16.msra.mxu0 %v10331_v56 }
 0x133   :  { %10146 = vmatprep.subr.bf16.mxu0 %v10334_v57  ;;  %9455 = vmatpush3.bf16.msra.mxu1 %v10342_v46 }
 0x134   :  { %9456 = vmatprep.subr.bf16.mxu1 %v10344_v43 }
 0x136   :  { %10147 = vmatpush3.bf16.msra.mxu0 %v10334_v57 }
 0x137   :  { %10148 = vmatprep.subr.bf16.mxu0 %v10337_v47  ;;  %9457 = vmatpush3.bf16.msra.mxu1 %v10345_v50 }
 0x138   :  { %9458 = vmatprep.subr.bf16.mxu1 %v10347_v41 }
 0x139   :  { %10141 = vmatmul.mubr.bf16.gmra.mrb[20].mxu0 %v1118_v13 }
 0x13a   :  { %10149 = vmatpush3.bf16.msra.mxu0 %v10337_v47 }
 0x13b   :  { %10150 = vmatprep.subr.bf16.mxu0 %v10340_v8  ;;  %9459 = vmatpush3.bf16.msra.mxu1 %v10348_v3 }
 0x13c   :  { %9460 = vmatprep.subr.bf16.mxu1 %v10350_v63 }
 0x13e   :  { %10151 = vmatpush3.bf16.msra.mxu0 %v10340_v8 }
 0x13f   :  { %10152 = vmatprep.subr.bf16.mxu0 %v10343_v39  ;;  %9461 = vmatpush3.bf16.msra.mxu1 %v10351_v58 }
 0x140   :  { %9462 = vmatprep.subr.bf16.mxu1 %v10353_v48 }
 0x142   :  { %10153 = vmatpush3.bf16.msra.mxu0 %v10343_v39 }
 0x143   :  { %10154 = vmatprep.subr.bf16.mxu0 %v10346_v22  ;;  %9463 = vmatpush3.bf16.msra.mxu1 %v10354_v20 }
 0x146   :  { %10155 = vmatpush3.bf16.msra.mxu0 %v10346_v22 }
 0x147   :  { %10156 = vmatprep.subr.bf16.mxu0 %v10349_v52 }
 0x14a   :  { %10157 = vmatpush3.bf16.msra.mxu0 %v10349_v52 }
 0x14b   :  { %10158 = vmatprep.subr.bf16.mxu0 %v10352_v55 }
 0x14e   :  { %10159 = vmatpush3.bf16.msra.mxu0 %v10352_v55 }
 0x1e3   :  { %v9372_v19 = vpop.f32.mrb[0].mxu0 }
 0x1e4   :  { %v9373_v37 = vpop.f32.mrb[1].mxu0  ;;  %v9412_v4 = vpop.f32.mrb[0].mxu1 }
 0x1e5   :  { %v9374_v16 = vadd.f32 %v9373_v37, %v9372_v19  ;;  %v9375_v25 = vpop.f32.mrb[2].mxu0  ;;  %v9413_v14 = vpop.f32.mrb[1].mxu1 }
 0x1e6   :  { %v9414_v28 = vadd.f32 %v9413_v14, %v9412_v4  ;;  %v9376_v44 = vpop.f32.mrb[3].mxu0  ;;  %v9415_v60 = vpop.f32.mrb[2].mxu1 }
 0x1e7   :  { %v9377_v2 = vadd.f32 %v9376_v44, %v9375_v25  ;;  %v9416_v61 = vpop.f32.mrb[3].mxu1 }
 0x1e8   :  { %v9417_v27 = vadd.f32 %v9416_v61, %v9415_v60  ;;  %v1544_v30 = vadd.f32 %v9414_v28, %v9374_v16 }
 0x1ea   :  { %v1547_v32 = vadd.f32 %v9417_v27, %v9377_v2 }
 0x1eb   :  { %v9378_v10 = vpop.f32.mrb[4].mxu0 }
 0x1ec   :  { %v9379_v62 = vpop.f32.mrb[5].mxu0  ;;  %v9418_v7 = vpop.f32.mrb[4].mxu1 }
 0x1ed   :  { %v9380_v26 = vadd.f32 %v9379_v62, %v9378_v10  ;;  %v9381_v34 = vpop.f32.mrb[6].mxu0  ;;  %v9419_v36 = vpop.f32.mrb[5].mxu1 }
 0x1ee   :  { %v9420_v12 = vadd.f32 %v9419_v36, %v9418_v7  ;;  %v9382_v15 = vpop.f32.mrb[7].mxu0  ;;  %v9421_v6 = vpop.f32.mrb[6].mxu1 }
 0x1ef   :  { %v9383_v38 = vadd.f32 %v9382_v15, %v9381_v34  ;;  %v9422_v9 = vpop.f32.mrb[7].mxu1 }
 0x1f0   :  { %v9423_v49 = vadd.f32 %v9422_v9, %v9421_v6  ;;  %v1552_v51 = vadd.f32 %v9420_v12, %v9380_v26 }
 0x1f2   :  { %v1555_v54 = vadd.f32 %v9423_v49, %v9383_v38 }
 0x1f3   :  { %v9384_v13 = vpop.f32.mrb[8].mxu0 }
 0x1f4   :  { %v9385_v56 = vpop.f32.mrb[9].mxu0  ;;  %v9424_v23 = vpop.f32.mrb[8].mxu1 }
 0x1f5   :  { %v9386_v45 = vadd.f32 %v9385_v56, %v9384_v13  ;;  %v9387_v57 = vpop.f32.mrb[10].mxu0  ;;  %v9425_v21 = vpop.f32.mrb[9].mxu1 }
 0x1f6   :  { %v9426_v17 = vadd.f32 %v9425_v21, %v9424_v23  ;;  %v9388_v47 = vpop.f32.mrb[11].mxu0  ;;  %v9427_v18 = vpop.f32.mrb[10].mxu1 }
 0x1f7   :  { %v9389_v24 = vadd.f32 %v9388_v47, %v9387_v57  ;;  %v9428_v8 = vpop.f32.mrb[11].mxu1 }
 0x1f8   :  { %v9429_v5 = vadd.f32 %v9428_v8, %v9427_v18  ;;  %v1560_v46 = vadd.f32 %v9426_v17, %v9386_v45 }
 0x1fa   :  { %v1563_v39 = vadd.f32 %v9429_v5, %v9389_v24 }
 0x1fb   :  { %v9390_v43 = vpop.f32.mrb[12].mxu0 }
 0x1fc   :  { %v9391_v22 = vpop.f32.mrb[13].mxu0  ;;  %v9430_v50 = vpop.f32.mrb[12].mxu1 }
 0x1fd   :  { %v9392_v41 = vadd.f32 %v9391_v22, %v9390_v43  ;;  %v9393_v52 = vpop.f32.mrb[14].mxu0  ;;  %v9431_v3 = vpop.f32.mrb[13].mxu1 }
 0x1fe   :  { %v9432_v63 = vadd.f32 %v9431_v3, %v9430_v50  ;;  %v9394_v55 = vpop.f32.mrb[15].mxu0  ;;  %v9433_v58 = vpop.f32.mrb[14].mxu1 }
 0x1ff   :  { %v9395_v48 = vadd.f32 %v9394_v55, %v9393_v52  ;;  %v9434_v20 = vpop.f32.mrb[15].mxu1 }
 0x200   :  { %v9435_v19 = vadd.f32 %v9434_v20, %v9433_v58  ;;  %v1568_v37 = vadd.f32 %v9432_v63, %v9392_v41 }
 0x202   :  { %v1571_v4 = vadd.f32 %v9435_v19, %v9395_v48 }
 0x204   :  { %v10138_v16 = vpop.f32.mrb[16].mxu0 }
 0x205   :  { %v11608_v25 = vadd.f32 %v10138_v16, %v1552_v51  ;;  %v1608_v14 = vpop.f32.mrb[17].mxu0 }
 0x206   :  { %v11610_v28 = vadd.f32 %v1608_v14, %v1544_v30  ;;  %v10139_v44 = vpop.f32.mrb[18].mxu0 }
 0x207   :  { %v11612_v60 = vadd.f32 %v10139_v44, %v1555_v54  ;;  %v1611_v2 = vpop.f32.mrb[19].mxu0  ;;  %v1653_v7 = vmul.f32 %v11608_v25, %v11608_v25 }
 0x208   :  { %v11614_v61 = vadd.f32 %v1611_v2, %v1547_v32  ;;  %v1651_v27 = vmul.f32 %v11610_v28, %v11610_v28 }
 0x209   :  { %v1654_v12 = vmul.f32 %v11612_v60, %v11612_v60 }
 0x20a   :  { %v1641_v10 = vadd.f32 %v11614_v61, %v11610_v28  ;;  %v1652_v62 = vmul.f32 %v11614_v61, %v11614_v61 }
 0x20c   :  { %v1642_v30 = vadd.f32 %v1641_v10, %v11608_v25  ;;  %v1655_v26 = vadd.f32 %v1652_v62, %v1651_v27  ;;  %v10142_v34 = vpop.f32.mrb[20].mxu0 }
 0x20d   :  { %v11625_v36 = vadd.f32 %v10142_v34, %v1568_v37  ;;  %v1624_v32 = vpop.f32.mrb[21].mxu0 }
 0x20e   :  { %v1643_v15 = vadd.f32 %v1642_v30, %v11612_v60  ;;  %v1656_v6 = vadd.f32 %v1655_v26, %v1653_v7  ;;  %v11630_v38 = vadd.f32 %v1624_v32, %v1560_v46  ;;  %v10143_v9 = vpop.f32.mrb[22].mxu0 }
 0x20f   :  { %v11632_v49 = vadd.f32 %v10143_v9, %v1571_v4  ;;  %v1627_v51 = vpop.f32.mrb[23].mxu0  ;;  %v1690_v47 = vmul.f32 %v11625_v36, %v11625_v36 }
 0x210   :  { %v1644_v54 = vrot.slane %v1643_v15, 4  ;;  %v1657_v13 = vadd.f32 %v1656_v6, %v1654_v12  ;;  %v11634_v56 = vadd.f32 %v1627_v51, %v1563_v39  ;;  %v1688_v23 = vmul.f32 %v11630_v38, %v11630_v38 }
 0x211   :  { %v1691_v46 = vmul.f32 %v11632_v49, %v11632_v49 }
 0x212   :  { %v1645_v45 = vadd.f32 %v1644_v54, %v1643_v15  ;;  %v1658_v57 = vrot.slane %v1657_v13, 4  ;;  %v1678_v21 = vadd.f32 %v11634_v56, %v11630_v38  ;;  %v1689_v17 = vmul.f32 %v11634_v56, %v11634_v56 }
 0x214   :  { %v1646_v18 = vrot.slane %v1645_v45, 2  ;;  %v1659_v24 = vadd.f32 %v1658_v57, %v1657_v13  ;;  %v1679_v8 = vadd.f32 %v1678_v21, %v11625_v36  ;;  %v1692_v5 = vadd.f32 %v1689_v17, %v1688_v23 }
 0x216   :  { %v1647_v39 = vadd.f32 %v1646_v18, %v1645_v45  ;;  %v1660_v43 = vrot.slane %v1659_v24, 2  ;;  %v1680_v22 = vadd.f32 %v1679_v8, %v11632_v49  ;;  %v1693_v50 = vadd.f32 %v1692_v5, %v1690_v47  ;;  %v11659_v47 = vld [vmem:[%s14115_s2 + $0xd] ss:$0 sm:$0xff] }
 0x218   :  { %v1648_v41 = vrot.slane %v1647_v39, 1  ;;  %v1661_v52 = vadd.f32 %v1660_v43, %v1659_v24  ;;  %v1681_v3 = vrot.slane %v1680_v22, 4  ;;  %v1694_v63 = vadd.f32 %v1693_v50, %v1691_v46 }
 0x21a   :  { %v1649_v55 = vadd.f32 %v1648_v41, %v1647_v39  ;;  %v1662_v58 = vrot.slane %v1661_v52, 1  ;;  %v1682_v48 = vadd.f32 %v1681_v3, %v1680_v22  ;;  %v1695_v20 = vrot.slane %v1694_v63, 4 }
 0x21c   :  { %v1650_v19 = vmul.f32 0.03125, %v1649_v55  ;;  %v1663_v37 = vadd.f32 %v1662_v58, %v1661_v52  ;;  %v1683_v4 = vrot.slane %v1682_v48, 2  ;;  %v1696_v16 = vadd.f32 %v1695_v20, %v1694_v63 }
 0x21d   :  { %v11675_v58 = vrot.slane %v14141_v1, 1 }
 0x21e   :  { %v1664_v14 = vmul.f32 0.03125, %v1663_v37  ;;  %v1665_v44 = vmul.f32 %v1650_v19, %v1650_v19  ;;  %v1669_v2 = vsub.f32 %v11614_v61, %v1650_v19  ;;  %v1684_v27 = vadd.f32 %v1683_v4, %v1682_v48 }
 0x21f   :  { %v1697_v10 = vrot.slane %v1696_v16, 2  ;;  %v1668_v62 = vsub.f32 %v11610_v28, %v1650_v19  ;;  %v1670_v7 = vsub.f32 %v11608_v25, %v1650_v19  ;;  %v1671_v30 = vsub.f32 %v11612_v60, %v1650_v19 }
 0x220   :  { %v1666_v26 = vsub.f32 %v1664_v14, %v1665_v44  ;;  %v1685_v34 = vrot.slane %v1684_v27, 1 }
 0x221   :  { %v1698_v32 = vadd.f32 %v1697_v10, %v1696_v16 }
 0x222   :  { %v1667_v12 = vmax.f32 %v1666_v26, 0.0  ;;  %v1686_v15 = vadd.f32 %v1685_v34, %v1684_v27 }
 0x223   :  { %v1699_v6 = vrot.slane %v1698_v32, 1 }
 0x224   :  { %v1672_v9 = vadd.f32 1e-05, %v1667_v12  ;;  %v1687_v51 = vmul.f32 0.03125, %v1686_v15 }
 0x225   :  { %v1700_v54 = vadd.f32 %v1699_v6, %v1698_v32 }
 0x226   :  { %10627 = vrsqrt.f32 %v1672_v9  ;;  %v1702_v13 = vmul.f32 %v1687_v51, %v1687_v51  ;;  %v1706_v61 = vsub.f32 %v11634_v56, %v1687_v51  ;;  %v1705_v23 = vsub.f32 %v11630_v38, %v1687_v51 }
 0x227   :  { %v1701_v28 = vmul.f32 0.03125, %v1700_v54  ;;  %v1707_v25 = vsub.f32 %v11625_v36, %v1687_v51  ;;  %v1708_v60 = vsub.f32 %v11632_v49, %v1687_v51  ;;  %v11664_v36 = vld [vmem:[%s14115_s2 + $0xe] ss:$0 sm:$0xff] }
 0x229   :  { %v1703_v45 = vsub.f32 %v1701_v28, %v1702_v13 }
 0x22b   :  { %v1704_v57 = vmax.f32 %v1703_v45, 0.0 }
 0x22d   :  { %v1709_v21 = vadd.f32 1e-05, %v1704_v57 }
 0x22f   :  { %10629 = vrsqrt.f32 %v1709_v21 }
 0x230   :  { %v10628_v17 = vpop.eup %10627 }
 0x231   :  { %v1675_v18 = vmul.f32 %v10628_v17, %v1669_v2  ;;  %v1674_v24 = vmul.f32 %v10628_v17, %v1668_v62  ;;  %v1676_v56 = vmul.f32 %v10628_v17, %v1670_v7  ;;  %v1677_v8 = vmul.f32 %v10628_v17, %v1671_v30 }
 0x233   :  { %v1720_v38 = vmul.f32 %v11659_v47, %v1675_v18  ;;  %v1719_v49 = vmul.f32 %v11659_v47, %v1674_v24  ;;  %v1721_v5 = vmul.f32 %v11659_v47, %v1676_v56  ;;  %v1722_v46 = vmul.f32 %v11659_v47, %v1677_v8 }
 0x235   :  { %v1732_v39 = vadd.f32 %v11664_v36, %v1720_v38  ;;  %v1731_v43 = vadd.f32 %v11664_v36, %v1719_v49  ;;  %v1733_v22 = vadd.f32 %v11664_v36, %v1721_v5  ;;  %v1734_v50 = vadd.f32 %v11664_v36, %v1722_v46 }
 0x237   :  { %v1740_v41 = vmax.f32 %v1732_v39, 0.0  ;;  %v1739_v52 = vmax.f32 %v1731_v43, 0.0  ;;  %v1741_v3 = vmax.f32 %v1733_v22, 0.0  ;;  %v1742_v63 = vmax.f32 %v1734_v50, 0.0 }
 0x239   :  { %v10630_v55 = vpop.eup %10629  ;;  %v1747_v48 = vpack.c.bf16 %v1740_v41, %v1739_v52  ;;  %v11677_v20 = vpack.c.bf16 %v1742_v63, %v1741_v3 }
 0x23a   :  { %v1712_v19 = vmul.f32 %v10630_v55, %v1706_v61  ;;  %v1711_v37 = vmul.f32 %v10630_v55, %v1705_v23  ;;  %v1713_v4 = vmul.f32 %v10630_v55, %v1707_v25  ;;  %v1714_v16 = vmul.f32 %v10630_v55, %v1708_v60 }
 0x23b   :  { %v1768_v14 = vrot.slane %v1747_v48, 1  ;;  %v1783_v44 = vrot.slane %v11677_v20, 1  ;;  %v1759_v2 = vshll.u32 %v1747_v48, 16  ;;  %v1762_v10 = vshrl.u32 %v1747_v48, 16 }
 0x23c   :  { %v1724_v27 = vmul.f32 %v11659_v47, %v1712_v19  ;;  %v1775_v62 = vshll.u32 %v11677_v20, 16  ;;  %v1723_v7 = vmul.f32 %v11659_v47, %v1711_v37  ;;  %v1778_v6 = vshrl.u32 %v11677_v20, 16 }
 0x23d   :  { %v1770_v30 = vsel %vm263_vm0, %v1768_v14, %v11675_v58  ;;  %v1837_v26 = vshrl.u32 %v1768_v14, 16  ;;  %v1785_v34 = vsel %vm263_vm0, %v1783_v44, %v11675_v58  ;;  %v1871_v32 = vshrl.u32 %v1783_v44, 16 }
 0x23e   :  { %v1841_v12 = vshrl.u32 %v1770_v30, 16  ;;  %v1875_v15 = vshrl.u32 %v1785_v34, 16  ;;  %v1736_v9 = vadd.f32 %v11664_v36, %v1724_v27  ;;  %v1844_v54 = vshll.u32 %v1770_v30, 16 }
 0x23f   :  { %v1839_v51 = vrot.slane %v1837_v26, 7  ;;  %v1761_v13 = vrot.slane %v1759_v2, 1  ;;  %v1873_v23 = vrot.slane %v1871_v32, 7  ;;  %v1878_v25 = vshll.u32 %v1785_v34, 16 }
 0x240   :  { %v1843_v61 = vrot.slane %v1841_v12, 7  ;;  %v1877_v28 = vrot.slane %v1875_v15, 7  ;;  %v1821_v45 = vrot.slane %v1762_v10, 7  ;;  %v1777_v57 = vrot.slane %v1775_v62, 1 }
 0x241   :  { %v1764_v60 = vor.u32 %v1762_v10, %v1761_v13  ;;  %v1735_v21 = vadd.f32 %v11664_v36, %v1723_v7  ;;  %v1825_v24 = vshrl.u32 %v1761_v13, 16  ;;  %v1725_v56 = vmul.f32 %v11659_v47, %v1713_v4 }
 0x242   :  { %v1846_v17 = vor.u32 %v1844_v54, %v1843_v61  ;;  %v1880_v18 = vor.u32 %v1878_v25, %v1877_v28  ;;  %v1744_v8 = vmax.f32 %v1736_v9, 0.0  ;;  %v1780_v49 = vor.u32 %v1778_v6, %v1777_v57 }
 0x243   :  { %v1829_v38 = vshrl.u32 %v1764_v60, 16  ;;  %v1859_v39 = vshrl.u32 %v1777_v57, 16  ;;  %v1832_v22 = vshll.u32 %v1764_v60, 16  ;;  %v1743_v41 = vmax.f32 %v1735_v21, 0.0 }
 0x244   :  { %v1847_v5 = vsel %vm1816_vm9, %v1839_v51, %v1846_v17  ;;  %v1881_v46 = vsel %vm1816_vm9, %v1873_v23, %v1880_v18  ;;  %v1863_v50 = vshrl.u32 %v1780_v49, 16  ;;  %v1827_v52 = vrot.slane %v1825_v24, 7 }
 0x245   :  { %10160 = vmatprep.mubr.bf16.mxu0 %v1847_v5  ;;  %v1831_v43 = vrot.slane %v1829_v38, 7  ;;  %v1822_v3 = vor.u32 %v1821_v45, %v1759_v2  ;;  %v1726_v63 = vmul.f32 %v11659_v47, %v1714_v16  ;;  %v1737_v55 = vadd.f32 %v11664_v36, %v1725_v56 }
 0x246   :  { %10161 = vmatmul.mubr.bf16.vlgmr.msra.gmra.mrb[24].mxu0 %v1881_v46  ;;  %v1865_v19 = vrot.slane %v1863_v50, 7  ;;  %v1866_v37 = vshll.u32 %v1780_v49, 16  ;;  %v1751_v4 = vpack.c.bf16 %v1744_v8, %v1743_v41  ;;  %v1861_v14 = vrot.slane %v1859_v39, 7 }
 0x247   :  { %v1834_v48 = vor.u32 %v1832_v22, %v1831_v43  ;;  %v1738_v44 = vadd.f32 %v11664_v36, %v1726_v63  ;;  %v1745_v27 = vmax.f32 %v1737_v55, 0.0  ;;  %v1855_v10 = vrot.slane %v1778_v6, 7 }
 0x248   :  { %v1868_v30 = vor.u32 %v1866_v37, %v1865_v19  ;;  %v1798_v26 = vrot.slane %v1751_v4, 1  ;;  %v1790_v34 = vshll.u32 %v1751_v4, 16  ;;  %v1823_v47 = vsel %vm1816_vm9, %v11443_v0, %v1822_v3 }
 0x249   :  { %v1835_v7 = vsel %vm1816_vm9, %v1827_v52, %v1834_v48  ;;  %v1746_v16 = vmax.f32 %v1738_v44, 0.0  ;;  %v1793_v2 = vshrl.u32 %v1751_v4, 16  ;;  %v1856_v54 = vor.u32 %v1855_v10, %v1775_v62 }
 0x24a   :  { %2177 = vmatprep.mubr.bf16.mxu1 %v1835_v7  ;;  %v1869_v32 = vsel %vm1816_vm9, %v1861_v14, %v1868_v30  ;;  %v1800_v12 = vsel %vm263_vm0, %v1798_v26, %v11675_v58  ;;  %v1905_v36 = vshrl.u32 %v1798_v26, 16  ;;  %v1792_v15 = vrot.slane %v1790_v34, 1  ;;  %v10355_v26 = vld [vmem:[%s14116_s1 + $0x600] sm:$0xff]  }
 0x24b   :  { %2178 = vmatmul.mubr.bf16.vlgmr.msra.gmra.mrb[16].mxu1 %v1823_v47  ;;  %v1909_v6 = vshrl.u32 %v1800_v12, 16  ;;  %v1753_v9 = vpack.c.bf16 %v1746_v16, %v1745_v27  ;;  %v1912_v51 = vshll.u32 %v1800_v12, 16  ;;  %v1857_v62 = vsel %vm1816_vm9, %v11443_v0, %v1856_v54  ;;  %10168 = vmatprep.subr.bf16.mxu1 %v10355_v26  ;;  %v10357_v47 = vld [vmem:[%s14116_s1 + $0x610] sm:$0xff]   ;;  %v10358_v16 = vld [vmem:[%s14116_s1 + $0x618] sm:$0xff]   ;;  %v10361_v12 = vld [vmem:[%s14116_s1 + $0x620] sm:$0xff]  }
 0x24c   :  { %2185 = vmatprep.mubr.bf16.mxu1 %v1869_v32  ;;  %v1795_v13 = vor.u32 %v1793_v2, %v1792_v15  ;;  %v1893_v28 = vshrl.u32 %v1792_v15, 16  ;;  %v1907_v60 = vrot.slane %v1905_v36, 7  ;;  %v1889_v5 = vrot.slane %v1793_v2, 7  ;;  %10169 = vmatpush3.bf16.msra.mxu1 %v10355_v26  ;;  %v10359_v2 = vld [vmem:[%s14116_s1 + $0x240] sm:$0xff]   ;;  %v10362_v36 = vld [vmem:[%s14116_s1 + $0x248] sm:$0xff]   ;;  %v10367_v54 = vld [vmem:[%s14116_s1 + $0x630] sm:$0xff]  }
 0x24d   :  { %v1911_v61 = vrot.slane %v1909_v6, 7  ;;  %v1813_v23 = vrot.slane %v1753_v9, 1  ;;  %v1805_v25 = vshll.u32 %v1753_v9, 16  ;;  %v1808_v38 = vshrl.u32 %v1753_v9, 16  ;;  %v10360_v32 = vld [vmem:[%s14116_s1 + $0x200] sm:$0xff]   ;;  %9512 = vmatprep.subr.bf16.mxu0 %v10359_v2  ;;  %v10363_v15 = vld [vmem:[%s14116_s1 + $0x208] sm:$0xff]  }
 0x24e   :  { %v1897_v45 = vshrl.u32 %v1795_v13, 16  ;;  %v1900_v18 = vshll.u32 %v1795_v13, 16  ;;  %v1895_v49 = vrot.slane %v1893_v28, 7  ;;  %v1890_v55 = vor.u32 %v1889_v5, %v1790_v34  ;;  %v10356_v34 = vld [vmem:[%s14116_s1 + $0x608] sm:$0xff]   ;;  %9513 = vmatpush3.bf16.msra.mxu0 %v10360_v32  ;;  %v10365_v9 = vld [vmem:[%s14116_s1 + $0x250] sm:$0xff]   ;;  %v10368_v13 = vld [vmem:[%s14116_s1 + $0x258] sm:$0xff]  }
 0x24f   :  { %v1914_v57 = vor.u32 %v1912_v51, %v1911_v61  ;;  %v1815_v21 = vsel %vm263_vm0, %v1813_v23, %v11675_v58  ;;  %v1939_v17 = vshrl.u32 %v1813_v23, 16  ;;  %v1807_v8 = vrot.slane %v1805_v25, 1  ;;  %10170 = vmatprep.subr.bf16.mxu1 %v10356_v34  ;;  %9514 = vmatprep.subr.bf16.mxu0 %v10362_v36  ;;  %v10364_v6 = vld [vmem:[%s14116_s1 + $0x628] sm:$0xff]   ;;  %v10366_v51 = vld [vmem:[%s14116_s1 + $0x210] sm:$0xff]   ;;  %v10369_v61 = vld [vmem:[%s14116_s1 + $0x218] sm:$0xff]  }
 0x250   :  { %v1943_v24 = vshrl.u32 %v1815_v21, 16  ;;  %v1899_v56 = vrot.slane %v1897_v45, 7  ;;  %v1946_v39 = vshll.u32 %v1815_v21, 16  ;;  %v1891_v44 = vsel %vm1816_vm9, %v11443_v0, %v1890_v55  ;;  %10171 = vmatpush3.bf16.msra.mxu1 %v10356_v34  ;;  %v10370_v23 = vld [vmem:[%s14116_s1 + $0x638] sm:$0xff]   ;;  %v10371_v28 = vld [vmem:[%s14116_s1 + $0x260] sm:$0xff]   ;;  %v10375_v45 = vld [vmem:[%s14116_s1 + $0x268] sm:$0xff]  }
 0x251   :  { %v1915_v20 = vsel %vm1816_vm9, %v1907_v60, %v1914_v57  ;;  %v1810_v22 = vor.u32 %v1808_v38, %v1807_v8  ;;  %v1941_v50 = vrot.slane %v1939_v17, 7  ;;  %v1927_v3 = vshrl.u32 %v1807_v8, 16  ;;  %10172 = vmatprep.subr.bf16.mxu1 %v10357_v47  ;;  %v10373_v60 = vld [vmem:[%s14116_s1 + $0x2c0] sm:$0xff]   ;;  %v10376_v57 = vld [vmem:[%s14116_s1 + $0x228] sm:$0xff]   ;;  %v10379_v21 = vld [vmem:[%s14116_s1 + $0x270] sm:$0xff]  }
 0x252   :  { %10164 = vmatprep.mubr.bf16.mxu0 %v1915_v20  ;;  %v1945_v46 = vrot.slane %v1943_v24, 7  ;;  %v1902_v43 = vor.u32 %v1900_v18, %v1899_v56  ;;  %v1923_v27 = vrot.slane %v1808_v38, 7  ;;  %9515 = vmatpush3.bf16.msra.mxu0 %v10363_v15  ;;  %v10380_v17 = vld [vmem:[%s14116_s1 + $0x230] sm:$0xff]   ;;  %v10383_v18 = vld [vmem:[%s14116_s1 + $0x278] sm:$0xff]   ;;  %v10387_v56 = vld [vmem:[%s14116_s1 + $0x340] sm:$0xff]  }
 0x253   :  { %2186 = vmatmul.mubr.bf16.gmra.mrb[20].mxu1 %v1857_v62  ;;  %v1931_v63 = vshrl.u32 %v1810_v22, 16  ;;  %v1934_v37 = vshll.u32 %v1810_v22, 16  ;;  %v1929_v4 = vrot.slane %v1927_v3, 7  ;;  %9516 = vmatprep.subr.bf16.mxu0 %v10365_v9  ;;  %v10384_v24 = vld [vmem:[%s14116_s1 + $0x238] sm:$0xff]  }
 0x254   :  { %v1948_v41 = vor.u32 %v1946_v39, %v1945_v46  ;;  %v1903_v52 = vsel %vm1816_vm9, %v1895_v49, %v1902_v43  ;;  %v1924_v7 = vor.u32 %v1923_v27, %v1805_v25  ;;  %10173 = vmatpush3.bf16.msra.mxu1 %v10357_v47  ;;  %v10372_v25 = vld [vmem:[%s14116_s1 + $0x220] sm:$0xff]  }
 0x255   :  { %2193 = vmatprep.mubr.bf16.mxu1 %v1903_v52  ;;  %v1933_v19 = vrot.slane %v1931_v63, 7  ;;  %10174 = vmatprep.subr.bf16.mxu1 %v10358_v16 }
 0x256   :  { %v1949_v48 = vsel %vm1816_vm9, %v1941_v50, %v1948_v41  ;;  %v1925_v30 = vsel %vm1816_vm9, %v11443_v0, %v1924_v7  ;;  %9517 = vmatpush3.bf16.msra.mxu0 %v10366_v51 }
 0x257   :  { %10165 = vmatmul.mubr.bf16.gmra.mrb[28].mxu0 %v1949_v48  ;;  %v1936_v14 = vor.u32 %v1934_v37, %v1933_v19  ;;  %9518 = vmatprep.subr.bf16.mxu0 %v10368_v13 }
 0x258   :  { %10175 = vmatpush3.bf16.msra.mxu1 %v10358_v16 }
 0x259   :  { %v1937_v10 = vsel %vm1816_vm9, %v1929_v4, %v1936_v14  ;;  %10176 = vmatprep.subr.bf16.mxu1 %v10361_v12 }
 0x25a   :  { %9519 = vmatpush3.bf16.msra.mxu0 %v10369_v61 }
 0x25b   :  { %2194 = vmatmul.mubr.bf16.gmra.mrb[24].mxu1 %v1891_v44  ;;  %9520 = vmatprep.subr.bf16.mxu0 %v10371_v28 }
 0x25c   :  { %2201 = vmatprep.mubr.bf16.mxu1 %v1937_v10  ;;  %10177 = vmatpush3.bf16.msra.mxu1 %v10361_v12 }
 0x25d   :  { %10178 = vmatprep.subr.bf16.mxu1 %v10364_v6 }
 0x25e   :  { %9521 = vmatpush3.bf16.msra.mxu0 %v10372_v25 }
 0x25f   :  { %9522 = vmatprep.subr.bf16.mxu0 %v10375_v45 }
 0x260   :  { %10179 = vmatpush3.bf16.msra.mxu1 %v10364_v6 }
 0x261   :  { %10180 = vmatprep.subr.bf16.mxu1 %v10367_v54 }
 0x262   :  { %9523 = vmatpush3.bf16.msra.mxu0 %v10376_v57 }
 0x263   :  { %2202 = vmatmul.mubr.bf16.gmra.mrb[28].mxu1 %v1925_v30  ;;  %9524 = vmatprep.subr.bf16.mxu0 %v10379_v21 }
 0x264   :  { %10181 = vmatpush3.bf16.msra.mxu1 %v10367_v54 }
 0x265   :  { %10182 = vmatprep.subr.bf16.mxu1 %v10370_v23 }
 0x266   :  { %9525 = vmatpush3.bf16.msra.mxu0 %v10380_v17 }
 0x267   :  { %9526 = vmatprep.subr.bf16.mxu0 %v10383_v18 }
 0x268   :  { %10183 = vmatpush3.bf16.msra.mxu1 %v10370_v23 }
 0x269   :  { %9552 = vmatprep.subr.bf16.mxu1 %v10373_v60 }
 0x26a   :  { %9527 = vmatpush3.bf16.msra.mxu0 %v10384_v24 }
 0x26b   :  { %9592 = vmatprep.subr.bf16.mxu0 %v10387_v56 }
 0x319   :  { %v10162_v8 = vpop.f32.mrb[24].mxu0 }
 0x31a   :  { %v2244_v38 = vpop.f32.mrb[25].mxu0 }
 0x31b   :  { %v10163_v20 = vpop.f32.mrb[26].mxu0 }
 0x31c   :  { %v2247_v62 = vpop.f32.mrb[27].mxu0 }
 0x31e   :  { %v9464_v49 = vpop.f32.mrb[16].mxu1 }
 0x31f   :  { %v9465_v5 = vpop.f32.mrb[17].mxu1 }
 0x320   :  { %v9466_v46 = vadd.f32 %v9465_v5, %v9464_v49  ;;  %v9467_v39 = vpop.f32.mrb[18].mxu1 }
 0x321   :  { %v9468_v43 = vpop.f32.mrb[19].mxu1 }
 0x322   :  { %v11796_v22 = vadd.f32 %v9466_v46, %v2244_v38  ;;  %v9469_v50 = vadd.f32 %v9468_v43, %v9467_v39 }
 0x324   :  { %v11798_v41 = vadd.f32 %v9469_v50, %v2247_v62  ;;  %v2287_v52 = vmul.f32 %v11796_v22, %v11796_v22 }
 0x326   :  { %v2277_v3 = vadd.f32 %v11798_v41, %v11796_v22  ;;  %v2288_v63 = vmul.f32 %v11798_v41, %v11798_v41  ;;  %v9470_v55 = vpop.f32.mrb[20].mxu1 }
 0x327   :  { %v9471_v48 = vpop.f32.mrb[21].mxu1 }
 0x328   :  { %v2291_v19 = vadd.f32 %v2288_v63, %v2287_v52  ;;  %v9472_v37 = vadd.f32 %v9471_v48, %v9470_v55  ;;  %v9473_v4 = vpop.f32.mrb[22].mxu1 }
 0x329   :  { %v9474_v14 = vpop.f32.mrb[23].mxu1 }
 0x32a   :  { %v11806_v44 = vadd.f32 %v10162_v8, %v9472_v37  ;;  %v9475_v27 = vadd.f32 %v9474_v14, %v9473_v4  ;;  %v10166_v10 = vpop.f32.mrb[28].mxu0 }
 0x32b   :  { %v2260_v7 = vpop.f32.mrb[29].mxu0 }
 0x32c   :  { %v2278_v30 = vadd.f32 %v2277_v3, %v11806_v44  ;;  %v2289_v26 = vmul.f32 %v11806_v44, %v11806_v44  ;;  %v11811_v34 = vadd.f32 %v10163_v20, %v9475_v27  ;;  %v10167_v47 = vpop.f32.mrb[30].mxu0 }
 0x32d   :  { %v2263_v16 = vpop.f32.mrb[31].mxu0 }
 0x32e   :  { %v2292_v2 = vadd.f32 %v2291_v19, %v2289_v26  ;;  %v2279_v32 = vadd.f32 %v2278_v30, %v11811_v34  ;;  %v2290_v12 = vmul.f32 %v11811_v34, %v11811_v34  ;;  %v9476_v36 = vpop.f32.mrb[24].mxu1 }
 0x32f   :  { %v9477_v15 = vpop.f32.mrb[25].mxu1 }
 0x330   :  { %v2280_v6 = vrot.slane %v2279_v32, 4  ;;  %v2293_v9 = vadd.f32 %v2292_v2, %v2290_v12  ;;  %v9478_v51 = vadd.f32 %v9477_v15, %v9476_v36  ;;  %v9479_v54 = vpop.f32.mrb[26].mxu1 }
 0x331   :  { %v9480_v13 = vpop.f32.mrb[27].mxu1 }
 0x332   :  { %v2281_v61 = vadd.f32 %v2280_v6, %v2279_v32  ;;  %v2294_v23 = vrot.slane %v2293_v9, 4  ;;  %v11816_v28 = vadd.f32 %v9478_v51, %v2260_v7  ;;  %v9481_v25 = vadd.f32 %v9480_v13, %v9479_v54  ;;  %v8976_v13 = vld [vmem:[%s14115_s2 + $0xb] ss:$0 sm:$0xff] }
 0x334   :  { %v2282_v60 = vrot.slane %v2281_v61, 2  ;;  %v2295_v45 = vadd.f32 %v2294_v23, %v2293_v9  ;;  %v11818_v57 = vadd.f32 %v9481_v25, %v2263_v16  ;;  %v2324_v21 = vmul.f32 %v11816_v28, %v11816_v28 }
 0x336   :  { %v2283_v17 = vadd.f32 %v2282_v60, %v2281_v61  ;;  %v2296_v18 = vrot.slane %v2295_v45, 2  ;;  %v2314_v24 = vadd.f32 %v11818_v57, %v11816_v28  ;;  %v2325_v56 = vmul.f32 %v11818_v57, %v11818_v57  ;;  %v9482_v8 = vpop.f32.mrb[28].mxu1 }
 0x337   :  { %v9483_v38 = vpop.f32.mrb[29].mxu1  ;;  %v224_v60 = vmul.f32 %v8976_v13, %v11416_v33 }
 0x338   :  { %v2284_v20 = vrot.slane %v2283_v17, 1  ;;  %v2297_v62 = vadd.f32 %v2296_v18, %v2295_v45  ;;  %v2328_v49 = vadd.f32 %v2325_v56, %v2324_v21  ;;  %v9484_v5 = vadd.f32 %v9483_v38, %v9482_v8  ;;  %v9485_v46 = vpop.f32.mrb[30].mxu1 }
 0x339   :  { %v9486_v39 = vpop.f32.mrb[31].mxu1  ;;  %v221_v21 = vmul.f32 %v8976_v13, %v11418_v59  ;;  %v11861_v59 = vld [vmem:[%s14115_s2 + $0xf] ss:$0 sm:$0xff] }
 0x33a   :  { %v2285_v43 = vadd.f32 %v2284_v20, %v2283_v17  ;;  %v2298_v50 = vrot.slane %v2297_v62, 1  ;;  %v11826_v52 = vadd.f32 %v10166_v10, %v9484_v5  ;;  %v9487_v3 = vadd.f32 %v9486_v39, %v9485_v46  ;;  %v8977_v17 = vld [vmem:[%s14115_s2 + $0xc] ss:$0 sm:$0xff] }
 0x33c   :  { %v2286_v63 = vmul.f32 0.03125, %v2285_v43  ;;  %v2299_v55 = vadd.f32 %v2298_v50, %v2297_v62  ;;  %v2315_v48 = vadd.f32 %v2314_v24, %v11826_v52  ;;  %v2326_v19 = vmul.f32 %v11826_v52, %v11826_v52 }
 0x33d   :  { %v11831_v37 = vadd.f32 %v10167_v47, %v9487_v3  ;;  %v222_v62 = vmul.f32 %v8976_v13, %v11420_v53  ;;  %v2689_v50 = vrot.slane %v14141_v1, 4  ;;  %v236_v3 = vadd.f32 %v8977_v17, %v224_v60 }
 0x33e   :  { %v2300_v4 = vmul.f32 0.03125, %v2299_v55  ;;  %v2301_v14 = vmul.f32 %v2286_v63, %v2286_v63  ;;  %v2304_v27 = vsub.f32 %v11796_v22, %v2286_v63  ;;  %v2305_v7 = vsub.f32 %v11798_v41, %v2286_v63 }
 0x33f   :  { %v2306_v30 = vsub.f32 %v11806_v44, %v2286_v63  ;;  %v2307_v10 = vsub.f32 %v11811_v34, %v2286_v63  ;;  %v2329_v26 = vadd.f32 %v2328_v49, %v2326_v19  ;;  %v2316_v16 = vadd.f32 %v2315_v48, %v11831_v37  ;;  %v11871_v63 = vld [vmem:[%s14115_s2 + $0x10] ss:$0 sm:$0xff] }
 0x340   :  { %v2302_v2 = vsub.f32 %v2300_v4, %v2301_v14  ;;  %v2327_v32 = vmul.f32 %v11831_v37, %v11831_v37  ;;  %v223_v49 = vmul.f32 %v8976_v13, %v11422_v29  ;;  %v233_v14 = vadd.f32 %v8977_v17, %v221_v21 }
 0x341   :  { %v2317_v12 = vrot.slane %v2316_v16, 4 }
 0x342   :  { %v2303_v47 = vmax.f32 %v2302_v2, 0.0  ;;  %v2330_v36 = vadd.f32 %v2329_v26, %v2327_v32  ;;  %v2840_v2 = vrot.slane %v14141_v1, 6  ;;  %v228_v32 = vmul.f32 %v8976_v13, %v11402_v40 }
 0x343   :  { %v2318_v15 = vadd.f32 %v2317_v12, %v2316_v16 }
 0x344   :  { %v2308_v6 = vadd.f32 1e-05, %v2303_v47  ;;  %v2331_v9 = vrot.slane %v2330_v36, 4  ;;  %v225_v47 = vmul.f32 %v8976_v13, %v11404_v11  ;;  %v11893_v11 = vor.u32 %v2840_v2, %v11443_v0 }
 0x345   :  { %v2319_v22 = vrot.slane %v2318_v15, 2 }
 0x346   :  { %10631 = vrsqrt.f32 %v2308_v6  ;;  %v2332_v41 = vadd.f32 %v2331_v9, %v2330_v36 }
 0x347   :  { %v2320_v51 = vadd.f32 %v2319_v22, %v2318_v15  ;;  %v11885_v22 = vrot.slane %v14141_v1, 3 }
 0x348   :  { %v2333_v44 = vrot.slane %v2332_v41, 2 }
 0x349   :  { %v2321_v54 = vrot.slane %v2320_v51, 1  ;;  %v11890_v40 = vor.u32 %v2689_v50, %v11885_v22 }
 0x34a   :  { %v2334_v34 = vadd.f32 %v2333_v44, %v2332_v41  ;;  %v226_v41 = vmul.f32 %v8976_v13, %v11406_v42  ;;  %v10374_v42 = vld [vmem:[%s14116_s1 + $0x280] sm:$0xff]  }
 0x34b   :  { %v2322_v61 = vadd.f32 %v2321_v54, %v2320_v51  ;;  %v227_v51 = vmul.f32 %v8976_v13, %v11411_v35  ;;  %v11904_v35 = vadd.f32 %v8977_v17, %v225_v47  ;;  %v10377_v13 = vld [vmem:[%s14116_s1 + $0x2c8] sm:$0xff]  }
 0x34c   :  { %v2335_v23 = vrot.slane %v2334_v34, 1 }
 0x34d   :  { %v11843_v25 = vmul.f32 0.03125, %v2322_v61  ;;  %v11911_v21 = vadd.f32 %v8977_v17, %v227_v51 }
 0x34e   :  { %v2336_v45 = vadd.f32 %v2335_v23, %v2334_v34  ;;  %v11895_v23 = vadd.f32 %v8977_v17, %v228_v32 }
 0x34f   :  { %v2338_v18 = vmul.f32 %v11843_v25, %v11843_v25  ;;  %v2341_v24 = vsub.f32 %v11816_v28, %v11843_v25  ;;  %v2342_v56 = vsub.f32 %v11818_v57, %v11843_v25  ;;  %v2343_v8 = vsub.f32 %v11826_v52, %v11843_v25  ;;  %v10388_v28 = vld [vmem:[%s14116_s1 + $0x300] sm:$0xff]  }
 0x350   :  { %v10632_v33 = vpop.eup %10631  ;;  %v2337_v38 = vmul.f32 0.03125, %v2336_v45  ;;  %v2344_v20 = vsub.f32 %v11831_v37, %v11843_v25  ;;  %v11909_v45 = vadd.f32 %v8977_v17, %v226_v41  ;;  %v10385_v41 = vld [vmem:[%s14116_s1 + $0x2d8] sm:$0xff]  }
 0x351   :  { %v2313_v5 = vmul.f32 %v10632_v33, %v2307_v10  ;;  %v2310_v46 = vmul.f32 %v10632_v33, %v2304_v27  ;;  %v2311_v39 = vmul.f32 %v10632_v33, %v2305_v7  ;;  %v2312_v43 = vmul.f32 %v10632_v33, %v2306_v30 }
 0x352   :  { %v2339_v55 = vsub.f32 %v2337_v38, %v2338_v18  ;;  %v234_v27 = vadd.f32 %v8977_v17, %v222_v62  ;;  %v235_v7 = vadd.f32 %v8977_v17, %v223_v49  ;;  %v11915_v18 = vor.u32 %v11885_v22, %v11414_v31 }
 0x353   :  { %v2358_v48 = vmul.f32 %v11861_v59, %v2313_v5  ;;  %v2355_v19 = vmul.f32 %v11861_v59, %v2310_v46  ;;  %v2356_v53 = vmul.f32 %v11861_v59, %v2311_v39  ;;  %v2357_v29 = vmul.f32 %v11861_v59, %v2312_v43  ;;  %v10378_v43 = vld [vmem:[%s14116_s1 + $0x288] sm:$0xff]  }
 0x354   :  { %v2340_v4 = vmax.f32 %v2339_v55, 0.0 }
 0x355   :  { %v2370_v30 = vadd.f32 %v11871_v63, %v2358_v48  ;;  %v2367_v10 = vadd.f32 %v11871_v63, %v2355_v19  ;;  %v2368_v26 = vadd.f32 %v11871_v63, %v2356_v53  ;;  %v2369_v16 = vadd.f32 %v11871_v63, %v2357_v29  ;;  %v10381_v19 = vld [vmem:[%s14116_s1 + $0x2d0] sm:$0xff]  }
 0x356   :  { %v2345_v12 = vadd.f32 1e-05, %v2340_v4 }
 0x357   :  { %v2378_v36 = vadd.f32 %v2370_v30, %v236_v3  ;;  %v2375_v15 = vadd.f32 %v2367_v10, %v233_v14  ;;  %v2376_v6 = vadd.f32 %v2368_v26, %v234_v27  ;;  %v2377_v9 = vadd.f32 %v2369_v16, %v235_v7 }
 0x358   :  { %10633 = vrsqrt.f32 %v2345_v12 }
 0x359   :  { %v2386_v44 = vmax.f32 %v2378_v36, 0.0  ;;  %v2383_v54 = vmax.f32 %v2375_v15, 0.0  ;;  %v2384_v34 = vmax.f32 %v2376_v6, 0.0  ;;  %v2385_v61 = vmax.f32 %v2377_v9, 0.0  ;;  %v10382_v36 = vld [vmem:[%s14116_s1 + $0x290] sm:$0xff]  }
 0x35b   :  { %v11897_v60 = vpack.c.bf16 %v2384_v34, %v2383_v54  ;;  %v11899_v1 = vpack.c.bf16 %v2386_v44, %v2385_v61 }
 0x35d   :  { %10184 = vmatprep.mubr.bf16.mxu1 %v11897_v60  ;;  %v11919_v33 = vshll.u32 %v11897_v60, 16  ;;  %v11922_v38 = vshrl.u32 %v11897_v60, 16  ;;  %v11925_v62 = vshll.u32 %v11899_v1, 16  ;;  %v11928_v49 = vshrl.u32 %v11899_v1, 16 }
 0x35e   :  { %10185 = vmatmul.mubr.bf16.vlgmr.msra.gmra.mrb[32].mxu1 %v11899_v1  ;;  %v11932_v17 = vrot.slane %v11897_v60, 1  ;;  %v11935_v5 = vrot.slane %v11899_v1, 1  ;;  %v11938_v46 = vrot.slane %v11897_v60, 2  ;;  %v11941_v39 = vrot.slane %v11899_v1, 2 }
 0x35f   :  { %9553 = vmatpush3.bf16.msra.mxu1 %v10374_v42  ;;  %v2650_v50 = vrot.slane %v11919_v33, 1  ;;  %v2843_v3 = vrot.slane %v11922_v38, 6  ;;  %v2844_v55 = vrot.slane %v11919_v33, 7  ;;  %v2702_v48 = vrot.slane %v11925_v62, 1 }
 0x360   :  { %9554 = vmatprep.subr.bf16.mxu1 %v10377_v13  ;;  %v2660_v53 = vrot.slane %v11922_v38, 1  ;;  %v2661_v29 = vrot.slane %v11919_v33, 2  ;;  %v2969_v4 = vrot.slane %v11928_v49, 6  ;;  %v2970_v14 = vrot.slane %v11925_v62, 7 }
 0x361   :  { %v2651_v27 = vsel %vm931_vm7, %v11675_v58, %v2650_v50  ;;  %v2654_v7 = vor.u32 %v11922_v38, %v2650_v50  ;;  %v2845_v30 = vor.u32 %v2844_v55, %v2843_v3  ;;  %v2703_v10 = vsel %vm931_vm7, %v11675_v58, %v2702_v48 }
 0x362   :  { %v10634_v26 = vpop.eup %10633  ;;  %v2848_v16 = vshrl.u32 %v2651_v27, 16  ;;  %v2851_v2 = vshll.u32 %v2651_v27, 16  ;;  %v2706_v32 = vor.u32 %v11928_v49, %v2702_v48  ;;  %v2974_v12 = vshrl.u32 %v2703_v10, 16 }
 0x363   :  { %v2350_v47 = vmul.f32 %v10634_v26, %v2344_v20  ;;  %9555 = vmatpush3.bf16.msra.mxu1 %v10378_v43  ;;  %v2856_v15 = vshrl.u32 %v2654_v7, 16  ;;  %v2859_v6 = vshll.u32 %v2654_v7, 16  ;;  %v2846_v9 = vsel %vm2839_vm10, %v11893_v11, %v2845_v30 }
 0x364   :  { %9556 = vmatprep.subr.bf16.mxu1 %v10381_v19  ;;  %v2850_v51 = vrot.slane %v2848_v16, 6  ;;  %v2853_v44 = vrot.slane %v2851_v2, 7  ;;  %v2976_v54 = vrot.slane %v2974_v12, 6  ;;  %v2977_v37 = vshll.u32 %v2703_v10, 16  ;;  %v10386_v19 = vld [vmem:[%s14116_s1 + $0x298] sm:$0xff]   ;;  %v10389_v16 = vld [vmem:[%s14116_s1 + $0x2e0] sm:$0xff]  }
 0x365   :  { %v2362_v20 = vmul.f32 %v11861_v59, %v2350_v47  ;;  %v2858_v34 = vrot.slane %v2856_v15, 6  ;;  %v2861_v61 = vrot.slane %v2859_v6, 7  ;;  %v2982_v42 = vshrl.u32 %v2706_v32, 16  ;;  %v10391_v47 = vld [vmem:[%s14116_s1 + $0x348] sm:$0xff]  }
 0x366   :  { %v2854_v13 = vor.u32 %v2853_v44, %v2850_v51  ;;  %v2979_v43 = vrot.slane %v2977_v37, 7  ;;  %v2985_v50 = vshll.u32 %v2706_v32, 16  ;;  %v2347_v3 = vmul.f32 %v10634_v26, %v2341_v24 }
 0x367   :  { %v2374_v55 = vadd.f32 %v11871_v63, %v2362_v20  ;;  %9557 = vmatpush3.bf16.msra.mxu1 %v10382_v36  ;;  %v2862_v48 = vor.u32 %v2861_v61, %v2858_v34  ;;  %v2984_v27 = vrot.slane %v2982_v42, 6  ;;  %v2348_v7 = vmul.f32 %v10634_v26, %v2342_v56 }
 0x368   :  { %9558 = vmatprep.subr.bf16.mxu1 %v10385_v41  ;;  %v2980_v30 = vor.u32 %v2979_v43, %v2976_v54  ;;  %v2987_v10 = vrot.slane %v2985_v50, 7  ;;  %v2359_v24 = vmul.f32 %v11861_v59, %v2347_v3  ;;  %v2349_v2 = vmul.f32 %v10634_v26, %v2343_v8  ;;  %v10390_v8 = vld [vmem:[%s14116_s1 + $0x2a0] sm:$0xff]  }
 0x369   :  { %v2382_v57 = vadd.f32 %v2374_v55, %v11895_v23  ;;  %v2863_v56 = vsel %vm2839_vm10, %v2854_v13, %v2862_v48  ;;  %v2360_v32 = vmul.f32 %v11861_v59, %v2348_v7  ;;  %v2662_v12 = vor.u32 %v2661_v29, %v2660_v53  ;;  %v10394_v13 = vld [vmem:[%s14116_s1 + $0x2a8] sm:$0xff]  }
 0x36a   :  { %3888 = vmatprep.mubr.bf16.mxu0 %v2863_v56  ;;  %v2988_v36 = vor.u32 %v2987_v10, %v2984_v27  ;;  %v2371_v15 = vadd.f32 %v11871_v63, %v2359_v24  ;;  %v2361_v6 = vmul.f32 %v11861_v59, %v2349_v2  ;;  %v2971_v41 = vor.u32 %v2970_v14, %v2969_v4  ;;  %v10392_v4 = vld [vmem:[%s14116_s1 + $0x308] sm:$0xff]   ;;  %v10396_v27 = vld [vmem:[%s14116_s1 + $0x310] sm:$0xff]   ;;  %v10399_v24 = vld [vmem:[%s14116_s1 + $0x358] sm:$0xff]  }
 0x36b   :  { %v2390_v52 = vmax.f32 %v2382_v57, 0.0  ;;  %9559 = vmatpush3.bf16.msra.mxu1 %v10386_v19  ;;  %3889 = vmatmul.mubr.bf16.vlgmr.msra.gmra.mrb[32].mxu0 %v2846_v9  ;;  %v2372_v25 = vadd.f32 %v11871_v63, %v2360_v32  ;;  %v2882_v23 = vshrl.u32 %v2662_v12, 16  ;;  %v2885_v53 = vshll.u32 %v2662_v12, 16  ;;  %v10393_v14 = vld [vmem:[%s14116_s1 + $0x2e8] sm:$0xff]   ;;  %v10398_v56 = vld [vmem:[%s14116_s1 + $0x2b0] sm:$0xff]  }
 0x36c   :  { %v2989_v29 = vsel %vm2839_vm10, %v2980_v30, %v2988_v36  ;;  %9593 = vmatpush3.bf16.msra.mxu0 %v10388_v28  ;;  %v2379_v26 = vadd.f32 %v2371_v15, %v11904_v35  ;;  %9560 = vmatprep.subr.bf16.mxu1 %v10389_v16  ;;  %v2373_v59 = vadd.f32 %v11871_v63, %v2361_v6  ;;  %v2873_v9 = vshrl.u32 %v11932_v17, 16  ;;  %v10395_v63 = vld [vmem:[%s14116_s1 + $0x350] sm:$0xff]   ;;  %v10401_v15 = vld [vmem:[%s14116_s1 + $0x2f8] sm:$0xff]  }
 0x36d   :  { %3896 = vmatprep.mubr.bf16.mxu0 %v2989_v29  ;;  %v2380_v51 = vadd.f32 %v2372_v25, %v11909_v45  ;;  %v2884_v44 = vrot.slane %v2882_v23, 6  ;;  %v2887_v54 = vrot.slane %v2885_v53, 7  ;;  %9594 = vmatprep.subr.bf16.mxu0 %v10391_v47  ;;  %v2972_v35 = vsel %vm2839_vm10, %v11893_v11, %v2971_v41 }
 0x36e   :  { %v2387_v37 = vmax.f32 %v2379_v26, 0.0  ;;  %v2381_v20 = vadd.f32 %v2373_v59, %v11911_v21  ;;  %v2659_v34 = vsel %vm263_vm0, %v11675_v58, %v11932_v17  ;;  %v2875_v61 = vrot.slane %v2873_v9, 6  ;;  %v10403_v59 = vld [vmem:[%s14116_s1 + $0x360] sm:$0xff]  }
 0x36f   :  { %v2388_v42 = vmax.f32 %v2380_v51, 0.0  ;;  %9561 = vmatpush3.bf16.msra.mxu1 %v10390_v8  ;;  %v2888_v45 = vor.u32 %v2887_v54, %v2884_v44  ;;  %v2865_v43 = vshrl.u32 %v2659_v34, 16  ;;  %v2868_v50 = vshll.u32 %v2659_v34, 16  ;;  %v10400_v8 = vld [vmem:[%s14116_s1 + $0x318] sm:$0xff]  }
 0x370   :  { %v2389_v3 = vmax.f32 %v2381_v20, 0.0  ;;  %9595 = vmatpush3.bf16.msra.mxu0 %v10392_v4  ;;  %9562 = vmatprep.subr.bf16.mxu1 %v10393_v14  ;;  %v2876_v55 = vshll.u32 %v11932_v17, 16  ;;  %v2712_v21 = vrot.slane %v11928_v49, 1  ;;  %v2713_v48 = vrot.slane %v11925_v62, 2  ;;  %v10397_v17 = vld [vmem:[%s14116_s1 + $0x2f0] sm:$0xff]  }
 0x371   :  { %v12033_v19 = vpack.c.bf16 %v2388_v42, %v2387_v37  ;;  %9596 = vmatprep.subr.bf16.mxu0 %v10395_v63  ;;  %v2867_v7 = vrot.slane %v2865_v43, 6  ;;  %v2870_v30 = vrot.slane %v2868_v50, 7  ;;  %v2668_v10 = vrot.slane %v11922_v38, 2 }
 0x372   :  { %v12039_v28 = vpack.c.bf16 %v2390_v52, %v2389_v3  ;;  %v2878_v16 = vrot.slane %v2876_v55, 7  ;;  %v2714_v2 = vor.u32 %v2713_v48, %v2712_v21  ;;  %v2669_v57 = vrot.slane %v11919_v33, 3  ;;  %v10404_v55 = vld [vmem:[%s14116_s1 + $0x320] sm:$0xff]  }
 0x373   :  { %10188 = vmatprep.mubr.bf16.mxu1 %v12033_v19  ;;  %9563 = vmatpush3.bf16.msra.mxu1 %v10394_v13  ;;  %v12053_v32 = vshll.u32 %v12033_v19, 16  ;;  %v12056_v12 = vshrl.u32 %v12033_v19, 16  ;;  %v2871_v47 = vor.u32 %v2870_v30, %v2867_v7  ;;  %v12061_v36 = vsel %vm263_vm0, %v11675_v58, %v11935_v5  ;;  %v10407_v30 = vld [vmem:[%s14116_s1 + $0x368] sm:$0xff]  }
 0x374   :  { %10189 = vmatmul.mubr.bf16.gmra.mrb[36].mxu1 %v12039_v28  ;;  %3897 = vmatmul.mubr.bf16.gmra.mrb[36].mxu0 %v2972_v35  ;;  %v12068_v6 = vshll.u32 %v12039_v28, 16  ;;  %v12071_v41 = vshrl.u32 %v12039_v28, 16  ;;  %v2879_v52 = vor.u32 %v2878_v16, %v2875_v61  ;;  %v3008_v25 = vshrl.u32 %v2714_v2, 16  ;;  %v10402_v35 = vld [vmem:[%s14116_s1 + $0x2b8] sm:$0xff]  }
 0x375   :  { %3953 = vmatprep.mubr.bf16.mxu1 %v2888_v45  ;;  %9597 = vmatpush3.bf16.msra.mxu0 %v10396_v27  ;;  %v2751_v23 = vrot.slane %v12053_v32, 1  ;;  %v3095_v53 = vrot.slane %v12056_v12, 6  ;;  %v3096_v29 = vrot.slane %v12053_v32, 7  ;;  %v3011_v26 = vshll.u32 %v2714_v2, 16  ;;  %v10405_v45 = vld [vmem:[%s14116_s1 + $0x3c0] sm:$0xff]  }
 0x376   :  { %9564 = vmatprep.subr.bf16.mxu1 %v10397_v17  ;;  %9598 = vmatprep.subr.bf16.mxu0 %v10399_v24  ;;  %v2800_v4 = vrot.slane %v12068_v6, 1  ;;  %v2880_v14 = vsel %vm2839_vm10, %v2871_v47, %v2879_v52  ;;  %v3010_v9 = vrot.slane %v3008_v25, 6  ;;  %v3221_v51 = vrot.slane %v12071_v41, 6 }
 0x377   :  { %9565 = vmatpush3.bf16.msra.mxu1 %v10398_v56  ;;  %v2752_v44 = vsel %vm931_vm7, %v11675_v58, %v2751_v23  ;;  %v2755_v54 = vor.u32 %v12056_v12, %v2751_v23  ;;  %v3097_v63 = vor.u32 %v3096_v29, %v3095_v53  ;;  %v3013_v37 = vrot.slane %v3011_v26, 7  ;;  %v10406_v56 = vld [vmem:[%s14116_s1 + $0x380] sm:$0xff]  }
 0x378   :  { %9566 = vmatprep.subr.bf16.mxu1 %v10401_v15  ;;  %v3100_v20 = vshrl.u32 %v2752_v44, 16  ;;  %v3103_v34 = vshll.u32 %v2752_v44, 16  ;;  %v2801_v61 = vsel %vm931_vm7, %v11675_v58, %v2800_v4  ;;  %v2804_v42 = vor.u32 %v12071_v41, %v2800_v4  ;;  %v10408_v4 = vld [vmem:[%s14116_s1 + $0x328] sm:$0xff]  }
 0x379   :  { %9599 = vmatpush3.bf16.msra.mxu0 %v10400_v8  ;;  %v3108_v13 = vshrl.u32 %v2755_v54, 16  ;;  %v3111_v43 = vshll.u32 %v2755_v54, 16  ;;  %v3098_v50 = vsel %vm2839_vm10, %v11893_v11, %v3097_v63  ;;  %v3226_v3 = vshrl.u32 %v2801_v61, 16  ;;  %v10409_v8 = vld [vmem:[%s14116_s1 + $0x3c8] sm:$0xff]  }
 0x37a   :  { %v3102_v21 = vrot.slane %v3100_v20, 6  ;;  %v3105_v48 = vrot.slane %v3103_v34, 7  ;;  %9600 = vmatprep.subr.bf16.mxu0 %v10403_v59  ;;  %v3229_v27 = vshll.u32 %v2801_v61, 16  ;;  %v3234_v7 = vshrl.u32 %v2804_v42, 16 }
 0x37b   :  { %v3110_v17 = vrot.slane %v3108_v13, 6  ;;  %v3113_v24 = vrot.slane %v3111_v43, 7  ;;  %9567 = vmatpush3.bf16.msra.mxu1 %v10402_v35  ;;  %v3228_v16 = vrot.slane %v3226_v3, 6  ;;  %v3237_v2 = vshll.u32 %v2804_v42, 16  ;;  %v10413_v42 = vld [vmem:[%s14116_s1 + $0x3d0] sm:$0xff]  }
 0x37c   :  { %v3106_v47 = vor.u32 %v3105_v48, %v3102_v21  ;;  %v3231_v15 = vrot.slane %v3229_v27, 7  ;;  %v3236_v52 = vrot.slane %v3234_v7, 6  ;;  %9632 = vmatprep.subr.bf16.mxu1 %v10405_v45  ;;  %v3014_v25 = vor.u32 %v3013_v37, %v3010_v9  ;;  %v10412_v3 = vld [vmem:[%s14116_s1 + $0x330] sm:$0xff]  }
 0x37d   :  { %v3114_v23 = vor.u32 %v3113_v24, %v3110_v17  ;;  %v3239_v53 = vrot.slane %v3237_v2, 7  ;;  %9601 = vmatpush3.bf16.msra.mxu0 %v10404_v55  ;;  %v3222_v29 = vrot.slane %v12068_v6, 7  ;;  %v2670_v26 = vor.u32 %v2669_v57, %v2668_v10  ;;  %v10410_v10 = vld [vmem:[%s14116_s1 + $0x388] sm:$0xff]   ;;  %v10414_v24 = vld [vmem:[%s14116_s1 + $0x390] sm:$0xff]  }
 0x37e   :  { %v3232_v59 = vor.u32 %v3231_v15, %v3228_v16  ;;  %3954 = vmatmul.mubr.bf16.vlgmr.msra.gmra.mrb[40].mxu1 %v2880_v14  ;;  %9602 = vmatprep.subr.bf16.mxu0 %v10407_v30  ;;  %v2991_v9 = vshrl.u32 %v12061_v36, 16  ;;  %v2994_v44 = vshll.u32 %v12061_v36, 16  ;;  %v2999_v54 = vshrl.u32 %v11935_v5, 16  ;;  %v10411_v14 = vld [vmem:[%s14116_s1 + $0x370] sm:$0xff]   ;;  %v10415_v16 = vld [vmem:[%s14116_s1 + $0x378] sm:$0xff]  }
 0x37f   :  { %v3115_v35 = vsel %vm2839_vm10, %v3106_v47, %v3114_v23  ;;  %v3240_v63 = vor.u32 %v3239_v53, %v3236_v52  ;;  %3961 = vmatprep.mubr.bf16.mxu1 %v3014_v25  ;;  %9633 = vmatpush3.bf16.msra.mxu1 %v10406_v56  ;;  %v3223_v57 = vor.u32 %v3222_v29, %v3221_v51  ;;  %v2908_v37 = vshrl.u32 %v2670_v26, 16  ;;  %v10417_v47 = vld [vmem:[%s14116_s1 + $0x3d8] sm:$0xff]  }
 0x380   :  { %3904 = vmatprep.mubr.bf16.mxu0 %v3115_v35  ;;  %9634 = vmatprep.subr.bf16.mxu1 %v10409_v8  ;;  %v2679_v36 = vsel %vm2667_vm11, %v2670_v26, %v11915_v18  ;;  %v2911_v20 = vshll.u32 %v2670_v26, 16  ;;  %v2993_v34 = vrot.slane %v2991_v9, 6  ;;  %v2996_v61 = vrot.slane %v2994_v44, 7 }
 0x381   :  { %3905 = vmatmul.mubr.bf16.gmra.mrb[40].mxu0 %v3098_v50  ;;  %v3241_v51 = vsel %vm2839_vm10, %v3232_v59, %v3240_v63  ;;  %v3224_v45 = vsel %vm2839_vm10, %v11893_v11, %v3223_v57  ;;  %v2910_v13 = vrot.slane %v2908_v37, 6  ;;  %v2916_v43 = vshrl.u32 %v2679_v36, 16  ;;  %v10419_v37 = vld [vmem:[%s14116_s1 + $0x3e0] sm:$0xff]  }
 0x382   :  { %3912 = vmatprep.mubr.bf16.mxu0 %v3241_v51  ;;  %9603 = vmatpush3.bf16.msra.mxu0 %v10408_v4  ;;  %v2913_v55 = vrot.slane %v2911_v20, 7  ;;  %v2919_v21 = vshll.u32 %v2679_v36, 16  ;;  %v2997_v48 = vor.u32 %v2996_v61, %v2993_v34  ;;  %v3001_v27 = vrot.slane %v2999_v54, 6  ;;  %v10416_v54 = vld [vmem:[%s14116_s1 + $0x338] sm:$0xff]  }
 0x383   :  { %9635 = vmatpush3.bf16.msra.mxu1 %v10410_v10  ;;  %9604 = vmatprep.subr.bf16.mxu0 %v10411_v14  ;;  %v2918_v50 = vrot.slane %v2916_v43, 6  ;;  %v3002_v7 = vshll.u32 %v11935_v5, 16  ;;  %v2761_v30 = vrot.slane %v12056_v12, 1  ;;  %v2762_v17 = vrot.slane %v12053_v32, 2 }
 0x384   :  { %v2914_v2 = vor.u32 %v2913_v55, %v2910_v13  ;;  %v2921_v56 = vrot.slane %v2919_v21, 7  ;;  %9636 = vmatprep.subr.bf16.mxu1 %v10413_v42  ;;  %v2666_v5 = vsel %vm286_vm1, %v11938_v46, %v11414_v31  ;;  %v2891_v15 = vshrl.u32 %v11938_v46, 16 }
 0x385   :  { %v3004_v52 = vrot.slane %v3002_v7, 7  ;;  %v2763_v25 = vor.u32 %v2762_v17, %v2761_v30  ;;  %v2894_v8 = vshll.u32 %v11938_v46, 16  ;;  %v2899_v23 = vshrl.u32 %v2666_v5, 16  ;;  %v10418_v46 = vld [vmem:[%s14116_s1 + $0x398] sm:$0xff]   ;;  %v10421_v17 = vld [vmem:[%s14116_s1 + $0x3e8] sm:$0xff]  }
 0x386   :  { %9605 = vmatpush3.bf16.msra.mxu0 %v10412_v3  ;;  %v2922_v53 = vor.u32 %v2921_v56, %v2918_v50  ;;  %v2893_v29 = vrot.slane %v2891_v15, 6  ;;  %v2902_v26 = vshll.u32 %v2666_v5, 16  ;;  %v2719_v59 = vrot.slane %v11928_v49, 2 }
 0x387   :  { %v3005_v4 = vor.u32 %v3004_v52, %v3001_v27  ;;  %v3134_v9 = vshrl.u32 %v2763_v25, 16  ;;  %v3137_v44 = vshll.u32 %v2763_v25, 16  ;;  %9637 = vmatpush3.bf16.msra.mxu1 %v10414_v24  ;;  %9606 = vmatprep.subr.bf16.mxu0 %v10415_v16  ;;  %v2896_v35 = vrot.slane %v2894_v8, 7 }
 0x388   :  { %v2923_v63 = vsel %vm2839_vm10, %v2914_v2, %v2922_v53  ;;  %9638 = vmatprep.subr.bf16.mxu1 %v10417_v47  ;;  %v2901_v10 = vrot.slane %v2899_v23, 6  ;;  %v2904_v57 = vrot.slane %v2902_v26, 7  ;;  %v2720_v14 = vrot.slane %v11925_v62, 3 }
 0x389   :  { %3913 = vmatmul.mubr.bf16.gmra.mrb[44].mxu0 %v3224_v45  ;;  %v3006_v36 = vsel %vm2839_vm10, %v2997_v48, %v3005_v4  ;;  %v3136_v20 = vrot.slane %v3134_v9, 6  ;;  %v3139_v34 = vrot.slane %v3137_v44, 7  ;;  %v2897_v61 = vor.u32 %v2896_v35, %v2893_v29  ;;  %v10420_v45 = vld [vmem:[%s14116_s1 + $0x3a0] sm:$0xff]   ;;  %v10422_v29 = vld [vmem:[%s14116_s1 + $0x3a8] sm:$0xff]   ;;  %v10423_v44 = vld [vmem:[%s14116_s1 + $0x3f0] sm:$0xff]  }
 0x38a   :  { %4018 = vmatprep.mubr.bf16.mxu0 %v2923_v63  ;;  %3962 = vmatmul.mubr.bf16.gmra.mrb[44].mxu1 %v3006_v36  ;;  %v2905_v42 = vor.u32 %v2904_v57, %v2901_v10  ;;  %v2721_v51 = vor.u32 %v2720_v14, %v2719_v59  ;;  %v2759_v13 = vrot.slane %v12033_v19, 1  ;;  %v2810_v43 = vrot.slane %v12071_v41, 1 }
 0x38b   :  { %v3140_v3 = vor.u32 %v3139_v34, %v3136_v20  ;;  %9607 = vmatpush3.bf16.msra.mxu0 %v10416_v54  ;;  %9639 = vmatpush3.bf16.msra.mxu1 %v10418_v46  ;;  %v2811_v55 = vrot.slane %v12068_v6, 2  ;;  %v2718_v21 = vsel %vm286_vm1, %v11941_v39, %v11414_v31  ;;  %v3017_v48 = vshrl.u32 %v11941_v39, 16 }
 0x38c   :  { %v2906_v27 = vsel %vm2839_vm10, %v2897_v61, %v2905_v42  ;;  %v2730_v50 = vsel %vm2667_vm11, %v2721_v51, %v11915_v18  ;;  %v3034_v7 = vshrl.u32 %v2721_v51, 16  ;;  %v3037_v30 = vshll.u32 %v2721_v51, 16  ;;  %9640 = vmatprep.subr.bf16.mxu1 %v10419_v37  ;;  %v10424_v42 = vld [vmem:[%s14116_s1 + $0x3b0] sm:$0xff]  }
 0x38d   :  { %3969 = vmatprep.mubr.bf16.mxu1 %v3140_v3  ;;  %v3042_v24 = vshrl.u32 %v2730_v50, 16  ;;  %v3045_v16 = vshll.u32 %v2730_v50, 16  ;;  %v2760_v2 = vsel %vm263_vm0, %v11675_v58, %v2759_v13  ;;  %v3125_v56 = vshrl.u32 %v2759_v13, 16  ;;  %v10425_v3 = vld [vmem:[%s14116_s1 + $0x3f8] sm:$0xff]  }
 0x38e   :  { %v3036_v47 = vrot.slane %v3034_v7, 6  ;;  %v3039_v5 = vrot.slane %v3037_v30, 7  ;;  %v3117_v15 = vshrl.u32 %v2760_v2, 16  ;;  %v3120_v52 = vshll.u32 %v2760_v2, 16 }
 0x38f   :  { %v3044_v25 = vrot.slane %v3042_v24, 6  ;;  %v3047_v8 = vrot.slane %v3045_v16, 7  ;;  %v3127_v23 = vrot.slane %v3125_v56, 6  ;;  %v3128_v53 = vshll.u32 %v2759_v13, 16  ;;  %9641 = vmatpush3.bf16.msra.mxu1 %v10420_v45  ;;  %v10426_v16 = vld [vmem:[%s14116_s1 + $0x3b8] sm:$0xff]  }
 0x390   :  { %v3040_v26 = vor.u32 %v3039_v5, %v3036_v47  ;;  %v3119_v59 = vrot.slane %v3117_v15, 6  ;;  %v3122_v4 = vrot.slane %v3120_v52, 7  ;;  %v2812_v9 = vor.u32 %v2811_v55, %v2810_v43  ;;  %9642 = vmatprep.subr.bf16.mxu1 %v10421_v17 }
 0x391   :  { %4019 = vmatmul.mubr.bf16.vlgmr.msra.gmra.mrb[48].mxu0 %v2906_v27  ;;  %v3048_v54 = vor.u32 %v3047_v8, %v3044_v25  ;;  %v3130_v46 = vrot.slane %v3128_v53, 7  ;;  %v3019_v35 = vrot.slane %v3017_v48, 6  ;;  %v3020_v63 = vshll.u32 %v11941_v39, 16 }
 0x392   :  { %v3123_v10 = vor.u32 %v3122_v4, %v3119_v59  ;;  %v3260_v57 = vshrl.u32 %v2812_v9, 16  ;;  %v3263_v14 = vshll.u32 %v2812_v9, 16  ;;  %v3025_v37 = vshrl.u32 %v2718_v21, 16 }
 0x393   :  { %v3049_v36 = vsel %vm2839_vm10, %v3040_v26, %v3048_v54  ;;  %v3131_v20 = vor.u32 %v3130_v46, %v3127_v23  ;;  %9643 = vmatpush3.bf16.msra.mxu1 %v10422_v29  ;;  %v3022_v34 = vrot.slane %v3020_v63, 7  ;;  %v3028_v61 = vshll.u32 %v2718_v21, 16 }
 0x394   :  { %4026 = vmatprep.mubr.bf16.mxu0 %v3049_v36  ;;  %v3262_v51 = vrot.slane %v3260_v57, 6  ;;  %v3265_v13 = vrot.slane %v3263_v14, 7  ;;  %v3027_v43 = vrot.slane %v3025_v37, 6  ;;  %v2768_v39 = vrot.slane %v12056_v12, 2  ;;  %9644 = vmatprep.subr.bf16.mxu1 %v10423_v44 }
 0x395   :  { %v3132_v55 = vsel %vm2839_vm10, %v3123_v10, %v3131_v20  ;;  %v3023_v45 = vor.u32 %v3022_v34, %v3019_v35  ;;  %v3030_v48 = vrot.slane %v3028_v61, 7  ;;  %v2769_v21 = vrot.slane %v12053_v32, 3 }
 0x396   :  { %3970 = vmatmul.mubr.bf16.gmra.mrb[48].mxu1 %v3132_v55  ;;  %v3266_v27 = vor.u32 %v3265_v13, %v3262_v51  ;;  %v2808_v50 = vrot.slane %v12039_v28, 1  ;;  %v2685_v7 = vrot.slane %v11922_v38, 3  ;;  %v2686_v30 = vrot.slane %v11919_v33, 4 }
 0x397   :  { %v3031_v17 = vor.u32 %v3030_v48, %v3027_v43  ;;  %v2770_v24 = vor.u32 %v2769_v21, %v2768_v39  ;;  %9645 = vmatpush3.bf16.msra.mxu1 %v10424_v42  ;;  %v2765_v2 = vrot.slane %v12033_v19, 2  ;;  %v2817_v56 = vrot.slane %v12071_v41, 2 }
 0x398   :  { %3977 = vmatprep.mubr.bf16.mxu1 %v3266_v27  ;;  %v2809_v47 = vsel %vm263_vm0, %v11675_v58, %v2808_v50  ;;  %v3251_v5 = vshrl.u32 %v2808_v50, 16  ;;  %v3254_v15 = vshll.u32 %v2808_v50, 16  ;;  %v2687_v38 = vor.u32 %v2686_v30, %v2685_v7  ;;  %9646 = vmatprep.subr.bf16.mxu1 %v10425_v3 }
 0x399   :  { %v3032_v33 = vsel %vm2839_vm10, %v3023_v45, %v3031_v17  ;;  %v2779_v52 = vsel %vm2667_vm11, %v2770_v24, %v11915_v18  ;;  %v3160_v25 = vshrl.u32 %v2770_v24, 16  ;;  %v3163_v8 = vshll.u32 %v2770_v24, 16 }
 0x39a   :  { %4027 = vmatmul.mubr.bf16.gmra.mrb[52].mxu0 %v3032_v33  ;;  %v3168_v23 = vshrl.u32 %v2779_v52, 16  ;;  %v3171_v53 = vshll.u32 %v2779_v52, 16  ;;  %v3243_v29 = vshrl.u32 %v2809_v47, 16  ;;  %v3246_v26 = vshll.u32 %v2809_v47, 16 }
 0x39b   :  { %v3162_v59 = vrot.slane %v3160_v25, 6  ;;  %v3165_v4 = vrot.slane %v3163_v8, 7  ;;  %v3253_v9 = vrot.slane %v3251_v5, 6  ;;  %v3256_v44 = vrot.slane %v3254_v15, 7  ;;  %9647 = vmatpush3.bf16.msra.mxu1 %v10426_v16 }
 0x39c   :  { %v3170_v54 = vrot.slane %v3168_v23, 6  ;;  %v3173_v46 = vrot.slane %v3171_v53, 7  ;;  %v3245_v35 = vrot.slane %v3243_v29, 6  ;;  %v3248_v63 = vrot.slane %v3246_v26, 7 }
 0x39d   :  { %v3166_v10 = vor.u32 %v3165_v4, %v3162_v59  ;;  %v3257_v57 = vor.u32 %v3256_v44, %v3253_v9  ;;  %v2691_v14 = vsel %vm2684_vm12, %v2687_v38, %v11890_v40  ;;  %v2942_v37 = vshrl.u32 %v2687_v38, 16 }
 0x39e   :  { %v3174_v36 = vor.u32 %v3173_v46, %v3170_v54  ;;  %v3249_v20 = vor.u32 %v3248_v63, %v3245_v35  ;;  %v2945_v34 = vshll.u32 %v2687_v38, 16  ;;  %v2950_v61 = vshrl.u32 %v2691_v14, 16 }
 0x39f   :  { %v2944_v42 = vrot.slane %v2942_v37, 6  ;;  %v2953_v51 = vshll.u32 %v2691_v14, 16  ;;  %v2767_v13 = vsel %vm286_vm1, %v2765_v2, %v11414_v31  ;;  %v3143_v43 = vshrl.u32 %v2765_v2, 16 }
 0x3a0   :  { %v3175_v39 = vsel %vm2839_vm10, %v3166_v10, %v3174_v36  ;;  %v3258_v3 = vsel %vm2839_vm10, %v3249_v20, %v3257_v57  ;;  %v2947_v55 = vrot.slane %v2945_v34, 7  ;;  %v2952_v45 = vrot.slane %v2950_v61, 6 }
 0x3a1   :  { %4034 = vmatprep.mubr.bf16.mxu0 %v3175_v39  ;;  %3978 = vmatmul.mubr.bf16.gmra.mrb[52].mxu1 %v3258_v3  ;;  %v2955_v48 = vrot.slane %v2953_v51, 7  ;;  %v3145_v21 = vrot.slane %v3143_v43, 6  ;;  %v3146_v27 = vshll.u32 %v2765_v2, 16  ;;  %v3151_v50 = vshrl.u32 %v2767_v13, 16 }
 0x3a2   :  { %v2948_v7 = vor.u32 %v2947_v55, %v2944_v42  ;;  %v3154_v30 = vshll.u32 %v2767_v13, 16  ;;  %v2818_v17 = vrot.slane %v12068_v6, 3  ;;  %v2681_v24 = vrot.slane %v11897_v60, 3 }
 0x3a3   :  { %v2956_v16 = vor.u32 %v2955_v48, %v2952_v45  ;;  %v3148_v47 = vrot.slane %v3146_v27, 7  ;;  %v3153_v5 = vrot.slane %v3151_v50, 6  ;;  %v2734_v15 = vrot.slane %v11928_v49, 3 }
 0x3a4   :  { %v3156_v38 = vrot.slane %v3154_v30, 7  ;;  %v2819_v33 = vor.u32 %v2818_v17, %v2817_v56  ;;  %v2683_v52 = vsel %vm307_vm2, %v2681_v24, %v11885_v22  ;;  %v2925_v25 = vshrl.u32 %v2681_v24, 16 }
 0x3a5   :  { %v2957_v2 = vsel %vm2839_vm10, %v2948_v7, %v2956_v16  ;;  %v3149_v8 = vor.u32 %v3148_v47, %v3145_v21  ;;  %v2928_v23 = vshll.u32 %v2681_v24, 16  ;;  %v2933_v53 = vshrl.u32 %v2683_v52, 16 }
 0x3a6   :  { %4083 = vmatprep.mubr.bf16.mxu1 %v2957_v2  ;;  %v3157_v29 = vor.u32 %v3156_v38, %v3153_v5  ;;  %v2828_v60 = vsel %vm2667_vm11, %v2819_v33, %v11915_v18  ;;  %v3286_v26 = vshrl.u32 %v2819_v33, 16  ;;  %v3289_v59 = vshll.u32 %v2819_v33, 16 }
 0x3a7   :  { %v3294_v4 = vshrl.u32 %v2828_v60, 16  ;;  %v3297_v49 = vshll.u32 %v2828_v60, 16  ;;  %v2927_v9 = vrot.slane %v2925_v25, 6  ;;  %v2930_v56 = vrot.slane %v2928_v23, 7 }
 0x3a8   :  { %v3158_v44 = vsel %vm2839_vm10, %v3149_v8, %v3157_v29  ;;  %v3288_v54 = vrot.slane %v3286_v26, 6  ;;  %v3291_v46 = vrot.slane %v3289_v59, 7  ;;  %v2935_v35 = vrot.slane %v2933_v53, 6 }
 0x3a9   :  { %4035 = vmatmul.mubr.bf16.gmra.mrb[56].mxu0 %v3158_v44  ;;  %v3296_v63 = vrot.slane %v3294_v4, 6  ;;  %v3299_v10 = vrot.slane %v3297_v49, 7  ;;  %v2931_v57 = vor.u32 %v2930_v56, %v2927_v9  ;;  %v2936_v14 = vshll.u32 %v2683_v52, 16 }
 0x3aa   :  { %v3292_v37 = vor.u32 %v3291_v46, %v3288_v54  ;;  %v2735_v36 = vrot.slane %v11925_v62, 4  ;;  %v2814_v20 = vrot.slane %v12039_v28, 2  ;;  %v2731_v34 = vrot.slane %v11899_v1, 3 }
 0x3ab   :  { %v3300_v61 = vor.u32 %v3299_v10, %v3296_v63  ;;  %v2938_v42 = vrot.slane %v2936_v14, 7  ;;  %v2783_v51 = vrot.slane %v12056_v12, 3  ;;  %v2784_v13 = vrot.slane %v12053_v32, 4 }
 0x3ac   :  { %v2736_v43 = vor.u32 %v2735_v36, %v2734_v15  ;;  %v2816_v39 = vsel %vm286_vm1, %v2814_v20, %v11414_v31  ;;  %v3269_v3 = vshrl.u32 %v2814_v20, 16  ;;  %v3272_v55 = vshll.u32 %v2814_v20, 16 }
 0x3ad   :  { %v3301_v45 = vsel %vm2839_vm10, %v3292_v37, %v3300_v61  ;;  %v2939_v48 = vor.u32 %v2938_v42, %v2935_v35  ;;  %v3277_v62 = vshrl.u32 %v2816_v39, 16  ;;  %v3280_v21 = vshll.u32 %v2816_v39, 16 }
 0x3ae   :  { %4042 = vmatprep.mubr.bf16.mxu0 %v3301_v45  ;;  %v2740_v1 = vsel %vm2684_vm12, %v2736_v43, %v11890_v40  ;;  %v3068_v27 = vshrl.u32 %v2736_v43, 16  ;;  %v3071_v50 = vshll.u32 %v2736_v43, 16  ;;  %v3271_v12 = vrot.slane %v3269_v3, 6 }
 0x3af   :  { %v2940_v32 = vsel %vm2839_vm10, %v2931_v57, %v2939_v48  ;;  %v3076_v7 = vshrl.u32 %v2740_v1, 16  ;;  %v3079_v30 = vshll.u32 %v2740_v1, 16  ;;  %v3274_v17 = vrot.slane %v3272_v55, 7 }
 0x3b0   :  { %4084 = vmatmul.mubr.bf16.vlgmr.msra.gmra.mrb[56].mxu1 %v2940_v32  ;;  %v3070_v24 = vrot.slane %v3068_v27, 6  ;;  %v3073_v16 = vrot.slane %v3071_v50, 7  ;;  %v3279_v47 = vrot.slane %v3277_v62, 6  ;;  %v3282_v5 = vrot.slane %v3280_v21, 7 }
 0x3b1   :  { %v3078_v15 = vrot.slane %v3076_v7, 6  ;;  %v3081_v38 = vrot.slane %v3079_v30, 7  ;;  %v3275_v33 = vor.u32 %v3274_v17, %v3271_v12  ;;  %v2733_v52 = vsel %vm307_vm2, %v2731_v34, %v11885_v22 }
 0x3b2   :  { %v3074_v25 = vor.u32 %v3073_v16, %v3070_v24  ;;  %v3283_v2 = vor.u32 %v3282_v5, %v3279_v47  ;;  %v3051_v8 = vshrl.u32 %v2731_v34, 16  ;;  %v3054_v23 = vshll.u32 %v2731_v34, 16 }
 0x3b3   :  { %v3082_v53 = vor.u32 %v3081_v38, %v3078_v15  ;;  %v3059_v29 = vshrl.u32 %v2733_v52, 16  ;;  %v3062_v60 = vshll.u32 %v2733_v52, 16  ;;  %v2785_v26 = vor.u32 %v2784_v13, %v2783_v51 }
 0x3b4   :  { %v3284_v59 = vsel %vm2839_vm10, %v3275_v33, %v3283_v2  ;;  %v3053_v4 = vrot.slane %v3051_v8, 6  ;;  %v3056_v49 = vrot.slane %v3054_v23, 7  ;;  %v2780_v9 = vrot.slane %v12033_v19, 3 }
 0x3b5   :  { %v3083_v56 = vsel %vm2839_vm10, %v3074_v25, %v3082_v53  ;;  %4043 = vmatmul.mubr.bf16.gmra.mrb[60].mxu0 %v3284_v59  ;;  %v3061_v44 = vrot.slane %v3059_v29, 6  ;;  %v3064_v54 = vrot.slane %v3062_v60, 7  ;;  %v2789_v46 = vsel %vm2684_vm12, %v2785_v26, %v11890_v40 }
 0x3b6   :  { %4091 = vmatprep.mubr.bf16.mxu1 %v3083_v56  ;;  %v3057_v35 = vor.u32 %v3056_v49, %v3053_v4  ;;  %v3194_v63 = vshrl.u32 %v2785_v26, 16  ;;  %v3197_v10 = vshll.u32 %v2785_v26, 16  ;;  %v3202_v57 = vshrl.u32 %v2789_v46, 16 }
 0x3b7   :  { %v3065_v14 = vor.u32 %v3064_v54, %v3061_v44  ;;  %v3205_v37 = vshll.u32 %v2789_v46, 16  ;;  %v2782_v36 = vsel %vm307_vm2, %v2780_v9, %v11885_v22  ;;  %v3177_v20 = vshrl.u32 %v2780_v9, 16 }
 0x3b8   :  { %v3196_v19 = vrot.slane %v3194_v63, 6  ;;  %v3199_v34 = vrot.slane %v3197_v10, 7  ;;  %v3204_v61 = vrot.slane %v3202_v57, 6  ;;  %v3180_v42 = vshll.u32 %v2780_v9, 16 }
 0x3b9   :  { %v3066_v51 = vsel %vm2839_vm10, %v3057_v35, %v3065_v14  ;;  %v3207_v13 = vrot.slane %v3205_v37, 7  ;;  %v3179_v43 = vrot.slane %v3177_v20, 6  ;;  %v3185_v39 = vshrl.u32 %v2782_v36, 16 }
 0x3ba   :  { %4092 = vmatmul.mubr.bf16.gmra.mrb[60].mxu1 %v3066_v51  ;;  %v3200_v3 = vor.u32 %v3199_v34, %v3196_v19  ;;  %v3182_v55 = vrot.slane %v3180_v42, 7  ;;  %v3188_v45 = vshll.u32 %v2782_v36, 16  ;;  %v2832_v48 = vrot.slane %v12071_v41, 3 }
 0x3bb   :  { %v3208_v62 = vor.u32 %v3207_v13, %v3204_v61  ;;  %v3187_v21 = vrot.slane %v3185_v39, 6  ;;  %v2833_v1 = vrot.slane %v12068_v6, 4  ;;  %v2829_v27 = vrot.slane %v12039_v28, 3 }
 0x3bc   :  { %v3183_v50 = vor.u32 %v3182_v55, %v3179_v43  ;;  %v3190_v12 = vrot.slane %v3188_v45, 7 }
 0x3bd   :  { %v3209_v32 = vsel %vm2839_vm10, %v3200_v3, %v3208_v62  ;;  %v2834_v7 = vor.u32 %v2833_v1, %v2832_v48  ;;  %v2831_v30 = vsel %vm307_vm2, %v2829_v27, %v11885_v22  ;;  %v3303_v17 = vshrl.u32 %v2829_v27, 16 }
 0x3be   :  { %4099 = vmatprep.mubr.bf16.mxu1 %v3209_v32  ;;  %v3191_v24 = vor.u32 %v3190_v12, %v3187_v21  ;;  %v3306_v16 = vshll.u32 %v2829_v27, 16  ;;  %v3311_v47 = vshrl.u32 %v2831_v30, 16  ;;  %v3314_v41 = vshll.u32 %v2831_v30, 16 }
 0x3bf   :  { %v2838_v5 = vsel %vm2684_vm12, %v2834_v7, %v11890_v40  ;;  %v3320_v6 = vshrl.u32 %v2834_v7, 16  ;;  %v3323_v15 = vshll.u32 %v2834_v7, 16  ;;  %v3305_v28 = vrot.slane %v3303_v17, 6 }
 0x3c0   :  { %v3192_v38 = vsel %vm2839_vm10, %v3183_v50, %v3191_v24  ;;  %v3328_v33 = vshrl.u32 %v2838_v5, 16  ;;  %v3331_v52 = vshll.u32 %v2838_v5, 16  ;;  %v3308_v25 = vrot.slane %v3306_v16, 7 }
 0x3c1   :  { %v3322_v2 = vrot.slane %v3320_v6, 6  ;;  %v3325_v8 = vrot.slane %v3323_v15, 7  ;;  %v3313_v23 = vrot.slane %v3311_v47, 6  ;;  %v3316_v53 = vrot.slane %v3314_v41, 7 }
 0x3c2   :  { %4100 = vmatmul.mubr.bf16.gmra.mrb[64].mxu1 %v3192_v38  ;;  %v3330_v29 = vrot.slane %v3328_v33, 6  ;;  %v3333_v60 = vrot.slane %v3331_v52, 7  ;;  %v3309_v4 = vor.u32 %v3308_v25, %v3305_v28 }
 0x3c3   :  { %v3326_v26 = vor.u32 %v3325_v8, %v3322_v2  ;;  %v3317_v49 = vor.u32 %v3316_v53, %v3313_v23 }
 0x3c4   :  { %v3334_v59 = vor.u32 %v3333_v60, %v3330_v29 }
 0x3c5   :  { %v3318_v56 = vsel %vm2839_vm10, %v3309_v4, %v3317_v49 }
 0x3c6   :  { %v3335_v9 = vsel %vm2839_vm10, %v3326_v26, %v3334_v59 }
 0x3c7   :  { %4107 = vmatprep.mubr.bf16.mxu1 %v3335_v9 }
 0x3ca   :  { %4108 = vmatmul.mubr.bf16.gmra.mrb[68].mxu1 %v3318_v56 }
 0x431   :  { %v12265_v44 = vpop.f32.mrb[32].mxu1 }
 0x432   :  { %v12267_v54 = vpop.f32.mrb[33].mxu1  ;;  %v2554_v14 = vmul.f32 %v12265_v44, %v12265_v44 }
 0x433   :  { %v12269_v46 = vpop.f32.mrb[34].mxu1  ;;  %v2552_v63 = vmul.f32 %v12267_v54, %v12267_v54 }
 0x434   :  { %v12271_v35 = vpop.f32.mrb[35].mxu1  ;;  %v2555_v20 = vmul.f32 %v12269_v46, %v12269_v46 }
 0x435   :  { %v2542_v10 = vadd.f32 %v12271_v35, %v12267_v54  ;;  %v2553_v57 = vmul.f32 %v12271_v35, %v12271_v35 }
 0x437   :  { %v2543_v37 = vadd.f32 %v12265_v44, %v2542_v10  ;;  %v2556_v36 = vadd.f32 %v2553_v57, %v2552_v63 }
 0x439   :  { %v2544_v19 = vadd.f32 %v12269_v46, %v2543_v37  ;;  %v2557_v34 = vadd.f32 %v2556_v36, %v2554_v14 }
 0x43b   :  { %v2545_v61 = vrot.slane %v2544_v19, 4  ;;  %v2558_v42 = vadd.f32 %v2557_v34, %v2555_v20  ;;  %v10427_v34 = vld [vmem:[%s14116_s1 + $0x440] sm:$0xff]  }
 0x43c   :  { %9672 = vmatprep.subr.bf16.mxu0 %v10427_v34 }
 0x43d   :  { %v2546_v51 = vadd.f32 %v2545_v61, %v2544_v19  ;;  %v2559_v13 = vrot.slane %v2558_v42, 4  ;;  %v10428_v61 = vld [vmem:[%s14116_s1 + $0x400] sm:$0xff]  }
 0x43e   :  { %v9528_v43 = vpop.f32.mrb[32].mxu0  ;;  %9673 = vmatpush3.bf16.msra.mxu0 %v10428_v61 }
 0x43f   :  { %v2547_v39 = vrot.slane %v2546_v51, 2  ;;  %v2560_v3 = vadd.f32 %v2559_v13, %v2558_v42  ;;  %v9529_v55 = vpop.f32.mrb[33].mxu0  ;;  %v10429_v42 = vld [vmem:[%s14116_s1 + $0x4c0] sm:$0xff]  }
 0x440   :  { %v9530_v45 = vadd.f32 %v9529_v55, %v9528_v43  ;;  %v9531_v48 = vpop.f32.mrb[34].mxu0  ;;  %v10431_v55 = vld [vmem:[%s14116_s1 + $0x448] sm:$0xff]   ;;  %9712 = vmatprep.subr.bf16.mxu1 %v10429_v42 }
 0x441   :  { %v2548_v62 = vadd.f32 %v2547_v39, %v2546_v51  ;;  %v2561_v21 = vrot.slane %v2560_v3, 2  ;;  %v9532_v1 = vpop.f32.mrb[35].mxu0  ;;  %9674 = vmatprep.subr.bf16.mxu0 %v10431_v55 }
 0x442   :  { %v12285_v27 = vadd.f32 %v9532_v1, %v9531_v48 }
 0x443   :  { %v2549_v50 = vrot.slane %v2548_v62, 1  ;;  %v2562_v12 = vadd.f32 %v2561_v21, %v2560_v3  ;;  %v10430_v3 = vld [vmem:[%s14116_s1 + $0x480] sm:$0xff]   ;;  %v10433_v21 = vld [vmem:[%s14116_s1 + $0x4c8] sm:$0xff]  }
 0x444   :  { %9713 = vmatpush3.bf16.msra.mxu1 %v10430_v3  ;;  %v10445_v3 = vld [vmem:[%s14116_s1 + $0x4e0] sm:$0xff]  }
 0x445   :  { %v2550_v32 = vadd.f32 %v2549_v50, %v2548_v62  ;;  %v2563_v7 = vrot.slane %v2562_v12, 1  ;;  %9714 = vmatprep.subr.bf16.mxu1 %v10433_v21 }
 0x447   :  { %v12287_v30 = vmul.f32 0.03125, %v2550_v32  ;;  %v2564_v17 = vadd.f32 %v2563_v7, %v2562_v12  ;;  %v12289_v24 = vpop.f32.mrb[36].mxu1  ;;  %v9534_v16 = vpop.f32.mrb[36].mxu0 }
 0x448   :  { %v12291_v47 = vpop.f32.mrb[37].mxu1  ;;  %v9535_v41 = vpop.f32.mrb[37].mxu0  ;;  %v2591_v49 = vmul.f32 %v12289_v24, %v12289_v24 }
 0x449   :  { %v2565_v5 = vmul.f32 0.03125, %v2564_v17  ;;  %v2566_v6 = vmul.f32 %v12287_v30, %v12287_v30  ;;  %v2569_v15 = vsub.f32 %v12267_v54, %v12287_v30  ;;  %v2570_v28 = vsub.f32 %v12271_v35, %v12287_v30  ;;  %v12299_v38 = vpop.f32.mrb[38].mxu1  ;;  %v9537_v33 = vpop.f32.mrb[38].mxu0  ;;  %v10432_v17 = vld [vmem:[%s14116_s1 + $0x408] sm:$0xff]   ;;  %v10440_v35 = vld [vmem:[%s14116_s1 + $0x418] sm:$0xff]  }
 0x44a   :  { %v2571_v52 = vsub.f32 %v12265_v44, %v12287_v30  ;;  %v2589_v25 = vmul.f32 %v12291_v47, %v12291_v47  ;;  %v12305_v2 = vpop.f32.mrb[39].mxu1  ;;  %v12307_v8 = vadd.f32 %v9535_v41, %v9534_v16  ;;  %v9538_v23 = vpop.f32.mrb[39].mxu0  ;;  %v2572_v59 = vsub.f32 %v12269_v46, %v12287_v30  ;;  %v10434_v16 = vld [vmem:[%s14116_s1 + $0x488] sm:$0xff]   ;;  %9675 = vmatpush3.bf16.msra.mxu0 %v10432_v17  ;;  %v10442_v46 = vld [vmem:[%s14116_s1 + $0x498] sm:$0xff]   ;;  %v10443_v30 = vld [vmem:[%s14116_s1 + $0x460] sm:$0xff]  }
 0x44b   :  { %v2567_v53 = vsub.f32 %v2565_v5, %v2566_v6  ;;  %v2579_v29 = vadd.f32 %v12305_v2, %v12291_v47  ;;  %v2590_v60 = vmul.f32 %v12305_v2, %v12305_v2  ;;  %v12313_v26 = vadd.f32 %v9538_v23, %v9537_v33  ;;  %v10437_v6 = vld [vmem:[%s14116_s1 + $0x4d0] sm:$0xff]   ;;  %9715 = vmatpush3.bf16.msra.mxu1 %v10434_v16  ;;  %v10447_v17 = vld [vmem:[%s14116_s1 + $0x468] sm:$0xff]  }
 0x44c   :  { %v2592_v10 = vmul.f32 %v12299_v38, %v12299_v38  ;;  %9716 = vmatprep.subr.bf16.mxu1 %v10437_v6 }
 0x44d   :  { %v2568_v4 = vmax.f32 %v2567_v53, 0.0  ;;  %v2580_v9 = vadd.f32 %v12289_v24, %v2579_v29  ;;  %v2593_v56 = vadd.f32 %v2590_v60, %v2589_v25 }
 0x44f   :  { %v2573_v63 = vadd.f32 1e-05, %v2568_v4  ;;  %v2581_v57 = vadd.f32 %v12299_v38, %v2580_v9  ;;  %v2594_v14 = vadd.f32 %v2593_v56, %v2591_v49  ;;  %v10436_v49 = vld [vmem:[%s14116_s1 + $0x410] sm:$0xff]  }
 0x450   :  { %v10438_v9 = vld [vmem:[%s14116_s1 + $0x490] sm:$0xff]  }
 0x451   :  { %10635 = vrsqrt.f32 %v2573_v63  ;;  %v2582_v37 = vrot.slane %v2581_v57, 4  ;;  %v2595_v36 = vadd.f32 %v2594_v14, %v2592_v10  ;;  %v9568_v20 = vpop.f32.mrb[40].mxu1  ;;  %9717 = vmatpush3.bf16.msra.mxu1 %v10438_v9 }
 0x452   :  { %v9569_v19 = vpop.f32.mrb[41].mxu1 }
 0x453   :  { %v2583_v51 = vadd.f32 %v2582_v37, %v2581_v57  ;;  %v2596_v13 = vrot.slane %v2595_v36, 4  ;;  %v9570_v43 = vadd.f32 %v9569_v19, %v9568_v20  ;;  %v9571_v39 = vpop.f32.mrb[42].mxu1  ;;  %v10441_v57 = vld [vmem:[%s14116_s1 + $0x4d8] sm:$0xff]  }
 0x454   :  { %v9540_v48 = vpop.f32.mrb[40].mxu0  ;;  %v9572_v62 = vpop.f32.mrb[43].mxu1  ;;  %9718 = vmatprep.subr.bf16.mxu1 %v10441_v57  ;;  %v10452_v57 = vld [vmem:[%s14116_s1 + $0x430] sm:$0xff]  }
 0x455   :  { %v2584_v1 = vrot.slane %v2583_v51, 2  ;;  %v2597_v50 = vadd.f32 %v2596_v13, %v2595_v36  ;;  %v9541_v12 = vpop.f32.mrb[41].mxu0  ;;  %v12341_v32 = vadd.f32 %v9570_v43, %v9530_v45  ;;  %v9573_v7 = vadd.f32 %v9572_v62, %v9571_v39  ;;  %v10435_v45 = vld [vmem:[%s14116_s1 + $0x450] sm:$0xff]   ;;  %9719 = vmatpush3.bf16.msra.mxu1 %v10442_v46 }
 0x456   :  { %v12349_v41 = vadd.f32 %v9541_v12, %v9540_v48  ;;  %v9543_v5 = vpop.f32.mrb[42].mxu0  ;;  %9676 = vmatprep.subr.bf16.mxu0 %v10435_v45  ;;  %v10444_v12 = vld [vmem:[%s14116_s1 + $0x420] sm:$0xff]   ;;  %9720 = vmatprep.subr.bf16.mxu1 %v10445_v3 }
 0x457   :  { %v2585_v33 = vadd.f32 %v2584_v1, %v2583_v51  ;;  %v2598_v25 = vrot.slane %v2597_v50, 2  ;;  %v9544_v23 = vpop.f32.mrb[43].mxu0  ;;  %v12358_v53 = vadd.f32 %v9573_v7, %v12285_v27  ;;  %v10439_v27 = vld [vmem:[%s14116_s1 + $0x458] sm:$0xff]   ;;  %9677 = vmatpush3.bf16.msra.mxu0 %v10436_v49  ;;  %v10446_v7 = vld [vmem:[%s14116_s1 + $0x4a0] sm:$0xff]  }
 0x458   :  { %v12360_v29 = vadd.f32 %v9544_v23, %v9543_v5  ;;  %9678 = vmatprep.subr.bf16.mxu0 %v10439_v27  ;;  %v10453_v27 = vld [vmem:[%s14116_s1 + $0x4f0] sm:$0xff]  }
 0x459   :  { %v2586_v60 = vrot.slane %v2585_v33, 1  ;;  %v2599_v4 = vadd.f32 %v2598_v25, %v2597_v50  ;;  %9721 = vmatpush3.bf16.msra.mxu1 %v10446_v7 }
 0x45b   :  { %v10636_v56 = vpop.eup %10635  ;;  %v2587_v63 = vadd.f32 %v2586_v60, %v2585_v33  ;;  %v2600_v10 = vrot.slane %v2599_v4, 1  ;;  %9679 = vmatpush3.bf16.msra.mxu0 %v10440_v35  ;;  %v10449_v33 = vld [vmem:[%s14116_s1 + $0x4e8] sm:$0xff]  }
 0x45c   :  { %v12377_v14 = vmul.f32 %v10636_v56, %v2569_v15  ;;  %v12382_v37 = vmul.f32 %v10636_v56, %v2570_v28  ;;  %v12387_v36 = vmul.f32 %v10636_v56, %v2571_v52  ;;  %v9546_v20 = vpop.f32.mrb[44].mxu0  ;;  %v12392_v19 = vmul.f32 %v10636_v56, %v2572_v59  ;;  %9680 = vmatprep.subr.bf16.mxu0 %v10443_v30 }
 0x45d   :  { %v12394_v34 = vmul.f32 0.03125, %v2587_v63  ;;  %v2601_v54 = vadd.f32 %v2600_v10, %v2599_v4  ;;  %v9547_v15 = vpop.f32.mrb[45].mxu0  ;;  %v9574_v61 = vpop.f32.mrb[44].mxu1  ;;  %v10448_v4 = vld [vmem:[%s14116_s1 + $0x428] sm:$0xff]   ;;  %9722 = vmatprep.subr.bf16.mxu1 %v10449_v33 }
 0x45e   :  { %v12399_v44 = vadd.f32 %v9547_v15, %v9546_v20  ;;  %v9549_v28 = vpop.f32.mrb[46].mxu0  ;;  %v9575_v52 = vpop.f32.mrb[45].mxu1  ;;  %v10454_v15 = vld [vmem:[%s14116_s1 + $0x4b0] sm:$0xff]  }
 0x45f   :  { %v2602_v59 = vmul.f32 0.03125, %v2601_v54  ;;  %v2603_v42 = vmul.f32 %v12394_v34, %v12394_v34  ;;  %v2606_v51 = vsub.f32 %v12291_v47, %v12394_v34  ;;  %v2607_v13 = vsub.f32 %v12305_v2, %v12394_v34  ;;  %v9550_v43 = vpop.f32.mrb[47].mxu0  ;;  %v9577_v39 = vpop.f32.mrb[46].mxu1  ;;  %9681 = vmatpush3.bf16.msra.mxu0 %v10444_v12 }
 0x460   :  { %v2608_v55 = vsub.f32 %v12289_v24, %v12394_v34  ;;  %v9578_v48 = vpop.f32.mrb[47].mxu1  ;;  %v12418_v21 = vadd.f32 %v9550_v43, %v9549_v28  ;;  %v9576_v1 = vadd.f32 %v9575_v52, %v9574_v61  ;;  %v2609_v16 = vsub.f32 %v12299_v38, %v12394_v34  ;;  %9682 = vmatprep.subr.bf16.mxu0 %v10447_v17  ;;  %v10457_v28 = vld [vmem:[%s14116_s1 + $0x4f8] sm:$0xff]  }
 0x461   :  { %v2604_v62 = vsub.f32 %v2602_v59, %v2603_v42  ;;  %v9579_v50 = vadd.f32 %v9578_v48, %v9577_v39  ;;  %v10456_v59 = vld [vmem:[%s14116_s1 + $0x438] sm:$0xff]   ;;  %v12474_v39 = vld [vmem:[%s14116_s1 + $0x500] sm:$0xff]  }
 0x462   :  { %v3964_v45 = vadd.f32 %v9576_v1, %v12307_v8  ;;  %v10450_v8 = vld [vmem:[%s14116_s1 + $0x4a8] sm:$0xff]   ;;  %v10458_v43 = vld [vmem:[%s14116_s1 + $0x4b8] sm:$0xff]  }
 0x463   :  { %v2605_v5 = vmax.f32 %v2604_v62, 0.0  ;;  %v3967_v6 = vadd.f32 %v9579_v50, %v12313_v26  ;;  %v10451_v26 = vld [vmem:[%s14116_s1 + $0x470] sm:$0xff]   ;;  %9683 = vmatpush3.bf16.msra.mxu0 %v10448_v4  ;;  %9723 = vmatpush3.bf16.msra.mxu1 %v10450_v8 }
 0x464   :  { %v9608_v25 = vpop.f32.mrb[48].mxu0  ;;  %9684 = vmatprep.subr.bf16.mxu0 %v10451_v26  ;;  %9724 = vmatprep.subr.bf16.mxu1 %v10453_v27 }
 0x465   :  { %v2610_v23 = vadd.f32 1e-05, %v2605_v5  ;;  %v9609_v60 = vpop.f32.mrb[49].mxu0 }
 0x466   :  { %v9610_v49 = vadd.f32 %v9609_v60, %v9608_v25  ;;  %v9611_v38 = vpop.f32.mrb[50].mxu0 }
 0x467   :  { %10637 = vrsqrt.f32 %v2610_v23  ;;  %v9612_v9 = vpop.f32.mrb[51].mxu0  ;;  %9685 = vmatpush3.bf16.msra.mxu0 %v10452_v57  ;;  %9725 = vmatpush3.bf16.msra.mxu1 %v10454_v15 }
 0x468   :  { %v12449_v56 = vadd.f32 %v9610_v49, %v12341_v32  ;;  %v9613_v63 = vadd.f32 %v9612_v9, %v9611_v38  ;;  %v10455_v32 = vld [vmem:[%s14116_s1 + $0x478] sm:$0xff]   ;;  %9726 = vmatprep.subr.bf16.mxu1 %v10457_v28 }
 0x469   :  { %v9580_v10 = vpop.f32.mrb[48].mxu1  ;;  %9686 = vmatprep.subr.bf16.mxu0 %v10455_v32 }
 0x46a   :  { %v9581_v20 = vpop.f32.mrb[49].mxu1  ;;  %v4024_v54 = vadd.f32 %v9613_v63, %v12358_v53 }
 0x46b   :  { %v9582_v61 = vadd.f32 %v9581_v20, %v9580_v10  ;;  %v9583_v35 = vpop.f32.mrb[50].mxu1  ;;  %9687 = vmatpush3.bf16.msra.mxu0 %v10456_v59  ;;  %9727 = vmatpush3.bf16.msra.mxu1 %v10458_v43 }
 0x46c   :  { %v9584_v52 = vpop.f32.mrb[51].mxu1  ;;  %10192 = vmatprep.subr.bf16.mxu0 %v12474_v39 }
 0x46d   :  { %v3972_v53 = vadd.f32 %v9582_v61, %v12349_v41  ;;  %v9585_v46 = vadd.f32 %v9584_v52, %v9583_v35  ;;  %v9614_v30 = vpop.f32.mrb[52].mxu0 }
 0x46e   :  { %v9615_v42 = vpop.f32.mrb[53].mxu0 }
 0x46f   :  { %v3975_v41 = vadd.f32 %v9585_v46, %v12360_v29  ;;  %v9616_v3 = vadd.f32 %v9615_v42, %v9614_v30  ;;  %v9617_v48 = vpop.f32.mrb[54].mxu0 }
 0x470   :  { %v9618_v62 = vpop.f32.mrb[55].mxu0 }
 0x471   :  { %v10638_v1 = vpop.eup %10637  ;;  %v4029_v50 = vadd.f32 %v9616_v3, %v3964_v45  ;;  %v9619_v12 = vadd.f32 %v9618_v62, %v9617_v48 }
 0x472   :  { %v12480_v7 = vmul.f32 %v10638_v1, %v2606_v51  ;;  %v12485_v17 = vmul.f32 %v10638_v1, %v2607_v13  ;;  %v12490_v29 = vmul.f32 %v10638_v1, %v2608_v55  ;;  %v12493_v45 = vmul.f32 %v10638_v1, %v2609_v16 }
 0x473   :  { %v4032_v5 = vadd.f32 %v9619_v12, %v3967_v6 }
 0x474   :  { %v9586_v33 = vpop.f32.mrb[52].mxu1 }
 0x475   :  { %v9587_v47 = vpop.f32.mrb[53].mxu1 }
 0x476   :  { %v9588_v51 = vadd.f32 %v9587_v47, %v9586_v33  ;;  %v9589_v25 = vpop.f32.mrb[54].mxu1 }
 0x477   :  { %v9590_v23 = vpop.f32.mrb[55].mxu1 }
 0x478   :  { %v3980_v2 = vadd.f32 %v9588_v51, %v12399_v44  ;;  %v9591_v13 = vadd.f32 %v9590_v23, %v9589_v25 }
 0x47a   :  { %v3983_v60 = vadd.f32 %v9591_v13, %v12418_v21 }
 0x47c   :  { %v9620_v4 = vpop.f32.mrb[56].mxu0 }
 0x47d   :  { %v9621_v24 = vpop.f32.mrb[57].mxu0 }
 0x47e   :  { %v9622_v34 = vadd.f32 %v9621_v24, %v9620_v4  ;;  %v9623_v55 = vpop.f32.mrb[58].mxu0 }
 0x47f   :  { %v9624_v49 = vpop.f32.mrb[59].mxu0 }
 0x480   :  { %v4037_v38 = vadd.f32 %v9622_v34, %v3972_v53  ;;  %v9625_v8 = vadd.f32 %v9624_v49, %v9623_v55 }
 0x482   :  { %v4040_v6 = vadd.f32 %v9625_v8, %v3975_v41 }
 0x483   :  { %v9648_v16 = vpop.f32.mrb[56].mxu1 }
 0x484   :  { %v9649_v26 = vpop.f32.mrb[57].mxu1 }
 0x485   :  { %v9650_v9 = vadd.f32 %v9649_v26, %v9648_v16  ;;  %v9651_v27 = vpop.f32.mrb[58].mxu1 }
 0x486   :  { %v9652_v63 = vpop.f32.mrb[59].mxu1 }
 0x487   :  { %v12498_v10 = vadd.f32 %v9650_v9, %v12449_v56  ;;  %v9653_v44 = vadd.f32 %v9652_v63, %v9651_v27 }
 0x488   :  { %v9626_v57 = vpop.f32.mrb[60].mxu0 }
 0x489   :  { %v12500_v20 = vadd.f32 %v9653_v44, %v4024_v54  ;;  %v9627_v21 = vpop.f32.mrb[61].mxu0  ;;  %v4128_v61 = vmul.f32 %v12498_v10, %v12498_v10 }
 0x48a   :  { %v9628_v15 = vadd.f32 %v9627_v21, %v9626_v57  ;;  %v9629_v32 = vpop.f32.mrb[62].mxu0 }
 0x48b   :  { %v4118_v35 = vadd.f32 %v12500_v20, %v12498_v10  ;;  %v4129_v28 = vmul.f32 %v12500_v20, %v12500_v20  ;;  %v9630_v52 = vpop.f32.mrb[63].mxu0 }
 0x48c   :  { %v4045_v53 = vadd.f32 %v9628_v15, %v3980_v2  ;;  %v9631_v56 = vadd.f32 %v9630_v52, %v9629_v32 }
 0x48d   :  { %v4132_v46 = vadd.f32 %v4129_v28, %v4128_v61  ;;  %v9654_v30 = vpop.f32.mrb[60].mxu1 }
 0x48e   :  { %v4048_v59 = vadd.f32 %v9631_v56, %v3983_v60  ;;  %v9655_v54 = vpop.f32.mrb[61].mxu1 }
 0x48f   :  { %v9656_v42 = vadd.f32 %v9655_v54, %v9654_v30  ;;  %v9657_v43 = vpop.f32.mrb[62].mxu1 }
 0x490   :  { %v9658_v41 = vpop.f32.mrb[63].mxu1 }
 0x491   :  { %v12508_v3 = vadd.f32 %v9656_v42, %v4029_v50  ;;  %v9659_v48 = vadd.f32 %v9658_v41, %v9657_v43 }
 0x493   :  { %v4119_v62 = vadd.f32 %v4118_v35, %v12508_v3  ;;  %v4130_v1 = vmul.f32 %v12508_v3, %v12508_v3  ;;  %v12513_v12 = vadd.f32 %v9659_v48, %v4032_v5 }
 0x495   :  { %v4133_v33 = vadd.f32 %v4132_v46, %v4130_v1  ;;  %v4120_v47 = vadd.f32 %v4119_v62, %v12513_v12  ;;  %v4131_v51 = vmul.f32 %v12513_v12, %v12513_v12  ;;  %v9660_v25 = vpop.f32.mrb[64].mxu1 }
 0x496   :  { %v9661_v23 = vpop.f32.mrb[65].mxu1 }
 0x497   :  { %v4121_v2 = vrot.slane %v4120_v47, 4  ;;  %v4134_v13 = vadd.f32 %v4133_v33, %v4131_v51  ;;  %v9662_v50 = vadd.f32 %v9661_v23, %v9660_v25  ;;  %v9663_v60 = vpop.f32.mrb[66].mxu1 }
 0x498   :  { %v9664_v4 = vpop.f32.mrb[67].mxu1 }
 0x499   :  { %v4122_v24 = vadd.f32 %v4121_v2, %v4120_v47  ;;  %v4135_v34 = vrot.slane %v4134_v13, 4  ;;  %v12518_v55 = vadd.f32 %v9662_v50, %v4037_v38  ;;  %v9665_v49 = vadd.f32 %v9664_v4, %v9663_v60 }
 0x49b   :  { %v4123_v5 = vrot.slane %v4122_v24, 2  ;;  %v4136_v8 = vadd.f32 %v4135_v34, %v4134_v13  ;;  %v12520_v16 = vadd.f32 %v9665_v49, %v4040_v6  ;;  %v4165_v26 = vmul.f32 %v12518_v55, %v12518_v55 }
 0x49d   :  { %v4124_v9 = vadd.f32 %v4123_v5, %v4122_v24  ;;  %v4137_v27 = vrot.slane %v4136_v8, 2  ;;  %v4155_v63 = vadd.f32 %v12520_v16, %v12518_v55  ;;  %v4166_v44 = vmul.f32 %v12520_v16, %v12520_v16  ;;  %v9666_v57 = vpop.f32.mrb[68].mxu1 }
 0x49e   :  { %v9667_v21 = vpop.f32.mrb[69].mxu1 }
 0x49f   :  { %v4125_v38 = vrot.slane %v4124_v9, 1  ;;  %v4138_v15 = vadd.f32 %v4137_v27, %v4136_v8  ;;  %v4169_v32 = vadd.f32 %v4166_v44, %v4165_v26  ;;  %v9668_v61 = vadd.f32 %v9667_v21, %v9666_v57  ;;  %v9669_v35 = vpop.f32.mrb[70].mxu1 }
 0x4a0   :  { %v9670_v6 = vpop.f32.mrb[71].mxu1 }
 0x4a1   :  { %v4126_v28 = vadd.f32 %v4125_v38, %v4124_v9  ;;  %v4139_v52 = vrot.slane %v4138_v15, 1  ;;  %v12528_v56 = vadd.f32 %v9668_v61, %v4045_v53  ;;  %v9671_v46 = vadd.f32 %v9670_v6, %v9669_v35  ;;  %v12555_v38 = vld [vmem:[%s14115_s2 + $0x11] ss:$0 sm:$0xff] }
 0x4a3   :  { %v4127_v30 = vmul.f32 0.03125, %v4126_v28  ;;  %v4140_v54 = vadd.f32 %v4139_v52, %v4138_v15  ;;  %v4156_v42 = vadd.f32 %v4155_v63, %v12528_v56  ;;  %v4167_v43 = vmul.f32 %v12528_v56, %v12528_v56  ;;  %v12562_v52 = vld [vmem:[%s14115_s2 + $0x12] ss:$0 sm:$0xff] }
 0x4a4   :  { %v12533_v41 = vadd.f32 %v9671_v46, %v4048_v59 }
 0x4a5   :  { %v4141_v48 = vmul.f32 0.03125, %v4140_v54  ;;  %v4142_v62 = vmul.f32 %v4127_v30, %v4127_v30  ;;  %v4145_v1 = vsub.f32 %v12498_v10, %v4127_v30  ;;  %v4146_v33 = vsub.f32 %v12500_v20, %v4127_v30 }
 0x4a6   :  { %v4147_v47 = vsub.f32 %v12508_v3, %v4127_v30  ;;  %v4148_v53 = vsub.f32 %v12513_v12, %v4127_v30  ;;  %v4170_v51 = vadd.f32 %v4169_v32, %v4167_v43  ;;  %v4157_v25 = vadd.f32 %v4156_v42, %v12533_v41 }
 0x4a7   :  { %v4143_v23 = vsub.f32 %v4141_v48, %v4142_v62  ;;  %v4168_v2 = vmul.f32 %v12533_v41, %v12533_v41 }
 0x4a8   :  { %v4158_v13 = vrot.slane %v4157_v25, 4 }
 0x4a9   :  { %v4144_v59 = vmax.f32 %v4143_v23, 0.0  ;;  %v4171_v50 = vadd.f32 %v4170_v51, %v4168_v2 }
 0x4aa   :  { %v4159_v60 = vadd.f32 %v4158_v13, %v4157_v25 }
 0x4ab   :  { %v4149_v4 = vadd.f32 1e-05, %v4144_v59  ;;  %v4172_v24 = vrot.slane %v4171_v50, 4 }
 0x4ac   :  { %v4160_v10 = vrot.slane %v4159_v60, 2 }
 0x4ad   :  { %10639 = vrsqrt.f32 %v4149_v4  ;;  %v4173_v20 = vadd.f32 %v4172_v24, %v4171_v50 }
 0x4ae   :  { %v4161_v34 = vadd.f32 %v4160_v10, %v4159_v60 }
 0x4af   :  { %v4174_v3 = vrot.slane %v4173_v20, 2 }
 0x4b0   :  { %v4162_v49 = vrot.slane %v4161_v34, 1 }
 0x4b1   :  { %v4175_v12 = vadd.f32 %v4174_v3, %v4173_v20 }
 0x4b2   :  { %v4163_v5 = vadd.f32 %v4162_v49, %v4161_v34 }
 0x4b3   :  { %v4176_v8 = vrot.slane %v4175_v12, 1 }
 0x4b4   :  { %v12542_v26 = vmul.f32 0.03125, %v4163_v5 }
 0x4b5   :  { %v4177_v9 = vadd.f32 %v4176_v8, %v4175_v12 }
 0x4b6   :  { %v4179_v27 = vmul.f32 %v12542_v26, %v12542_v26  ;;  %v4182_v63 = vsub.f32 %v12518_v55, %v12542_v26  ;;  %v4183_v44 = vsub.f32 %v12520_v16, %v12542_v26  ;;  %v4184_v57 = vsub.f32 %v12528_v56, %v12542_v26 }
 0x4b7   :  { %v10640_v21 = vpop.eup %10639  ;;  %v4178_v15 = vmul.f32 0.03125, %v4177_v9  ;;  %v4185_v32 = vsub.f32 %v12533_v41, %v12542_v26 }
 0x4b8   :  { %v4153_v61 = vmul.f32 %v10640_v21, %v4147_v47  ;;  %v4154_v35 = vmul.f32 %v10640_v21, %v4148_v53  ;;  %v4151_v6 = vmul.f32 %v10640_v21, %v4145_v1  ;;  %v4152_v28 = vmul.f32 %v10640_v21, %v4146_v33 }
 0x4b9   :  { %v4180_v56 = vsub.f32 %v4178_v15, %v4179_v27 }
 0x4ba   :  { %v4198_v46 = vmul.f32 %v12555_v38, %v4153_v61  ;;  %v4199_v30 = vmul.f32 %v12555_v38, %v4154_v35  ;;  %v4196_v54 = vmul.f32 %v12555_v38, %v4151_v6  ;;  %v4197_v42 = vmul.f32 %v12555_v38, %v4152_v28 }
 0x4bb   :  { %v4181_v43 = vmax.f32 %v4180_v56, 0.0 }
 0x4bc   :  { %v4210_v41 = vadd.f32 %v12562_v52, %v4198_v46  ;;  %v4211_v48 = vadd.f32 %v12562_v52, %v4199_v30  ;;  %v4208_v62 = vadd.f32 %v12562_v52, %v4196_v54  ;;  %v4209_v1 = vadd.f32 %v12562_v52, %v4197_v42 }
 0x4bd   :  { %v4186_v33 = vadd.f32 1e-05, %v4181_v43 }
 0x4be   :  { %v4218_v47 = vmax.f32 %v4210_v41, 0.0  ;;  %v4219_v53 = vmax.f32 %v4211_v48, 0.0  ;;  %v4216_v51 = vmax.f32 %v4208_v62, 0.0  ;;  %v4217_v25 = vmax.f32 %v4209_v1, 0.0 }
 0x4bf   :  { %10641 = vrsqrt.f32 %v4186_v33 }
 0x4c0   :  { %v12572_v23 = vpack.c.bf16 %v4219_v53, %v4218_v47  ;;  %v12574_v2 = vpack.c.bf16 %v4217_v25, %v4216_v51  ;;  %v10460_v47 = vld [vmem:[%s14116_s1 + $0x508] sm:$0xff]  }
 0x4c2   :  { %v4239_v13 = vshll.u32 %v12574_v2, 16  ;;  %v4243_v59 = vshrl.u32 %v12574_v2, 16  ;;  %v4267_v50 = vshll.u32 %v12572_v23, 16  ;;  %v4271_v60 = vshrl.u32 %v12572_v23, 16 }
 0x4c3   :  { %v4346_v5 = vrot.slane %v12574_v2, 7 }
 0x4c4   :  { %v4241_v4 = vrot.slane %v4239_v13, 1  ;;  %v4248_v24 = vrot.slane %v4243_v59, 1  ;;  %v4249_v10 = vrot.slane %v4239_v13, 2  ;;  %v4269_v20 = vrot.slane %v4267_v50, 1 }
 0x4c5   :  { %v4276_v34 = vrot.slane %v4271_v60, 1  ;;  %v4277_v3 = vrot.slane %v4267_v50, 2  ;;  %v4347_v1 = vsel %vm397_vm6, %v11443_v0, %v4346_v5 }
 0x4c6   :  { %v4242_v49 = vsel %vm931_vm7, 0, %v4241_v4  ;;  %v4245_v12 = vor.u32 %v4243_v59, %v4241_v4  ;;  %v4250_v8 = vor.u32 %v4249_v10, %v4248_v24  ;;  %v4270_v27 = vsel %vm931_vm7, 0, %v4269_v20  ;;  %v10461_v59 = vld [vmem:[%s14116_s1 + $0x510] sm:$0xff]  }
 0x4c7   :  { %v4348_v9 = vrot.slane %v4242_v49, 7  ;;  %v4273_v21 = vor.u32 %v4271_v60, %v4269_v20  ;;  %v4278_v15 = vor.u32 %v4277_v3, %v4276_v34  ;;  %v4368_v28 = vrot.slane %v4270_v27, 7  ;;  %v10462_v34 = vld [vmem:[%s14116_s1 + $0x518] sm:$0xff]  }
 0x4c8   :  { %v4349_v61 = vrot.slane %v4245_v12, 7  ;;  %v4255_v35 = vsel %vm945_vm8, %v4250_v8, %v11414_v31  ;;  %v4353_v6 = vrot.slane %v4250_v8, 7 }
 0x4c9   :  { %v10642_v56 = vpop.eup %10641  ;;  %v4354_v46 = vrot.slane %v4255_v35, 7  ;;  %v4369_v30 = vrot.slane %v4273_v21, 7  ;;  %v4283_v54 = vsel %vm945_vm8, %v4278_v15, %v11414_v31  ;;  %v4373_v42 = vrot.slane %v4278_v15, 7  ;;  %v10463_v35 = vld [vmem:[%s14116_s1 + $0x520] sm:$0xff]  }
 0x4ca   :  { %v4190_v43 = vmul.f32 %v10642_v56, %v4184_v57  ;;  %v4191_v41 = vmul.f32 %v10642_v56, %v4185_v32  ;;  %v4350_v48 = vsel %vm397_vm6, %v4348_v9, %v4349_v61  ;;  %v4374_v62 = vrot.slane %v4283_v54, 7 }
 0x4cb   :  { %4776 = vmatprep.mubr.bf16.mxu0 %v4350_v48  ;;  %v4355_v33 = vsel %vm397_vm6, %v4353_v6, %v4354_v46  ;;  %v4188_v53 = vmul.f32 %v10642_v56, %v4182_v63  ;;  %v4189_v57 = vmul.f32 %v10642_v56, %v4183_v44  ;;  %v4370_v25 = vsel %vm397_vm6, %v4368_v28, %v4369_v30 }
 0x4cc   :  { %v4202_v32 = vmul.f32 %v12555_v38, %v4190_v43  ;;  %v4203_v51 = vmul.f32 %v12555_v38, %v4191_v41  ;;  %4777 = vmatmul.mubr.bf16.vlgmr.msra.gmra.mrb[64].mxu0 %v4347_v1  ;;  %4841 = vmatprep.mubr.bf16.mxu1 %v4355_v33  ;;  %v4375_v13 = vsel %vm397_vm6, %v4373_v42, %v4374_v62  ;;  %v4366_v44 = vrot.slane %v12572_v23, 7 }
 0x4cd   :  { %4784 = vmatprep.mubr.bf16.mxu0 %v4370_v25  ;;  %4842 = vmatmul.mubr.bf16.vlgmr.msra.gmra.mrb[72].mxu1 %v12574_v2  ;;  %v4200_v55 = vmul.f32 %v12555_v38, %v4188_v53  ;;  %v4201_v63 = vmul.f32 %v12555_v38, %v4189_v57 }
 0x4ce   :  { %v4214_v16 = vadd.f32 %v12562_v52, %v4202_v32  ;;  %v4215_v26 = vadd.f32 %v12562_v52, %v4203_v51  ;;  %10193 = vmatpush3.bf16.msra.mxu0 %v12474_v39  ;;  %4849 = vmatprep.mubr.bf16.mxu1 %v4375_v13  ;;  %v4367_v39 = vsel %vm397_vm6, %v11443_v0, %v4366_v44  ;;  %v4257_v51 = vrot.slane %v12574_v2, 2  ;;  %v10464_v13 = vld [vmem:[%s14116_s1 + $0x528] sm:$0xff]   ;;  %v10465_v2 = vld [vmem:[%s14116_s1 + $0x530] sm:$0xff]  }
 0x4cf   :  { %10194 = vmatprep.subr.bf16.mxu0 %v10460_v47  ;;  %v4212_v50 = vadd.f32 %v12562_v52, %v4200_v55  ;;  %v4213_v60 = vadd.f32 %v12562_v52, %v4201_v63 }
 0x4d0   :  { %v4222_v4 = vmax.f32 %v4214_v16, 0.0  ;;  %v4223_v38 = vmax.f32 %v4215_v26, 0.0  ;;  %v4259_v44 = vsel %vm286_vm1, %v4257_v51, %v11414_v31 }
 0x4d1   :  { %v4220_v24 = vmax.f32 %v4212_v50, 0.0  ;;  %v4221_v10 = vmax.f32 %v4213_v60, 0.0  ;;  %v4356_v50 = vrot.slane %v4257_v51, 7  ;;  %v4357_v60 = vrot.slane %v4259_v44, 7  ;;  %v10486_v51 = vld [vmem:[%s14116_s1 + $0x5b0] sm:$0xff]  }
 0x4d2   :  { %v12616_v20 = vpack.c.bf16 %v4223_v38, %v4222_v4  ;;  %10195 = vmatpush3.bf16.msra.mxu0 %v10460_v47  ;;  %v10466_v4 = vld [vmem:[%s14116_s1 + $0x538] sm:$0xff]   ;;  %v4285_v38 = vrot.slane %v12572_v23, 2 }
 0x4d3   :  { %10196 = vmatprep.subr.bf16.mxu0 %v10461_v59  ;;  %v12623_v3 = vpack.c.bf16 %v4221_v10, %v4220_v24 }
 0x4d4   :  { %4785 = vmatmul.mubr.bf16.gmra.mrb[68].mxu0 %v4367_v39  ;;  %v4323_v52 = vshll.u32 %v12616_v20, 16  ;;  %v4327_v49 = vshrl.u32 %v12616_v20, 16  ;;  %v4358_v39 = vsel %vm397_vm6, %v4356_v50, %v4357_v60 }
 0x4d5   :  { %4850 = vmatmul.mubr.bf16.gmra.mrb[76].mxu1 %v12572_v23  ;;  %v4295_v12 = vshll.u32 %v12623_v3, 16  ;;  %v4299_v5 = vshrl.u32 %v12623_v3, 16  ;;  %v4386_v43 = vrot.slane %v12623_v3, 7  ;;  %v4313_v24 = vrot.slane %v12623_v3, 2 }
 0x4d6   :  { %10197 = vmatpush3.bf16.msra.mxu0 %v10461_v59  ;;  %v4325_v8 = vrot.slane %v4323_v52, 1  ;;  %v4332_v9 = vrot.slane %v4327_v49, 1  ;;  %v4333_v27 = vrot.slane %v4323_v52, 2  ;;  %v4406_v59 = vrot.slane %v12616_v20, 7 }
 0x4d7   :  { %10198 = vmatprep.subr.bf16.mxu0 %v10462_v34  ;;  %v4297_v21 = vrot.slane %v4295_v12, 1  ;;  %v4304_v15 = vrot.slane %v4299_v5, 1  ;;  %v4305_v61 = vrot.slane %v4295_v12, 2  ;;  %v4387_v55 = vsel %vm397_vm6, %v11443_v0, %v4386_v43  ;;  %v10476_v43 = vld [vmem:[%s14116_s1 + $0x5d8] sm:$0xff]  }
 0x4d8   :  { %v4326_v6 = vsel %vm931_vm7, 0, %v4325_v8  ;;  %v4329_v28 = vor.u32 %v4327_v49, %v4325_v8  ;;  %v4334_v56 = vor.u32 %v4333_v27, %v4332_v9  ;;  %v4407_v10 = vsel %vm397_vm6, %v11443_v0, %v4406_v59 }
 0x4d9   :  { %v4298_v46 = vsel %vm931_vm7, 0, %v4297_v21  ;;  %v4301_v30 = vor.u32 %v4299_v5, %v4297_v21  ;;  %v4306_v54 = vor.u32 %v4305_v61, %v4304_v15  ;;  %v4408_v41 = vrot.slane %v4326_v6, 7  ;;  %v10469_v6 = vld [vmem:[%s14116_s1 + $0x540] sm:$0xff]  }
 0x4da   :  { %10199 = vmatpush3.bf16.msra.mxu0 %v10462_v34  ;;  %v4388_v42 = vrot.slane %v4298_v46, 7  ;;  %v4339_v48 = vsel %vm945_vm8, %v4334_v56, %v11414_v31  ;;  %v4409_v47 = vrot.slane %v4329_v28, 7  ;;  %v4413_v57 = vrot.slane %v4334_v56, 7  ;;  %v10470_v28 = vld [vmem:[%s14116_s1 + $0x5c8] sm:$0xff]  }
 0x4db   :  { %v4389_v62 = vrot.slane %v4301_v30, 7  ;;  %v4311_v1 = vsel %vm945_vm8, %v4306_v54, %v11414_v31  ;;  %v4393_v33 = vrot.slane %v4306_v54, 7  ;;  %10200 = vmatprep.subr.bf16.mxu0 %v10463_v35  ;;  %v4414_v32 = vrot.slane %v4339_v48, 7  ;;  %v10471_v56 = vld [vmem:[%s14116_s1 + $0x588] sm:$0xff]   ;;  %v10473_v30 = vld [vmem:[%s14116_s1 + $0x5d0] sm:$0xff]   ;;  %v10478_v48 = vld [vmem:[%s14116_s1 + $0x558] sm:$0xff]  }
 0x4dc   :  { %v4394_v53 = vrot.slane %v4311_v1, 7  ;;  %v4410_v16 = vsel %vm397_vm6, %v4408_v41, %v4409_v47  ;;  %v4287_v34 = vsel %vm286_vm1, %v4285_v38, %v11414_v31  ;;  %v4315_v52 = vsel %vm286_vm1, %v4313_v24, %v11414_v31  ;;  %v10472_v46 = vld [vmem:[%s14116_s1 + $0x548] sm:$0xff]   ;;  %v10474_v54 = vld [vmem:[%s14116_s1 + $0x590] sm:$0xff]   ;;  %v10477_v41 = vld [vmem:[%s14116_s1 + $0x598] sm:$0xff]  }
 0x4dd   :  { %v4390_v25 = vsel %vm397_vm6, %v4388_v42, %v4389_v62  ;;  %v4415_v26 = vsel %vm397_vm6, %v4413_v57, %v4414_v32  ;;  %v4376_v23 = vrot.slane %v4285_v38, 7  ;;  %v4396_v49 = vrot.slane %v4313_v24, 7  ;;  %v10475_v42 = vld [vmem:[%s14116_s1 + $0x550] sm:$0xff]   ;;  %v10479_v62 = vld [vmem:[%s14116_s1 + $0x5e0] sm:$0xff]   ;;  %v10482_v47 = vld [vmem:[%s14116_s1 + $0x5e8] sm:$0xff]  }
 0x4de   :  { %4792 = vmatprep.mubr.bf16.mxu0 %v4390_v25  ;;  %v4395_v63 = vsel %vm397_vm6, %v4393_v33, %v4394_v53  ;;  %10201 = vmatpush3.bf16.msra.mxu0 %v10463_v35  ;;  %v4397_v12 = vrot.slane %v4315_v52, 7  ;;  %v4341_v5 = vrot.slane %v12616_v20, 2  ;;  %v10467_v35 = vld [vmem:[%s14116_s1 + $0x5c0] sm:$0xff]   ;;  %v10483_v53 = vld [vmem:[%s14116_s1 + $0x5a8] sm:$0xff]   ;;  %v10485_v32 = vld [vmem:[%s14116_s1 + $0x5f0] sm:$0xff]  }
 0x4df   :  { %4793 = vmatmul.mubr.bf16.gmra.mrb[72].mxu0 %v4387_v55  ;;  %4857 = vmatprep.mubr.bf16.mxu1 %v4395_v63  ;;  %v10480_v1 = vld [vmem:[%s14116_s1 + $0x5a0] sm:$0xff]   ;;  %v10484_v57 = vld [vmem:[%s14116_s1 + $0x568] sm:$0xff]   ;;  %v10487_v25 = vld [vmem:[%s14116_s1 + $0x570] sm:$0xff]  }
 0x4e0   :  { %4800 = vmatprep.mubr.bf16.mxu0 %v4410_v16  ;;  %4858 = vmatmul.mubr.bf16.gmra.mrb[80].mxu1 %v12623_v3  ;;  %v4377_v3 = vrot.slane %v4287_v34, 7  ;;  %v4398_v9 = vsel %vm397_vm6, %v4396_v49, %v4397_v12  ;;  %v4343_v27 = vsel %vm286_vm1, %v4341_v5, %v11414_v31  ;;  %v4416_v21 = vrot.slane %v4341_v5, 7  ;;  %v10481_v33 = vld [vmem:[%s14116_s1 + $0x560] sm:$0xff]   ;;  %v10489_v55 = vld [vmem:[%s14116_s1 + $0x5b8] sm:$0xff]  }
 0x4e1   :  { %4865 = vmatprep.mubr.bf16.mxu1 %v4415_v26  ;;  %10202 = vmatprep.subr.bf16.mxu0 %v10464_v13  ;;  %v4417_v15 = vrot.slane %v4343_v27, 7  ;;  %v10490_v63 = vld [vmem:[%s14116_s1 + $0x578] sm:$0xff]  }
 0x4e2   :  { %10203 = vmatpush3.bf16.msra.mxu0 %v10464_v13  ;;  %v4378_v8 = vsel %vm397_vm6, %v4376_v23, %v4377_v3  ;;  %v10488_v13 = vld [vmem:[%s14116_s1 + $0x5f8] sm:$0xff]  }
 0x4e3   :  { %10204 = vmatprep.subr.bf16.mxu0 %v10465_v2  ;;  %v4418_v61 = vsel %vm397_vm6, %v4416_v21, %v4417_v15 }
 0x4e6   :  { %10205 = vmatpush3.bf16.msra.mxu0 %v10465_v2 }
 0x4e7   :  { %4801 = vmatmul.mubr.bf16.gmra.mrb[76].mxu0 %v4407_v10  ;;  %10206 = vmatprep.subr.bf16.mxu0 %v10466_v4 }
 0x4e8   :  { %4866 = vmatmul.mubr.bf16.gmra.mrb[84].mxu1 %v12616_v20  ;;  %10208 = vmatprep.mubr.bf16.mxu0 %v4358_v39  ;;  %v10468_v20 = vld [vmem:[%s14116_s1 + $0x580] sm:$0xff]  }
 0x4e9   :  { %9764 = vmatprep.subr.bf16.mxu1 %v10468_v20 }
 0x4ea   :  { %10207 = vmatpush3.bf16.msra.mxu0 %v10466_v4  ;;  %9765 = vmatpush3.bf16.msra.mxu1 %v10469_v6 }
 0x4eb   :  { %10216 = vmatprep.subr.bf16.mxu0 %v10467_v35  ;;  %9766 = vmatprep.subr.bf16.mxu1 %v10471_v56 }
 0x4ee   :  { %9767 = vmatpush3.bf16.msra.mxu1 %v10472_v46 }
 0x4ef   :  { %10209 = vmatmul.mubr.bf16.vlgmr.msra.gmra.mrb[80].mxu0 %v4378_v8  ;;  %9768 = vmatprep.subr.bf16.mxu1 %v10474_v54 }
 0x4f0   :  { %10212 = vmatprep.mubr.bf16.mxu0 %v4398_v9  ;;  %10217 = vmatpush3.bf16.msra.mxu0 %v10467_v35 }
 0x4f1   :  { %10218 = vmatprep.subr.bf16.mxu0 %v10470_v28 }
 0x4f2   :  { %9769 = vmatpush3.bf16.msra.mxu1 %v10475_v42 }
 0x4f3   :  { %9770 = vmatprep.subr.bf16.mxu1 %v10477_v41 }
 0x4f4   :  { %10219 = vmatpush3.bf16.msra.mxu0 %v10470_v28 }
 0x4f5   :  { %10220 = vmatprep.subr.bf16.mxu0 %v10473_v30 }
 0x4f6   :  { %9771 = vmatpush3.bf16.msra.mxu1 %v10478_v48 }
 0x4f7   :  { %10213 = vmatmul.mubr.bf16.gmra.mrb[84].mxu0 %v4418_v61  ;;  %9772 = vmatprep.subr.bf16.mxu1 %v10480_v1 }
 0x4f8   :  { %10221 = vmatpush3.bf16.msra.mxu0 %v10473_v30 }
 0x4f9   :  { %10222 = vmatprep.subr.bf16.mxu0 %v10476_v43 }
 0x4fa   :  { %9773 = vmatpush3.bf16.msra.mxu1 %v10481_v33 }
 0x4fb   :  { %9774 = vmatprep.subr.bf16.mxu1 %v10483_v53 }
 0x4fc   :  { %10223 = vmatpush3.bf16.msra.mxu0 %v10476_v43 }
 0x4fd   :  { %10224 = vmatprep.subr.bf16.mxu0 %v10479_v62 }
 0x4fe   :  { %9775 = vmatpush3.bf16.msra.mxu1 %v10484_v57 }
 0x4ff   :  { %9776 = vmatprep.subr.bf16.mxu1 %v10486_v51 }
 0x500   :  { %10225 = vmatpush3.bf16.msra.mxu0 %v10479_v62 }
 0x501   :  { %10226 = vmatprep.subr.bf16.mxu0 %v10482_v47 }
 0x502   :  { %9777 = vmatpush3.bf16.msra.mxu1 %v10487_v25 }
 0x503   :  { %9778 = vmatprep.subr.bf16.mxu1 %v10489_v55 }
 0x504   :  { %10227 = vmatpush3.bf16.msra.mxu0 %v10482_v47 }
 0x505   :  { %10228 = vmatprep.subr.bf16.mxu0 %v10485_v32 }
 0x506   :  { %9779 = vmatpush3.bf16.msra.mxu1 %v10490_v63 }
 0x508   :  { %10229 = vmatpush3.bf16.msra.mxu0 %v10485_v32 }
 0x509   :  { %10230 = vmatprep.subr.bf16.mxu0 %v10488_v13 }
 0x50c   :  { %10231 = vmatpush3.bf16.msra.mxu0 %v10488_v13 }
 0x59f   :  { %v9688_v16 = vpop.f32.mrb[64].mxu0 }
 0x5a0   :  { %v9689_v2 = vpop.f32.mrb[65].mxu0  ;;  %v9728_v26 = vpop.f32.mrb[72].mxu1 }
 0x5a1   :  { %v9690_v44 = vadd.f32 %v9689_v2, %v9688_v16  ;;  %v9691_v59 = vpop.f32.mrb[66].mxu0  ;;  %v9729_v50 = vpop.f32.mrb[73].mxu1 }
 0x5a2   :  { %v9730_v60 = vadd.f32 %v9729_v50, %v9728_v26  ;;  %v9692_v4 = vpop.f32.mrb[67].mxu0  ;;  %v9731_v38 = vpop.f32.mrb[74].mxu1 }
 0x5a3   :  { %v9693_v24 = vadd.f32 %v9692_v4, %v9691_v59  ;;  %v9732_v10 = vpop.f32.mrb[75].mxu1 }
 0x5a4   :  { %v9733_v39 = vadd.f32 %v9732_v10, %v9731_v38  ;;  %v4844_v34 = vadd.f32 %v9730_v60, %v9690_v44 }
 0x5a6   :  { %v4847_v52 = vadd.f32 %v9733_v39, %v9693_v24 }
 0x5a7   :  { %v9694_v23 = vpop.f32.mrb[68].mxu0 }
 0x5a8   :  { %v9695_v3 = vpop.f32.mrb[69].mxu0  ;;  %v9734_v49 = vpop.f32.mrb[76].mxu1 }
 0x5a9   :  { %v9696_v12 = vadd.f32 %v9695_v3, %v9694_v23  ;;  %v9697_v5 = vpop.f32.mrb[70].mxu0  ;;  %v9735_v8 = vpop.f32.mrb[77].mxu1 }
 0x5aa   :  { %v9736_v9 = vadd.f32 %v9735_v8, %v9734_v49  ;;  %v9698_v27 = vpop.f32.mrb[71].mxu0  ;;  %v9737_v21 = vpop.f32.mrb[78].mxu1 }
 0x5ab   :  { %v9699_v15 = vadd.f32 %v9698_v27, %v9697_v5  ;;  %v9738_v61 = vpop.f32.mrb[79].mxu1 }
 0x5ac   :  { %v9739_v35 = vadd.f32 %v9738_v61, %v9737_v21  ;;  %v4852_v20 = vadd.f32 %v9736_v9, %v9696_v12 }
 0x5ae   :  { %v4855_v6 = vadd.f32 %v9739_v35, %v9699_v15 }
 0x5b2   :  { %v9700_v28 = vpop.f32.mrb[72].mxu0 }
 0x5b3   :  { %v9701_v56 = vpop.f32.mrb[73].mxu0  ;;  %v9740_v46 = vpop.f32.mrb[80].mxu1 }
 0x5b4   :  { %v9702_v30 = vadd.f32 %v9701_v56, %v9700_v28  ;;  %v9703_v54 = vpop.f32.mrb[74].mxu0  ;;  %v9741_v42 = vpop.f32.mrb[81].mxu1 }
 0x5b5   :  { %v9742_v43 = vadd.f32 %v9741_v42, %v9740_v46  ;;  %v9704_v41 = vpop.f32.mrb[75].mxu0  ;;  %v9743_v48 = vpop.f32.mrb[82].mxu1 }
 0x5b6   :  { %v9705_v62 = vadd.f32 %v9704_v41, %v9703_v54  ;;  %v9744_v1 = vpop.f32.mrb[83].mxu1 }
 0x5b7   :  { %v9745_v33 = vadd.f32 %v9744_v1, %v9743_v48  ;;  %v4860_v47 = vadd.f32 %v9742_v43, %v9702_v30 }
 0x5b9   :  { %v4863_v53 = vadd.f32 %v9745_v33, %v9705_v62 }
 0x5ba   :  { %v9706_v57 = vpop.f32.mrb[76].mxu0 }
 0x5bb   :  { %v9707_v32 = vpop.f32.mrb[77].mxu0  ;;  %v9746_v51 = vpop.f32.mrb[84].mxu1 }
 0x5bc   :  { %v9708_v25 = vadd.f32 %v9707_v32, %v9706_v57  ;;  %v9709_v13 = vpop.f32.mrb[78].mxu0  ;;  %v9747_v55 = vpop.f32.mrb[85].mxu1 }
 0x5bd   :  { %v9748_v63 = vadd.f32 %v9747_v55, %v9746_v51  ;;  %v9710_v16 = vpop.f32.mrb[79].mxu0  ;;  %v9749_v2 = vpop.f32.mrb[86].mxu1 }
 0x5be   :  { %v9711_v26 = vadd.f32 %v9710_v16, %v9709_v13  ;;  %v9750_v44 = vpop.f32.mrb[87].mxu1 }
 0x5bf   :  { %v9751_v59 = vadd.f32 %v9750_v44, %v9749_v2  ;;  %v4868_v50 = vadd.f32 %v9748_v63, %v9708_v25 }
 0x5c1   :  { %v4871_v60 = vadd.f32 %v9751_v59, %v9711_v26 }
 0x5c2   :  { %v10210_v4 = vpop.f32.mrb[80].mxu0 }
 0x5c3   :  { %v12748_v38 = vadd.f32 %v10210_v4, %v4852_v20  ;;  %v4908_v24 = vpop.f32.mrb[81].mxu0 }
 0x5c4   :  { %v12750_v10 = vadd.f32 %v4908_v24, %v4844_v34  ;;  %v10211_v39 = vpop.f32.mrb[82].mxu0 }
 0x5c5   :  { %v12752_v23 = vadd.f32 %v10211_v39, %v4855_v6  ;;  %v4911_v3 = vpop.f32.mrb[83].mxu0  ;;  %v4953_v9 = vmul.f32 %v12748_v38, %v12748_v38 }
 0x5c6   :  { %v12754_v49 = vadd.f32 %v4911_v3, %v4847_v52  ;;  %v4951_v12 = vmul.f32 %v12750_v10, %v12750_v10 }
 0x5c7   :  { %v4954_v61 = vmul.f32 %v12752_v23, %v12752_v23 }
 0x5c8   :  { %v4941_v5 = vadd.f32 %v12754_v49, %v12750_v10  ;;  %v4952_v8 = vmul.f32 %v12754_v49, %v12754_v49 }
 0x5ca   :  { %v4942_v34 = vadd.f32 %v4941_v5, %v12748_v38  ;;  %v4955_v27 = vadd.f32 %v4952_v8, %v4951_v12  ;;  %v10214_v21 = vpop.f32.mrb[84].mxu0 }
 0x5cb   :  { %v12765_v15 = vadd.f32 %v10214_v21, %v4868_v50  ;;  %v4924_v52 = vpop.f32.mrb[85].mxu0 }
 0x5cc   :  { %v4943_v35 = vadd.f32 %v4942_v34, %v12752_v23  ;;  %v4956_v20 = vadd.f32 %v4955_v27, %v4953_v9  ;;  %v12770_v6 = vadd.f32 %v4924_v52, %v4860_v47  ;;  %v10215_v28 = vpop.f32.mrb[86].mxu0 }
 0x5cd   :  { %v12772_v56 = vadd.f32 %v10215_v28, %v4871_v60  ;;  %v4927_v46 = vpop.f32.mrb[87].mxu0  ;;  %v4990_v33 = vmul.f32 %v12765_v15, %v12765_v15 }
 0x5ce   :  { %v4944_v30 = vrot.slane %v4943_v35, 4  ;;  %v4957_v54 = vadd.f32 %v4956_v20, %v4954_v61  ;;  %v12774_v42 = vadd.f32 %v4927_v46, %v4863_v53  ;;  %v4988_v43 = vmul.f32 %v12770_v6, %v12770_v6 }
 0x5cf   :  { %v4991_v51 = vmul.f32 %v12772_v56, %v12772_v56 }
 0x5d0   :  { %v4945_v41 = vadd.f32 %v4944_v30, %v4943_v35  ;;  %v4958_v48 = vrot.slane %v4957_v54, 4  ;;  %v4978_v62 = vadd.f32 %v12774_v42, %v12770_v6  ;;  %v4989_v1 = vmul.f32 %v12774_v42, %v12774_v42 }
 0x5d2   :  { %v4946_v47 = vrot.slane %v4945_v41, 2  ;;  %v4959_v57 = vadd.f32 %v4958_v48, %v4957_v54  ;;  %v4979_v32 = vadd.f32 %v4978_v62, %v12765_v15  ;;  %v4992_v53 = vadd.f32 %v4989_v1, %v4988_v43 }
 0x5d4   :  { %v4947_v25 = vadd.f32 %v4946_v47, %v4945_v41  ;;  %v4960_v13 = vrot.slane %v4959_v57, 2  ;;  %v4980_v55 = vadd.f32 %v4979_v32, %v12772_v56  ;;  %v4993_v63 = vadd.f32 %v4992_v53, %v4990_v33  ;;  %v12799_v53 = vld [vmem:[%s14115_s2 + $0x13] ss:$0 sm:$0xff] }
 0x5d6   :  { %v4948_v16 = vrot.slane %v4947_v25, 1  ;;  %v4961_v2 = vadd.f32 %v4960_v13, %v4959_v57  ;;  %v4981_v26 = vrot.slane %v4980_v55, 4  ;;  %v4994_v44 = vadd.f32 %v4993_v63, %v4991_v51 }
 0x5d8   :  { %v4949_v59 = vadd.f32 %v4948_v16, %v4947_v25  ;;  %v4962_v50 = vrot.slane %v4961_v2, 1  ;;  %v4982_v60 = vadd.f32 %v4981_v26, %v4980_v55  ;;  %v4995_v4 = vrot.slane %v4994_v44, 4 }
 0x5da   :  { %v4950_v24 = vmul.f32 0.03125, %v4949_v59  ;;  %v4963_v39 = vadd.f32 %v4962_v50, %v4961_v2  ;;  %v4983_v3 = vrot.slane %v4982_v60, 2  ;;  %v4996_v12 = vadd.f32 %v4995_v4, %v4994_v44 }
 0x5dc   :  { %v4964_v5 = vmul.f32 0.03125, %v4963_v39  ;;  %v4965_v8 = vmul.f32 %v4950_v24, %v4950_v24  ;;  %v4969_v9 = vsub.f32 %v12754_v49, %v4950_v24  ;;  %v4984_v34 = vadd.f32 %v4983_v3, %v4982_v60 }
 0x5dd   :  { %v4997_v27 = vrot.slane %v4996_v12, 2  ;;  %v4968_v21 = vsub.f32 %v12750_v10, %v4950_v24  ;;  %v4970_v52 = vsub.f32 %v12748_v38, %v4950_v24  ;;  %v4971_v61 = vsub.f32 %v12752_v23, %v4950_v24 }
 0x5de   :  { %v4966_v35 = vsub.f32 %v4964_v5, %v4965_v8  ;;  %v4985_v20 = vrot.slane %v4984_v34, 1 }
 0x5df   :  { %v4998_v28 = vadd.f32 %v4997_v27, %v4996_v12 }
 0x5e0   :  { %v4967_v46 = vmax.f32 %v4966_v35, 0.0  ;;  %v4986_v30 = vadd.f32 %v4985_v20, %v4984_v34 }
 0x5e1   :  { %v4999_v54 = vrot.slane %v4998_v28, 1 }
 0x5e2   :  { %v4972_v43 = vadd.f32 1e-05, %v4967_v46  ;;  %v4987_v41 = vmul.f32 0.03125, %v4986_v30 }
 0x5e3   :  { %v5000_v48 = vadd.f32 %v4999_v54, %v4998_v28 }
 0x5e4   :  { %10643 = vrsqrt.f32 %v4972_v43  ;;  %v5002_v62 = vmul.f32 %v4987_v41, %v4987_v41  ;;  %v5006_v49 = vsub.f32 %v12774_v42, %v4987_v41  ;;  %v5005_v1 = vsub.f32 %v12770_v6, %v4987_v41 }
 0x5e5   :  { %v5001_v10 = vmul.f32 0.03125, %v5000_v48  ;;  %v5007_v38 = vsub.f32 %v12765_v15, %v4987_v41  ;;  %v5008_v23 = vsub.f32 %v12772_v56, %v4987_v41  ;;  %v12804_v15 = vld [vmem:[%s14115_s2 + $0x14] ss:$0 sm:$0xff] }
 0x5e7   :  { %v5003_v33 = vsub.f32 %v5001_v10, %v5002_v62 }
 0x5e9   :  { %v5004_v47 = vmax.f32 %v5003_v33, 0.0 }
 0x5eb   :  { %v5009_v57 = vadd.f32 1e-05, %v5004_v47 }
 0x5ed   :  { %10645 = vrsqrt.f32 %v5009_v57 }
 0x5ee   :  { %v10644_v32 = vpop.eup %10643 }
 0x5ef   :  { %v4975_v51 = vmul.f32 %v10644_v32, %v4969_v9  ;;  %v4974_v25 = vmul.f32 %v10644_v32, %v4968_v21  ;;  %v4976_v42 = vmul.f32 %v10644_v32, %v4970_v52  ;;  %v4977_v13 = vmul.f32 %v10644_v32, %v4971_v61 }
 0x5f1   :  { %v5020_v6 = vmul.f32 %v12799_v53, %v4975_v51  ;;  %v5019_v56 = vmul.f32 %v12799_v53, %v4974_v25  ;;  %v5021_v55 = vmul.f32 %v12799_v53, %v4976_v42  ;;  %v5022_v63 = vmul.f32 %v12799_v53, %v4977_v13 }
 0x5f3   :  { %v5032_v16 = vadd.f32 %v12804_v15, %v5020_v6  ;;  %v5031_v2 = vadd.f32 %v12804_v15, %v5019_v56  ;;  %v5033_v26 = vadd.f32 %v12804_v15, %v5021_v55  ;;  %v5034_v44 = vadd.f32 %v12804_v15, %v5022_v63 }
 0x5f5   :  { %v5040_v59 = vmax.f32 %v5032_v16, 0.0  ;;  %v5039_v50 = vmax.f32 %v5031_v2, 0.0  ;;  %v5041_v60 = vmax.f32 %v5033_v26, 0.0  ;;  %v5042_v4 = vmax.f32 %v5034_v44, 0.0 }
 0x5f7   :  { %v10646_v24 = vpop.eup %10645  ;;  %v5047_v39 = vpack.c.bf16 %v5040_v59, %v5039_v50  ;;  %v12814_v3 = vpack.c.bf16 %v5042_v4, %v5041_v60 }
 0x5f8   :  { %v5012_v12 = vmul.f32 %v10646_v24, %v5006_v49  ;;  %v5011_v5 = vmul.f32 %v10646_v24, %v5005_v1  ;;  %v5013_v8 = vmul.f32 %v10646_v24, %v5007_v38  ;;  %v5014_v9 = vmul.f32 %v10646_v24, %v5008_v23 }
 0x5f9   :  { %v5067_v34 = vrot.slane %v5047_v39, 1  ;;  %v5082_v27 = vrot.slane %v12814_v3, 1  ;;  %v5059_v21 = vshll.u32 %v5047_v39, 16  ;;  %v5062_v61 = vshrl.u32 %v5047_v39, 16 }
 0x5fa   :  { %v5024_v52 = vmul.f32 %v12799_v53, %v5012_v12  ;;  %v5074_v35 = vshll.u32 %v12814_v3, 16  ;;  %v5023_v20 = vmul.f32 %v12799_v53, %v5011_v5  ;;  %v5077_v48 = vshrl.u32 %v12814_v3, 16 }
 0x5fb   :  { %v5069_v28 = vsel %vm263_vm0, %v5067_v34, %v11675_v58  ;;  %v5135_v46 = vshrl.u32 %v5067_v34, 16  ;;  %v5084_v30 = vsel %vm263_vm0, %v5082_v27, %v11675_v58  ;;  %v5169_v54 = vshrl.u32 %v5082_v27, 16 }
 0x5fc   :  { %v5139_v43 = vshrl.u32 %v5069_v28, 16  ;;  %v5173_v41 = vshrl.u32 %v5084_v30, 16  ;;  %v5036_v62 = vadd.f32 %v12804_v15, %v5024_v52  ;;  %v5142_v1 = vshll.u32 %v5069_v28, 16 }
 0x5fd   :  { %v5137_v49 = vrot.slane %v5135_v46, 7  ;;  %v5061_v10 = vrot.slane %v5059_v21, 1  ;;  %v5171_v23 = vrot.slane %v5169_v54, 7  ;;  %v5176_v47 = vshll.u32 %v5084_v30, 16 }
 0x5fe   :  { %v5141_v38 = vrot.slane %v5139_v43, 7  ;;  %v5175_v33 = vrot.slane %v5173_v41, 7  ;;  %v5119_v32 = vrot.slane %v5062_v61, 7  ;;  %v5076_v51 = vrot.slane %v5074_v35, 1 }
 0x5ff   :  { %v5064_v57 = vor.u32 %v5062_v61, %v5061_v10  ;;  %v5035_v25 = vadd.f32 %v12804_v15, %v5023_v20  ;;  %v5123_v6 = vshrl.u32 %v5061_v10, 16  ;;  %v5025_v56 = vmul.f32 %v12799_v53, %v5013_v8 }
 0x600   :  { %v5144_v42 = vor.u32 %v5142_v1, %v5141_v38  ;;  %v5178_v13 = vor.u32 %v5176_v47, %v5175_v33  ;;  %v5044_v55 = vmax.f32 %v5036_v62, 0.0  ;;  %v5079_v16 = vor.u32 %v5077_v48, %v5076_v51 }
 0x601   :  { %v5127_v63 = vshrl.u32 %v5064_v57, 16  ;;  %v5157_v44 = vshrl.u32 %v5076_v51, 16  ;;  %v5130_v50 = vshll.u32 %v5064_v57, 16  ;;  %v5043_v4 = vmax.f32 %v5035_v25, 0.0 }
 0x602   :  { %v5145_v2 = vsel %vm1816_vm9, %v5137_v49, %v5144_v42  ;;  %v5179_v26 = vsel %vm1816_vm9, %v5171_v23, %v5178_v13  ;;  %v5161_v60 = vshrl.u32 %v5079_v16, 16  ;;  %v5125_v24 = vrot.slane %v5123_v6, 7 }
 0x603   :  { %10232 = vmatprep.mubr.bf16.mxu0 %v5145_v2  ;;  %v5129_v59 = vrot.slane %v5127_v63, 7  ;;  %v5120_v39 = vor.u32 %v5119_v32, %v5059_v21  ;;  %v5026_v12 = vmul.f32 %v12799_v53, %v5014_v9  ;;  %v5037_v5 = vadd.f32 %v12804_v15, %v5025_v56 }
 0x604   :  { %10233 = vmatmul.mubr.bf16.vlgmr.msra.gmra.mrb[88].mxu0 %v5179_v26  ;;  %v5163_v34 = vrot.slane %v5161_v60, 7  ;;  %v5164_v27 = vshll.u32 %v5079_v16, 16  ;;  %v5051_v52 = vpack.c.bf16 %v5044_v55, %v5043_v4  ;;  %v5159_v61 = vrot.slane %v5157_v44, 7 }
 0x605   :  { %v5132_v8 = vor.u32 %v5130_v50, %v5129_v59  ;;  %v5038_v20 = vadd.f32 %v12804_v15, %v5026_v12  ;;  %v5045_v28 = vmax.f32 %v5037_v5, 0.0  ;;  %v5153_v46 = vrot.slane %v5077_v48, 7 }
 0x606   :  { %v5166_v54 = vor.u32 %v5164_v27, %v5163_v34  ;;  %v5097_v43 = vrot.slane %v5051_v52, 1  ;;  %v5089_v41 = vshll.u32 %v5051_v52, 16  ;;  %v5121_v53 = vsel %vm1816_vm9, %v11443_v0, %v5120_v39 }
 0x607   :  { %v5133_v30 = vsel %vm1816_vm9, %v5125_v24, %v5132_v8  ;;  %v5046_v9 = vmax.f32 %v5038_v20, 0.0  ;;  %v5092_v21 = vshrl.u32 %v5051_v52, 16  ;;  %v5154_v23 = vor.u32 %v5153_v46, %v5074_v35 }
 0x608   :  { %5475 = vmatprep.mubr.bf16.mxu1 %v5133_v30  ;;  %v5167_v62 = vsel %vm1816_vm9, %v5159_v61, %v5166_v54  ;;  %v5099_v49 = vsel %vm263_vm0, %v5097_v43, %v11675_v58  ;;  %v5203_v15 = vshrl.u32 %v5097_v43, 16  ;;  %v5091_v1 = vrot.slane %v5089_v41, 1 }
 0x609   :  { %5476 = vmatmul.mubr.bf16.vlgmr.msra.gmra.mrb[88].mxu1 %v5121_v53  ;;  %v5207_v48 = vshrl.u32 %v5099_v49, 16  ;;  %v5053_v10 = vpack.c.bf16 %v5046_v9, %v5045_v28  ;;  %v5210_v38 = vshll.u32 %v5099_v49, 16  ;;  %v5155_v35 = vsel %vm1816_vm9, %v11443_v0, %v5154_v23  ;;  %v10494_v49 = vld [vmem:[%s14116_s1 + $0x640] sm:$0xff]   ;;  %v10500_v23 = vld [vmem:[%s14116_s1 + $0x690] sm:$0xff]  }
 0x60a   :  { %5483 = vmatprep.mubr.bf16.mxu1 %v5167_v62  ;;  %v5094_v33 = vor.u32 %v5092_v21, %v5091_v1  ;;  %v5191_v32 = vshrl.u32 %v5091_v1, 16  ;;  %v5205_v25 = vrot.slane %v5203_v15, 7  ;;  %v5187_v59 = vrot.slane %v5092_v21, 7  ;;  %v10492_v21 = vld [vmem:[%s14116_s1 + $0x680] sm:$0xff]   ;;  %v10495_v15 = vld [vmem:[%s14116_s1 + $0x708] sm:$0xff]  }
 0x60b   :  { %v5209_v47 = vrot.slane %v5207_v48, 7  ;;  %v5112_v57 = vrot.slane %v5053_v10, 1  ;;  %v5104_v51 = vshll.u32 %v5053_v10, 16  ;;  %v5107_v26 = vshrl.u32 %v5053_v10, 16  ;;  %v10493_v62 = vld [vmem:[%s14116_s1 + $0x6c0] sm:$0xff]   ;;  %9816 = vmatprep.subr.bf16.mxu1 %v10492_v21  ;;  %v10496_v1 = vld [vmem:[%s14116_s1 + $0x688] sm:$0xff]  }
 0x60c   :  { %v5195_v42 = vshrl.u32 %v5094_v33, 16  ;;  %v5198_v55 = vshll.u32 %v5094_v33, 16  ;;  %v5193_v44 = vrot.slane %v5191_v32, 7  ;;  %v5188_v27 = vor.u32 %v5187_v59, %v5089_v41  ;;  %v10491_v41 = vld [vmem:[%s14116_s1 + $0x700] sm:$0xff]   ;;  %9817 = vmatpush3.bf16.msra.mxu1 %v10494_v49  ;;  %v10497_v48 = vld [vmem:[%s14116_s1 + $0x6c8] sm:$0xff]   ;;  %v10501_v33 = vld [vmem:[%s14116_s1 + $0x6d0] sm:$0xff]  }
 0x60d   :  { %v5212_v13 = vor.u32 %v5210_v38, %v5209_v47  ;;  %v5114_v6 = vsel %vm263_vm0, %v5112_v57, %v11675_v58  ;;  %v5237_v56 = vshrl.u32 %v5112_v57, 16  ;;  %v5106_v2 = vrot.slane %v5104_v51, 1  ;;  %9856 = vmatprep.subr.bf16.mxu0 %v10491_v41  ;;  %v10498_v10 = vld [vmem:[%s14116_s1 + $0x648] sm:$0xff]   ;;  %9818 = vmatprep.subr.bf16.mxu1 %v10496_v1  ;;  %v10499_v38 = vld [vmem:[%s14116_s1 + $0x710] sm:$0xff]   ;;  %v10503_v57 = vld [vmem:[%s14116_s1 + $0x718] sm:$0xff]  }
 0x60e   :  { %v5241_v63 = vshrl.u32 %v5114_v6, 16  ;;  %v5197_v16 = vrot.slane %v5195_v42, 7  ;;  %v5244_v60 = vshll.u32 %v5114_v6, 16  ;;  %v5189_v30 = vsel %vm1816_vm9, %v11443_v0, %v5188_v27  ;;  %9857 = vmatpush3.bf16.msra.mxu0 %v10493_v62  ;;  %v10502_v47 = vld [vmem:[%s14116_s1 + $0x650] sm:$0xff]   ;;  %v10504_v32 = vld [vmem:[%s14116_s1 + $0x698] sm:$0xff]   ;;  %v10507_v42 = vld [vmem:[%s14116_s1 + $0x720] sm:$0xff]  }
 0x60f   :  { %v5213_v3 = vsel %vm1816_vm9, %v5205_v25, %v5212_v13  ;;  %v5109_v24 = vor.u32 %v5107_v26, %v5106_v2  ;;  %v5239_v39 = vrot.slane %v5237_v56, 7  ;;  %v5225_v8 = vshrl.u32 %v5106_v2, 16  ;;  %9858 = vmatprep.subr.bf16.mxu0 %v10495_v15  ;;  %v10506_v25 = vld [vmem:[%s14116_s1 + $0x658] sm:$0xff]   ;;  %v10508_v13 = vld [vmem:[%s14116_s1 + $0x6a0] sm:$0xff]   ;;  %v10514_v2 = vld [vmem:[%s14116_s1 + $0x668] sm:$0xff]  }
 0x610   :  { %10236 = vmatprep.mubr.bf16.mxu0 %v5213_v3  ;;  %v5243_v50 = vrot.slane %v5241_v63, 7  ;;  %v5200_v4 = vor.u32 %v5198_v55, %v5197_v16  ;;  %v5221_v54 = vrot.slane %v5107_v26, 7  ;;  %9819 = vmatpush3.bf16.msra.mxu1 %v10498_v10  ;;  %v10509_v6 = vld [vmem:[%s14116_s1 + $0x6e0] sm:$0xff]   ;;  %v10511_v55 = vld [vmem:[%s14116_s1 + $0x728] sm:$0xff]   ;;  %v10515_v26 = vld [vmem:[%s14116_s1 + $0x730] sm:$0xff]  }
 0x611   :  { %5484 = vmatmul.mubr.bf16.gmra.mrb[92].mxu1 %v5155_v35  ;;  %v5229_v34 = vshrl.u32 %v5109_v24, 16  ;;  %v5232_v20 = vshll.u32 %v5109_v24, 16  ;;  %v5227_v28 = vrot.slane %v5225_v8, 7  ;;  %9820 = vmatprep.subr.bf16.mxu1 %v10500_v23  ;;  %v10510_v56 = vld [vmem:[%s14116_s1 + $0x660] sm:$0xff]   ;;  %v10512_v63 = vld [vmem:[%s14116_s1 + $0x6a8] sm:$0xff]   ;;  %v10516_v3 = vld [vmem:[%s14116_s1 + $0x6b0] sm:$0xff]  }
 0x612   :  { %v5246_v12 = vor.u32 %v5244_v60, %v5243_v50  ;;  %v5201_v5 = vsel %vm1816_vm9, %v5193_v44, %v5200_v4  ;;  %v5222_v53 = vor.u32 %v5221_v54, %v5104_v51  ;;  %9859 = vmatpush3.bf16.msra.mxu0 %v10497_v48  ;;  %v10505_v51 = vld [vmem:[%s14116_s1 + $0x6d8] sm:$0xff]   ;;  %v10513_v16 = vld [vmem:[%s14116_s1 + $0x6e8] sm:$0xff]   ;;  %v10517_v35 = vld [vmem:[%s14116_s1 + $0x6f0] sm:$0xff]  }
 0x613   :  { %5491 = vmatprep.mubr.bf16.mxu1 %v5201_v5  ;;  %v5231_v61 = vrot.slane %v5229_v34, 7  ;;  %9860 = vmatprep.subr.bf16.mxu0 %v10499_v38  ;;  %v10518_v59 = vld [vmem:[%s14116_s1 + $0x670] sm:$0xff]   ;;  %v10519_v50 = vld [vmem:[%s14116_s1 + $0x738] sm:$0xff]   ;;  %v10523_v8 = vld [vmem:[%s14116_s1 + $0x800] sm:$0xff]  }
 0x614   :  { %v5247_v52 = vsel %vm1816_vm9, %v5239_v39, %v5246_v12  ;;  %v5223_v9 = vsel %vm1816_vm9, %v11443_v0, %v5222_v53  ;;  %9821 = vmatpush3.bf16.msra.mxu1 %v10502_v47  ;;  %v10520_v4 = vld [vmem:[%s14116_s1 + $0x6b8] sm:$0xff]   ;;  %v10524_v27 = vld [vmem:[%s14116_s1 + $0x780] sm:$0xff]  }
 0x615   :  { %10237 = vmatmul.mubr.bf16.gmra.mrb[92].mxu0 %v5247_v52  ;;  %v5234_v46 = vor.u32 %v5232_v20, %v5231_v61  ;;  %9822 = vmatprep.subr.bf16.mxu1 %v10504_v32  ;;  %v10521_v12 = vld [vmem:[%s14116_s1 + $0x6f8] sm:$0xff]  }
 0x616   :  { %9861 = vmatpush3.bf16.msra.mxu0 %v10501_v33  ;;  %v10522_v5 = vld [vmem:[%s14116_s1 + $0x678] sm:$0xff]  }
 0x617   :  { %v5235_v43 = vsel %vm1816_vm9, %v5227_v28, %v5234_v46  ;;  %9862 = vmatprep.subr.bf16.mxu0 %v10503_v57 }
 0x618   :  { %9823 = vmatpush3.bf16.msra.mxu1 %v10506_v25 }
 0x619   :  { %5492 = vmatmul.mubr.bf16.gmra.mrb[96].mxu1 %v5189_v30  ;;  %9824 = vmatprep.subr.bf16.mxu1 %v10508_v13 }
 0x61a   :  { %5499 = vmatprep.mubr.bf16.mxu1 %v5235_v43  ;;  %9863 = vmatpush3.bf16.msra.mxu0 %v10505_v51 }
 0x61b   :  { %9864 = vmatprep.subr.bf16.mxu0 %v10507_v42 }
 0x61c   :  { %9825 = vmatpush3.bf16.msra.mxu1 %v10510_v56 }
 0x61d   :  { %9826 = vmatprep.subr.bf16.mxu1 %v10512_v63 }
 0x61e   :  { %9865 = vmatpush3.bf16.msra.mxu0 %v10509_v6 }
 0x61f   :  { %9866 = vmatprep.subr.bf16.mxu0 %v10511_v55 }
 0x620   :  { %9827 = vmatpush3.bf16.msra.mxu1 %v10514_v2 }
 0x621   :  { %5500 = vmatmul.mubr.bf16.gmra.mrb[100].mxu1 %v5223_v9  ;;  %9828 = vmatprep.subr.bf16.mxu1 %v10516_v3 }
 0x622   :  { %9867 = vmatpush3.bf16.msra.mxu0 %v10513_v16 }
 0x623   :  { %9868 = vmatprep.subr.bf16.mxu0 %v10515_v26 }
 0x624   :  { %9829 = vmatpush3.bf16.msra.mxu1 %v10518_v59 }
 0x625   :  { %9830 = vmatprep.subr.bf16.mxu1 %v10520_v4 }
 0x626   :  { %9869 = vmatpush3.bf16.msra.mxu0 %v10517_v35 }
 0x627   :  { %9870 = vmatprep.subr.bf16.mxu0 %v10519_v50 }
 0x628   :  { %9831 = vmatpush3.bf16.msra.mxu1 %v10522_v5 }
 0x629   :  { %9896 = vmatprep.subr.bf16.mxu1 %v10524_v27 }
 0x62a   :  { %9871 = vmatpush3.bf16.msra.mxu0 %v10521_v12 }
 0x62b   :  { %9936 = vmatprep.subr.bf16.mxu0 %v10523_v8 }
 0x6d7   :  { %v10234_v44 = vpop.f32.mrb[88].mxu0 }
 0x6d8   :  { %v5542_v60 = vpop.f32.mrb[89].mxu0 }
 0x6d9   :  { %v10235_v24 = vpop.f32.mrb[90].mxu0 }
 0x6da   :  { %v5545_v39 = vpop.f32.mrb[91].mxu0 }
 0x6dc   :  { %v9780_v34 = vpop.f32.mrb[88].mxu1 }
 0x6dd   :  { %v9781_v52 = vpop.f32.mrb[89].mxu1 }
 0x6de   :  { %v9782_v61 = vadd.f32 %v9781_v52, %v9780_v34  ;;  %v9783_v20 = vpop.f32.mrb[90].mxu1 }
 0x6df   :  { %v9784_v28 = vpop.f32.mrb[91].mxu1 }
 0x6e0   :  { %v12957_v46 = vadd.f32 %v9782_v61, %v5542_v60  ;;  %v9785_v30 = vadd.f32 %v9784_v28, %v9783_v20 }
 0x6e2   :  { %v12959_v54 = vadd.f32 %v9785_v30, %v5545_v39  ;;  %v5585_v43 = vmul.f32 %v12957_v46, %v12957_v46 }
 0x6e4   :  { %v5575_v53 = vadd.f32 %v12959_v54, %v12957_v46  ;;  %v5586_v9 = vmul.f32 %v12959_v54, %v12959_v54  ;;  %v9786_v41 = vpop.f32.mrb[92].mxu1 }
 0x6e5   :  { %v9787_v21 = vpop.f32.mrb[93].mxu1 }
 0x6e6   :  { %v5589_v62 = vadd.f32 %v5586_v9, %v5585_v43  ;;  %v9788_v49 = vadd.f32 %v9787_v21, %v9786_v41  ;;  %v9789_v15 = vpop.f32.mrb[94].mxu1 }
 0x6e7   :  { %v9790_v1 = vpop.f32.mrb[95].mxu1 }
 0x6e8   :  { %v12967_v48 = vadd.f32 %v10234_v44, %v9788_v49  ;;  %v9791_v10 = vadd.f32 %v9790_v1, %v9789_v15  ;;  %v10238_v38 = vpop.f32.mrb[92].mxu0 }
 0x6e9   :  { %v5558_v23 = vpop.f32.mrb[93].mxu0 }
 0x6ea   :  { %v5576_v33 = vadd.f32 %v5575_v53, %v12967_v48  ;;  %v5587_v47 = vmul.f32 %v12967_v48, %v12967_v48  ;;  %v12972_v57 = vadd.f32 %v10235_v24, %v9791_v10  ;;  %v10239_v32 = vpop.f32.mrb[94].mxu0 }
 0x6eb   :  { %v5561_v51 = vpop.f32.mrb[95].mxu0 }
 0x6ec   :  { %v5590_v25 = vadd.f32 %v5589_v62, %v5587_v47  ;;  %v5577_v42 = vadd.f32 %v5576_v33, %v12972_v57  ;;  %v5588_v13 = vmul.f32 %v12972_v57, %v12972_v57  ;;  %v9792_v6 = vpop.f32.mrb[96].mxu1 }
 0x6ed   :  { %v9793_v56 = vpop.f32.mrb[97].mxu1 }
 0x6ee   :  { %v5578_v55 = vrot.slane %v5577_v42, 4  ;;  %v5591_v63 = vadd.f32 %v5590_v25, %v5588_v13  ;;  %v9794_v16 = vadd.f32 %v9793_v56, %v9792_v6  ;;  %v9795_v2 = vpop.f32.mrb[98].mxu1 }
 0x6ef   :  { %v9796_v26 = vpop.f32.mrb[99].mxu1 }
 0x6f0   :  { %v5579_v3 = vadd.f32 %v5578_v55, %v5577_v42  ;;  %v5592_v35 = vrot.slane %v5591_v63, 4  ;;  %v12977_v44 = vadd.f32 %v9794_v16, %v5558_v23  ;;  %v9797_v59 = vadd.f32 %v9796_v26, %v9795_v2 }
 0x6f2   :  { %v5580_v50 = vrot.slane %v5579_v3, 2  ;;  %v5593_v60 = vadd.f32 %v5592_v35, %v5591_v63  ;;  %v12979_v4 = vadd.f32 %v9797_v59, %v5561_v51  ;;  %v5622_v24 = vmul.f32 %v12977_v44, %v12977_v44  ;;  %v9068_v59 = vld [vmem:[%s14115_s2 + $0x17] ss:$0 sm:$0xff] }
 0x6f4   :  { %v5581_v39 = vadd.f32 %v5580_v50, %v5579_v3  ;;  %v5594_v12 = vrot.slane %v5593_v60, 2  ;;  %v5612_v5 = vadd.f32 %v12979_v4, %v12977_v44  ;;  %v5623_v8 = vmul.f32 %v12979_v4, %v12979_v4  ;;  %v9798_v34 = vpop.f32.mrb[100].mxu1 }
 0x6f5   :  { %v9799_v27 = vpop.f32.mrb[101].mxu1 }
 0x6f6   :  { %v5582_v52 = vrot.slane %v5581_v39, 1  ;;  %v5595_v61 = vadd.f32 %v5594_v12, %v5593_v60  ;;  %v5626_v20 = vadd.f32 %v5623_v8, %v5622_v24  ;;  %v9800_v28 = vadd.f32 %v9799_v27, %v9798_v34  ;;  %v9801_v30 = vpop.f32.mrb[102].mxu1  ;;  %v9069_v8 = vld [vmem:[%s14115_s2 + $0x18] ss:$0 sm:$0xff] }
 0x6f7   :  { %v9802_v43 = vpop.f32.mrb[103].mxu1  ;;  %v2621_v12 = vmul.f32 %v9068_v59, %v12382_v37  ;;  %v2622_v37 = vmul.f32 %v9068_v59, %v12387_v36  ;;  %v13031_v36 = vld [vmem:[%s14115_s2 + $0x16] ss:$0 sm:$0xff] }
 0x6f8   :  { %v5583_v53 = vadd.f32 %v5582_v52, %v5581_v39  ;;  %v5596_v9 = vrot.slane %v5595_v61, 1  ;;  %v12987_v41 = vadd.f32 %v10238_v38, %v9800_v28  ;;  %v9803_v21 = vadd.f32 %v9802_v43, %v9801_v30  ;;  %v13024_v28 = vld [vmem:[%s14115_s2 + $0x15] ss:$0 sm:$0xff] }
 0x6f9   :  { %v2620_v39 = vmul.f32 %v9068_v59, %v12377_v14 }
 0x6fa   :  { %v5584_v62 = vmul.f32 0.03125, %v5583_v53  ;;  %v5597_v49 = vadd.f32 %v5596_v9, %v5595_v61  ;;  %v5613_v15 = vadd.f32 %v5612_v5, %v12987_v41  ;;  %v5624_v1 = vmul.f32 %v12987_v41, %v12987_v41 }
 0x6fb   :  { %v12992_v10 = vadd.f32 %v10239_v32, %v9803_v21 }
 0x6fc   :  { %v5598_v23 = vmul.f32 0.03125, %v5597_v49  ;;  %v5599_v33 = vmul.f32 %v5584_v62, %v5584_v62  ;;  %v5602_v47 = vsub.f32 %v12957_v46, %v5584_v62  ;;  %v5603_v51 = vsub.f32 %v12959_v54, %v5584_v62 }
 0x6fd   :  { %v5604_v25 = vsub.f32 %v12967_v48, %v5584_v62  ;;  %v5605_v38 = vsub.f32 %v12972_v57, %v5584_v62  ;;  %v5627_v42 = vadd.f32 %v5626_v20, %v5624_v1  ;;  %v5614_v13 = vadd.f32 %v5613_v15, %v12992_v10 }
 0x6fe   :  { %v5600_v6 = vsub.f32 %v5598_v23, %v5599_v33  ;;  %v5625_v56 = vmul.f32 %v12992_v10, %v12992_v10  ;;  %v2623_v20 = vmul.f32 %v9068_v59, %v12392_v19  ;;  %v2632_v49 = vadd.f32 %v9069_v8, %v2620_v39 }
 0x6ff   :  { %v5615_v55 = vrot.slane %v5614_v13, 4 }
 0x700   :  { %v5601_v32 = vmax.f32 %v5600_v6, 0.0  ;;  %v5628_v63 = vadd.f32 %v5627_v42, %v5625_v56  ;;  %v2633_v42 = vadd.f32 %v9069_v8, %v2621_v12 }
 0x701   :  { %v5616_v16 = vadd.f32 %v5615_v55, %v5614_v13  ;;  %v2624_v55 = vmul.f32 %v9068_v59, %v12480_v7 }
 0x702   :  { %v5606_v2 = vadd.f32 1e-05, %v5601_v32  ;;  %v5629_v26 = vrot.slane %v5628_v63, 4  ;;  %v2625_v32 = vmul.f32 %v9068_v59, %v12485_v17 }
 0x703   :  { %v5617_v46 = vrot.slane %v5616_v16, 2  ;;  %v2636_v7 = vadd.f32 %v9069_v8, %v2624_v55 }
 0x704   :  { %10647 = vrsqrt.f32 %v5606_v2  ;;  %v5630_v54 = vadd.f32 %v5629_v26, %v5628_v63  ;;  %v2626_v63 = vmul.f32 %v9068_v59, %v12490_v29  ;;  %v2637_v17 = vadd.f32 %v9069_v8, %v2625_v32 }
 0x705   :  { %v5618_v3 = vadd.f32 %v5617_v46, %v5616_v16 }
 0x706   :  { %v5631_v48 = vrot.slane %v5630_v54, 2 }
 0x707   :  { %v5619_v35 = vrot.slane %v5618_v3, 1 }
 0x708   :  { %v5632_v57 = vadd.f32 %v5631_v48, %v5630_v54 }
 0x709   :  { %v5620_v50 = vadd.f32 %v5619_v35, %v5618_v3  ;;  %v2627_v3 = vmul.f32 %v9068_v59, %v12493_v45 }
 0x70a   :  { %v5633_v60 = vrot.slane %v5632_v57, 1 }
 0x70b   :  { %v13004_v24 = vmul.f32 0.03125, %v5620_v50 }
 0x70c   :  { %v5634_v5 = vadd.f32 %v5633_v60, %v5632_v57  ;;  %v2638_v60 = vadd.f32 %v9069_v8, %v2626_v63 }
 0x70d   :  { %v5636_v34 = vmul.f32 %v13004_v24, %v13004_v24  ;;  %v5639_v27 = vsub.f32 %v12977_v44, %v13004_v24  ;;  %v5640_v52 = vsub.f32 %v12979_v4, %v13004_v24  ;;  %v5641_v61 = vsub.f32 %v12987_v41, %v13004_v24 }
 0x70e   :  { %v10648_v14 = vpop.eup %10647  ;;  %v5635_v30 = vmul.f32 0.03125, %v5634_v5  ;;  %v5642_v43 = vsub.f32 %v12992_v10, %v13004_v24 }
 0x70f   :  { %v5608_v53 = vmul.f32 %v10648_v14, %v5602_v47  ;;  %v5609_v9 = vmul.f32 %v10648_v14, %v5603_v51  ;;  %v5610_v21 = vmul.f32 %v10648_v14, %v5604_v25  ;;  %v5611_v62 = vmul.f32 %v10648_v14, %v5605_v38 }
 0x710   :  { %v5637_v19 = vsub.f32 %v5635_v30, %v5636_v34  ;;  %v2634_v47 = vadd.f32 %v9069_v8, %v2622_v37  ;;  %v2635_v51 = vadd.f32 %v9069_v8, %v2623_v20  ;;  %v2639_v34 = vadd.f32 %v9069_v8, %v2627_v3 }
 0x711   :  { %v5653_v15 = vmul.f32 %v13024_v28, %v5608_v53  ;;  %v5654_v1 = vmul.f32 %v13024_v28, %v5609_v9  ;;  %v5655_v23 = vmul.f32 %v13024_v28, %v5610_v21  ;;  %v5656_v33 = vmul.f32 %v13024_v28, %v5611_v62 }
 0x712   :  { %v5638_v25 = vmax.f32 %v5637_v19, 0.0 }
 0x713   :  { %v5665_v38 = vadd.f32 %v13031_v36, %v5653_v15  ;;  %v5666_v13 = vadd.f32 %v13031_v36, %v5654_v1  ;;  %v5667_v6 = vadd.f32 %v13031_v36, %v5655_v23  ;;  %v5668_v56 = vadd.f32 %v13031_v36, %v5656_v33 }
 0x714   :  { %v5643_v16 = vadd.f32 1e-05, %v5638_v25 }
 0x715   :  { %v5673_v2 = vadd.f32 %v5665_v38, %v2632_v49  ;;  %v5674_v26 = vadd.f32 %v5666_v13, %v2633_v42  ;;  %v5675_v46 = vadd.f32 %v5667_v6, %v2634_v47  ;;  %v5676_v54 = vadd.f32 %v5668_v56, %v2635_v51 }
 0x716   :  { %10649 = vrsqrt.f32 %v5643_v16 }
 0x717   :  { %v13045_v48 = vmax.f32 %v5673_v2, 0.0  ;;  %v13047_v35 = vmax.f32 %v5674_v26, 0.0  ;;  %v13049_v57 = vmax.f32 %v5675_v46, 0.0  ;;  %v13051_v50 = vmax.f32 %v5676_v54, 0.0 }
 0x719   :  { %v13055_v29 = vpack.c.bf16 %v13051_v50, %v13049_v57  ;;  %v5699_v39 = vadd.f32 %v13047_v35, %v13045_v48  ;;  %v5709_v45 = vmul.f32 %v13045_v48, %v13045_v48  ;;  %v5710_v59 = vmul.f32 %v13047_v35, %v13047_v35 }
 0x71a   :  { %v5711_v12 = vmul.f32 %v13049_v57, %v13049_v57  ;;  %v5712_v5 = vmul.f32 %v13051_v50, %v13051_v50  ;;  %v13069_v14 = vpack.c.bf16 %v13047_v35, %v13045_v48 }
 0x71b   :  { %v5700_v37 = vadd.f32 %v5699_v39, %v13049_v57  ;;  %v5713_v20 = vadd.f32 %v5710_v59, %v5709_v45  ;;  %v13073_v30 = vshll.u32 %v13055_v29, 16  ;;  %v13076_v53 = vshrl.u32 %v13055_v29, 16 }
 0x71c   :  { %v13079_v9 = vshll.u32 %v13069_v14, 16  ;;  %v13082_v21 = vshrl.u32 %v13069_v14, 16  ;;  %v13085_v8 = vrot.slane %v13069_v14, 1  ;;  %v13088_v62 = vrot.slane %v13055_v29, 1 }
 0x71d   :  { %v5701_v49 = vadd.f32 %v5700_v37, %v13051_v50  ;;  %v5714_v19 = vadd.f32 %v5713_v20, %v5711_v12  ;;  %v5872_v15 = vrot.slane %v13076_v53, 1  ;;  %v5873_v1 = vrot.slane %v13073_v30, 2 }
 0x71e   :  { %v5820_v23 = vrot.slane %v13082_v21, 1  ;;  %v5821_v33 = vrot.slane %v13079_v9, 2  ;;  %v5810_v42 = vrot.slane %v13079_v9, 1  ;;  %v13099_v47 = vsel %vm263_vm0, %v11675_v58, %v13085_v8 }
 0x71f   :  { %v5702_v51 = vrot.slane %v5701_v49, 4  ;;  %v5715_v25 = vadd.f32 %v5714_v19, %v5712_v5  ;;  %v6030_v38 = vshrl.u32 %v13099_v47, 16  ;;  %v6033_v13 = vshll.u32 %v13099_v47, 16 }
 0x720   :  { %v10650_v6 = vpop.eup %10649  ;;  %v5822_v56 = vor.u32 %v5821_v33, %v5820_v23  ;;  %v5811_v55 = vsel %vm931_vm7, %v11675_v58, %v5810_v42  ;;  %v13106_v32 = vor.u32 %v13082_v21, %v5810_v42  ;;  %v6038_v63 = vshrl.u32 %v13085_v8, 16 }
 0x721   :  { %v5703_v16 = vadd.f32 %v5702_v51, %v5701_v49  ;;  %v5716_v2 = vrot.slane %v5715_v25, 4  ;;  %v5645_v26 = vmul.f32 %v10650_v6, %v5639_v27  ;;  %v5646_v46 = vmul.f32 %v10650_v6, %v5640_v52 }
 0x722   :  { %v5647_v54 = vmul.f32 %v10650_v6, %v5641_v61  ;;  %v5648_v3 = vmul.f32 %v10650_v6, %v5642_v43  ;;  %v6047_v39 = vshrl.u32 %v5822_v56, 16  ;;  %v6050_v45 = vshll.u32 %v5822_v56, 16 }
 0x723   :  { %v5704_v59 = vrot.slane %v5703_v16, 2  ;;  %v5717_v12 = vadd.f32 %v5716_v2, %v5715_v25  ;;  %v5657_v5 = vmul.f32 %v13024_v28, %v5645_v26  ;;  %v5658_v44 = vmul.f32 %v13024_v28, %v5646_v46 }
 0x724   :  { %v5659_v27 = vmul.f32 %v13024_v28, %v5647_v54  ;;  %v5660_v4 = vmul.f32 %v13024_v28, %v5648_v3  ;;  %v6049_v52 = vrot.slane %v6047_v39, 6  ;;  %v6052_v37 = vrot.slane %v6050_v45, 7 }
 0x725   :  { %v5705_v41 = vadd.f32 %v5704_v59, %v5703_v16  ;;  %v5718_v61 = vrot.slane %v5717_v12, 2  ;;  %v5669_v20 = vadd.f32 %v13031_v36, %v5657_v5  ;;  %v5670_v10 = vadd.f32 %v13031_v36, %v5658_v44 }
 0x726   :  { %v5671_v24 = vadd.f32 %v13031_v36, %v5659_v27  ;;  %v5672_v43 = vadd.f32 %v13031_v36, %v5660_v4  ;;  %v6053_v49 = vor.u32 %v6052_v37, %v6049_v52  ;;  %v6013_v19 = vshrl.u32 %v5811_v55, 16  ;;  %v10549_v4 = vld [vmem:[%s14116_s1 + $0x7f0] sm:$0xff]  }
 0x727   :  { %v5706_v23 = vrot.slane %v5705_v41, 1  ;;  %v5719_v33 = vadd.f32 %v5718_v61, %v5717_v12  ;;  %v5677_v42 = vadd.f32 %v5669_v20, %v2636_v7  ;;  %v5678_v51 = vadd.f32 %v5670_v10, %v2637_v17 }
 0x728   :  { %v5679_v25 = vadd.f32 %v5671_v24, %v2638_v60  ;;  %v5680_v28 = vadd.f32 %v5672_v43, %v2639_v34  ;;  %7118 = vmatprep.mubr.bf16.mxu0 %v6053_v49  ;;  %v6015_v6 = vrot.slane %v6013_v19, 6  ;;  %v6016_v56 = vshll.u32 %v5811_v55, 16 }
 0x729   :  { %v5707_v16 = vadd.f32 %v5706_v23, %v5705_v41  ;;  %v5720_v2 = vrot.slane %v5719_v33, 1  ;;  %v13129_v26 = vmax.f32 %v5677_v42, 0.0  ;;  %v13131_v46 = vmax.f32 %v5678_v51, 0.0 }
 0x72a   :  { %v13133_v54 = vmax.f32 %v5679_v25, 0.0  ;;  %v13135_v36 = vmax.f32 %v5680_v28, 0.0  ;;  %v6018_v3 = vrot.slane %v6016_v56, 7  ;;  %v6021_v39 = vshrl.u32 %v13106_v32, 16 }
 0x72b   :  { %v13138_v7 = vmul.f32 0.03125, %v5707_v16  ;;  %v5721_v17 = vadd.f32 %v5720_v2, %v5719_v33  ;;  %v5736_v60 = vadd.f32 %v13131_v46, %v13129_v26  ;;  %v5746_v34 = vmul.f32 %v13129_v26, %v13129_v26 }
 0x72c   :  { %v13146_v55 = vpack.c.bf16 %v13135_v36, %v13133_v54  ;;  %v5747_v45 = vmul.f32 %v13131_v46, %v13131_v46  ;;  %v5748_v59 = vmul.f32 %v13133_v54, %v13133_v54  ;;  %v5749_v12 = vmul.f32 %v13135_v36, %v13135_v36 }
 0x72d   :  { %v5722_v5 = vmul.f32 0.03125, %v5721_v17  ;;  %v5723_v44 = vmul.f32 %v13138_v7, %v13138_v7  ;;  %v5728_v52 = vsub.f32 %v13049_v57, %v13138_v7  ;;  %v5729_v37 = vsub.f32 %v13051_v50, %v13138_v7 }
 0x72e   :  { %v5737_v41 = vadd.f32 %v5736_v60, %v13133_v54  ;;  %v5750_v61 = vadd.f32 %v5747_v45, %v5746_v34  ;;  %v6019_v10 = vor.u32 %v6018_v3, %v6015_v6  ;;  %v6023_v24 = vrot.slane %v6021_v39, 6  ;;  %v10525_v45 = vld [vmem:[%s14116_s1 + $0x7c0] sm:$0xff]  }
 0x72f   :  { %v5724_v20 = vsub.f32 %v5722_v5, %v5723_v44  ;;  %v6024_v43 = vshll.u32 %v13106_v32, 16  ;;  %v6032_v23 = vrot.slane %v6030_v38, 6  ;;  %v6035_v33 = vrot.slane %v6033_v13, 7 }
 0x730   :  { %v5738_v49 = vadd.f32 %v5737_v41, %v13135_v36  ;;  %v5751_v19 = vadd.f32 %v5750_v61, %v5748_v59  ;;  %v6040_v25 = vrot.slane %v6038_v63, 6  ;;  %v6041_v28 = vshll.u32 %v13085_v8, 16  ;;  %v10526_v59 = vld [vmem:[%s14116_s1 + $0x740] sm:$0xff]   ;;  %v10528_v41 = vld [vmem:[%s14116_s1 + $0x788] sm:$0xff]  }
 0x731   :  { %v5725_v42 = vmax.f32 %v5724_v20, 0.0  ;;  %v6026_v51 = vrot.slane %v6024_v43, 7  ;;  %v6036_v16 = vor.u32 %v6035_v33, %v6032_v23  ;;  %v6008_v32 = vrot.slane %v13082_v21, 6 }
 0x732   :  { %v5739_v6 = vrot.slane %v5738_v49, 4  ;;  %v5752_v56 = vadd.f32 %v5751_v19, %v5749_v12  ;;  %v6043_v39 = vrot.slane %v6041_v28, 7  ;;  %v6009_v38 = vrot.slane %v13079_v9, 7  ;;  %v10529_v28 = vld [vmem:[%s14116_s1 + $0x7c8] sm:$0xff]  }
 0x733   :  { %v5730_v2 = vadd.f32 1e-05, %v5725_v42  ;;  %v6027_v3 = vor.u32 %v6026_v51, %v6023_v24  ;;  %v5874_v13 = vor.u32 %v5873_v1, %v5872_v15  ;;  %v5862_v63 = vrot.slane %v13073_v30, 1  ;;  %v10527_v1 = vld [vmem:[%s14116_s1 + $0x808] sm:$0xff]  }
 0x734   :  { %v5740_v17 = vadd.f32 %v5739_v6, %v5738_v49  ;;  %v5753_v47 = vrot.slane %v5752_v56, 4  ;;  %v6044_v60 = vor.u32 %v6043_v39, %v6040_v25  ;;  %v6010_v34 = vor.u32 %v6009_v38, %v6008_v32  ;;  %v10530_v6 = vld [vmem:[%s14116_s1 + $0x748] sm:$0xff]   ;;  %v10532_v39 = vld [vmem:[%s14116_s1 + $0x790] sm:$0xff]  }
 0x735   :  { %10651 = vrsqrt.f32 %v5730_v2  ;;  %v6028_v8 = vsel %vm2839_vm10, %v6019_v10, %v6027_v3  ;;  %v6173_v44 = vshrl.u32 %v5874_v13, 16  ;;  %v6176_v15 = vshll.u32 %v5874_v13, 16  ;;  %v10531_v3 = vld [vmem:[%s14116_s1 + $0x810] sm:$0xff]  }
 0x736   :  { %v5741_v12 = vrot.slane %v5740_v17, 2  ;;  %v5754_v5 = vadd.f32 %v5753_v47, %v5752_v56  ;;  %7053 = vmatprep.mubr.bf16.mxu1 %v6028_v8  ;;  %v6045_v61 = vsel %vm2839_vm10, %v6036_v16, %v6044_v60  ;;  %v6011_v20 = vsel %vm2839_vm10, %v11893_v11, %v6010_v34 }
 0x737   :  { %v5863_v10 = vsel %vm931_vm7, %v11675_v58, %v5862_v63  ;;  %v5866_v24 = vor.u32 %v13076_v53, %v5862_v63  ;;  %7119 = vmatmul.mubr.bf16.vlgmr.msra.gmra.mrb[96].mxu0 %v6045_v61  ;;  %7054 = vmatmul.mubr.bf16.vlgmr.msra.gmra.mrb[104].mxu1 %v6011_v20  ;;  %v6175_v19 = vrot.slane %v6173_v44, 6  ;;  %v6178_v23 = vrot.slane %v6176_v15, 7  ;;  %v10533_v44 = vld [vmem:[%s14116_s1 + $0x7d0] sm:$0xff]  }
 0x738   :  { %v5742_v43 = vadd.f32 %v5741_v12, %v5740_v17  ;;  %v5755_v49 = vrot.slane %v5754_v5, 2  ;;  %9937 = vmatpush3.bf16.msra.mxu0 %v10525_v45  ;;  %v6139_v33 = vshrl.u32 %v5863_v10, 16  ;;  %v6142_v42 = vshll.u32 %v5863_v10, 16  ;;  %9897 = vmatpush3.bf16.msra.mxu1 %v10526_v59  ;;  %v10534_v20 = vld [vmem:[%s14116_s1 + $0x750] sm:$0xff]  }
 0x739   :  { %v6147_v51 = vshrl.u32 %v5866_v24, 16  ;;  %v6150_v25 = vshll.u32 %v5866_v24, 16  ;;  %v6179_v32 = vor.u32 %v6178_v23, %v6175_v19  ;;  %9938 = vmatprep.subr.bf16.mxu0 %v10527_v1  ;;  %9898 = vmatprep.subr.bf16.mxu1 %v10528_v41  ;;  %v5871_v2 = vsel %vm263_vm0, %v11675_v58, %v13088_v62  ;;  %v10535_v19 = vld [vmem:[%s14116_s1 + $0x818] sm:$0xff]  }
 0x73a   :  { %v5743_v56 = vrot.slane %v5742_v43, 1  ;;  %v5756_v16 = vadd.f32 %v5755_v49, %v5754_v5  ;;  %v6141_v38 = vrot.slane %v6139_v33, 6  ;;  %v6144_v17 = vrot.slane %v6142_v42, 7  ;;  %v10536_v23 = vld [vmem:[%s14116_s1 + $0x798] sm:$0xff]  }
 0x73b   :  { %v6149_v47 = vrot.slane %v6147_v51, 6  ;;  %v6152_v13 = vrot.slane %v6150_v25, 7  ;;  %7126 = vmatprep.mubr.bf16.mxu0 %v6179_v32  ;;  %v6156_v60 = vshrl.u32 %v5871_v2, 16  ;;  %v6159_v34 = vshll.u32 %v5871_v2, 16  ;;  %v10538_v32 = vld [vmem:[%s14116_s1 + $0x758] sm:$0xff]  }
 0x73c   :  { %v5744_v63 = vadd.f32 %v5743_v56, %v5742_v43  ;;  %v5757_v8 = vrot.slane %v5756_v16, 1  ;;  %v6145_v45 = vor.u32 %v6144_v17, %v6141_v38  ;;  %9939 = vmatpush3.bf16.msra.mxu0 %v10529_v28  ;;  %9899 = vmatpush3.bf16.msra.mxu1 %v10530_v6  ;;  %v6164_v12 = vshrl.u32 %v13088_v62, 16 }
 0x73d   :  { %v6153_v59 = vor.u32 %v6152_v13, %v6149_v47  ;;  %v6167_v5 = vshll.u32 %v13088_v62, 16  ;;  %v6158_v41 = vrot.slane %v6156_v60, 6  ;;  %v6161_v61 = vrot.slane %v6159_v34, 7  ;;  %9940 = vmatprep.subr.bf16.mxu0 %v10531_v3  ;;  %9900 = vmatprep.subr.bf16.mxu1 %v10532_v39  ;;  %v10539_v39 = vld [vmem:[%s14116_s1 + $0x820] sm:$0xff]  }
 0x73e   :  { %v13220_v15 = vmul.f32 0.03125, %v5744_v63  ;;  %v5758_v1 = vadd.f32 %v5757_v8, %v5756_v16  ;;  %v6166_v62 = vrot.slane %v6164_v12, 6  ;;  %v6134_v49 = vrot.slane %v13076_v53, 6  ;;  %v10537_v16 = vld [vmem:[%s14116_s1 + $0x7d8] sm:$0xff]   ;;  %v10540_v47 = vld [vmem:[%s14116_s1 + $0x7a0] sm:$0xff]  }
 0x73f   :  { %v13225_v10 = vpop.eup %10651  ;;  %v6154_v24 = vsel %vm2839_vm10, %v6145_v45, %v6153_v59  ;;  %v6169_v43 = vrot.slane %v6167_v5, 7  ;;  %v6162_v6 = vor.u32 %v6161_v61, %v6158_v41  ;;  %v6135_v2 = vrot.slane %v13073_v30, 7  ;;  %v10541_v12 = vld [vmem:[%s14116_s1 + $0x7e0] sm:$0xff]  }
 0x740   :  { %v13239_v33 = vmul.f32 %v13225_v10, %v5728_v52  ;;  %v13245_v42 = vmul.f32 %v13225_v10, %v5729_v37  ;;  %v5759_v51 = vmul.f32 0.03125, %v5758_v1  ;;  %v5760_v25 = vmul.f32 %v13220_v15, %v13220_v15  ;;  %7061 = vmatprep.mubr.bf16.mxu1 %v6154_v24  ;;  %9941 = vmatpush3.bf16.msra.mxu0 %v10533_v44  ;;  %v10542_v61 = vld [vmem:[%s14116_s1 + $0x760] sm:$0xff]  }
 0x741   :  { %v5765_v52 = vsub.f32 %v13133_v54, %v13220_v15  ;;  %v5766_v50 = vsub.f32 %v13135_v36, %v13220_v15  ;;  %v6170_v56 = vor.u32 %v6169_v43, %v6166_v62  ;;  %9901 = vmatpush3.bf16.msra.mxu1 %v10534_v20  ;;  %9942 = vmatprep.subr.bf16.mxu0 %v10535_v19  ;;  %v13272_v38 = vshll.u32 %v13146_v55, 16  ;;  %v10544_v19 = vld [vmem:[%s14116_s1 + $0x7a8] sm:$0xff]  }
 0x742   :  { %v5761_v37 = vsub.f32 %v5759_v51, %v5760_v25  ;;  %9902 = vmatprep.subr.bf16.mxu1 %v10536_v23  ;;  %v13266_v3 = vpack.c.bf16 %v13131_v46, %v13129_v26  ;;  %v13275_v17 = vshrl.u32 %v13146_v55, 16  ;;  %v13282_v8 = vrot.slane %v13146_v55, 1 }
 0x743   :  { %v6171_v63 = vsel %vm2839_vm10, %v6162_v6, %v6170_v56  ;;  %v6136_v60 = vor.u32 %v6135_v2, %v6134_v49  ;;  %v5977_v1 = vrot.slane %v13272_v38, 2  ;;  %v5966_v41 = vrot.slane %v13272_v38, 1  ;;  %v10543_v49 = vld [vmem:[%s14116_s1 + $0x828] sm:$0xff]  }
 0x744   :  { %v5762_v13 = vmax.f32 %v5761_v37, 0.0  ;;  %7127 = vmatmul.mubr.bf16.gmra.mrb[100].mxu0 %v6171_v63  ;;  %v13285_v34 = vshll.u32 %v13266_v3, 16  ;;  %v13288_v45 = vshrl.u32 %v13266_v3, 16  ;;  %v5922_v59 = vrot.slane %v13266_v3, 1  ;;  %v10546_v63 = vld [vmem:[%s14116_s1 + $0x768] sm:$0xff]  }
 0x745   :  { %9943 = vmatpush3.bf16.msra.mxu0 %v10537_v16  ;;  %9903 = vmatpush3.bf16.msra.mxu1 %v10538_v32  ;;  %v5976_v44 = vrot.slane %v13275_v17, 1  ;;  %v6137_v20 = vsel %vm2839_vm10, %v11893_v11, %v6136_v60 }
 0x746   :  { %v5767_v5 = vadd.f32 1e-05, %v5762_v13  ;;  %v5924_v24 = vrot.slane %v13288_v45, 1  ;;  %v5925_v62 = vrot.slane %v13285_v34, 2  ;;  %v5914_v43 = vrot.slane %v13285_v34, 1  ;;  %9944 = vmatprep.subr.bf16.mxu0 %v10539_v39  ;;  %9904 = vmatprep.subr.bf16.mxu1 %v10540_v47  ;;  %v10545_v13 = vld [vmem:[%s14116_s1 + $0x7e8] sm:$0xff]  }
 0x747   :  { %7062 = vmatmul.mubr.bf16.gmra.mrb[108].mxu1 %v6137_v20  ;;  %v5923_v23 = vsel %vm263_vm0, %v11675_v58, %v5922_v59  ;;  %v6290_v51 = vshrl.u32 %v5922_v59, 16  ;;  %v6293_v25 = vshll.u32 %v5922_v59, 16 }
 0x748   :  { %10653 = vrsqrt.f32 %v5767_v5  ;;  %v5926_v37 = vor.u32 %v5925_v62, %v5924_v24  ;;  %v5915_v6 = vsel %vm931_vm7, %v11675_v58, %v5914_v43  ;;  %v5918_v56 = vor.u32 %v13288_v45, %v5914_v43  ;;  %v10547_v24 = vld [vmem:[%s14116_s1 + $0x830] sm:$0xff]  }
 0x749   :  { %v6282_v16 = vshrl.u32 %v5923_v23, 16  ;;  %v6265_v32 = vshrl.u32 %v5915_v6, 16  ;;  %v6268_v2 = vshll.u32 %v5915_v6, 16  ;;  %v6285_v39 = vshll.u32 %v5923_v23, 16  ;;  %9945 = vmatpush3.bf16.msra.mxu0 %v10541_v12  ;;  %9905 = vmatpush3.bf16.msra.mxu1 %v10542_v61  ;;  %v10548_v12 = vld [vmem:[%s14116_s1 + $0x7b0] sm:$0xff]  }
 0x74a   :  { %v6292_v47 = vrot.slane %v6290_v51, 6  ;;  %v6299_v60 = vshrl.u32 %v5926_v37, 16  ;;  %v6302_v59 = vshll.u32 %v5926_v37, 16  ;;  %v6273_v5 = vshrl.u32 %v5918_v56, 16  ;;  %9946 = vmatprep.subr.bf16.mxu0 %v10543_v49  ;;  %9906 = vmatprep.subr.bf16.mxu1 %v10544_v19 }
 0x74b   :  { %v6276_v20 = vshll.u32 %v5918_v56, 16  ;;  %v6267_v61 = vrot.slane %v6265_v32, 6  ;;  %v6270_v62 = vrot.slane %v6268_v2, 7  ;;  %v6284_v43 = vrot.slane %v6282_v16, 6 }
 0x74c   :  { %v6287_v23 = vrot.slane %v6285_v39, 7  ;;  %v6301_v51 = vrot.slane %v6299_v60, 6  ;;  %v6304_v6 = vrot.slane %v6302_v59, 7  ;;  %v6275_v57 = vrot.slane %v6273_v5, 6  ;;  %v10550_v39 = vld [vmem:[%s14116_s1 + $0x770] sm:$0xff]  }
 0x74d   :  { %v6278_v37 = vrot.slane %v6276_v20, 7  ;;  %v6271_v28 = vor.u32 %v6270_v62, %v6267_v61  ;;  %v6295_v49 = vrot.slane %v6293_v25, 7  ;;  %v6260_v19 = vrot.slane %v13288_v45, 6  ;;  %9947 = vmatpush3.bf16.msra.mxu0 %v10545_v13  ;;  %9907 = vmatpush3.bf16.msra.mxu1 %v10546_v63 }
 0x74e   :  { %v6288_v56 = vor.u32 %v6287_v23, %v6284_v43  ;;  %v6305_v27 = vor.u32 %v6304_v6, %v6301_v51  ;;  %v6261_v16 = vrot.slane %v13285_v34, 7  ;;  %v5978_v2 = vor.u32 %v5977_v1, %v5976_v44  ;;  %9948 = vmatprep.subr.bf16.mxu0 %v10547_v24  ;;  %9908 = vmatprep.subr.bf16.mxu1 %v10548_v12  ;;  %v10554_v23 = vld [vmem:[%s14116_s1 + $0x778] sm:$0xff]  }
 0x74f   :  { %v6279_v32 = vor.u32 %v6278_v37, %v6275_v57  ;;  %v6296_v25 = vor.u32 %v6295_v49, %v6292_v47  ;;  %v5967_v13 = vsel %vm931_vm7, %v11675_v58, %v5966_v41  ;;  %v5970_v63 = vor.u32 %v13275_v17, %v5966_v41  ;;  %v10551_v57 = vld [vmem:[%s14116_s1 + $0x838] sm:$0xff]  }
 0x750   :  { %v5975_v60 = vsel %vm263_vm0, %v11675_v58, %v13282_v8  ;;  %7134 = vmatprep.mubr.bf16.mxu0 %v6305_v27  ;;  %v6262_v1 = vor.u32 %v6261_v16, %v6260_v19  ;;  %v6425_v59 = vshrl.u32 %v5978_v2, 16  ;;  %v6428_v5 = vshll.u32 %v5978_v2, 16  ;;  %v10552_v47 = vld [vmem:[%s14116_s1 + $0x7b8] sm:$0xff]  }
 0x751   :  { %v6280_v44 = vsel %vm2839_vm10, %v6271_v28, %v6279_v32  ;;  %v6297_v41 = vsel %vm2839_vm10, %v6288_v56, %v6296_v25  ;;  %v6391_v24 = vshrl.u32 %v5967_v13, 16  ;;  %v6394_v12 = vshll.u32 %v5967_v13, 16  ;;  %9949 = vmatpush3.bf16.msra.mxu0 %v10549_v4  ;;  %v10553_v27 = vld [vmem:[%s14116_s1 + $0x7f8] sm:$0xff]   ;;  %9909 = vmatpush3.bf16.msra.mxu1 %v10550_v39 }
 0x752   :  { %v13349_v20 = vpop.eup %10653  ;;  %7069 = vmatprep.mubr.bf16.mxu1 %v6280_v44  ;;  %v6399_v61 = vshrl.u32 %v5970_v63, 16  ;;  %7135 = vmatmul.mubr.bf16.gmra.mrb[104].mxu0 %v6297_v41  ;;  %v6263_v4 = vsel %vm2839_vm10, %v11893_v11, %v6262_v1  ;;  %v6427_v43 = vrot.slane %v6425_v59, 6  ;;  %v6430_v54 = vrot.slane %v6428_v5, 7 }
 0x753   :  { %v13359_v28 = vmul.f32 %v13349_v20, %v5765_v52  ;;  %v13365_v62 = vmul.f32 %v13349_v20, %v5766_v50  ;;  %7070 = vmatmul.mubr.bf16.gmra.mrb[112].mxu1 %v6263_v4  ;;  %v6393_v52 = vrot.slane %v6391_v24, 6  ;;  %v6396_v51 = vrot.slane %v6394_v12, 7  ;;  %9950 = vmatprep.subr.bf16.mxu0 %v10551_v57 }
 0x754   :  { %v5842_v6 = vrot.slane %v13082_v21, 3  ;;  %v6401_v36 = vrot.slane %v6399_v61, 6  ;;  %v6402_v50 = vshll.u32 %v5970_v63, 16  ;;  %v6408_v37 = vshrl.u32 %v5975_v60, 16  ;;  %9910 = vmatprep.subr.bf16.mxu1 %v10552_v47 }
 0x755   :  { %v6411_v56 = vshll.u32 %v5975_v60, 16  ;;  %v6431_v49 = vor.u32 %v6430_v54, %v6427_v43  ;;  %v6397_v19 = vor.u32 %v6396_v51, %v6393_v52  ;;  %v6416_v32 = vshrl.u32 %v13282_v8, 16  ;;  %9951 = vmatpush3.bf16.msra.mxu0 %v10553_v27  ;;  %9911 = vmatpush3.bf16.msra.mxu1 %v10554_v23 }
 0x756   :  { %v6419_v16 = vshll.u32 %v13282_v8, 16  ;;  %v6404_v2 = vrot.slane %v6402_v50, 7  ;;  %v6410_v39 = vrot.slane %v6408_v37, 6  ;;  %v6386_v13 = vrot.slane %v13275_v17, 6 }
 0x757   :  { %v6413_v25 = vrot.slane %v6411_v56, 7  ;;  %7142 = vmatprep.mubr.bf16.mxu0 %v6431_v49  ;;  %v6418_v57 = vrot.slane %v6416_v32, 6  ;;  %v6387_v63 = vrot.slane %v13272_v38, 7  ;;  %v5843_v60 = vrot.slane %v13079_v9, 4 }
 0x758   :  { %v6421_v44 = vrot.slane %v6419_v16, 7  ;;  %v6405_v1 = vor.u32 %v6404_v2, %v6401_v36  ;;  %v5827_v5 = vrot.slane %v13082_v21, 2  ;;  %v5828_v8 = vrot.slane %v13079_v9, 3 }
 0x759   :  { %v6414_v59 = vor.u32 %v6413_v25, %v6410_v39  ;;  %v6388_v41 = vor.u32 %v6387_v63, %v6386_v13  ;;  %v5844_v24 = vor.u32 %v5843_v60, %v5842_v6  ;;  %v5839_v12 = vrot.slane %v13069_v14, 3 }
 0x75a   :  { %v6422_v47 = vor.u32 %v6421_v44, %v6418_v57  ;;  %v6406_v61 = vsel %vm2839_vm10, %v6397_v19, %v6405_v1  ;;  %v5829_v27 = vor.u32 %v5828_v8, %v5827_v5  ;;  %v5824_v4 = vrot.slane %v13069_v14, 2 }
 0x75b   :  { %v5894_v43 = vrot.slane %v13076_v53, 3  ;;  %7077 = vmatprep.mubr.bf16.mxu1 %v6406_v61  ;;  %v6389_v21 = vsel %vm2839_vm10, %v11893_v11, %v6388_v41  ;;  %v5848_v9 = vsel %vm2684_vm12, %v5844_v24, %v11890_v40  ;;  %v6107_v54 = vshrl.u32 %v5844_v24, 16 }
 0x75c   :  { %v6423_v23 = vsel %vm2839_vm10, %v6414_v59, %v6422_v47  ;;  %7078 = vmatmul.mubr.bf16.gmra.mrb[116].mxu1 %v6389_v21  ;;  %v6110_v52 = vshll.u32 %v5844_v24, 16  ;;  %v6115_v51 = vshrl.u32 %v5848_v9, 16  ;;  %v6118_v6 = vshll.u32 %v5848_v9, 16 }
 0x75d   :  { %7143 = vmatmul.mubr.bf16.gmra.mrb[108].mxu0 %v6423_v23  ;;  %v5838_v14 = vsel %vm2667_vm11, %v5829_v27, %v11915_v18  ;;  %v6109_v36 = vrot.slane %v6107_v54, 6  ;;  %v6073_v50 = vshrl.u32 %v5829_v27, 16  ;;  %v6076_v37 = vshll.u32 %v5829_v27, 16 }
 0x75e   :  { %v6081_v56 = vshrl.u32 %v5838_v14, 16  ;;  %v6112_v49 = vrot.slane %v6110_v52, 7  ;;  %v6117_v19 = vrot.slane %v6115_v51, 6  ;;  %v6120_v32 = vrot.slane %v6118_v6, 7 }
 0x75f   :  { %v6084_v11 = vshll.u32 %v5838_v14, 16  ;;  %v6075_v16 = vrot.slane %v6073_v50, 6  ;;  %v6078_v2 = vrot.slane %v6076_v37, 7  ;;  %v5841_v25 = vsel %vm307_vm2, %v5839_v12, %v11885_v22 }
 0x760   :  { %v6083_v39 = vrot.slane %v6081_v56, 6  ;;  %v6113_v13 = vor.u32 %v6112_v49, %v6109_v36  ;;  %v6121_v57 = vor.u32 %v6120_v32, %v6117_v19  ;;  %v6090_v63 = vshrl.u32 %v5839_v12, 16 }
 0x761   :  { %v6086_v44 = vrot.slane %v6084_v11, 7  ;;  %v6079_v60 = vor.u32 %v6078_v2, %v6075_v16  ;;  %v6093_v1 = vshll.u32 %v5839_v12, 16  ;;  %v6098_v59 = vshrl.u32 %v5841_v25, 16 }
 0x762   :  { %v6101_v5 = vshll.u32 %v5841_v25, 16  ;;  %v6122_v8 = vsel %vm2839_vm10, %v6113_v13, %v6121_v57  ;;  %v6092_v41 = vrot.slane %v6090_v63, 6  ;;  %v5826_v24 = vsel %vm286_vm1, %v5824_v4, %v11414_v31 }
 0x763   :  { %v6087_v47 = vor.u32 %v6086_v44, %v6083_v39  ;;  %7248 = vmatprep.mubr.bf16.mxu0 %v6122_v8  ;;  %v6095_v61 = vrot.slane %v6093_v1, 7  ;;  %v6100_v27 = vrot.slane %v6098_v59, 6  ;;  %v6056_v21 = vshrl.u32 %v5824_v4, 16 }
 0x764   :  { %v6103_v23 = vrot.slane %v6101_v5, 7  ;;  %v6059_v54 = vshll.u32 %v5824_v4, 16  ;;  %v6064_v52 = vshrl.u32 %v5826_v24, 16  ;;  %v6067_v51 = vshll.u32 %v5826_v24, 16 }
 0x765   :  { %v6088_v9 = vsel %vm2839_vm10, %v6079_v60, %v6087_v47  ;;  %v6096_v12 = vor.u32 %v6095_v61, %v6092_v41  ;;  %v6058_v14 = vrot.slane %v6056_v21, 6  ;;  %v5895_v36 = vrot.slane %v13073_v30, 4 }
 0x766   :  { %7183 = vmatprep.mubr.bf16.mxu1 %v6088_v9  ;;  %v6104_v6 = vor.u32 %v6103_v23, %v6100_v27  ;;  %v6061_v50 = vrot.slane %v6059_v54, 7  ;;  %v6066_v37 = vrot.slane %v6064_v52, 6  ;;  %v6069_v56 = vrot.slane %v6067_v51, 7 }
 0x767   :  { %v5879_v49 = vrot.slane %v13076_v53, 2  ;;  %v5896_v32 = vor.u32 %v5895_v36, %v5894_v43  ;;  %v5880_v11 = vrot.slane %v13073_v30, 3  ;;  %v5891_v4 = vrot.slane %v13055_v29, 3 }
 0x768   :  { %v6105_v19 = vsel %vm2839_vm10, %v6096_v12, %v6104_v6  ;;  %v6062_v16 = vor.u32 %v6061_v50, %v6058_v14  ;;  %v6070_v2 = vor.u32 %v6069_v56, %v6066_v37  ;;  %v5876_v39 = vrot.slane %v13055_v29, 2 }
 0x769   :  { %7249 = vmatmul.mubr.bf16.vlgmr.msra.gmra.mrb[112].mxu0 %v6105_v19  ;;  %v5946_v25 = vrot.slane %v13288_v45, 3  ;;  %v5900_v13 = vsel %vm2684_vm12, %v5896_v32, %v11890_v40  ;;  %v6233_v57 = vshrl.u32 %v5896_v32, 16  ;;  %v6236_v44 = vshll.u32 %v5896_v32, 16 }
 0x76a   :  { %v5881_v53 = vor.u32 %v5880_v11, %v5879_v49  ;;  %v6071_v63 = vsel %vm2839_vm10, %v6062_v16, %v6070_v2  ;;  %v6241_v43 = vshrl.u32 %v5900_v13, 16  ;;  %v6244_v60 = vshll.u32 %v5900_v13, 16 }
 0x76b   :  { %v5893_v30 = vsel %vm307_vm2, %v5891_v4, %v11885_v22  ;;  %7184 = vmatmul.mubr.bf16.vlgmr.msra.gmra.mrb[120].mxu1 %v6071_v63  ;;  %v6235_v1 = vrot.slane %v6233_v57, 6  ;;  %v6238_v59 = vrot.slane %v6236_v44, 7  ;;  %v6216_v21 = vshrl.u32 %v5891_v4, 16 }
 0x76c   :  { %v5890_v29 = vsel %vm2667_vm11, %v5881_v53, %v11915_v18  ;;  %v6199_v5 = vshrl.u32 %v5881_v53, 16  ;;  %v6243_v8 = vrot.slane %v6241_v43, 6  ;;  %v6246_v47 = vrot.slane %v6244_v60, 7 }
 0x76d   :  { %v6202_v41 = vshll.u32 %v5881_v53, 16  ;;  %v6207_v24 = vshrl.u32 %v5890_v29, 16  ;;  %v6239_v61 = vor.u32 %v6238_v59, %v6235_v1  ;;  %v6210_v23 = vshll.u32 %v5890_v29, 16 }
 0x76e   :  { %v6201_v27 = vrot.slane %v6199_v5, 6  ;;  %v6247_v9 = vor.u32 %v6246_v47, %v6243_v8  ;;  %v6219_v51 = vshll.u32 %v5891_v4, 16  ;;  %v6218_v6 = vrot.slane %v6216_v21, 6 }
 0x76f   :  { %v6204_v54 = vrot.slane %v6202_v41, 7  ;;  %v6209_v52 = vrot.slane %v6207_v24, 6  ;;  %v6212_v12 = vrot.slane %v6210_v23, 7  ;;  %v6224_v14 = vshrl.u32 %v5893_v30, 16 }
 0x770   :  { %v6227_v36 = vshll.u32 %v5893_v30, 16  ;;  %v6248_v50 = vsel %vm2839_vm10, %v6239_v61, %v6247_v9  ;;  %v6221_v56 = vrot.slane %v6219_v51, 7  ;;  %v5878_v49 = vsel %vm286_vm1, %v5876_v39, %v11414_v31 }
 0x771   :  { %v6205_v37 = vor.u32 %v6204_v54, %v6201_v27  ;;  %7256 = vmatprep.mubr.bf16.mxu0 %v6248_v50  ;;  %v6213_v19 = vor.u32 %v6212_v12, %v6209_v52  ;;  %v6226_v32 = vrot.slane %v6224_v14, 6  ;;  %v6182_v16 = vshrl.u32 %v5876_v39, 16 }
 0x772   :  { %v6229_v11 = vrot.slane %v6227_v36, 7  ;;  %v6222_v2 = vor.u32 %v6221_v56, %v6218_v6  ;;  %v6185_v13 = vshll.u32 %v5876_v39, 16  ;;  %v6190_v57 = vshrl.u32 %v5878_v49, 16 }
 0x773   :  { %v6193_v4 = vshll.u32 %v5878_v49, 16  ;;  %v6214_v44 = vsel %vm2839_vm10, %v6205_v37, %v6213_v19  ;;  %v6184_v63 = vrot.slane %v6182_v16, 6  ;;  %v5947_v43 = vrot.slane %v13285_v34, 4 }
 0x774   :  { %v6230_v53 = vor.u32 %v6229_v11, %v6226_v32  ;;  %7191 = vmatprep.mubr.bf16.mxu1 %v6214_v44  ;;  %v6187_v60 = vrot.slane %v6185_v13, 7  ;;  %v6192_v30 = vrot.slane %v6190_v57, 6  ;;  %v5931_v59 = vrot.slane %v13288_v45, 2 }
 0x775   :  { %v6195_v1 = vrot.slane %v6193_v4, 7  ;;  %v5948_v5 = vor.u32 %v5947_v43, %v5946_v25  ;;  %v5932_v8 = vrot.slane %v13285_v34, 3  ;;  %v5943_v39 = vrot.slane %v13266_v3, 3 }
 0x776   :  { %v6231_v29 = vsel %vm2839_vm10, %v6222_v2, %v6230_v53  ;;  %v6188_v47 = vor.u32 %v6187_v60, %v6184_v63  ;;  %v5928_v24 = vrot.slane %v13266_v3, 2  ;;  %v5998_v61 = vrot.slane %v13275_v17, 3 }
 0x777   :  { %7257 = vmatmul.mubr.bf16.gmra.mrb[116].mxu0 %v6231_v29  ;;  %v6196_v41 = vor.u32 %v6195_v1, %v6192_v30  ;;  %v5952_v27 = vsel %vm2684_vm12, %v5948_v5, %v11890_v40  ;;  %v6359_v23 = vshrl.u32 %v5948_v5, 16  ;;  %v6362_v21 = vshll.u32 %v5948_v5, 16 }
 0x778   :  { %v5933_v45 = vor.u32 %v5932_v8, %v5931_v59  ;;  %v6367_v25 = vshrl.u32 %v5952_v27, 16  ;;  %v6370_v54 = vshll.u32 %v5952_v27, 16  ;;  %v5945_v34 = vsel %vm307_vm2, %v5943_v39, %v11885_v22 }
 0x779   :  { %v6197_v9 = vsel %vm2839_vm10, %v6188_v47, %v6196_v41  ;;  %v6361_v52 = vrot.slane %v6359_v23, 6  ;;  %v6364_v51 = vrot.slane %v6362_v21, 7  ;;  %v6342_v19 = vshrl.u32 %v5943_v39, 16 }
 0x77a   :  { %7192 = vmatmul.mubr.bf16.gmra.mrb[124].mxu1 %v6197_v9  ;;  %v5942_v3 = vsel %vm2667_vm11, %v5933_v45, %v11915_v18  ;;  %v6325_v12 = vshrl.u32 %v5933_v45, 16  ;;  %v6369_v6 = vrot.slane %v6367_v25, 6  ;;  %v6372_v14 = vrot.slane %v6370_v54, 7 }
 0x77b   :  { %v6328_v36 = vshll.u32 %v5933_v45, 16  ;;  %v6333_v50 = vshrl.u32 %v5942_v3, 16  ;;  %v6365_v37 = vor.u32 %v6364_v51, %v6361_v52  ;;  %v6336_v49 = vshll.u32 %v5942_v3, 16 }
 0x77c   :  { %v6327_v56 = vrot.slane %v6325_v12, 6  ;;  %v6373_v32 = vor.u32 %v6372_v14, %v6369_v6  ;;  %v6345_v2 = vshll.u32 %v5943_v39, 16  ;;  %v6344_v57 = vrot.slane %v6342_v19, 6 }
 0x77d   :  { %v6330_v11 = vrot.slane %v6328_v36, 7  ;;  %v6335_v16 = vrot.slane %v6333_v50, 6  ;;  %v6338_v13 = vrot.slane %v6336_v49, 7  ;;  %v6350_v4 = vshrl.u32 %v5945_v34, 16 }
 0x77e   :  { %v6353_v44 = vshll.u32 %v5945_v34, 16  ;;  %v6374_v53 = vsel %vm2839_vm10, %v6365_v37, %v6373_v32  ;;  %v6347_v43 = vrot.slane %v6345_v2, 7  ;;  %v5930_v60 = vsel %vm286_vm1, %v5928_v24, %v11414_v31 }
 0x77f   :  { %v6331_v63 = vor.u32 %v6330_v11, %v6327_v56  ;;  %7264 = vmatprep.mubr.bf16.mxu0 %v6374_v53  ;;  %v6339_v30 = vor.u32 %v6338_v13, %v6335_v16  ;;  %v6352_v1 = vrot.slane %v6350_v4, 6  ;;  %v6308_v29 = vshrl.u32 %v5928_v24, 16 }
 0x780   :  { %v6355_v59 = vrot.slane %v6353_v44, 7  ;;  %v6348_v5 = vor.u32 %v6347_v43, %v6344_v57  ;;  %v6311_v8 = vshll.u32 %v5928_v24, 16  ;;  %v6316_v47 = vshrl.u32 %v5930_v60, 16 }
 0x781   :  { %v6319_v39 = vshll.u32 %v5930_v60, 16  ;;  %v6340_v41 = vsel %vm2839_vm10, %v6331_v63, %v6339_v30  ;;  %v6310_v23 = vrot.slane %v6308_v29, 6  ;;  %v5999_v21 = vrot.slane %v13272_v38, 4 }
 0x782   :  { %v6356_v27 = vor.u32 %v6355_v59, %v6352_v1  ;;  %7199 = vmatprep.mubr.bf16.mxu1 %v6340_v41  ;;  %v6313_v45 = vrot.slane %v6311_v8, 7  ;;  %v6318_v9 = vrot.slane %v6316_v47, 6  ;;  %v5983_v54 = vrot.slane %v13275_v17, 2 }
 0x783   :  { %v6321_v25 = vrot.slane %v6319_v39, 7  ;;  %v6000_v52 = vor.u32 %v5999_v21, %v5998_v61  ;;  %v5984_v51 = vrot.slane %v13272_v38, 3  ;;  %v5995_v24 = vrot.slane %v13146_v55, 3 }
 0x784   :  { %v6357_v34 = vsel %vm2839_vm10, %v6348_v5, %v6356_v27  ;;  %v6314_v3 = vor.u32 %v6313_v45, %v6310_v23  ;;  %v5980_v6 = vrot.slane %v13146_v55, 2  ;;  %v14142_v14 = vsub.f32 %v13045_v48, %v13138_v7 }
 0x785   :  { %7265 = vmatmul.mubr.bf16.gmra.mrb[120].mxu0 %v6357_v34  ;;  %v6322_v12 = vor.u32 %v6321_v25, %v6318_v9  ;;  %v6004_v17 = vsel %vm2684_vm12, %v6000_v52, %v11890_v40  ;;  %v6485_v50 = vshrl.u32 %v6000_v52, 16  ;;  %v6488_v61 = vshll.u32 %v6000_v52, 16 }
 0x786   :  { %v13443_v36 = vmul.f32 %v13225_v10, %v14142_v14  ;;  %v5985_v37 = vor.u32 %v5984_v51, %v5983_v54  ;;  %v6493_v56 = vshrl.u32 %v6004_v17, 16  ;;  %v6496_v49 = vshll.u32 %v6004_v17, 16 }
 0x787   :  { %v6323_v38 = vsel %vm2839_vm10, %v6314_v3, %v6322_v12  ;;  %v5997_v19 = vsel %vm307_vm2, %v5995_v24, %v11885_v22  ;;  %v6487_v55 = vrot.slane %v6485_v50, 6  ;;  %v6490_v32 = vrot.slane %v6488_v61, 7 }
 0x788   :  { %7200 = vmatmul.mubr.bf16.gmra.mrb[128].mxu1 %v6323_v38  ;;  %v5994_v48 = vsel %vm2667_vm11, %v5985_v37, %v11915_v18  ;;  %v6451_v11 = vshrl.u32 %v5985_v37, 16  ;;  %v6495_v16 = vrot.slane %v6493_v56, 6  ;;  %v6498_v2 = vrot.slane %v6496_v49, 7 }
 0x789   :  { %v6454_v40 = vshll.u32 %v5985_v37, 16  ;;  %v6459_v13 = vshrl.u32 %v5994_v48, 16  ;;  %v6491_v57 = vor.u32 %v6490_v32, %v6487_v55  ;;  %v6462_v44 = vshll.u32 %v5994_v48, 16 }
 0x78a   :  { %v6453_v4 = vrot.slane %v6451_v11, 6  ;;  %v6468_v53 = vshrl.u32 %v5995_v24, 16  ;;  %v6499_v63 = vor.u32 %v6498_v2, %v6495_v16  ;;  %v6471_v30 = vshll.u32 %v5995_v24, 16 }
 0x78b   :  { %v6456_v43 = vrot.slane %v6454_v40, 7  ;;  %v6461_v60 = vrot.slane %v6459_v13, 6  ;;  %v6464_v22 = vrot.slane %v6462_v44, 7  ;;  %v6476_v59 = vshrl.u32 %v5997_v19, 16 }
 0x78c   :  { %v6470_v1 = vrot.slane %v6468_v53, 6  ;;  %v6479_v29 = vshll.u32 %v5997_v19, 16  ;;  %v6500_v5 = vsel %vm2839_vm10, %v6491_v57, %v6499_v63  ;;  %v6473_v8 = vrot.slane %v6471_v30, 7 }
 0x78d   :  { %v6457_v18 = vor.u32 %v6456_v43, %v6453_v4  ;;  %v5982_v47 = vsel %vm286_vm1, %v5980_v6, %v11414_v31  ;;  %7272 = vmatprep.mubr.bf16.mxu0 %v6500_v5  ;;  %v6465_v39 = vor.u32 %v6464_v22, %v6461_v60  ;;  %v6478_v41 = vrot.slane %v6476_v59, 6  ;;  %v10556_v59 = vld [vmem:[%s14116_s1 + $0x840] sm:$0xff]  }
 0x78e   :  { %v6481_v27 = vrot.slane %v6479_v29, 7  ;;  %v6434_v23 = vshrl.u32 %v5980_v6, 16  ;;  %v6474_v21 = vor.u32 %v6473_v8, %v6470_v1  ;;  %v6437_v45 = vshll.u32 %v5980_v6, 16  ;;  %v10555_v1 = vld [vmem:[%s14116_s1 + $0x880] sm:$0xff]  }
 0x78f   :  { %v6442_v9 = vshrl.u32 %v5982_v47, 16  ;;  %v6445_v25 = vshll.u32 %v5982_v47, 16  ;;  %v6466_v54 = vsel %vm2839_vm10, %v6457_v18, %v6465_v39  ;;  %v14143_v51 = vsub.f32 %v13047_v35, %v13138_v7  ;;  %v10557_v29 = vld [vmem:[%s14116_s1 + $0x900] sm:$0xff]   ;;  %v10559_v47 = vld [vmem:[%s14116_s1 + $0x888] sm:$0xff]   ;;  %9976 = vmatprep.subr.bf16.mxu1 %v10555_v1 }
 0x790   :  { %v6482_v34 = vor.u32 %v6481_v27, %v6478_v41  ;;  %v6436_v52 = vrot.slane %v6434_v23, 6  ;;  %7207 = vmatprep.mubr.bf16.mxu1 %v6466_v54  ;;  %v6439_v3 = vrot.slane %v6437_v45, 7  ;;  %v14144_v61 = vsub.f32 %v13129_v26, %v13220_v15  ;;  %v10558_v8 = vld [vmem:[%s14116_s1 + $0x8c0] sm:$0xff]   ;;  %10016 = vmatprep.subr.bf16.mxu0 %v10557_v29  ;;  %v10561_v39 = vld [vmem:[%s14116_s1 + $0x908] sm:$0xff]   ;;  %v10565_v45 = vld [vmem:[%s14116_s1 + $0x910] sm:$0xff]  }
 0x791   :  { %v13460_v24 = vmul.f32 %v13225_v10, %v14143_v51  ;;  %v6444_v12 = vrot.slane %v6442_v9, 6  ;;  %v6447_v14 = vrot.slane %v6445_v25, 7  ;;  %v14145_v35 = vsub.f32 %v13131_v46, %v13220_v15  ;;  %9977 = vmatpush3.bf16.msra.mxu1 %v10556_v59  ;;  %10017 = vmatpush3.bf16.msra.mxu0 %v10558_v8  ;;  %v10560_v27 = vld [vmem:[%s14116_s1 + $0x848] sm:$0xff]   ;;  %v10564_v9 = vld [vmem:[%s14116_s1 + $0x850] sm:$0xff]  }
 0x792   :  { %v6483_v17 = vsel %vm2839_vm10, %v6474_v21, %v6482_v34  ;;  %v6440_v6 = vor.u32 %v6439_v3, %v6436_v52  ;;  %v13467_v37 = vmul.f32 %v13349_v20, %v14144_v61  ;;  %v10562_v23 = vld [vmem:[%s14116_s1 + $0x8c8] sm:$0xff]   ;;  %9978 = vmatprep.subr.bf16.mxu1 %v10559_v47  ;;  %10018 = vmatprep.subr.bf16.mxu0 %v10561_v39  ;;  %v10563_v21 = vld [vmem:[%s14116_s1 + $0x890] sm:$0xff]   ;;  %v10567_v34 = vld [vmem:[%s14116_s1 + $0x898] sm:$0xff]  }
 0x793   :  { %7273 = vmatmul.mubr.bf16.gmra.mrb[124].mxu0 %v6483_v17  ;;  %v6448_v50 = vor.u32 %v6447_v14, %v6444_v12  ;;  %v13473_v7 = vmul.f32 %v13349_v20, %v14145_v35  ;;  %v10566_v25 = vld [vmem:[%s14116_s1 + $0x8d0] sm:$0xff]   ;;  %v10569_v52 = vld [vmem:[%s14116_s1 + $0x918] sm:$0xff]  }
 0x794   :  { %v10568_v35 = vld [vmem:[%s14116_s1 + $0x858] sm:$0xff]   ;;  %v10580_v47 = vld [vmem:[%s14116_s1 + $0x870] sm:$0xff]  }
 0x795   :  { %v6449_v10 = vsel %vm2839_vm10, %v6440_v6, %v6448_v50  ;;  %9979 = vmatpush3.bf16.msra.mxu1 %v10560_v27  ;;  %10019 = vmatpush3.bf16.msra.mxu0 %v10562_v23  ;;  %v10582_v39 = vld [vmem:[%s14116_s1 + $0x8f0] sm:$0xff]   ;;  %v10583_v23 = vld [vmem:[%s14116_s1 + $0x8b8] sm:$0xff]  }
 0x796   :  { %7208 = vmatmul.mubr.bf16.gmra.mrb[132].mxu1 %v6449_v10  ;;  %9980 = vmatprep.subr.bf16.mxu1 %v10563_v21  ;;  %v10570_v10 = vld [vmem:[%s14116_s1 + $0x8d8] sm:$0xff]  }
 0x797   :  { %10020 = vmatprep.subr.bf16.mxu0 %v10565_v45  ;;  %v10585_v21 = vld [vmem:[%s14116_s1 + $0x938] sm:$0xff]  }
 0x798   :  { %v10584_v45 = vld [vmem:[%s14116_s1 + $0x878] sm:$0xff]  }
 0x799   :  { %9981 = vmatpush3.bf16.msra.mxu1 %v10564_v9  ;;  %10021 = vmatpush3.bf16.msra.mxu0 %v10566_v25  ;;  %v10586_v9 = vld [vmem:[%s14116_s1 + $0x8f8] sm:$0xff]   ;;  %v13591_v25 = vld [vmem:[%s14116_s1 + $0x940] sm:$0xff]  }
 0x79a   :  { %9982 = vmatprep.subr.bf16.mxu1 %v10567_v34  ;;  %10022 = vmatprep.subr.bf16.mxu0 %v10569_v52 }
 0x79d   :  { %9983 = vmatpush3.bf16.msra.mxu1 %v10568_v35  ;;  %10023 = vmatpush3.bf16.msra.mxu0 %v10570_v10 }
 0x80a   :  { %v9872_v38 = vpop.f32.mrb[96].mxu0  ;;  %v9832_v56 = vpop.f32.mrb[104].mxu1 }
 0x80b   :  { %v9873_v49 = vpop.f32.mrb[97].mxu0  ;;  %v9833_v19 = vpop.f32.mrb[105].mxu1 }
 0x80c   :  { %v9874_v55 = vadd.f32 %v9873_v49, %v9872_v38  ;;  %v9834_v32 = vadd.f32 %v9833_v19, %v9832_v56  ;;  %v9875_v48 = vpop.f32.mrb[98].mxu0  ;;  %v9835_v26 = vpop.f32.mrb[106].mxu1  ;;  %v10571_v49 = vld [vmem:[%s14116_s1 + $0x8a0] sm:$0xff]  }
 0x80d   :  { %v9876_v11 = vpop.f32.mrb[99].mxu0  ;;  %v9836_v16 = vpop.f32.mrb[107].mxu1  ;;  %v10573_v19 = vld [vmem:[%s14116_s1 + $0x920] sm:$0xff]   ;;  %9984 = vmatprep.subr.bf16.mxu1 %v10571_v49 }
 0x80e   :  { %v13476_v2 = vadd.f32 %v9874_v55, %v9834_v32  ;;  %v9877_v40 = vadd.f32 %v9876_v11, %v9875_v48  ;;  %v9837_v46 = vadd.f32 %v9836_v16, %v9835_v26  ;;  %v10572_v26 = vld [vmem:[%s14116_s1 + $0x860] sm:$0xff]   ;;  %10024 = vmatprep.subr.bf16.mxu0 %v10573_v19  ;;  %v10575_v16 = vld [vmem:[%s14116_s1 + $0x8a8] sm:$0xff]  }
 0x80f   :  { %v10574_v11 = vld [vmem:[%s14116_s1 + $0x8e0] sm:$0xff]   ;;  %9985 = vmatpush3.bf16.msra.mxu1 %v10572_v26 }
 0x810   :  { %v13478_v15 = vadd.f32 %v9877_v40, %v9837_v46  ;;  %v10577_v40 = vld [vmem:[%s14116_s1 + $0x928] sm:$0xff]   ;;  %10025 = vmatpush3.bf16.msra.mxu0 %v10574_v11  ;;  %9986 = vmatprep.subr.bf16.mxu1 %v10575_v16 }
 0x811   :  { %10026 = vmatprep.subr.bf16.mxu0 %v10577_v40 }
 0x817   :  { %v9878_v20 = vpop.f32.mrb[100].mxu0 }
 0x818   :  { %v9879_v13 = vpop.f32.mrb[101].mxu0 }
 0x819   :  { %v9880_v57 = vadd.f32 %v9879_v13, %v9878_v20  ;;  %v9881_v4 = vpop.f32.mrb[102].mxu0 }
 0x81a   :  { %v9838_v44 = vpop.f32.mrb[108].mxu1  ;;  %v9882_v53 = vpop.f32.mrb[103].mxu0 }
 0x81b   :  { %v9839_v63 = vpop.f32.mrb[109].mxu1  ;;  %v9883_v43 = vadd.f32 %v9882_v53, %v9881_v4  ;;  %v10576_v4 = vld [vmem:[%s14116_s1 + $0x868] sm:$0xff]  }
 0x81c   :  { %v9840_v60 = vadd.f32 %v9839_v63, %v9838_v44  ;;  %v9841_v30 = vpop.f32.mrb[110].mxu1  ;;  %v10578_v44 = vld [vmem:[%s14116_s1 + $0x8e8] sm:$0xff]   ;;  %9987 = vmatpush3.bf16.msra.mxu1 %v10576_v4 }
 0x81d   :  { %v9842_v22 = vpop.f32.mrb[111].mxu1  ;;  %10027 = vmatpush3.bf16.msra.mxu0 %v10578_v44 }
 0x81e   :  { %v13489_v5 = vadd.f32 %v9880_v57, %v9840_v60  ;;  %v9843_v18 = vadd.f32 %v9842_v22, %v9841_v30  ;;  %v10579_v30 = vld [vmem:[%s14116_s1 + $0x8b0] sm:$0xff]  }
 0x81f   :  { %v10581_v22 = vld [vmem:[%s14116_s1 + $0x930] sm:$0xff]   ;;  %9988 = vmatprep.subr.bf16.mxu1 %v10579_v30 }
 0x820   :  { %v13500_v41 = vadd.f32 %v9883_v43, %v9843_v18  ;;  %10028 = vmatprep.subr.bf16.mxu0 %v10581_v22  ;;  %9989 = vmatpush3.bf16.msra.mxu1 %v10580_v47 }
 0x821   :  { %10029 = vmatpush3.bf16.msra.mxu0 %v10582_v39  ;;  %9990 = vmatprep.subr.bf16.mxu1 %v10583_v23 }
 0x822   :  { %10030 = vmatprep.subr.bf16.mxu0 %v10585_v21 }
 0x824   :  { %9991 = vmatpush3.bf16.msra.mxu1 %v10584_v45 }
 0x825   :  { %v9884_v54 = vpop.f32.mrb[104].mxu0  ;;  %10031 = vmatpush3.bf16.msra.mxu0 %v10586_v9  ;;  %10240 = vmatprep.subr.bf16.mxu1 %v13591_v25 }
 0x826   :  { %v9844_v51 = vpop.f32.mrb[112].mxu1  ;;  %v9885_v3 = vpop.f32.mrb[105].mxu0 }
 0x827   :  { %v9886_v12 = vadd.f32 %v9885_v3, %v9884_v54  ;;  %v9845_v14 = vpop.f32.mrb[113].mxu1  ;;  %v9887_v17 = vpop.f32.mrb[106].mxu0 }
 0x828   :  { %v9846_v6 = vadd.f32 %v9845_v14, %v9844_v51  ;;  %v9847_v50 = vpop.f32.mrb[114].mxu1  ;;  %v9888_v61 = vpop.f32.mrb[107].mxu0 }
 0x829   :  { %v9889_v38 = vadd.f32 %v9888_v61, %v9887_v17  ;;  %v9848_v56 = vpop.f32.mrb[115].mxu1 }
 0x82a   :  { %v13538_v55 = vadd.f32 %v9886_v12, %v9846_v6  ;;  %v9849_v32 = vadd.f32 %v9848_v56, %v9847_v50 }
 0x82c   :  { %v13540_v48 = vadd.f32 %v9889_v38, %v9849_v32 }
 0x82f   :  { %v9850_v20 = vpop.f32.mrb[116].mxu1 }
 0x830   :  { %v9890_v46 = vpop.f32.mrb[108].mxu0  ;;  %v9851_v57 = vpop.f32.mrb[117].mxu1 }
 0x831   :  { %v9891_v13 = vpop.f32.mrb[109].mxu0  ;;  %v9852_v63 = vadd.f32 %v9851_v57, %v9850_v20  ;;  %v9853_v60 = vpop.f32.mrb[118].mxu1 }
 0x832   :  { %v9892_v53 = vadd.f32 %v9891_v13, %v9890_v46  ;;  %v9893_v43 = vpop.f32.mrb[110].mxu0  ;;  %v9854_v59 = vpop.f32.mrb[119].mxu1 }
 0x833   :  { %v9894_v1 = vpop.f32.mrb[111].mxu0  ;;  %v9855_v8 = vadd.f32 %v9854_v59, %v9853_v60 }
 0x834   :  { %v13566_v29 = vadd.f32 %v9892_v53, %v9852_v63  ;;  %v9895_v18 = vadd.f32 %v9894_v1, %v9893_v43 }
 0x836   :  { %v13574_v27 = vadd.f32 %v9895_v18, %v9855_v8 }
 0x83c   :  { %v9952_v54 = vpop.f32.mrb[112].mxu0 }
 0x83d   :  { %v9953_v34 = vpop.f32.mrb[113].mxu0 }
 0x83e   :  { %v9954_v52 = vadd.f32 %v9953_v34, %v9952_v54  ;;  %v9955_v51 = vpop.f32.mrb[114].mxu0  ;;  %v9912_v3 = vpop.f32.mrb[120].mxu1 }
 0x83f   :  { %v9956_v12 = vpop.f32.mrb[115].mxu0  ;;  %v9913_v14 = vpop.f32.mrb[121].mxu1 }
 0x840   :  { %v9957_v17 = vadd.f32 %v9956_v12, %v9955_v51  ;;  %v9914_v6 = vadd.f32 %v9913_v14, %v9912_v3  ;;  %v9915_v50 = vpop.f32.mrb[122].mxu1 }
 0x841   :  { %v9916_v61 = vpop.f32.mrb[123].mxu1 }
 0x842   :  { %v7186_v35 = vadd.f32 %v9914_v6, %v13476_v2  ;;  %v9917_v10 = vadd.f32 %v9916_v61, %v9915_v50 }
 0x844   :  { %v13595_v38 = vadd.f32 %v9954_v52, %v7186_v35  ;;  %v7189_v56 = vadd.f32 %v9917_v10, %v13478_v15 }
 0x846   :  { %v13598_v49 = vadd.f32 %v9957_v17, %v7189_v56  ;;  %v7293_v19 = vmul.f32 %v13595_v38, %v13595_v38 }
 0x848   :  { %v7283_v32 = vadd.f32 %v13598_v49, %v13595_v38  ;;  %v7294_v26 = vmul.f32 %v13598_v49, %v13598_v49 }
 0x84a   :  { %v9958_v11 = vpop.f32.mrb[116].mxu0  ;;  %v7297_v16 = vadd.f32 %v7294_v26, %v7293_v19 }
 0x84b   :  { %v9959_v40 = vpop.f32.mrb[117].mxu0 }
 0x84c   :  { %v9960_v2 = vadd.f32 %v9959_v40, %v9958_v11  ;;  %v9961_v46 = vpop.f32.mrb[118].mxu0 }
 0x84d   :  { %v9918_v20 = vpop.f32.mrb[124].mxu1  ;;  %v9962_v13 = vpop.f32.mrb[119].mxu0 }
 0x84e   :  { %v9919_v57 = vpop.f32.mrb[125].mxu1  ;;  %v9963_v15 = vadd.f32 %v9962_v13, %v9961_v46 }
 0x84f   :  { %v9920_v4 = vadd.f32 %v9919_v57, %v9918_v20  ;;  %v9921_v44 = vpop.f32.mrb[126].mxu1 }
 0x850   :  { %v9922_v53 = vpop.f32.mrb[127].mxu1 }
 0x851   :  { %v7194_v63 = vadd.f32 %v9920_v4, %v13489_v5  ;;  %v9923_v43 = vadd.f32 %v9922_v53, %v9921_v44 }
 0x853   :  { %v13607_v60 = vadd.f32 %v9960_v2, %v7194_v63  ;;  %v7197_v30 = vadd.f32 %v9923_v43, %v13500_v41 }
 0x855   :  { %v7284_v22 = vadd.f32 %v7283_v32, %v13607_v60  ;;  %v7295_v1 = vmul.f32 %v13607_v60, %v13607_v60  ;;  %v13613_v59 = vadd.f32 %v9963_v15, %v7197_v30 }
 0x857   :  { %v7298_v18 = vadd.f32 %v7297_v16, %v7295_v1  ;;  %v7285_v8 = vadd.f32 %v7284_v22, %v13613_v59  ;;  %v7296_v47 = vmul.f32 %v13613_v59, %v13613_v59 }
 0x858   :  { %v9964_v39 = vpop.f32.mrb[120].mxu0 }
 0x859   :  { %v7286_v5 = vrot.slane %v7285_v8, 4  ;;  %v7299_v23 = vadd.f32 %v7298_v18, %v7296_v47  ;;  %v9965_v21 = vpop.f32.mrb[121].mxu0 }
 0x85a   :  { %v9966_v45 = vadd.f32 %v9965_v21, %v9964_v39  ;;  %v9967_v9 = vpop.f32.mrb[122].mxu0 }
 0x85b   :  { %v7287_v41 = vadd.f32 %v7286_v5, %v7285_v8  ;;  %v7300_v54 = vrot.slane %v7299_v23, 4  ;;  %v9924_v34 = vpop.f32.mrb[128].mxu1  ;;  %v9968_v52 = vpop.f32.mrb[123].mxu0 }
 0x85c   :  { %v9925_v51 = vpop.f32.mrb[129].mxu1  ;;  %v9969_v3 = vadd.f32 %v9968_v52, %v9967_v9 }
 0x85d   :  { %v7288_v12 = vrot.slane %v7287_v41, 2  ;;  %v7301_v14 = vadd.f32 %v7300_v54, %v7299_v23  ;;  %v9926_v17 = vadd.f32 %v9925_v51, %v9924_v34  ;;  %v9927_v6 = vpop.f32.mrb[130].mxu1 }
 0x85e   :  { %v9928_v50 = vpop.f32.mrb[131].mxu1 }
 0x85f   :  { %v7289_v61 = vadd.f32 %v7288_v12, %v7287_v41  ;;  %v7302_v35 = vrot.slane %v7301_v14, 2  ;;  %v7202_v10 = vadd.f32 %v9926_v17, %v13538_v55  ;;  %v9929_v56 = vadd.f32 %v9928_v50, %v9927_v6 }
 0x861   :  { %v7290_v19 = vrot.slane %v7289_v61, 1  ;;  %v7303_v32 = vadd.f32 %v7302_v35, %v7301_v14  ;;  %v13619_v26 = vadd.f32 %v9966_v45, %v7202_v10  ;;  %v7205_v11 = vadd.f32 %v9929_v56, %v13540_v48 }
 0x863   :  { %v7291_v16 = vadd.f32 %v7290_v19, %v7289_v61  ;;  %v7304_v40 = vrot.slane %v7303_v32, 1  ;;  %v13622_v2 = vadd.f32 %v9969_v3, %v7205_v11  ;;  %v7330_v55 = vmul.f32 %v13619_v26, %v13619_v26 }
 0x865   :  { %v7292_v46 = vmul.f32 0.03125, %v7291_v16  ;;  %v7305_v20 = vadd.f32 %v7304_v40, %v7303_v32  ;;  %v7320_v13 = vadd.f32 %v13622_v2, %v13619_v26  ;;  %v7331_v57 = vmul.f32 %v13622_v2, %v13622_v2  ;;  %v13654_v16 = vld [vmem:[%s14115_s2 + $0x1a] ss:$0 sm:$0xff] }
 0x866   :  { %v9970_v15 = vpop.f32.mrb[124].mxu0 }
 0x867   :  { %v7306_v4 = vmul.f32 0.03125, %v7305_v20  ;;  %v7307_v44 = vmul.f32 %v7292_v46, %v7292_v46  ;;  %v7310_v48 = vsub.f32 %v13595_v38, %v7292_v46  ;;  %v7311_v53 = vsub.f32 %v13598_v49, %v7292_v46  ;;  %v9971_v63 = vpop.f32.mrb[125].mxu0 }
 0x868   :  { %v7312_v43 = vsub.f32 %v13607_v60, %v7292_v46  ;;  %v7313_v30 = vsub.f32 %v13613_v59, %v7292_v46  ;;  %v7334_v22 = vadd.f32 %v7331_v57, %v7330_v55  ;;  %v9972_v1 = vadd.f32 %v9971_v63, %v9970_v15  ;;  %v9973_v18 = vpop.f32.mrb[126].mxu0 }
 0x869   :  { %v7308_v8 = vsub.f32 %v7306_v4, %v7307_v44  ;;  %v9930_v47 = vpop.f32.mrb[132].mxu1  ;;  %v9974_v39 = vpop.f32.mrb[127].mxu0 }
 0x86a   :  { %v9931_v5 = vpop.f32.mrb[133].mxu1  ;;  %v9975_v23 = vadd.f32 %v9974_v39, %v9973_v18 }
 0x86b   :  { %v7309_v21 = vmax.f32 %v7308_v8, 0.0  ;;  %v9932_v45 = vadd.f32 %v9931_v5, %v9930_v47  ;;  %v9933_v9 = vpop.f32.mrb[134].mxu1 }
 0x86c   :  { %v9934_v41 = vpop.f32.mrb[135].mxu1 }
 0x86d   :  { %v7314_v38 = vadd.f32 1e-05, %v7309_v21  ;;  %v7210_v49 = vadd.f32 %v9932_v45, %v13566_v29  ;;  %v9935_v54 = vadd.f32 %v9934_v41, %v9933_v9 }
 0x86f   :  { %10655 = vrsqrt.f32 %v7314_v38  ;;  %v13635_v60 = vadd.f32 %v9972_v1, %v7210_v49  ;;  %v7213_v59 = vadd.f32 %v9935_v54, %v13574_v27  ;;  %v13649_v27 = vld [vmem:[%s14115_s2 + $0x19] ss:$0 sm:$0xff] }
 0x871   :  { %v7321_v34 = vadd.f32 %v7320_v13, %v13635_v60  ;;  %v7332_v52 = vmul.f32 %v13635_v60, %v13635_v60  ;;  %v13641_v51 = vadd.f32 %v9975_v23, %v7213_v59 }
 0x873   :  { %v7335_v3 = vadd.f32 %v7334_v22, %v7332_v52  ;;  %v7322_v12 = vadd.f32 %v7321_v34, %v13641_v51  ;;  %v7333_v14 = vmul.f32 %v13641_v51, %v13641_v51 }
 0x875   :  { %v7323_v29 = vrot.slane %v7322_v12, 4  ;;  %v7336_v17 = vadd.f32 %v7335_v3, %v7333_v14 }
 0x877   :  { %v7324_v6 = vadd.f32 %v7323_v29, %v7322_v12  ;;  %v7337_v50 = vrot.slane %v7336_v17, 4 }
 0x879   :  { %v10656_v61 = vpop.eup %10655  ;;  %v7325_v35 = vrot.slane %v7324_v6, 2  ;;  %v7338_v10 = vadd.f32 %v7337_v50, %v7336_v17 }
 0x87a   :  { %v7318_v56 = vmul.f32 %v10656_v61, %v7312_v43  ;;  %v7319_v19 = vmul.f32 %v10656_v61, %v7313_v30  ;;  %v7316_v32 = vmul.f32 %v10656_v61, %v7310_v48  ;;  %v7317_v11 = vmul.f32 %v10656_v61, %v7311_v53 }
 0x87b   :  { %v7326_v40 = vadd.f32 %v7325_v35, %v7324_v6  ;;  %v7339_v46 = vrot.slane %v7338_v10, 2 }
 0x87c   :  { %v7363_v20 = vmul.f32 %v13649_v27, %v7318_v56  ;;  %v7364_v13 = vmul.f32 %v13649_v27, %v7319_v19  ;;  %v7361_v57 = vmul.f32 %v13649_v27, %v7316_v32  ;;  %v7362_v55 = vmul.f32 %v13649_v27, %v7317_v11 }
 0x87d   :  { %v7327_v15 = vrot.slane %v7326_v40, 1  ;;  %v7340_v4 = vadd.f32 %v7339_v46, %v7338_v10 }
 0x87e   :  { %v7375_v44 = vadd.f32 %v13654_v16, %v7363_v20  ;;  %v7376_v48 = vadd.f32 %v13654_v16, %v7364_v13  ;;  %v7373_v53 = vadd.f32 %v13654_v16, %v7361_v57  ;;  %v7374_v63 = vadd.f32 %v13654_v16, %v7362_v55 }
 0x87f   :  { %v7328_v43 = vadd.f32 %v7327_v15, %v7326_v40  ;;  %v7341_v30 = vrot.slane %v7340_v4, 1 }
 0x880   :  { %v7383_v22 = vmax.f32 %v7375_v44, 0.0  ;;  %v7384_v1 = vmax.f32 %v7376_v48, 0.0  ;;  %v7381_v18 = vmax.f32 %v7373_v53, 0.0  ;;  %v7382_v8 = vmax.f32 %v7374_v63, 0.0  ;;  %v10588_v53 = vld [vmem:[%s14116_s1 + $0x948] sm:$0xff]  }
 0x881   :  { %v13664_v47 = vmul.f32 0.03125, %v7328_v43  ;;  %v7342_v39 = vadd.f32 %v7341_v30, %v7340_v4 }
 0x882   :  { %v13666_v5 = vpack.c.bf16 %v7384_v1, %v7383_v22  ;;  %v13668_v23 = vpack.c.bf16 %v7382_v8, %v7381_v18  ;;  %v10589_v1 = vld [vmem:[%s14116_s1 + $0x950] sm:$0xff]  }
 0x883   :  { %v7343_v21 = vmul.f32 0.03125, %v7342_v39  ;;  %v7344_v45 = vmul.f32 %v13664_v47, %v13664_v47  ;;  %v7347_v9 = vsub.f32 %v13619_v26, %v13664_v47  ;;  %v7348_v41 = vsub.f32 %v13622_v2, %v13664_v47 }
 0x884   :  { %v7349_v38 = vsub.f32 %v13635_v60, %v13664_v47  ;;  %v7350_v49 = vsub.f32 %v13641_v51, %v13664_v47  ;;  %v7404_v54 = vshll.u32 %v13668_v23, 16  ;;  %v7408_v59 = vshrl.u32 %v13668_v23, 16 }
 0x885   :  { %v7345_v34 = vsub.f32 %v7343_v21, %v7344_v45  ;;  %v7432_v52 = vshll.u32 %v13666_v5, 16  ;;  %v7436_v3 = vshrl.u32 %v13666_v5, 16  ;;  %v7511_v2 = vrot.slane %v13668_v23, 7 }
 0x886   :  { %v7406_v12 = vrot.slane %v7404_v54, 1  ;;  %v7413_v26 = vrot.slane %v7408_v59, 1  ;;  %v7414_v14 = vrot.slane %v7404_v54, 2  ;;  %v7531_v22 = vrot.slane %v13666_v5, 7 }
 0x887   :  { %v7346_v29 = vmax.f32 %v7345_v34, 0.0  ;;  %v7434_v17 = vrot.slane %v7432_v52, 1  ;;  %v7441_v60 = vrot.slane %v7436_v3, 1  ;;  %v7442_v61 = vrot.slane %v7432_v52, 2 }
 0x888   :  { %v7407_v6 = vsel %vm931_vm7, 0, %v7406_v12  ;;  %v7410_v51 = vor.u32 %v7408_v59, %v7406_v12  ;;  %v7415_v50 = vor.u32 %v7414_v14, %v7413_v26  ;;  %v7512_v15 = vsel %vm397_vm6, %v11443_v0, %v7511_v2 }
 0x889   :  { %v7351_v35 = vadd.f32 1e-05, %v7346_v29  ;;  %v7513_v10 = vrot.slane %v7407_v6, 7  ;;  %v7435_v56 = vsel %vm931_vm7, 0, %v7434_v17  ;;  %v7438_v19 = vor.u32 %v7436_v3, %v7434_v17 }
 0x88a   :  { %v7514_v32 = vrot.slane %v7410_v51, 7  ;;  %v7420_v11 = vsel %vm945_vm8, %v7415_v50, %v11414_v31  ;;  %v7518_v40 = vrot.slane %v7415_v50, 7  ;;  %v7533_v46 = vrot.slane %v7435_v56, 7  ;;  %v10593_v50 = vld [vmem:[%s14116_s1 + $0x970] sm:$0xff]  }
 0x88b   :  { %10657 = vrsqrt.f32 %v7351_v35  ;;  %v7519_v20 = vrot.slane %v7420_v11, 7  ;;  %v7534_v13 = vrot.slane %v7438_v19, 7  ;;  %v7443_v57 = vor.u32 %v7442_v61, %v7441_v60 }
 0x88c   :  { %v7515_v55 = vsel %vm397_vm6, %v7513_v10, %v7514_v32  ;;  %v7532_v8 = vsel %vm397_vm6, %v11443_v0, %v7531_v22  ;;  %v7422_v11 = vrot.slane %v13668_v23, 2 }
 0x88d   :  { %7941 = vmatprep.mubr.bf16.mxu1 %v7515_v55  ;;  %v7520_v4 = vsel %vm397_vm6, %v7518_v40, %v7519_v20  ;;  %v7448_v44 = vsel %vm945_vm8, %v7443_v57, %v11414_v31  ;;  %v7538_v48 = vrot.slane %v7443_v57, 7  ;;  %v7535_v63 = vsel %vm397_vm6, %v7533_v46, %v7534_v13 }
 0x88e   :  { %7942 = vmatmul.mubr.bf16.vlgmr.msra.gmra.mrb[136].mxu1 %v7512_v15  ;;  %8006 = vmatprep.mubr.bf16.mxu0 %v7520_v4  ;;  %v7539_v43 = vrot.slane %v7448_v44, 7  ;;  %v10594_v44 = vld [vmem:[%s14116_s1 + $0x978] sm:$0xff]  }
 0x88f   :  { %7949 = vmatprep.mubr.bf16.mxu1 %v7535_v63  ;;  %8007 = vmatmul.mubr.bf16.vlgmr.msra.gmra.mrb[128].mxu0 %v13668_v23 }
 0x890   :  { %10241 = vmatpush3.bf16.msra.mxu1 %v13591_v25  ;;  %v7540_v30 = vsel %vm397_vm6, %v7538_v48, %v7539_v43  ;;  %v10590_v25 = vld [vmem:[%s14116_s1 + $0x958] sm:$0xff]  }
 0x891   :  { %8014 = vmatprep.mubr.bf16.mxu0 %v7540_v30  ;;  %10242 = vmatprep.subr.bf16.mxu1 %v10588_v53 }
 0x894   :  { %10243 = vmatpush3.bf16.msra.mxu1 %v10588_v53 }
 0x895   :  { %v10658_v18 = vpop.eup %10657  ;;  %10244 = vmatprep.subr.bf16.mxu1 %v10589_v1 }
 0x896   :  { %v7355_v47 = vmul.f32 %v10658_v18, %v7349_v38  ;;  %v7356_v39 = vmul.f32 %v10658_v18, %v7350_v49  ;;  %7950 = vmatmul.mubr.bf16.gmra.mrb[140].mxu1 %v7532_v8  ;;  %v7353_v21 = vmul.f32 %v10658_v18, %v7347_v9  ;;  %v7354_v45 = vmul.f32 %v10658_v18, %v7348_v41  ;;  %v10591_v38 = vld [vmem:[%s14116_s1 + $0x960] sm:$0xff]  }
 0x897   :  { %8015 = vmatmul.mubr.bf16.gmra.mrb[132].mxu0 %v13666_v5 }
 0x898   :  { %v7367_v54 = vmul.f32 %v13649_v27, %v7355_v47  ;;  %v7368_v59 = vmul.f32 %v13649_v27, %v7356_v39  ;;  %10245 = vmatpush3.bf16.msra.mxu1 %v10589_v1  ;;  %v7365_v34 = vmul.f32 %v13649_v27, %v7353_v21  ;;  %v7366_v52 = vmul.f32 %v13649_v27, %v7354_v45  ;;  %v10592_v27 = vld [vmem:[%s14116_s1 + $0x968] sm:$0xff]  }
 0x899   :  { %10246 = vmatprep.subr.bf16.mxu1 %v10590_v25  ;;  %v7424_v45 = vsel %vm286_vm1, %v7422_v11, %v11414_v31 }
 0x89a   :  { %v7379_v49 = vadd.f32 %v13654_v16, %v7367_v54  ;;  %v7380_v9 = vadd.f32 %v13654_v16, %v7368_v59  ;;  %v7377_v41 = vadd.f32 %v13654_v16, %v7365_v34  ;;  %v7378_v3 = vadd.f32 %v13654_v16, %v7366_v52 }
 0x89b   :  { %v7521_v59 = vrot.slane %v7422_v11, 7  ;;  %v7522_v34 = vrot.slane %v7424_v45, 7  ;;  %v7450_v52 = vrot.slane %v13666_v5, 2  ;;  %v10604_v11 = vld [vmem:[%s14116_s1 + $0xa18] sm:$0xff]  }
 0x89c   :  { %v7387_v12 = vmax.f32 %v7379_v49, 0.0  ;;  %v7388_v26 = vmax.f32 %v7380_v9, 0.0  ;;  %10247 = vmatpush3.bf16.msra.mxu1 %v10590_v25  ;;  %v7385_v14 = vmax.f32 %v7377_v41, 0.0  ;;  %v7386_v29 = vmax.f32 %v7378_v3, 0.0 }
 0x89d   :  { %10248 = vmatprep.subr.bf16.mxu1 %v10591_v38  ;;  %v7523_v9 = vsel %vm397_vm6, %v7521_v59, %v7522_v34  ;;  %v7452_v41 = vsel %vm286_vm1, %v7450_v52, %v11414_v31 }
 0x89e   :  { %v13726_v2 = vpack.c.bf16 %v7388_v26, %v7387_v12  ;;  %v13728_v17 = vpack.c.bf16 %v7386_v29, %v7385_v14  ;;  %v7541_v12 = vrot.slane %v7450_v52, 7  ;;  %v7542_v26 = vrot.slane %v7452_v41, 7 }
 0x8a0   :  { %v7460_v60 = vshll.u32 %v13728_v17, 16  ;;  %v7464_v6 = vshrl.u32 %v13728_v17, 16  ;;  %v7488_v16 = vshll.u32 %v13726_v2, 16  ;;  %10249 = vmatpush3.bf16.msra.mxu1 %v10591_v38  ;;  %v7492_v51 = vshrl.u32 %v13726_v2, 16 }
 0x8a1   :  { %10250 = vmatprep.subr.bf16.mxu1 %v10592_v27  ;;  %v7551_v20 = vrot.slane %v13728_v17, 7  ;;  %v7571_v54 = vrot.slane %v13726_v2, 7  ;;  %v7478_v38 = vrot.slane %v13728_v17, 2  ;;  %v7506_v29 = vrot.slane %v13726_v2, 2 }
 0x8a2   :  { %v7462_v61 = vrot.slane %v7460_v60, 1  ;;  %v7469_v35 = vrot.slane %v7464_v6, 1  ;;  %v7470_v10 = vrot.slane %v7460_v60, 2  ;;  %v7490_v56 = vrot.slane %v7488_v16, 1 }
 0x8a3   :  { %v7497_v19 = vrot.slane %v7492_v51, 1  ;;  %v7498_v32 = vrot.slane %v7488_v16, 2  ;;  %v7552_v25 = vsel %vm397_vm6, %v11443_v0, %v7551_v20  ;;  %v7572_v49 = vsel %vm397_vm6, %v11443_v0, %v7571_v54  ;;  %v10607_v20 = vld [vmem:[%s14116_s1 + $0xa20] sm:$0xff]  }
 0x8a4   :  { %v7463_v40 = vsel %vm931_vm7, 0, %v7462_v61  ;;  %v7466_v46 = vor.u32 %v7464_v6, %v7462_v61  ;;  %v7471_v13 = vor.u32 %v7470_v10, %v7469_v35  ;;  %10251 = vmatpush3.bf16.msra.mxu1 %v10592_v27  ;;  %v7491_v55 = vsel %vm931_vm7, 0, %v7490_v56  ;;  %v10597_v61 = vld [vmem:[%s14116_s1 + $0x980] sm:$0xff]   ;;  %v10599_v35 = vld [vmem:[%s14116_s1 + $0x9c8] sm:$0xff]  }
 0x8a5   :  { %v7553_v57 = vrot.slane %v7463_v40, 7  ;;  %v7494_v15 = vor.u32 %v7492_v51, %v7490_v56  ;;  %v7499_v4 = vor.u32 %v7498_v32, %v7497_v19  ;;  %10252 = vmatprep.subr.bf16.mxu1 %v10593_v50  ;;  %v7573_v63 = vrot.slane %v7491_v55, 7  ;;  %v10600_v10 = vld [vmem:[%s14116_s1 + $0x988] sm:$0xff]   ;;  %v10601_v56 = vld [vmem:[%s14116_s1 + $0xa10] sm:$0xff]   ;;  %v10605_v40 = vld [vmem:[%s14116_s1 + $0x9d8] sm:$0xff]  }
 0x8a6   :  { %v7554_v48 = vrot.slane %v7466_v46, 7  ;;  %v7476_v23 = vsel %vm945_vm8, %v7471_v13, %v11414_v31  ;;  %v7558_v53 = vrot.slane %v7471_v13, 7  ;;  %v7480_v3 = vsel %vm286_vm1, %v7478_v38, %v11414_v31  ;;  %v10602_v19 = vld [vmem:[%s14116_s1 + $0x9d0] sm:$0xff]   ;;  %v10606_v46 = vld [vmem:[%s14116_s1 + $0x998] sm:$0xff]   ;;  %v10608_v13 = vld [vmem:[%s14116_s1 + $0x9e0] sm:$0xff]  }
 0x8a7   :  { %v7559_v43 = vrot.slane %v7476_v23, 7  ;;  %v7574_v30 = vrot.slane %v7494_v15, 7  ;;  %v7504_v22 = vsel %vm945_vm8, %v7499_v4, %v11414_v31  ;;  %v7578_v1 = vrot.slane %v7499_v4, 7  ;;  %v10603_v32 = vld [vmem:[%s14116_s1 + $0x990] sm:$0xff]   ;;  %v10610_v55 = vld [vmem:[%s14116_s1 + $0xa28] sm:$0xff]  }
 0x8a8   :  { %v7555_v18 = vsel %vm397_vm6, %v7553_v57, %v7554_v48  ;;  %v7579_v8 = vrot.slane %v7504_v22, 7  ;;  %10253 = vmatpush3.bf16.msra.mxu1 %v10593_v50  ;;  %v7561_v5 = vrot.slane %v7478_v38, 7  ;;  %v7562_v14 = vrot.slane %v7480_v3, 7  ;;  %v10595_v50 = vld [vmem:[%s14116_s1 + $0xa00] sm:$0xff]   ;;  %v10611_v15 = vld [vmem:[%s14116_s1 + $0x9e8] sm:$0xff]   ;;  %v10614_v48 = vld [vmem:[%s14116_s1 + $0x9f0] sm:$0xff]  }
 0x8a9   :  { %7957 = vmatprep.mubr.bf16.mxu1 %v7555_v18  ;;  %v7560_v47 = vsel %vm397_vm6, %v7558_v53, %v7559_v43  ;;  %10254 = vmatprep.subr.bf16.mxu1 %v10594_v44  ;;  %v7575_v39 = vsel %vm397_vm6, %v7573_v63, %v7574_v30  ;;  %v7543_v27 = vsel %vm397_vm6, %v7541_v12, %v7542_v26  ;;  %v7581_v6 = vrot.slane %v7506_v29, 7  ;;  %v10609_v57 = vld [vmem:[%s14116_s1 + $0x9a0] sm:$0xff]   ;;  %v10612_v4 = vld [vmem:[%s14116_s1 + $0x9a8] sm:$0xff]   ;;  %v10615_v23 = vld [vmem:[%s14116_s1 + $0x9b0] sm:$0xff]  }
 0x8aa   :  { %7958 = vmatmul.mubr.bf16.gmra.mrb[144].mxu1 %v7552_v25  ;;  %8022 = vmatprep.mubr.bf16.mxu0 %v7560_v47  ;;  %v7580_v21 = vsel %vm397_vm6, %v7578_v1, %v7579_v8  ;;  %v7508_v60 = vsel %vm286_vm1, %v7506_v29, %v11414_v31  ;;  %v10598_v31 = vld [vmem:[%s14116_s1 + $0xa08] sm:$0xff]   ;;  %v10616_v63 = vld [vmem:[%s14116_s1 + $0xa38] sm:$0xff]  }
 0x8ab   :  { %7965 = vmatprep.mubr.bf16.mxu1 %v7575_v39  ;;  %8023 = vmatmul.mubr.bf16.gmra.mrb[136].mxu0 %v13728_v17  ;;  %v7563_v17 = vsel %vm397_vm6, %v7561_v5, %v7562_v14  ;;  %v7582_v16 = vrot.slane %v7508_v60, 7  ;;  %v10617_v43 = vld [vmem:[%s14116_s1 + $0x9f8] sm:$0xff]  }
 0x8ac   :  { %8030 = vmatprep.mubr.bf16.mxu0 %v7580_v21  ;;  %10255 = vmatpush3.bf16.msra.mxu1 %v10594_v44  ;;  %v10613_v44 = vld [vmem:[%s14116_s1 + $0xa30] sm:$0xff]   ;;  %v10618_v21 = vld [vmem:[%s14116_s1 + $0x9b8] sm:$0xff]  }
 0x8ad   :  { %v7583_v51 = vsel %vm397_vm6, %v7581_v6, %v7582_v16  ;;  %10264 = vmatprep.subr.bf16.mxu1 %v10595_v50 }
 0x8b2   :  { %7966 = vmatmul.mubr.bf16.gmra.mrb[148].mxu1 %v7572_v49 }
 0x8b3   :  { %8031 = vmatmul.mubr.bf16.gmra.mrb[140].mxu0 %v13726_v2  ;;  %10256 = vmatprep.mubr.bf16.mxu1 %v7523_v9  ;;  %v10596_v2 = vld [vmem:[%s14116_s1 + $0x9c0] sm:$0xff]  }
 0x8b4   :  { %10068 = vmatprep.subr.bf16.mxu0 %v10596_v2 }
 0x8b5   :  { %10069 = vmatpush3.bf16.msra.mxu0 %v10597_v61 }
 0x8b6   :  { %10070 = vmatprep.subr.bf16.mxu0 %v10599_v35 }
 0x8b9   :  { %10071 = vmatpush3.bf16.msra.mxu0 %v10600_v10 }
 0x8ba   :  { %10257 = vmatmul.mubr.bf16.vlgmr.msra.gmra.mrb[152].mxu1 %v7543_v27  ;;  %10072 = vmatprep.subr.bf16.mxu0 %v10602_v19 }
 0x8bb   :  { %10260 = vmatprep.mubr.bf16.mxu1 %v7563_v17  ;;  %10265 = vmatpush3.bf16.msra.mxu1 %v10595_v50 }
 0x8bc   :  { %10266 = vmatprep.subr.bf16.mxu1 %v10598_v31 }
 0x8bd   :  { %10073 = vmatpush3.bf16.msra.mxu0 %v10603_v32 }
 0x8be   :  { %10074 = vmatprep.subr.bf16.mxu0 %v10605_v40 }
 0x8bf   :  { %10267 = vmatpush3.bf16.msra.mxu1 %v10598_v31 }
 0x8c0   :  { %10268 = vmatprep.subr.bf16.mxu1 %v10601_v56 }
 0x8c1   :  { %10075 = vmatpush3.bf16.msra.mxu0 %v10606_v46 }
 0x8c2   :  { %10261 = vmatmul.mubr.bf16.gmra.mrb[156].mxu1 %v7583_v51  ;;  %10076 = vmatprep.subr.bf16.mxu0 %v10608_v13 }
 0x8c3   :  { %10269 = vmatpush3.bf16.msra.mxu1 %v10601_v56 }
 0x8c4   :  { %10270 = vmatprep.subr.bf16.mxu1 %v10604_v11 }
 0x8c5   :  { %10077 = vmatpush3.bf16.msra.mxu0 %v10609_v57 }
 0x8c6   :  { %10078 = vmatprep.subr.bf16.mxu0 %v10611_v15 }
 0x8c7   :  { %10271 = vmatpush3.bf16.msra.mxu1 %v10604_v11 }
 0x8c8   :  { %10272 = vmatprep.subr.bf16.mxu1 %v10607_v20 }
 0x8c9   :  { %10079 = vmatpush3.bf16.msra.mxu0 %v10612_v4 }
 0x8ca   :  { %10080 = vmatprep.subr.bf16.mxu0 %v10614_v48 }
 0x8cb   :  { %10273 = vmatpush3.bf16.msra.mxu1 %v10607_v20 }
 0x8cc   :  { %10274 = vmatprep.subr.bf16.mxu1 %v10610_v55 }
 0x8cd   :  { %10081 = vmatpush3.bf16.msra.mxu0 %v10615_v23 }
 0x8ce   :  { %10082 = vmatprep.subr.bf16.mxu0 %v10617_v43 }
 0x8cf   :  { %10275 = vmatpush3.bf16.msra.mxu1 %v10610_v55 }
 0x8d0   :  { %10276 = vmatprep.subr.bf16.mxu1 %v10613_v44 }
 0x8d1   :  { %10083 = vmatpush3.bf16.msra.mxu0 %v10618_v21 }
 0x8d3   :  { %10277 = vmatpush3.bf16.msra.mxu1 %v10613_v44 }
 0x8d4   :  { %10278 = vmatprep.subr.bf16.mxu1 %v10616_v63 }
 0x8d7   :  { %10279 = vmatpush3.bf16.msra.mxu1 %v10616_v63 }
 0x961   :  { %v9992_v53 = vpop.f32.mrb[136].mxu1 }
 0x962   :  { %v9993_v30 = vpop.f32.mrb[137].mxu1  ;;  %v10032_v22 = vpop.f32.mrb[128].mxu0 }
 0x963   :  { %v9994_v1 = vadd.f32 %v9993_v30, %v9992_v53  ;;  %v9995_v18 = vpop.f32.mrb[138].mxu1  ;;  %v10033_v8 = vpop.f32.mrb[129].mxu0 }
 0x964   :  { %v10034_v25 = vadd.f32 %v10033_v8, %v10032_v22  ;;  %v9996_v47 = vpop.f32.mrb[139].mxu1  ;;  %v10035_v39 = vpop.f32.mrb[130].mxu0 }
 0x965   :  { %v9997_v45 = vadd.f32 %v9996_v47, %v9995_v18  ;;  %v10036_v54 = vpop.f32.mrb[131].mxu0 }
 0x966   :  { %v10037_v59 = vadd.f32 %v10036_v54, %v10035_v39  ;;  %v8009_v34 = vadd.f32 %v10034_v25, %v9994_v1 }
 0x968   :  { %v8012_v52 = vadd.f32 %v10037_v59, %v9997_v45 }
 0x969   :  { %v9998_v38 = vpop.f32.mrb[140].mxu1 }
 0x96a   :  { %v9999_v49 = vpop.f32.mrb[141].mxu1  ;;  %v10038_v9 = vpop.f32.mrb[132].mxu0 }
 0x96b   :  { %v10000_v41 = vadd.f32 %v9999_v49, %v9998_v38  ;;  %v10001_v3 = vpop.f32.mrb[142].mxu1  ;;  %v10039_v12 = vpop.f32.mrb[133].mxu0 }
 0x96c   :  { %v10040_v26 = vadd.f32 %v10039_v12, %v10038_v9  ;;  %v10002_v5 = vpop.f32.mrb[143].mxu1  ;;  %v10041_v14 = vpop.f32.mrb[134].mxu0 }
 0x96d   :  { %v10003_v29 = vadd.f32 %v10002_v5, %v10001_v3  ;;  %v10042_v27 = vpop.f32.mrb[135].mxu0 }
 0x96e   :  { %v10043_v17 = vadd.f32 %v10042_v27, %v10041_v14  ;;  %v8017_v60 = vadd.f32 %v10040_v26, %v10000_v41 }
 0x970   :  { %v8020_v6 = vadd.f32 %v10043_v17, %v10003_v29 }
 0x97d   :  { %v10004_v16 = vpop.f32.mrb[144].mxu1 }
 0x97e   :  { %v10005_v51 = vpop.f32.mrb[145].mxu1  ;;  %v10044_v50 = vpop.f32.mrb[136].mxu0 }
 0x97f   :  { %v10006_v2 = vadd.f32 %v10005_v51, %v10004_v16  ;;  %v10007_v61 = vpop.f32.mrb[146].mxu1  ;;  %v10045_v31 = vpop.f32.mrb[137].mxu0 }
 0x980   :  { %v10046_v35 = vadd.f32 %v10045_v31, %v10044_v50  ;;  %v10008_v10 = vpop.f32.mrb[147].mxu1  ;;  %v10047_v56 = vpop.f32.mrb[138].mxu0 }
 0x981   :  { %v10009_v19 = vadd.f32 %v10008_v10, %v10007_v61  ;;  %v10048_v32 = vpop.f32.mrb[139].mxu0 }
 0x982   :  { %v10049_v11 = vadd.f32 %v10048_v32, %v10047_v56  ;;  %v8025_v40 = vadd.f32 %v10046_v35, %v10006_v2 }
 0x984   :  { %v8028_v46 = vadd.f32 %v10049_v11, %v10009_v19 }
 0x985   :  { %v10010_v20 = vpop.f32.mrb[148].mxu1 }
 0x986   :  { %v10011_v13 = vpop.f32.mrb[149].mxu1  ;;  %v10050_v57 = vpop.f32.mrb[140].mxu0 }
 0x987   :  { %v10012_v55 = vadd.f32 %v10011_v13, %v10010_v20  ;;  %v10013_v15 = vpop.f32.mrb[150].mxu1  ;;  %v10051_v4 = vpop.f32.mrb[141].mxu0 }
 0x988   :  { %v10052_v44 = vadd.f32 %v10051_v4, %v10050_v57  ;;  %v10014_v48 = vpop.f32.mrb[151].mxu1  ;;  %v10053_v23 = vpop.f32.mrb[142].mxu0 }
 0x989   :  { %v10015_v53 = vadd.f32 %v10014_v48, %v10013_v15  ;;  %v10054_v63 = vpop.f32.mrb[143].mxu0 }
 0x98a   :  { %v10055_v43 = vadd.f32 %v10054_v63, %v10053_v23  ;;  %v8033_v30 = vadd.f32 %v10052_v44, %v10012_v55 }
 0x98c   :  { %v8036_v22 = vadd.f32 %v10055_v43, %v10015_v53 }
 0x98d   :  { %v10258_v1 = vpop.f32.mrb[152].mxu1 }
 0x98e   :  { %v13846_v18 = vadd.f32 %v10258_v1, %v8017_v60  ;;  %v8073_v8 = vpop.f32.mrb[153].mxu1 }
 0x98f   :  { %v13848_v25 = vadd.f32 %v8073_v8, %v8009_v34  ;;  %v10259_v47 = vpop.f32.mrb[154].mxu1 }
 0x990   :  { %v13850_v39 = vadd.f32 %v10259_v47, %v8020_v6  ;;  %v8076_v21 = vpop.f32.mrb[155].mxu1  ;;  %v8118_v49 = vmul.f32 %v13846_v18, %v13846_v18 }
 0x991   :  { %v13852_v45 = vadd.f32 %v8076_v21, %v8012_v52  ;;  %v8116_v54 = vmul.f32 %v13848_v25, %v13848_v25 }
 0x992   :  { %v8119_v12 = vmul.f32 %v13850_v39, %v13850_v39 }
 0x993   :  { %v8106_v59 = vadd.f32 %v13852_v45, %v13848_v25  ;;  %v8117_v38 = vmul.f32 %v13852_v45, %v13852_v45 }
 0x995   :  { %v8107_v34 = vadd.f32 %v8106_v59, %v13846_v18  ;;  %v8120_v9 = vadd.f32 %v8117_v38, %v8116_v54  ;;  %v10262_v41 = vpop.f32.mrb[156].mxu1 }
 0x996   :  { %v13863_v3 = vadd.f32 %v10262_v41, %v8033_v30  ;;  %v8089_v52 = vpop.f32.mrb[157].mxu1 }
 0x997   :  { %v8108_v26 = vadd.f32 %v8107_v34, %v13850_v39  ;;  %v8121_v5 = vadd.f32 %v8120_v9, %v8118_v49  ;;  %v13868_v14 = vadd.f32 %v8089_v52, %v8025_v40  ;;  %v10263_v29 = vpop.f32.mrb[158].mxu1 }
 0x998   :  { %v13870_v27 = vadd.f32 %v10263_v29, %v8036_v22  ;;  %v8092_v17 = vpop.f32.mrb[159].mxu1  ;;  %v8155_v35 = vmul.f32 %v13863_v3, %v13863_v3 }
 0x999   :  { %v8109_v60 = vrot.slane %v8108_v26, 4  ;;  %v8122_v6 = vadd.f32 %v8121_v5, %v8119_v12  ;;  %v13872_v16 = vadd.f32 %v8092_v17, %v8028_v46  ;;  %v8153_v51 = vmul.f32 %v13868_v14, %v13868_v14 }
 0x99a   :  { %v8156_v11 = vmul.f32 %v13870_v27, %v13870_v27 }
 0x99b   :  { %v8110_v50 = vadd.f32 %v8109_v60, %v8108_v26  ;;  %v8123_v2 = vrot.slane %v8122_v6, 4  ;;  %v8143_v61 = vadd.f32 %v13872_v16, %v13868_v14  ;;  %v8154_v31 = vmul.f32 %v13872_v16, %v13872_v16 }
 0x99d   :  { %v8111_v10 = vrot.slane %v8110_v50, 2  ;;  %v8124_v56 = vadd.f32 %v8123_v2, %v8122_v6  ;;  %v8144_v19 = vadd.f32 %v8143_v61, %v13863_v3  ;;  %v8157_v32 = vadd.f32 %v8154_v31, %v8153_v51  ;;  %v13897_v31 = vld [vmem:[%s14115_s2 + $0x1b] ss:$0 sm:$0xff] }
 0x99f   :  { %v8112_v40 = vadd.f32 %v8111_v10, %v8110_v50  ;;  %v8125_v46 = vrot.slane %v8124_v56, 2  ;;  %v8145_v20 = vadd.f32 %v8144_v19, %v13870_v27  ;;  %v8158_v13 = vadd.f32 %v8157_v32, %v8155_v35 }
 0x9a1   :  { %v8113_v57 = vrot.slane %v8112_v40, 1  ;;  %v8126_v55 = vadd.f32 %v8125_v46, %v8124_v56  ;;  %v8146_v15 = vrot.slane %v8145_v20, 4  ;;  %v8159_v4 = vadd.f32 %v8158_v13, %v8156_v11 }
 0x9a3   :  { %v8114_v44 = vadd.f32 %v8113_v57, %v8112_v40  ;;  %v8127_v48 = vrot.slane %v8126_v55, 1  ;;  %v8147_v23 = vadd.f32 %v8146_v15, %v8145_v20  ;;  %v8160_v53 = vrot.slane %v8159_v4, 4 }
 0x9a5   :  { %v8115_v63 = vmul.f32 0.03125, %v8114_v44  ;;  %v8128_v43 = vadd.f32 %v8127_v48, %v8126_v55  ;;  %v8148_v30 = vrot.slane %v8147_v23, 2  ;;  %v8161_v22 = vadd.f32 %v8160_v53, %v8159_v4 }
 0x9a7   :  { %v8129_v1 = vmul.f32 0.03125, %v8128_v43  ;;  %v8130_v8 = vmul.f32 %v8115_v63, %v8115_v63  ;;  %v8134_v47 = vsub.f32 %v13852_v45, %v8115_v63  ;;  %v8149_v21 = vadd.f32 %v8148_v30, %v8147_v23 }
 0x9a8   :  { %v8162_v54 = vrot.slane %v8161_v22, 2  ;;  %v8133_v59 = vsub.f32 %v13848_v25, %v8115_v63  ;;  %v8135_v38 = vsub.f32 %v13846_v18, %v8115_v63  ;;  %v8136_v49 = vsub.f32 %v13850_v39, %v8115_v63 }
 0x9a9   :  { %v8131_v34 = vsub.f32 %v8129_v1, %v8130_v8  ;;  %v8150_v9 = vrot.slane %v8149_v21, 1 }
 0x9aa   :  { %v8163_v41 = vadd.f32 %v8162_v54, %v8161_v22 }
 0x9ab   :  { %v8132_v52 = vmax.f32 %v8131_v34, 0.0  ;;  %v8151_v12 = vadd.f32 %v8150_v9, %v8149_v21 }
 0x9ac   :  { %v8164_v26 = vrot.slane %v8163_v41, 1 }
 0x9ad   :  { %v8137_v5 = vadd.f32 1e-05, %v8132_v52  ;;  %v8152_v29 = vmul.f32 0.03125, %v8151_v12 }
 0x9ae   :  { %v8165_v17 = vadd.f32 %v8164_v26, %v8163_v41 }
 0x9af   :  { %10659 = vrsqrt.f32 %v8137_v5  ;;  %v8167_v60 = vmul.f32 %v8152_v29, %v8152_v29  ;;  %v8171_v45 = vsub.f32 %v13872_v16, %v8152_v29  ;;  %v8170_v6 = vsub.f32 %v13868_v14, %v8152_v29 }
 0x9b0   :  { %v8166_v25 = vmul.f32 0.03125, %v8165_v17  ;;  %v8172_v18 = vsub.f32 %v13863_v3, %v8152_v29  ;;  %v8173_v39 = vsub.f32 %v13870_v27, %v8152_v29  ;;  %v13902_v3 = vld [vmem:[%s14115_s2 + $0x1c] ss:$0 sm:$0xff] }
 0x9b2   :  { %v8168_v51 = vsub.f32 %v8166_v25, %v8167_v60 }
 0x9b4   :  { %v8169_v50 = vmax.f32 %v8168_v51, 0.0 }
 0x9b6   :  { %v8174_v2 = vadd.f32 1e-05, %v8169_v50 }
 0x9b8   :  { %10661 = vrsqrt.f32 %v8174_v2 }
 0x9b9   :  { %v10660_v61 = vpop.eup %10659 }
 0x9ba   :  { %v8140_v35 = vmul.f32 %v10660_v61, %v8134_v47  ;;  %v8139_v10 = vmul.f32 %v10660_v61, %v8133_v59  ;;  %v8141_v16 = vmul.f32 %v10660_v61, %v8135_v38  ;;  %v8142_v56 = vmul.f32 %v10660_v61, %v8136_v49 }
 0x9bc   :  { %v8185_v14 = vmul.f32 %v13897_v31, %v8140_v35  ;;  %v8184_v27 = vmul.f32 %v13897_v31, %v8139_v10  ;;  %v8186_v19 = vmul.f32 %v13897_v31, %v8141_v16  ;;  %v8187_v32 = vmul.f32 %v13897_v31, %v8142_v56 }
 0x9be   :  { %v8197_v11 = vadd.f32 %v13902_v3, %v8185_v14  ;;  %v8196_v40 = vadd.f32 %v13902_v3, %v8184_v27  ;;  %v8198_v46 = vadd.f32 %v13902_v3, %v8186_v19  ;;  %v8199_v20 = vadd.f32 %v13902_v3, %v8187_v32 }
 0x9c0   :  { %v8205_v13 = vmax.f32 %v8197_v11, 0.0  ;;  %v8204_v57 = vmax.f32 %v8196_v40, 0.0  ;;  %v8206_v55 = vmax.f32 %v8198_v46, 0.0  ;;  %v8207_v15 = vmax.f32 %v8199_v20, 0.0 }
 0x9c2   :  { %v10662_v4 = vpop.eup %10661  ;;  %v8212_v44 = vpack.c.bf16 %v8205_v13, %v8204_v57  ;;  %v13912_v48 = vpack.c.bf16 %v8207_v15, %v8206_v55 }
 0x9c3   :  { %v8177_v23 = vmul.f32 %v10662_v4, %v8171_v45  ;;  %v8176_v53 = vmul.f32 %v10662_v4, %v8170_v6  ;;  %v8178_v63 = vmul.f32 %v10662_v4, %v8172_v18  ;;  %v8179_v43 = vmul.f32 %v10662_v4, %v8173_v39 }
 0x9c4   :  { %v8232_v30 = vrot.slane %v8212_v44, 1  ;;  %v8247_v22 = vrot.slane %v13912_v48, 1  ;;  %v8224_v1 = vshll.u32 %v8212_v44, 16  ;;  %v8227_v47 = vshrl.u32 %v8212_v44, 16 }
 0x9c5   :  { %v8189_v8 = vmul.f32 %v13897_v31, %v8177_v23  ;;  %v8239_v21 = vshll.u32 %v13912_v48, 16  ;;  %v8188_v54 = vmul.f32 %v13897_v31, %v8176_v53  ;;  %v8242_v52 = vshrl.u32 %v13912_v48, 16 }
 0x9c6   :  { %v8234_v59 = vsel %vm263_vm0, %v8232_v30, %v11675_v58  ;;  %v8300_v38 = vshrl.u32 %v8232_v30, 16  ;;  %v8249_v49 = vsel %vm263_vm0, %v8247_v22, %v11675_v58  ;;  %v8334_v34 = vshrl.u32 %v8247_v22, 16 }
 0x9c7   :  { %v8304_v9 = vshrl.u32 %v8234_v59, 16  ;;  %v8338_v41 = vshrl.u32 %v8249_v49, 16  ;;  %v8201_v12 = vadd.f32 %v13902_v3, %v8189_v8  ;;  %v8307_v5 = vshll.u32 %v8234_v59, 16 }
 0x9c8   :  { %v8302_v26 = vrot.slane %v8300_v38, 7  ;;  %v8226_v29 = vrot.slane %v8224_v1, 1  ;;  %v8336_v60 = vrot.slane %v8334_v34, 7  ;;  %v8341_v6 = vshll.u32 %v8249_v49, 16 }
 0x9c9   :  { %v8306_v17 = vrot.slane %v8304_v9, 7  ;;  %v8340_v45 = vrot.slane %v8338_v41, 7  ;;  %v8284_v18 = vrot.slane %v8227_v47, 7  ;;  %v8241_v39 = vrot.slane %v8239_v21, 1 }
 0x9ca   :  { %v8229_v25 = vor.u32 %v8227_v47, %v8226_v29  ;;  %v8200_v51 = vadd.f32 %v13902_v3, %v8188_v54  ;;  %v8288_v61 = vshrl.u32 %v8226_v29, 16  ;;  %v8190_v35 = vmul.f32 %v13897_v31, %v8178_v63 }
 0x9cb   :  { %v8309_v50 = vor.u32 %v8307_v5, %v8306_v17  ;;  %v8343_v2 = vor.u32 %v8341_v6, %v8340_v45  ;;  %v8209_v10 = vmax.f32 %v8201_v12, 0.0  ;;  %v8244_v56 = vor.u32 %v8242_v52, %v8241_v39 }
 0x9cc   :  { %v8292_v16 = vshrl.u32 %v8229_v25, 16  ;;  %v8322_v19 = vshrl.u32 %v8241_v39, 16  ;;  %v8295_v11 = vshll.u32 %v8229_v25, 16  ;;  %v8208_v46 = vmax.f32 %v8200_v51, 0.0 }
 0x9cd   :  { %v8310_v14 = vsel %vm1816_vm9, %v8302_v26, %v8309_v50  ;;  %v8344_v27 = vsel %vm1816_vm9, %v8336_v60, %v8343_v2  ;;  %v8326_v40 = vshrl.u32 %v8244_v56, 16  ;;  %v8290_v20 = vrot.slane %v8288_v61, 7 }
 0x9ce   :  { %10280 = vmatprep.mubr.bf16.mxu1 %v8310_v14  ;;  %v8294_v32 = vrot.slane %v8292_v16, 7  ;;  %v8285_v13 = vor.u32 %v8284_v18, %v8224_v1  ;;  %v8191_v57 = vmul.f32 %v13897_v31, %v8179_v43  ;;  %v8202_v55 = vadd.f32 %v13902_v3, %v8190_v35 }
 0x9cf   :  { %10281 = vmatmul.mubr.bf16.vlgmr.msra.gmra.mrb[160].mxu1 %v8344_v27  ;;  %v8328_v4 = vrot.slane %v8326_v40, 7  ;;  %v8329_v44 = vshll.u32 %v8244_v56, 16  ;;  %v8216_v23 = vpack.c.bf16 %v8209_v10, %v8208_v46  ;;  %v8324_v53 = vrot.slane %v8322_v19, 7 }
 0x9d0   :  { %v8297_v15 = vor.u32 %v8295_v11, %v8294_v32  ;;  %v8203_v63 = vadd.f32 %v13902_v3, %v8191_v57  ;;  %v8210_v30 = vmax.f32 %v8202_v55, 0.0  ;;  %v8318_v22 = vrot.slane %v8242_v52, 7 }
 0x9d1   :  { %v8331_v47 = vor.u32 %v8329_v44, %v8328_v4  ;;  %v8262_v54 = vrot.slane %v8216_v23, 1  ;;  %v8254_v59 = vshll.u32 %v8216_v23, 16  ;;  %v8286_v31 = vsel %vm1816_vm9, %v11443_v0, %v8285_v13 }
 0x9d2   :  { %v8298_v8 = vsel %vm1816_vm9, %v8290_v20, %v8297_v15  ;;  %v8211_v43 = vmax.f32 %v8203_v63, 0.0  ;;  %v8257_v1 = vshrl.u32 %v8216_v23, 16  ;;  %v8319_v12 = vor.u32 %v8318_v22, %v8239_v21 }
 0x9d3   :  { %8640 = vmatprep.mubr.bf16.mxu0 %v8298_v8  ;;  %v8332_v38 = vsel %vm1816_vm9, %v8324_v53, %v8331_v47  ;;  %v8264_v49 = vsel %vm263_vm0, %v8262_v54, %v11675_v58  ;;  %v8368_v3 = vshrl.u32 %v8262_v54, 16  ;;  %v8256_v34 = vrot.slane %v8254_v59, 1 }
 0x9d4   :  { %8641 = vmatmul.mubr.bf16.vlgmr.msra.gmra.mrb[144].mxu0 %v8286_v31  ;;  %v8372_v9 = vshrl.u32 %v8264_v49, 16  ;;  %v8218_v41 = vpack.c.bf16 %v8211_v43, %v8210_v30  ;;  %v8375_v52 = vshll.u32 %v8264_v49, 16  ;;  %v8320_v21 = vsel %vm1816_vm9, %v11443_v0, %v8319_v12 }
 0x9d5   :  { %8648 = vmatprep.mubr.bf16.mxu0 %v8332_v38  ;;  %v8259_v26 = vor.u32 %v8257_v1, %v8256_v34  ;;  %v8356_v17 = vshrl.u32 %v8256_v34, 16  ;;  %v8370_v45 = vrot.slane %v8368_v3, 7  ;;  %v8352_v16 = vrot.slane %v8257_v1, 7 }
 0x9d6   :  { %v8374_v5 = vrot.slane %v8372_v9, 7  ;;  %v8277_v29 = vrot.slane %v8218_v41, 1  ;;  %v8269_v60 = vshll.u32 %v8218_v41, 16  ;;  %v8272_v35 = vshrl.u32 %v8218_v41, 16 }
 0x9d7   :  { %v8360_v6 = vshrl.u32 %v8259_v26, 16  ;;  %v8363_v51 = vshll.u32 %v8259_v26, 16  ;;  %v8358_v10 = vrot.slane %v8356_v17, 7  ;;  %v8353_v20 = vor.u32 %v8352_v16, %v8254_v59 }
 0x9d8   :  { %v8377_v25 = vor.u32 %v8375_v52, %v8374_v5  ;;  %v8279_v18 = vsel %vm263_vm0, %v8277_v29, %v11675_v58  ;;  %v8402_v39 = vshrl.u32 %v8277_v29, 16  ;;  %v8271_v61 = vrot.slane %v8269_v60, 1 }
 0x9d9   :  { %v8406_v50 = vshrl.u32 %v8279_v18, 16  ;;  %v8362_v2 = vrot.slane %v8360_v6, 7  ;;  %v8409_v14 = vshll.u32 %v8279_v18, 16  ;;  %v8354_v44 = vsel %vm1816_vm9, %v11443_v0, %v8353_v20 }
 0x9da   :  { %v8378_v48 = vsel %vm1816_vm9, %v8370_v45, %v8377_v25  ;;  %v8274_v19 = vor.u32 %v8272_v35, %v8271_v61  ;;  %v8404_v58 = vrot.slane %v8402_v39, 7  ;;  %v8390_v40 = vshrl.u32 %v8271_v61, 16 }
 0x9db   :  { %10284 = vmatprep.mubr.bf16.mxu1 %v8378_v48  ;;  %v8408_v56 = vrot.slane %v8406_v50, 7  ;;  %v8365_v27 = vor.u32 %v8363_v51, %v8362_v2  ;;  %v8386_v23 = vrot.slane %v8272_v35, 7 }
 0x9dc   :  { %8649 = vmatmul.mubr.bf16.gmra.mrb[148].mxu0 %v8320_v21  ;;  %v8394_v46 = vshrl.u32 %v8274_v19, 16  ;;  %v8397_v55 = vshll.u32 %v8274_v19, 16  ;;  %v8392_v15 = vrot.slane %v8390_v40, 7 }
 0x9dd   :  { %v8411_v32 = vor.u32 %v8409_v14, %v8408_v56  ;;  %v8366_v11 = vsel %vm1816_vm9, %v8358_v10, %v8365_v27  ;;  %v8387_v63 = vor.u32 %v8386_v23, %v8269_v60 }
 0x9de   :  { %8656 = vmatprep.mubr.bf16.mxu0 %v8366_v11  ;;  %v8396_v57 = vrot.slane %v8394_v46, 7 }
 0x9df   :  { %v8412_v13 = vsel %vm1816_vm9, %v8404_v58, %v8411_v32  ;;  %v8388_v30 = vsel %vm1816_vm9, %v11443_v0, %v8387_v63 }
 0x9e0   :  { %10285 = vmatmul.mubr.bf16.gmra.mrb[164].mxu1 %v8412_v13  ;;  %v8399_v4 = vor.u32 %v8397_v55, %v8396_v57 }
 0x9e2   :  { %v8400_v53 = vsel %vm1816_vm9, %v8392_v15, %v8399_v4 }
 0x9e4   :  { %8657 = vmatmul.mubr.bf16.gmra.mrb[152].mxu0 %v8354_v44 }
 0x9e5   :  { %8664 = vmatprep.mubr.bf16.mxu0 %v8400_v53 }
 0x9ec   :  { %8665 = vmatmul.mubr.bf16.gmra.mrb[156].mxu0 %v8388_v30 }
 0xaa2   :  { %v10282_v22 = vpop.f32.mrb[160].mxu1 }
 0xaa3   :  { %v8707_v8 = vpop.f32.mrb[161].mxu1 }
 0xaa4   :  { %v10283_v47 = vpop.f32.mrb[162].mxu1 }
 0xaa5   :  { %v8710_v54 = vpop.f32.mrb[163].mxu1 }
 0xaa7   :  { %v10084_v59 = vpop.f32.mrb[144].mxu0 }
 0xaa8   :  { %v10085_v31 = vpop.f32.mrb[145].mxu0 }
 0xaa9   :  { %v10086_v43 = vadd.f32 %v10085_v31, %v10084_v59  ;;  %v10087_v1 = vpop.f32.mrb[146].mxu0 }
 0xaaa   :  { %v10088_v38 = vpop.f32.mrb[147].mxu0 }
 0xaab   :  { %v13953_v49 = vadd.f32 %v10086_v43, %v8707_v8  ;;  %v10089_v3 = vadd.f32 %v10088_v38, %v10087_v1 }
 0xaad   :  { %v13955_v34 = vadd.f32 %v10089_v3, %v8710_v54  ;;  %v8750_v9 = vmul.f32 %v13953_v49, %v13953_v49 }
 0xaaf   :  { %v8740_v0 = vadd.f32 %v13955_v34, %v13953_v49  ;;  %v8751_v41 = vmul.f32 %v13955_v34, %v13955_v34  ;;  %v10090_v52 = vpop.f32.mrb[148].mxu0 }
 0xab0   :  { %v10091_v12 = vpop.f32.mrb[149].mxu0 }
 0xab1   :  { %v8754_v26 = vadd.f32 %v8751_v41, %v8750_v9  ;;  %v10092_v5 = vadd.f32 %v10091_v12, %v10090_v52  ;;  %v10093_v29 = vpop.f32.mrb[150].mxu0 }
 0xab2   :  { %v10094_v17 = vpop.f32.mrb[151].mxu0 }
 0xab3   :  { %v13963_v60 = vadd.f32 %v10282_v22, %v10092_v5  ;;  %v10095_v45 = vadd.f32 %v10094_v17, %v10093_v29  ;;  %v10286_v6 = vpop.f32.mrb[164].mxu1 }
 0xab4   :  { %v8723_v25 = vpop.f32.mrb[165].mxu1 }
 0xab5   :  { %v8741_v18 = vadd.f32 %v8740_v0, %v13963_v60  ;;  %v8752_v39 = vmul.f32 %v13963_v60, %v13963_v60  ;;  %v13968_v51 = vadd.f32 %v10283_v47, %v10095_v45  ;;  %v10287_v50 = vpop.f32.mrb[166].mxu1 }
 0xab6   :  { %v8726_v2 = vpop.f32.mrb[167].mxu1 }
 0xab7   :  { %v8755_v61 = vadd.f32 %v8754_v26, %v8752_v39  ;;  %v8742_v35 = vadd.f32 %v8741_v18, %v13968_v51  ;;  %v8753_v48 = vmul.f32 %v13968_v51, %v13968_v51  ;;  %v10096_v21 = vpop.f32.mrb[152].mxu0 }
 0xab8   :  { %v10097_v10 = vpop.f32.mrb[153].mxu0 }
 0xab9   :  { %v8743_v16 = vrot.slane %v8742_v35, 4  ;;  %v8756_v56 = vadd.f32 %v8755_v61, %v8753_v48  ;;  %v10098_v14 = vadd.f32 %v10097_v10, %v10096_v21  ;;  %v10099_v27 = vpop.f32.mrb[154].mxu0 }
 0xaba   :  { %v10100_v19 = vpop.f32.mrb[155].mxu0 }
 0xabb   :  { %v8744_v58 = vadd.f32 %v8743_v16, %v8742_v35  ;;  %v8757_v32 = vrot.slane %v8756_v56, 4  ;;  %v13973_v11 = vadd.f32 %v10098_v14, %v8723_v25  ;;  %v10101_v40 = vadd.f32 %v10100_v19, %v10099_v27 }
 0xabd   :  { %v8745_v46 = vrot.slane %v8744_v58, 2  ;;  %v8758_v20 = vadd.f32 %v8757_v32, %v8756_v56  ;;  %v13975_v13 = vadd.f32 %v10101_v40, %v8726_v2  ;;  %v8787_v57 = vmul.f32 %v13973_v11, %v13973_v11 }
 0xabf   :  { %v8746_v55 = vadd.f32 %v8745_v46, %v8744_v58  ;;  %v8759_v15 = vrot.slane %v8758_v20, 2  ;;  %v8777_v4 = vadd.f32 %v13975_v13, %v13973_v11  ;;  %v8788_v44 = vmul.f32 %v13975_v13, %v13975_v13  ;;  %v10102_v23 = vpop.f32.mrb[156].mxu0 }
 0xac0   :  { %v10103_v53 = vpop.f32.mrb[157].mxu0 }
 0xac1   :  { %v8747_v63 = vrot.slane %v8746_v55, 1  ;;  %v8760_v30 = vadd.f32 %v8759_v15, %v8758_v20  ;;  %v8791_v22 = vadd.f32 %v8788_v44, %v8787_v57  ;;  %v10104_v8 = vadd.f32 %v10103_v53, %v10102_v23  ;;  %v10105_v47 = vpop.f32.mrb[158].mxu0  ;;  %v9346_v20 = vld [vmem:[%s14115_s2 + $0x1d] ss:$0 sm:$0xff] }
 0xac2   :  { %v10106_v54 = vpop.f32.mrb[159].mxu0 }
 0xac3   :  { %v8748_v59 = vadd.f32 %v8747_v63, %v8746_v55  ;;  %v8761_v31 = vrot.slane %v8760_v30, 1  ;;  %v13983_v43 = vadd.f32 %v10286_v6, %v10104_v8  ;;  %v10107_v1 = vadd.f32 %v10106_v54, %v10105_v47 }
 0xac5   :  { %v8749_v38 = vmul.f32 0.03125, %v8748_v59  ;;  %v8762_v3 = vadd.f32 %v8761_v31, %v8760_v30  ;;  %v8778_v9 = vadd.f32 %v8777_v4, %v13983_v43  ;;  %v8789_v0 = vmul.f32 %v13983_v43, %v13983_v43 }
 0xac6   :  { %v13988_v41 = vadd.f32 %v10287_v50, %v10107_v1 }
 0xac7   :  { %v8763_v52 = vmul.f32 0.03125, %v8762_v3  ;;  %v8764_v12 = vmul.f32 %v8749_v38, %v8749_v38  ;;  %v8767_v26 = vsub.f32 %v13953_v49, %v8749_v38  ;;  %v8768_v5 = vsub.f32 %v13955_v34, %v8749_v38 }
 0xac8   :  { %v8769_v29 = vsub.f32 %v13963_v60, %v8749_v38  ;;  %v8770_v17 = vsub.f32 %v13968_v51, %v8749_v38  ;;  %v8792_v45 = vadd.f32 %v8791_v22, %v8789_v0  ;;  %v8779_v6 = vadd.f32 %v8778_v9, %v13988_v41 }
 0xac9   :  { %v8765_v25 = vsub.f32 %v8763_v52, %v8764_v12  ;;  %v8790_v18 = vmul.f32 %v13988_v41, %v13988_v41 }
 0xaca   :  { %v8780_v39 = vrot.slane %v8779_v6, 4 }
 0xacb   :  { %v8766_v50 = vmax.f32 %v8765_v25, 0.0  ;;  %v8793_v2 = vadd.f32 %v8792_v45, %v8790_v18 }
 0xacc   :  { %v8781_v61 = vadd.f32 %v8780_v39, %v8779_v6 }
 0xacd   :  { %v8771_v35 = vadd.f32 1e-05, %v8766_v50  ;;  %v8794_v48 = vrot.slane %v8793_v2, 4 }
 0xace   :  { %v8782_v49 = vrot.slane %v8781_v61, 2 }
 0xacf   :  { %10663 = vrsqrt.f32 %v8771_v35  ;;  %v8795_v34 = vadd.f32 %v8794_v48, %v8793_v2 }
 0xad0   :  { %v8783_v21 = vadd.f32 %v8782_v49, %v8781_v61 }
 0xad1   :  { %v8796_v60 = vrot.slane %v8795_v34, 2 }
 0xad2   :  { %v8784_v10 = vrot.slane %v8783_v21, 1 }
 0xad3   :  { %v8797_v51 = vadd.f32 %v8796_v60, %v8795_v34 }
 0xad4   :  { %v8785_v16 = vadd.f32 %v8784_v10, %v8783_v21 }
 0xad5   :  { %v8798_v56 = vrot.slane %v8797_v51, 1 }
 0xad6   :  { %v8786_v14 = vmul.f32 0.03125, %v8785_v16 }
 0xad7   :  { %v8799_v27 = vadd.f32 %v8798_v56, %v8797_v51 }
 0xad8   :  { %v8801_v19 = vmul.f32 %v8786_v14, %v8786_v14  ;;  %v8804_v58 = vsub.f32 %v13973_v11, %v8786_v14  ;;  %v8805_v32 = vsub.f32 %v13975_v13, %v8786_v14  ;;  %v8806_v40 = vsub.f32 %v13983_v43, %v8786_v14  ;;  %v9347_v11 = vld [vmem:[%s14115_s2 + $0x1e] ss:$0 sm:$0xff] }
 0xad9   :  { %v10664_v46 = vpop.eup %10663  ;;  %v8800_v57 = vmul.f32 0.03125, %v8799_v27  ;;  %v8807_v55 = vsub.f32 %v13988_v41, %v8786_v14 }
 0xada   :  { %v8773_v15 = vmul.f32 %v10664_v46, %v8767_v26  ;;  %v8774_v4 = vmul.f32 %v10664_v46, %v8768_v5  ;;  %v8775_v44 = vmul.f32 %v10664_v46, %v8769_v29  ;;  %v8776_v23 = vmul.f32 %v10664_v46, %v8770_v17 }
 0xadb   :  { %v8802_v53 = vsub.f32 %v8800_v57, %v8801_v19 }
 0xadc   :  { %v8818_v13 = vmul.f32 %v9346_v20, %v8773_v15  ;;  %v8819_v63 = vmul.f32 %v9346_v20, %v8774_v4  ;;  %v8820_v30 = vmul.f32 %v9346_v20, %v8775_v44  ;;  %v8821_v22 = vmul.f32 %v9346_v20, %v8776_v23 }
 0xadd   :  { %v8803_v8 = vmax.f32 %v8802_v53, 0.0 }
 0xade   :  { %v14007_v47 = vadd.f32 %v9347_v11, %v8818_v13  ;;  %v14009_v54 = vadd.f32 %v9347_v11, %v8819_v63  ;;  %v14011_v59 = vadd.f32 %v9347_v11, %v8820_v30  ;;  %v14013_v43 = vadd.f32 %v9347_v11, %v8821_v22 }
 0xadf   :  { %v8808_v31 = vadd.f32 1e-05, %v8803_v8 }
 0xae0   :  { %v8840_v1 = vadd.f32 %v14009_v54, %v14007_v47  ;;  %v8850_v38 = vmul.f32 %v14007_v47, %v14007_v47  ;;  %v8851_v3 = vmul.f32 %v14009_v54, %v14009_v54  ;;  %v8852_v0 = vmul.f32 %v14011_v59, %v14011_v59 }
 0xae1   :  { %10665 = vrsqrt.f32 %v8808_v31  ;;  %v8853_v12 = vmul.f32 %v14013_v43, %v14013_v43 }
 0xae2   :  { %v8841_v9 = vadd.f32 %v8840_v1, %v14011_v59  ;;  %v8854_v41 = vadd.f32 %v8851_v3, %v8850_v38 }
 0xae4   :  { %v8842_v52 = vadd.f32 %v8841_v9, %v14013_v43  ;;  %v8855_v26 = vadd.f32 %v8854_v41, %v8852_v0 }
 0xae6   :  { %v8843_v5 = vrot.slane %v8842_v52, 4  ;;  %v8856_v29 = vadd.f32 %v8855_v26, %v8853_v12 }
 0xae8   :  { %v8844_v17 = vadd.f32 %v8843_v5, %v8842_v52  ;;  %v8857_v45 = vrot.slane %v8856_v29, 4 }
 0xaea   :  { %v8845_v6 = vrot.slane %v8844_v17, 2  ;;  %v8858_v25 = vadd.f32 %v8857_v45, %v8856_v29  ;;  %v14060_v45 = vld [vmem:[%s14115_s2 + $0x20] ss:$0 sm:$0xff] }
 0xaeb   :  { %v10666_v18 = vpop.eup %10665 }
 0xaec   :  { %v8846_v39 = vadd.f32 %v8845_v6, %v8844_v17  ;;  %v8859_v50 = vrot.slane %v8858_v25, 2  ;;  %v8810_v2 = vmul.f32 %v10666_v18, %v8804_v58  ;;  %v8811_v61 = vmul.f32 %v10666_v18, %v8805_v32 }
 0xaed   :  { %v8812_v35 = vmul.f32 %v10666_v18, %v8806_v40  ;;  %v8813_v48 = vmul.f32 %v10666_v18, %v8807_v55 }
 0xaee   :  { %v8847_v49 = vrot.slane %v8846_v39, 1  ;;  %v8860_v34 = vadd.f32 %v8859_v50, %v8858_v25  ;;  %v8822_v21 = vmul.f32 %v9346_v20, %v8810_v2  ;;  %v8823_v60 = vmul.f32 %v9346_v20, %v8811_v61 }
 0xaef   :  { %v8824_v10 = vmul.f32 %v9346_v20, %v8812_v35  ;;  %v8825_v51 = vmul.f32 %v9346_v20, %v8813_v48 }
 0xaf0   :  { %v8848_v16 = vadd.f32 %v8847_v49, %v8846_v39  ;;  %v8861_v56 = vrot.slane %v8860_v34, 1  ;;  %v14027_v14 = vadd.f32 %v9347_v11, %v8822_v21  ;;  %v14029_v27 = vadd.f32 %v9347_v11, %v8823_v60 }
 0xaf1   :  { %v14031_v19 = vadd.f32 %v9347_v11, %v8824_v10  ;;  %v14037_v40 = vadd.f32 %v9347_v11, %v8825_v51 }
 0xaf2   :  { %v8849_v46 = vmul.f32 0.03125, %v8848_v16  ;;  %v8862_v57 = vadd.f32 %v8861_v56, %v8860_v34  ;;  %v8877_v58 = vadd.f32 %v14029_v27, %v14027_v14  ;;  %v8887_v32 = vmul.f32 %v14027_v14, %v14027_v14 }
 0xaf3   :  { %v8888_v20 = vmul.f32 %v14029_v27, %v14029_v27  ;;  %v8889_v55 = vmul.f32 %v14031_v19, %v14031_v19  ;;  %v8890_v8 = vmul.f32 %v14037_v40, %v14037_v40 }
 0xaf4   :  { %v8863_v15 = vmul.f32 0.03125, %v8862_v57  ;;  %v8864_v4 = vmul.f32 %v8849_v46, %v8849_v46  ;;  %v8867_v44 = vsub.f32 %v14007_v47, %v8849_v46  ;;  %v8868_v23 = vsub.f32 %v14009_v54, %v8849_v46 }
 0xaf5   :  { %v8869_v53 = vsub.f32 %v14011_v59, %v8849_v46  ;;  %v8870_v13 = vsub.f32 %v14013_v43, %v8849_v46  ;;  %v8878_v63 = vadd.f32 %v8877_v58, %v14031_v19  ;;  %v8891_v11 = vadd.f32 %v8888_v20, %v8887_v32  ;;  %v9208_v43 = vld [vmem:[%s14115_s2 + $0x1f] ss:$0 sm:$0xff] }
 0xaf6   :  { %v8865_v30 = vsub.f32 %v8863_v15, %v8864_v4  ;;  %v5780_v5 = vmul.f32 %v9208_v43, %v13245_v42  ;;  %v5777_v29 = vmul.f32 %v9208_v43, %v13443_v36  ;;  %v5778_v17 = vmul.f32 %v9208_v43, %v13460_v24  ;;  %v9348_v24 = vld [vmem:[%s14115_s2 + $0x1f] ss:$0 sm:$0xff] }
 0xaf7   :  { %v8879_v22 = vadd.f32 %v8878_v63, %v14037_v40  ;;  %v8892_v31 = vadd.f32 %v8891_v11, %v8889_v55  ;;  %v5779_v2 = vmul.f32 %v9208_v43, %v13239_v33 }
 0xaf8   :  { %v8866_v1 = vmax.f32 %v8865_v30, 0.0  ;;  %v5789_v61 = vadd.f32 %v14060_v45, %v5777_v29  ;;  %v5790_v42 = vadd.f32 %v14060_v45, %v5778_v17  ;;  %v5792_v36 = vadd.f32 %v14060_v45, %v5780_v5 }
 0xaf9   :  { %v8880_v38 = vrot.slane %v8879_v22, 4  ;;  %v8893_v3 = vadd.f32 %v8892_v31, %v8890_v8  ;;  %v5791_v57 = vadd.f32 %v14060_v45, %v5779_v2  ;;  %v5784_v8 = vmul.f32 %v9208_v43, %v13365_v62 }
 0xafa   :  { %v8871_v47 = vadd.f32 1e-05, %v8866_v1  ;;  %v5781_v31 = vmul.f32 %v9208_v43, %v13467_v37  ;;  %v5782_v1 = vmul.f32 %v9208_v43, %v13473_v7 }
 0xafb   :  { %v8881_v9 = vadd.f32 %v8880_v38, %v8879_v22  ;;  %v8894_v54 = vrot.slane %v8893_v3, 4  ;;  %v5783_v38 = vmul.f32 %v9208_v43, %v13359_v28  ;;  %v5796_v37 = vadd.f32 %v14060_v45, %v5784_v8 }
 0xafc   :  { %10667 = vrsqrt.f32 %v8871_v47 }
 0xafd   :  { %v8882_v59 = vrot.slane %v8881_v9, 2  ;;  %v8895_v0 = vadd.f32 %v8894_v54, %v8893_v3  ;;  %v5795_v62 = vadd.f32 %v14060_v45, %v5783_v38 }
 0xaff   :  { %v8883_v41 = vadd.f32 %v8882_v59, %v8881_v9  ;;  %v8896_v52 = vrot.slane %v8895_v0, 2 }
 0xb01   :  { %v8884_v12 = vrot.slane %v8883_v41, 1  ;;  %v8897_v26 = vadd.f32 %v8896_v52, %v8895_v0 }
 0xb03   :  { %v8885_v6 = vadd.f32 %v8884_v12, %v8883_v41  ;;  %v8898_v25 = vrot.slane %v8897_v26, 1  ;;  %v5793_v12 = vadd.f32 %v14060_v45, %v5781_v31 }
 0xb05   :  { %v8886_v18 = vmul.f32 0.03125, %v8885_v6  ;;  %v8899_v39 = vadd.f32 %v8898_v25, %v8897_v26  ;;  %v5794_v26 = vadd.f32 %v14060_v45, %v5782_v1 }
 0xb06   :  { %v10668_v50 = vpop.eup %10667 }
 0xb07   :  { %v8873_v35 = vmul.f32 %v10668_v50, %v8867_v44  ;;  %v8874_v48 = vmul.f32 %v10668_v50, %v8868_v23  ;;  %v8875_v49 = vmul.f32 %v10668_v50, %v8869_v53  ;;  %v8876_v34 = vmul.f32 %v10668_v50, %v8870_v13 }
 0xb08   :  { %v8900_v21 = vmul.f32 0.03125, %v8899_v39  ;;  %v8901_v60 = vmul.f32 %v8886_v18, %v8886_v18  ;;  %v8904_v10 = vsub.f32 %v14027_v14, %v8886_v18  ;;  %v8905_v33 = vsub.f32 %v14029_v27, %v8886_v18 }
 0xb09   :  { %v8918_v51 = vmul.f32 %v9348_v24, %v8873_v35  ;;  %v8919_v16 = vmul.f32 %v9348_v24, %v8874_v48  ;;  %v8920_v56 = vmul.f32 %v9348_v24, %v8875_v49  ;;  %v8921_v46 = vmul.f32 %v9348_v24, %v8876_v34 }
 0xb0a   :  { %v8902_v58 = vsub.f32 %v8900_v21, %v8901_v60  ;;  %v8906_v32 = vsub.f32 %v14031_v19, %v8886_v18  ;;  %v8907_v20 = vsub.f32 %v14037_v40, %v8886_v18 }
 0xb0b   :  { %v8930_v55 = vadd.f32 %v14060_v45, %v8918_v51  ;;  %v8931_v15 = vadd.f32 %v14060_v45, %v8919_v16  ;;  %v8932_v4 = vadd.f32 %v14060_v45, %v8920_v56  ;;  %v8933_v14 = vadd.f32 %v14060_v45, %v8921_v46 }
 0xb0c   :  { %v8903_v27 = vmax.f32 %v8902_v58, 0.0 }
 0xb0d   :  { %v8938_v44 = vadd.f32 %v8930_v55, %v5789_v61  ;;  %v8939_v23 = vadd.f32 %v8931_v15, %v5790_v42  ;;  %v8940_v53 = vadd.f32 %v8932_v4, %v5791_v57  ;;  %v8941_v13 = vadd.f32 %v8933_v14, %v5792_v36 }
 0xb0e   :  { %v8908_v63 = vadd.f32 1e-05, %v8903_v27 }
 0xb0f   :  { %v8946_v11 = vmax.f32 %v8938_v44, 0.0  ;;  %v8947_v30 = vmax.f32 %v8939_v23, 0.0  ;;  %v8948_v22 = vmax.f32 %v8940_v53, 0.0  ;;  %v8949_v19 = vmax.f32 %v8941_v13, 0.0 }
 0xb10   :  { %10669 = vrsqrt.f32 %v8908_v63 }
 0xb11   :  { %8954 = vst [vmem:[%s14117_s3] sm:$0xff] %v8946_v11  ;;  %8955 = vst [vmem:[%s14117_s3 + $0x8] sm:$0xff] %v8947_v30 }
 0xb12   :  { %9350 = vst [vmem:[%s14117_s3 + $0x10] sm:$0xff] %v8948_v22  ;;  %9351 = vst [vmem:[%s14117_s3 + $0x18] sm:$0xff] %v8949_v19 }
 0xb1a   :  { %v10670_v40 = vpop.eup %10669 }
 0xb1b   :  { %v8910_v3 = vmul.f32 %v10670_v40, %v8904_v10  ;;  %v8911_v47 = vmul.f32 %v10670_v40, %v8905_v33  ;;  %v8912_v9 = vmul.f32 %v10670_v40, %v8906_v32  ;;  %v8913_v54 = vmul.f32 %v10670_v40, %v8907_v20 }
 0xb1d   :  { %v8922_v59 = vmul.f32 %v9348_v24, %v8910_v3  ;;  %v8923_v0 = vmul.f32 %v9348_v24, %v8911_v47  ;;  %v8924_v41 = vmul.f32 %v9348_v24, %v8912_v9  ;;  %v8925_v52 = vmul.f32 %v9348_v24, %v8913_v54 }
 0xb1f   :  { %v8934_v7 = vadd.f32 %v14060_v45, %v8922_v59  ;;  %v8935_v28 = vadd.f32 %v14060_v45, %v8923_v0  ;;  %v8936_v43 = vadd.f32 %v14060_v45, %v8924_v41  ;;  %v8937_v5 = vadd.f32 %v14060_v45, %v8925_v52 }
 0xb21   :  { %v8942_v29 = vadd.f32 %v8934_v7, %v5793_v12  ;;  %v8943_v17 = vadd.f32 %v8935_v28, %v5794_v26  ;;  %v8944_v6 = vadd.f32 %v8936_v43, %v5795_v62  ;;  %v8945_v25 = vadd.f32 %v8937_v5, %v5796_v37 }
 0xb23   :  { %v8950_v18 = vmax.f32 %v8942_v29, 0.0  ;;  %v8951_v39 = vmax.f32 %v8943_v17, 0.0  ;;  %v8952_v50 = vmax.f32 %v8944_v6, 0.0  ;;  %v8953_v2 = vmax.f32 %v8945_v25, 0.0 }
 0xb25   :  { %9352 = vst [vmem:[%s14117_s3 + $0x20] sm:$0xff] %v8950_v18  ;;  %9353 = vst [vmem:[%s14117_s3 + $0x28] sm:$0xff] %v8951_v39 }
 0xb26   :  { %9354 = vst [vmem:[%s14117_s3 + $0x30] sm:$0xff] %v8952_v50  ;;  %9355 = vst [vmem:[%s14117_s3 + $0x38] sm:$0xff] %v8953_v2 }

</bundles_post_ra>
